<compile_context>
chip_gen: v5e
topology: v5e:2x2
jax: 0.10.0
libtpu: 0.0.40
codegen_flags: <defaults>
</compile_context>

<pallas_src>
import jax
import jax.numpy as jnp
import numpy as np
from jax.experimental import pallas as pl
from jax.experimental.pallas import tpu as pltpu

# Geometry implied by the module (feature_map_size = 128*4*4 -> 32x32 input).
_HW0 = 32                      # input spatial size
_C = (3, 32, 64, 128)          # channels: input, after L1, after L2, after L3
_KPAD = 128                    # per-tap channel padding (lane width) for L2/L3 im2col


# ----------------------------------------------------------------------------
# in-kernel helpers
# ----------------------------------------------------------------------------
def _conv_relu_pool(patches, w, b, H, W, C, y_scr, t_scr):
    """Conv (single matmul on prebuilt patches) + bias + ReLU + 2x2/2 maxpool.

    patches : (H*W, K) value          rows ordered p = h*W + w
    w       : (K, C) value,  b : (1, C) value
    y_scr   : VMEM (H, W, C)          conv+relu result
    t_scr   : VMEM ((H//2)*W, C)      H-pooled result, flattened
    returns : ((H//2)*(W//2), C) value, rows ordered h'*(W//2) + w'
    """
    z = jnp.dot(patches, w, preferred_element_type=jnp.float32) + b
    z = jnp.maximum(z, 0.0)
    y_scr[...] = z.reshape(H, W, C)
    # pool over H: max of even/odd rows (stride-2 reads on the leading axis)
    row_max = jnp.maximum(y_scr[pl.ds(0, H // 2, 2), :, :],
                          y_scr[pl.ds(1, H // 2, 2), :, :])            # (H/2, W, C)
    t_scr[...] = row_max.reshape((H // 2) * W, C)
    # pool over W: on the flattened (h'*W + w) axis even/odd w are stride-2 rows
    n = (H // 2) * (W // 2)
    return jnp.maximum(t_scr[pl.ds(0, n, 2), :], t_scr[pl.ds(1, n, 2), :])


def _im2col(x_flat, Hh, Wh, Cin, xp_scr, p_scr):
    """Zero-pad spatially in VMEM and build a (Hh*Wh, 9*128) patch matrix.

    x_flat : (Hh*Wh, Cin) value (rows ordered h*Wh + w)
    xp_scr : VMEM (Hh+2, Wh+2, 128)  -- channels >= Cin stay zero
    p_scr  : VMEM (Hh*Wh, 9*128)     -- per-tap lane-aligned 128-wide slots
    """
    xp_scr[...] = jnp.zeros(xp_scr.shape, xp_scr.dtype)
    xp_scr[pl.ds(1, Hh), pl.ds(1, Wh), pl.ds(0, Cin)] = x_flat.reshape(Hh, Wh, Cin)
    for dy in range(3):
        for dx in range(3):
            tap = dy * 3 + dx
            piece = xp_scr[pl.ds(dy, Hh), pl.ds(dx, Wh), :]            # (Hh, Wh, 128)
            p_scr[:, pl.ds(tap * _KPAD, _KPAD)] = piece.reshape(Hh * Wh, _KPAD)
    return p_scr[...]


def _fused_kernel(p1_ref, w1_ref, b1_ref, w2_ref, b2_ref, w3_ref, b3_ref,
                  o_ref,
                  y1_scr, t1_scr, xp2_scr, p2_scr, y2_scr, t2_scr,
                  xp3_scr, p3_scr, y3_scr, t3_scr):
    c1, c2, c3 = _C[1], _C[2], _C[3]
    h1, h2, h3 = _HW0, _HW0 // 2, _HW0 // 4                            # 32, 16, 8

    # ---- layer 1: K=27 im2col matrix prepacked by the wrapper ---------------
    pooled1 = _conv_relu_pool(p1_ref[...], w1_ref[...], b1_ref[...],
                              h1, h1, c1, y1_scr, t1_scr)              # (256, 32)

    # ---- layer 2 -------------------------------------------------------------
    patches2 = _im2col(pooled1, h2, h2, c1, xp2_scr, p2_scr)           # (256, 1152)
    pooled2 = _conv_relu_pool(patches2, w2_ref[...], b2_ref[...],
                              h2, h2, c2, y2_scr, t2_scr)              # (64, 64)

    # ---- layer 3 -------------------------------------------------------------
    patches3 = _im2col(pooled2, h3, h3, c2, xp3_scr, p3_scr)           # (64, 1152)
    pooled3 = _conv_relu_pool(patches3, w3_ref[...], b3_ref[...],
                              h3, h3, c3, y3_scr, t3_scr)              # (16, 128)

    # torch flattens NCHW -> (C, H, W) order; transpose so the host reshape is free.
    o_ref[...] = pooled3.T                                             # (128, 16)


# ----------------------------------------------------------------------------
# wrapper
# ----------------------------------------------------------------------------
def _pack_w_padded(w):
    """(Cout, Cin, 3, 3) OIHW -> (9*128, Cout); rows ordered tap*128 + ci, Cin->128 zero-pad."""
    cin, cout = w.shape[1], w.shape[0]
    wt = jnp.transpose(w, (2, 3, 1, 0))                                # (3,3,cin,cout)
    wt = jnp.pad(wt, ((0, 0), (0, 0), (0, _KPAD - cin), (0, 0)))
    return wt.reshape(9 * _KPAD, cout).astype(jnp.float32)


def _build_pallas_forward(B):
    h1 = _HW0
    h2, h3 = h1 // 2, h1 // 4
    c0, c1, c2, c3 = _C
    k1 = 9 * c0                                                        # 27
    kp = 9 * _KPAD                                                     # 1152

    return pl.pallas_call(
        _fused_kernel,
        out_shape=jax.ShapeDtypeStruct((B, c3, (h3 // 2) ** 2), jnp.float32),
        grid_spec=pltpu.PrefetchScalarGridSpec(
            num_scalar_prefetch=0,
            grid=(B,),
            in_specs=[
                pl.BlockSpec((None, h1 * h1, k1), lambda b: (b, 0, 0)),
                pl.BlockSpec((k1, c1), lambda b: (0, 0)),
                pl.BlockSpec((1, c1), lambda b: (0, 0)),
                pl.BlockSpec((kp, c2), lambda b: (0, 0)),
                pl.BlockSpec((1, c2), lambda b: (0, 0)),
                pl.BlockSpec((kp, c3), lambda b: (0, 0)),
                pl.BlockSpec((1, c3), lambda b: (0, 0)),
            ],
            out_specs=pl.BlockSpec((None, c3, (h3 // 2) ** 2), lambda b: (b, 0, 0)),
            scratch_shapes=[
                pltpu.VMEM((h1, h1, c1), jnp.float32),                 # y1 conv out
                pltpu.VMEM(((h1 // 2) * h1, c1), jnp.float32),         # t1 pool tmp
                pltpu.VMEM((h2 + 2, h2 + 2, _KPAD), jnp.float32),      # xp2 padded in
                pltpu.VMEM((h2 * h2, kp), jnp.float32),                # p2 patches
                pltpu.VMEM((h2, h2, c2), jnp.float32),                 # y2 conv out
                pltpu.VMEM(((h2 // 2) * h2, c2), jnp.float32),         # t2 pool tmp
                pltpu.VMEM((h3 + 2, h3 + 2, _KPAD), jnp.float32),      # xp3 padded in
                pltpu.VMEM((h3 * h3, kp), jnp.float32),                # p3 patches
                pltpu.VMEM((h3, h3, c3), jnp.float32),                 # y3 conv out
                pltpu.VMEM(((h3 // 2) * h3, c3), jnp.float32),         # t3 pool tmp
            ],
        ),
        compiler_params=pltpu.CompilerParams(
            dimension_semantics=("parallel",),
            vmem_limit_bytes=32 * 1024 * 1024,
        ),
    )


@jax.jit
def feature_extractor_forward(x_nchw, params):
    """FeatureExtractor.forward (pretrained=False): NCHW input -> (B, 128*4*4)."""
    (w1, b1), (w2, b2), (w3, b3) = params
    B, c_in, H, W = x_nchw.shape
    assert (c_in, H, W) == (_C[0], _HW0, _HW0)

    x = jnp.transpose(x_nchw.astype(jnp.float32), (0, 2, 3, 1))        # NHWC
    xp = jnp.pad(x, ((0, 0), (1, 1), (1, 1), (0, 0)))
    # layer-1 im2col done once in XLA (K = 27), column order (tap, ci), tap = dy*3+dx,
    # so the kernel never touches a 3-lane-wide tensor.
    p1 = jnp.concatenate(
        [xp[:, dy:dy + H, dx:dx + W, :] for dy in range(3) for dx in range(3)],
        axis=-1,
    ).reshape(B, H * W, 9 * c_in)

    w1m = jnp.transpose(w1, (2, 3, 1, 0)).reshape(9 * _C[0], _C[1]).astype(jnp.float32)
    w2m = _pack_w_padded(w2)                                           # (1152, 64)
    w3m = _pack_w_padded(w3)                                           # (1152, 128)
    b1m = b1.reshape(1, -1).astype(jnp.float32)
    b2m = b2.reshape(1, -1).astype(jnp.float32)
    b3m = b3.reshape(1, -1).astype(jnp.float32)

    out = _build_pallas_forward(B)(p1, w1m, b1m, w2m, b2m, w3m, b3m)   # (B, 128, 16)
    # torch's out.view(B, -1) on NCHW == flatten in (C, H, W) order == this reshape.
    return out.reshape(B, -1)


# ----------------------------------------------------------------------------
# params / reference / test
# ----------------------------------------------------------------------------
def init_params(key):
    """Deterministic Conv2d params (PyTorch default-style uniform init)."""
    specs = [(3, 32), (32, 64), (64, 128)]
    params = []
    for i, (cin, cout) in enumerate(specs):
        kw, kb = jax.random.split(jax.random.fold_in(key, i))
        bound = 1.0 / np.sqrt(cin * 9)
        w = jax.random.uniform(kw, (cout, cin, 3, 3), jnp.float32, -bound, bound)
        b = jax.random.uniform(kb, (cout,), jnp.float32, -bound, bound)
        params.append((w, b))
    return params


def reference_forward(x_nchw, params):
    """Pure-JAX reference (lax.conv + reduce_window) for correctness checking."""
    x = x_nchw.astype(jnp.float32)
    for w, b in params:
        x = jax.lax.conv_general_dilated(
            x, w, window_strides=(1, 1), padding=((1, 1), (1, 1)),
            dimension_numbers=("NCHW", "OIHW", "NCHW"))
        x = jnp.maximum(x + b[None, :, None, None], 0.0)
        x = jax.lax.reduce_window(x, -jnp.inf, jax.lax.max,
                                  (1, 1, 2, 2), (1, 1, 2, 2), "VALID")
    return x.reshape(x.shape[0], -1)


if __name__ == "__main__":
    key = jax.random.PRNGKey(0)
    k_x, k_p = jax.random.split(key)

    # input consistent with feature_map_size = 128 * 4 * 4  ->  32x32 RGB images
    x = jax.random.normal(k_x, (2, 3, 32, 32), jnp.float32)
    params = init_params(k_p)

    out = feature_extractor_forward(x, params)
    out = jax.block_until_ready(out)

    assert out.shape == (2, 128 * 4 * 4), out.shape
    assert not bool(jnp.isnan(out).any()), "NaN detected in output of feature layer!"

    ref = jax.block_until_ready(reference_forward(x, params))
    np.testing.assert_allclose(np.asarray(out), np.asarray(ref), rtol=1e-4, atol=1e-4)

    print("KERNEL_OK")
</pallas_src>

<mosaic_0001>
module attributes {stable_mosaic.version = 11 : i64} {
  func.func @_fused_kernel(%arg0: i32, %arg1: memref<1x1024x27xf32, #tpu.memory_space<vmem>>, %arg2: memref<27x32xf32, #tpu.memory_space<vmem>>, %arg3: memref<1x32xf32, #tpu.memory_space<vmem>>, %arg4: memref<1152x64xf32, #tpu.memory_space<vmem>>, %arg5: memref<1x64xf32, #tpu.memory_space<vmem>>, %arg6: memref<1152x128xf32, #tpu.memory_space<vmem>>, %arg7: memref<1x128xf32, #tpu.memory_space<vmem>>, %arg8: memref<1x128x16xf32, #tpu.memory_space<vmem>>, %arg9: memref<32x32x32xf32, #tpu.memory_space<vmem>>, %arg10: memref<512x32xf32, #tpu.memory_space<vmem>>, %arg11: memref<18x18x128xf32, #tpu.memory_space<vmem>>, %arg12: memref<256x1152xf32, #tpu.memory_space<vmem>>, %arg13: memref<16x16x64xf32, #tpu.memory_space<vmem>>, %arg14: memref<128x64xf32, #tpu.memory_space<vmem>>, %arg15: memref<10x10x128xf32, #tpu.memory_space<vmem>>, %arg16: memref<64x1152xf32, #tpu.memory_space<vmem>>, %arg17: memref<8x8x128xf32, #tpu.memory_space<vmem>>, %arg18: memref<32x128xf32, #tpu.memory_space<vmem>>) attributes {dimension_semantics = [#tpu.dimension_semantics<parallel>], iteration_bounds = array<i64: 2>, scalar_prefetch = 0 : i64, scratch_operands = 10 : i64, tpu.core_type = #tpu.core_type<tc>, window_params = [{transform_indices = @transform_0, window_bounds = array<i64: 1, 1024, 27>}, {pipeline_mode = #tpu.pipeline_mode<synchronous>, transform_indices = @transform_1, window_bounds = array<i64: 27, 32>}, {pipeline_mode = #tpu.pipeline_mode<synchronous>, transform_indices = @transform_2, window_bounds = array<i64: 1, 32>}, {pipeline_mode = #tpu.pipeline_mode<synchronous>, transform_indices = @transform_3, window_bounds = array<i64: 1152, 64>}, {pipeline_mode = #tpu.pipeline_mode<synchronous>, transform_indices = @transform_4, window_bounds = array<i64: 1, 64>}, {pipeline_mode = #tpu.pipeline_mode<synchronous>, transform_indices = @transform_5, window_bounds = array<i64: 1152, 128>}, {pipeline_mode = #tpu.pipeline_mode<synchronous>, transform_indices = @transform_6, window_bounds = array<i64: 1, 128>}, {transform_indices = @transform_7, window_bounds = array<i64: 1, 128, 16>}]} {
    %c0 = arith.constant 0 : index
    %c0_0 = arith.constant 0 : index
    %c0_1 = arith.constant 0 : index
    %0 = vector.load %arg1[%c0, %c0_0, %c0_1] : memref<1x1024x27xf32, #tpu.memory_space<vmem>>, vector<1x1024x27xf32>
    %1 = vector.shape_cast %0 : vector<1x1024x27xf32> to vector<1024x27xf32>
    %c0_2 = arith.constant 0 : index
    %c0_3 = arith.constant 0 : index
    %2 = vector.load %arg2[%c0_2, %c0_3] : memref<27x32xf32, #tpu.memory_space<vmem>>, vector<27x32xf32>
    %c0_4 = arith.constant 0 : index
    %c0_5 = arith.constant 0 : index
    %3 = vector.load %arg3[%c0_4, %c0_5] : memref<1x32xf32, #tpu.memory_space<vmem>>, vector<1x32xf32>
    %cst = arith.constant dense<0.000000e+00> : vector<1024x32xf32>
    %4 = tpu.matmul %1, %2, %cst {dimension_numbers = #tpu.dot_dimension_numbers<[1], [0], [0], [1], [0, 0, 1, 1], [], []>} : vector<1024x27xf32>, vector<27x32xf32>, vector<1024x32xf32> -> vector<1024x32xf32>
    %5 = vector.broadcast %3 : vector<1x32xf32> to vector<1024x32xf32>
    %6 = arith.addf %4, %5 : vector<1024x32xf32>
    %cst_6 = arith.constant 0.000000e+00 : f32
    %7 = vector.broadcast %cst_6 : f32 to vector<1024x32xf32>
    %8 = arith.maximumf %6, %7 : vector<1024x32xf32>
    %9 = vector.shape_cast %8 : vector<1024x32xf32> to vector<32x32x32xf32>
    %c0_7 = arith.constant 0 : index
    %c0_8 = arith.constant 0 : index
    %c0_9 = arith.constant 0 : index
    %10 = vector.load %arg9[%c0_7, %c0_8, %c0_9] : memref<32x32x32xf32, #tpu.memory_space<vmem>>, vector<32x32x32xf32>
    tpu.vector_store %arg9[%c0_7, %c0_8, %c0_9], %9 {strides = array<i32>} : memref<32x32x32xf32, #tpu.memory_space<vmem>>, vector<32x32x32xf32>,
    %c0_10 = arith.constant 0 : index
    %c0_11 = arith.constant 0 : index
    %c0_12 = arith.constant 0 : index
    %11 = tpu.strided_load %arg9[%c0_10, %c0_11, %c0_12] {strides = array<i32: 2, 1, 1>} : memref<32x32x32xf32, #tpu.memory_space<vmem>>, vector<16x32x32xf32>
    %c1 = arith.constant 1 : index
    %c0_13 = arith.constant 0 : index
    %c0_14 = arith.constant 0 : index
    %12 = tpu.strided_load %arg9[%c1, %c0_13, %c0_14] {strides = array<i32: 2, 1, 1>} : memref<32x32x32xf32, #tpu.memory_space<vmem>>, vector<16x32x32xf32>
    %13 = arith.maximumf %11, %12 : vector<16x32x32xf32>
    %14 = vector.shape_cast %13 : vector<16x32x32xf32> to vector<512x32xf32>
    %c0_15 = arith.constant 0 : index
    %c0_16 = arith.constant 0 : index
    %15 = vector.load %arg10[%c0_15, %c0_16] : memref<512x32xf32, #tpu.memory_space<vmem>>, vector<512x32xf32>
    tpu.vector_store %arg10[%c0_15, %c0_16], %14 {strides = array<i32>} : memref<512x32xf32, #tpu.memory_space<vmem>>, vector<512x32xf32>,
    %c0_17 = arith.constant 0 : index
    %c0_18 = arith.constant 0 : index
    %16 = tpu.strided_load %arg10[%c0_17, %c0_18] {strides = array<i32: 2, 1>} : memref<512x32xf32, #tpu.memory_space<vmem>>, vector<256x32xf32>
    %c1_19 = arith.constant 1 : index
    %c0_20 = arith.constant 0 : index
    %17 = tpu.strided_load %arg10[%c1_19, %c0_20] {strides = array<i32: 2, 1>} : memref<512x32xf32, #tpu.memory_space<vmem>>, vector<256x32xf32>
    %18 = arith.maximumf %16, %17 : vector<256x32xf32>
    %cst_21 = arith.constant 0.000000e+00 : f32
    %19 = vector.broadcast %cst_21 : f32 to vector<18x18x128xf32>
    %c0_22 = arith.constant 0 : index
    %c0_23 = arith.constant 0 : index
    %c0_24 = arith.constant 0 : index
    %20 = vector.load %arg11[%c0_22, %c0_23, %c0_24] : memref<18x18x128xf32, #tpu.memory_space<vmem>>, vector<18x18x128xf32>
    tpu.vector_store %arg11[%c0_22, %c0_23, %c0_24], %19 {strides = array<i32>} : memref<18x18x128xf32, #tpu.memory_space<vmem>>, vector<18x18x128xf32>,
    %21 = vector.shape_cast %18 : vector<256x32xf32> to vector<16x16x32xf32>
    %c1_25 = arith.constant 1 : index
    %c1_26 = arith.constant 1 : index
    %c0_27 = arith.constant 0 : index
    %22 = vector.load %arg11[%c1_25, %c1_26, %c0_27] : memref<18x18x128xf32, #tpu.memory_space<vmem>>, vector<16x16x32xf32>
    tpu.vector_store %arg11[%c1_25, %c1_26, %c0_27], %21 {strides = array<i32>} : memref<18x18x128xf32, #tpu.memory_space<vmem>>, vector<16x16x32xf32>,
    %c0_28 = arith.constant 0 : index
    %c0_29 = arith.constant 0 : index
    %c0_30 = arith.constant 0 : index
    %23 = vector.load %arg11[%c0_28, %c0_29, %c0_30] : memref<18x18x128xf32, #tpu.memory_space<vmem>>, vector<16x16x128xf32>
    %24 = vector.shape_cast %23 : vector<16x16x128xf32> to vector<256x128xf32>
    %c0_31 = arith.constant 0 : index
    %c0_32 = arith.constant 0 : index
    %25 = vector.load %arg12[%c0_31, %c0_32] : memref<256x1152xf32, #tpu.memory_space<vmem>>, vector<256x128xf32>
    tpu.vector_store %arg12[%c0_31, %c0_32], %24 {strides = array<i32>} : memref<256x1152xf32, #tpu.memory_space<vmem>>, vector<256x128xf32>,
    %c0_33 = arith.constant 0 : index
    %c1_34 = arith.constant 1 : index
    %c0_35 = arith.constant 0 : index
    %26 = vector.load %arg11[%c0_33, %c1_34, %c0_35] : memref<18x18x128xf32, #tpu.memory_space<vmem>>, vector<16x16x128xf32>
    %27 = vector.shape_cast %26 : vector<16x16x128xf32> to vector<256x128xf32>
    %c0_36 = arith.constant 0 : index
    %c128 = arith.constant 128 : index
    %28 = vector.load %arg12[%c0_36, %c128] : memref<256x1152xf32, #tpu.memory_space<vmem>>, vector<256x128xf32>
    tpu.vector_store %arg12[%c0_36, %c128], %27 {strides = array<i32>} : memref<256x1152xf32, #tpu.memory_space<vmem>>, vector<256x128xf32>,
    %c0_37 = arith.constant 0 : index
    %c2 = arith.constant 2 : index
    %c0_38 = arith.constant 0 : index
    %29 = vector.load %arg11[%c0_37, %c2, %c0_38] : memref<18x18x128xf32, #tpu.memory_space<vmem>>, vector<16x16x128xf32>
    %30 = vector.shape_cast %29 : vector<16x16x128xf32> to vector<256x128xf32>
    %c0_39 = arith.constant 0 : index
    %c256 = arith.constant 256 : index
    %31 = vector.load %arg12[%c0_39, %c256] : memref<256x1152xf32, #tpu.memory_space<vmem>>, vector<256x128xf32>
    tpu.vector_store %arg12[%c0_39, %c256], %30 {strides = array<i32>} : memref<256x1152xf32, #tpu.memory_space<vmem>>, vector<256x128xf32>,
    %c1_40 = arith.constant 1 : index
    %c0_41 = arith.constant 0 : index
    %c0_42 = arith.constant 0 : index
    %32 = vector.load %arg11[%c1_40, %c0_41, %c0_42] : memref<18x18x128xf32, #tpu.memory_space<vmem>>, vector<16x16x128xf32>
    %33 = vector.shape_cast %32 : vector<16x16x128xf32> to vector<256x128xf32>
    %c0_43 = arith.constant 0 : index
    %c384 = arith.constant 384 : index
    %34 = vector.load %arg12[%c0_43, %c384] : memref<256x1152xf32, #tpu.memory_space<vmem>>, vector<256x128xf32>
    tpu.vector_store %arg12[%c0_43, %c384], %33 {strides = array<i32>} : memref<256x1152xf32, #tpu.memory_space<vmem>>, vector<256x128xf32>,
    %c1_44 = arith.constant 1 : index
    %c1_45 = arith.constant 1 : index
    %c0_46 = arith.constant 0 : index
    %35 = vector.load %arg11[%c1_44, %c1_45, %c0_46] : memref<18x18x128xf32, #tpu.memory_space<vmem>>, vector<16x16x128xf32>
    %36 = vector.shape_cast %35 : vector<16x16x128xf32> to vector<256x128xf32>
    %c0_47 = arith.constant 0 : index
    %c512 = arith.constant 512 : index
    %37 = vector.load %arg12[%c0_47, %c512] : memref<256x1152xf32, #tpu.memory_space<vmem>>, vector<256x128xf32>
    tpu.vector_store %arg12[%c0_47, %c512], %36 {strides = array<i32>} : memref<256x1152xf32, #tpu.memory_space<vmem>>, vector<256x128xf32>,
    %c1_48 = arith.constant 1 : index
    %c2_49 = arith.constant 2 : index
    %c0_50 = arith.constant 0 : index
    %38 = vector.load %arg11[%c1_48, %c2_49, %c0_50] : memref<18x18x128xf32, #tpu.memory_space<vmem>>, vector<16x16x128xf32>
    %39 = vector.shape_cast %38 : vector<16x16x128xf32> to vector<256x128xf32>
    %c0_51 = arith.constant 0 : index
    %c640 = arith.constant 640 : index
    %40 = vector.load %arg12[%c0_51, %c640] : memref<256x1152xf32, #tpu.memory_space<vmem>>, vector<256x128xf32>
    tpu.vector_store %arg12[%c0_51, %c640], %39 {strides = array<i32>} : memref<256x1152xf32, #tpu.memory_space<vmem>>, vector<256x128xf32>,
    %c2_52 = arith.constant 2 : index
    %c0_53 = arith.constant 0 : index
    %c0_54 = arith.constant 0 : index
    %41 = vector.load %arg11[%c2_52, %c0_53, %c0_54] : memref<18x18x128xf32, #tpu.memory_space<vmem>>, vector<16x16x128xf32>
    %42 = vector.shape_cast %41 : vector<16x16x128xf32> to vector<256x128xf32>
    %c0_55 = arith.constant 0 : index
    %c768 = arith.constant 768 : index
    %43 = vector.load %arg12[%c0_55, %c768] : memref<256x1152xf32, #tpu.memory_space<vmem>>, vector<256x128xf32>
    tpu.vector_store %arg12[%c0_55, %c768], %42 {strides = array<i32>} : memref<256x1152xf32, #tpu.memory_space<vmem>>, vector<256x128xf32>,
    %c2_56 = arith.constant 2 : index
    %c1_57 = arith.constant 1 : index
    %c0_58 = arith.constant 0 : index
    %44 = vector.load %arg11[%c2_56, %c1_57, %c0_58] : memref<18x18x128xf32, #tpu.memory_space<vmem>>, vector<16x16x128xf32>
    %45 = vector.shape_cast %44 : vector<16x16x128xf32> to vector<256x128xf32>
    %c0_59 = arith.constant 0 : index
    %c896 = arith.constant 896 : index
    %46 = vector.load %arg12[%c0_59, %c896] : memref<256x1152xf32, #tpu.memory_space<vmem>>, vector<256x128xf32>
    tpu.vector_store %arg12[%c0_59, %c896], %45 {strides = array<i32>} : memref<256x1152xf32, #tpu.memory_space<vmem>>, vector<256x128xf32>,
    %c2_60 = arith.constant 2 : index
    %c2_61 = arith.constant 2 : index
    %c0_62 = arith.constant 0 : index
    %47 = vector.load %arg11[%c2_60, %c2_61, %c0_62] : memref<18x18x128xf32, #tpu.memory_space<vmem>>, vector<16x16x128xf32>
    %48 = vector.shape_cast %47 : vector<16x16x128xf32> to vector<256x128xf32>
    %c0_63 = arith.constant 0 : index
    %c1024 = arith.constant 1024 : index
    %49 = vector.load %arg12[%c0_63, %c1024] : memref<256x1152xf32, #tpu.memory_space<vmem>>, vector<256x128xf32>
    tpu.vector_store %arg12[%c0_63, %c1024], %48 {strides = array<i32>} : memref<256x1152xf32, #tpu.memory_space<vmem>>, vector<256x128xf32>,
    %c0_64 = arith.constant 0 : index
    %c0_65 = arith.constant 0 : index
    %50 = vector.load %arg12[%c0_64, %c0_65] : memref<256x1152xf32, #tpu.memory_space<vmem>>, vector<256x1152xf32>
    %c0_66 = arith.constant 0 : index
    %c0_67 = arith.constant 0 : index
    %51 = vector.load %arg4[%c0_66, %c0_67] : memref<1152x64xf32, #tpu.memory_space<vmem>>, vector<1152x64xf32>
    %c0_68 = arith.constant 0 : index
    %c0_69 = arith.constant 0 : index
    %52 = vector.load %arg5[%c0_68, %c0_69] : memref<1x64xf32, #tpu.memory_space<vmem>>, vector<1x64xf32>
    %cst_70 = arith.constant dense<0.000000e+00> : vector<256x64xf32>
    %53 = tpu.matmul %50, %51, %cst_70 {dimension_numbers = #tpu.dot_dimension_numbers<[1], [0], [0], [1], [0, 0, 1, 1], [], []>} : vector<256x1152xf32>, vector<1152x64xf32>, vector<256x64xf32> -> vector<256x64xf32>
    %54 = vector.broadcast %52 : vector<1x64xf32> to vector<256x64xf32>
    %55 = arith.addf %53, %54 : vector<256x64xf32>
    %cst_71 = arith.constant 0.000000e+00 : f32
    %56 = vector.broadcast %cst_71 : f32 to vector<256x64xf32>
    %57 = arith.maximumf %55, %56 : vector<256x64xf32>
    %58 = vector.shape_cast %57 : vector<256x64xf32> to vector<16x16x64xf32>
    %c0_72 = arith.constant 0 : index
    %c0_73 = arith.constant 0 : index
    %c0_74 = arith.constant 0 : index
    %59 = vector.load %arg13[%c0_72, %c0_73, %c0_74] : memref<16x16x64xf32, #tpu.memory_space<vmem>>, vector<16x16x64xf32>
    tpu.vector_store %arg13[%c0_72, %c0_73, %c0_74], %58 {strides = array<i32>} : memref<16x16x64xf32, #tpu.memory_space<vmem>>, vector<16x16x64xf32>,
    %c0_75 = arith.constant 0 : index
    %c0_76 = arith.constant 0 : index
    %c0_77 = arith.constant 0 : index
    %60 = tpu.strided_load %arg13[%c0_75, %c0_76, %c0_77] {strides = array<i32: 2, 1, 1>} : memref<16x16x64xf32, #tpu.memory_space<vmem>>, vector<8x16x64xf32>
    %c1_78 = arith.constant 1 : index
    %c0_79 = arith.constant 0 : index
    %c0_80 = arith.constant 0 : index
    %61 = tpu.strided_load %arg13[%c1_78, %c0_79, %c0_80] {strides = array<i32: 2, 1, 1>} : memref<16x16x64xf32, #tpu.memory_space<vmem>>, vector<8x16x64xf32>
    %62 = arith.maximumf %60, %61 : vector<8x16x64xf32>
    %63 = vector.shape_cast %62 : vector<8x16x64xf32> to vector<128x64xf32>
    %c0_81 = arith.constant 0 : index
    %c0_82 = arith.constant 0 : index
    %64 = vector.load %arg14[%c0_81, %c0_82] : memref<128x64xf32, #tpu.memory_space<vmem>>, vector<128x64xf32>
    tpu.vector_store %arg14[%c0_81, %c0_82], %63 {strides = array<i32>} : memref<128x64xf32, #tpu.memory_space<vmem>>, vector<128x64xf32>,
    %c0_83 = arith.constant 0 : index
    %c0_84 = arith.constant 0 : index
    %65 = tpu.strided_load %arg14[%c0_83, %c0_84] {strides = array<i32: 2, 1>} : memref<128x64xf32, #tpu.memory_space<vmem>>, vector<64x64xf32>
    %c1_85 = arith.constant 1 : index
    %c0_86 = arith.constant 0 : index
    %66 = tpu.strided_load %arg14[%c1_85, %c0_86] {strides = array<i32: 2, 1>} : memref<128x64xf32, #tpu.memory_space<vmem>>, vector<64x64xf32>
    %67 = arith.maximumf %65, %66 : vector<64x64xf32>
    %cst_87 = arith.constant 0.000000e+00 : f32
    %68 = vector.broadcast %cst_87 : f32 to vector<10x10x128xf32>
    %c0_88 = arith.constant 0 : index
    %c0_89 = arith.constant 0 : index
    %c0_90 = arith.constant 0 : index
    %69 = vector.load %arg15[%c0_88, %c0_89, %c0_90] : memref<10x10x128xf32, #tpu.memory_space<vmem>>, vector<10x10x128xf32>
    tpu.vector_store %arg15[%c0_88, %c0_89, %c0_90], %68 {strides = array<i32>} : memref<10x10x128xf32, #tpu.memory_space<vmem>>, vector<10x10x128xf32>,
    %70 = vector.shape_cast %67 : vector<64x64xf32> to vector<8x8x64xf32>
    %c1_91 = arith.constant 1 : index
    %c1_92 = arith.constant 1 : index
    %c0_93 = arith.constant 0 : index
    %71 = vector.load %arg15[%c1_91, %c1_92, %c0_93] : memref<10x10x128xf32, #tpu.memory_space<vmem>>, vector<8x8x64xf32>
    tpu.vector_store %arg15[%c1_91, %c1_92, %c0_93], %70 {strides = array<i32>} : memref<10x10x128xf32, #tpu.memory_space<vmem>>, vector<8x8x64xf32>,
    %c0_94 = arith.constant 0 : index
    %c0_95 = arith.constant 0 : index
    %c0_96 = arith.constant 0 : index
    %72 = vector.load %arg15[%c0_94, %c0_95, %c0_96] : memref<10x10x128xf32, #tpu.memory_space<vmem>>, vector<8x8x128xf32>
    %73 = vector.shape_cast %72 : vector<8x8x128xf32> to vector<64x128xf32>
    %c0_97 = arith.constant 0 : index
    %c0_98 = arith.constant 0 : index
    %74 = vector.load %arg16[%c0_97, %c0_98] : memref<64x1152xf32, #tpu.memory_space<vmem>>, vector<64x128xf32>
    tpu.vector_store %arg16[%c0_97, %c0_98], %73 {strides = array<i32>} : memref<64x1152xf32, #tpu.memory_space<vmem>>, vector<64x128xf32>,
    %c0_99 = arith.constant 0 : index
    %c1_100 = arith.constant 1 : index
    %c0_101 = arith.constant 0 : index
    %75 = vector.load %arg15[%c0_99, %c1_100, %c0_101] : memref<10x10x128xf32, #tpu.memory_space<vmem>>, vector<8x8x128xf32>
    %76 = vector.shape_cast %75 : vector<8x8x128xf32> to vector<64x128xf32>
    %c0_102 = arith.constant 0 : index
    %c128_103 = arith.constant 128 : index
    %77 = vector.load %arg16[%c0_102, %c128_103] : memref<64x1152xf32, #tpu.memory_space<vmem>>, vector<64x128xf32>
    tpu.vector_store %arg16[%c0_102, %c128_103], %76 {strides = array<i32>} : memref<64x1152xf32, #tpu.memory_space<vmem>>, vector<64x128xf32>,
    %c0_104 = arith.constant 0 : index
    %c2_105 = arith.constant 2 : index
    %c0_106 = arith.constant 0 : index
    %78 = vector.load %arg15[%c0_104, %c2_105, %c0_106] : memref<10x10x128xf32, #tpu.memory_space<vmem>>, vector<8x8x128xf32>
    %79 = vector.shape_cast %78 : vector<8x8x128xf32> to vector<64x128xf32>
    %c0_107 = arith.constant 0 : index
    %c256_108 = arith.constant 256 : index
    %80 = vector.load %arg16[%c0_107, %c256_108] : memref<64x1152xf32, #tpu.memory_space<vmem>>, vector<64x128xf32>
    tpu.vector_store %arg16[%c0_107, %c256_108], %79 {strides = array<i32>} : memref<64x1152xf32, #tpu.memory_space<vmem>>, vector<64x128xf32>,
    %c1_109 = arith.constant 1 : index
    %c0_110 = arith.constant 0 : index
    %c0_111 = arith.constant 0 : index
    %81 = vector.load %arg15[%c1_109, %c0_110, %c0_111] : memref<10x10x128xf32, #tpu.memory_space<vmem>>, vector<8x8x128xf32>
    %82 = vector.shape_cast %81 : vector<8x8x128xf32> to vector<64x128xf32>
    %c0_112 = arith.constant 0 : index
    %c384_113 = arith.constant 384 : index
    %83 = vector.load %arg16[%c0_112, %c384_113] : memref<64x1152xf32, #tpu.memory_space<vmem>>, vector<64x128xf32>
    tpu.vector_store %arg16[%c0_112, %c384_113], %82 {strides = array<i32>} : memref<64x1152xf32, #tpu.memory_space<vmem>>, vector<64x128xf32>,
    %c1_114 = arith.constant 1 : index
    %c1_115 = arith.constant 1 : index
    %c0_116 = arith.constant 0 : index
    %84 = vector.load %arg15[%c1_114, %c1_115, %c0_116] : memref<10x10x128xf32, #tpu.memory_space<vmem>>, vector<8x8x128xf32>
    %85 = vector.shape_cast %84 : vector<8x8x128xf32> to vector<64x128xf32>
    %c0_117 = arith.constant 0 : index
    %c512_118 = arith.constant 512 : index
    %86 = vector.load %arg16[%c0_117, %c512_118] : memref<64x1152xf32, #tpu.memory_space<vmem>>, vector<64x128xf32>
    tpu.vector_store %arg16[%c0_117, %c512_118], %85 {strides = array<i32>} : memref<64x1152xf32, #tpu.memory_space<vmem>>, vector<64x128xf32>,
    %c1_119 = arith.constant 1 : index
    %c2_120 = arith.constant 2 : index
    %c0_121 = arith.constant 0 : index
    %87 = vector.load %arg15[%c1_119, %c2_120, %c0_121] : memref<10x10x128xf32, #tpu.memory_space<vmem>>, vector<8x8x128xf32>
    %88 = vector.shape_cast %87 : vector<8x8x128xf32> to vector<64x128xf32>
    %c0_122 = arith.constant 0 : index
    %c640_123 = arith.constant 640 : index
    %89 = vector.load %arg16[%c0_122, %c640_123] : memref<64x1152xf32, #tpu.memory_space<vmem>>, vector<64x128xf32>
    tpu.vector_store %arg16[%c0_122, %c640_123], %88 {strides = array<i32>} : memref<64x1152xf32, #tpu.memory_space<vmem>>, vector<64x128xf32>,
    %c2_124 = arith.constant 2 : index
    %c0_125 = arith.constant 0 : index
    %c0_126 = arith.constant 0 : index
    %90 = vector.load %arg15[%c2_124, %c0_125, %c0_126] : memref<10x10x128xf32, #tpu.memory_space<vmem>>, vector<8x8x128xf32>
    %91 = vector.shape_cast %90 : vector<8x8x128xf32> to vector<64x128xf32>
    %c0_127 = arith.constant 0 : index
    %c768_128 = arith.constant 768 : index
    %92 = vector.load %arg16[%c0_127, %c768_128] : memref<64x1152xf32, #tpu.memory_space<vmem>>, vector<64x128xf32>
    tpu.vector_store %arg16[%c0_127, %c768_128], %91 {strides = array<i32>} : memref<64x1152xf32, #tpu.memory_space<vmem>>, vector<64x128xf32>,
    %c2_129 = arith.constant 2 : index
    %c1_130 = arith.constant 1 : index
    %c0_131 = arith.constant 0 : index
    %93 = vector.load %arg15[%c2_129, %c1_130, %c0_131] : memref<10x10x128xf32, #tpu.memory_space<vmem>>, vector<8x8x128xf32>
    %94 = vector.shape_cast %93 : vector<8x8x128xf32> to vector<64x128xf32>
    %c0_132 = arith.constant 0 : index
    %c896_133 = arith.constant 896 : index
    %95 = vector.load %arg16[%c0_132, %c896_133] : memref<64x1152xf32, #tpu.memory_space<vmem>>, vector<64x128xf32>
    tpu.vector_store %arg16[%c0_132, %c896_133], %94 {strides = array<i32>} : memref<64x1152xf32, #tpu.memory_space<vmem>>, vector<64x128xf32>,
    %c2_134 = arith.constant 2 : index
    %c2_135 = arith.constant 2 : index
    %c0_136 = arith.constant 0 : index
    %96 = vector.load %arg15[%c2_134, %c2_135, %c0_136] : memref<10x10x128xf32, #tpu.memory_space<vmem>>, vector<8x8x128xf32>
    %97 = vector.shape_cast %96 : vector<8x8x128xf32> to vector<64x128xf32>
    %c0_137 = arith.constant 0 : index
    %c1024_138 = arith.constant 1024 : index
    %98 = vector.load %arg16[%c0_137, %c1024_138] : memref<64x1152xf32, #tpu.memory_space<vmem>>, vector<64x128xf32>
    tpu.vector_store %arg16[%c0_137, %c1024_138], %97 {strides = array<i32>} : memref<64x1152xf32, #tpu.memory_space<vmem>>, vector<64x128xf32>,
    %c0_139 = arith.constant 0 : index
    %c0_140 = arith.constant 0 : index
    %99 = vector.load %arg16[%c0_139, %c0_140] : memref<64x1152xf32, #tpu.memory_space<vmem>>, vector<64x1152xf32>
    %c0_141 = arith.constant 0 : index
    %c0_142 = arith.constant 0 : index
    %100 = vector.load %arg6[%c0_141, %c0_142] : memref<1152x128xf32, #tpu.memory_space<vmem>>, vector<1152x128xf32>
    %c0_143 = arith.constant 0 : index
    %c0_144 = arith.constant 0 : index
    %101 = vector.load %arg7[%c0_143, %c0_144] : memref<1x128xf32, #tpu.memory_space<vmem>>, vector<1x128xf32>
    %cst_145 = arith.constant dense<0.000000e+00> : vector<64x128xf32>
    %102 = tpu.matmul %99, %100, %cst_145 {dimension_numbers = #tpu.dot_dimension_numbers<[1], [0], [0], [1], [0, 0, 1, 1], [], []>} : vector<64x1152xf32>, vector<1152x128xf32>, vector<64x128xf32> -> vector<64x128xf32>
    %103 = vector.broadcast %101 : vector<1x128xf32> to vector<64x128xf32>
    %104 = arith.addf %102, %103 : vector<64x128xf32>
    %cst_146 = arith.constant 0.000000e+00 : f32
    %105 = vector.broadcast %cst_146 : f32 to vector<64x128xf32>
    %106 = arith.maximumf %104, %105 : vector<64x128xf32>
    %107 = vector.shape_cast %106 : vector<64x128xf32> to vector<8x8x128xf32>
    %c0_147 = arith.constant 0 : index
    %c0_148 = arith.constant 0 : index
    %c0_149 = arith.constant 0 : index
    %108 = vector.load %arg17[%c0_147, %c0_148, %c0_149] : memref<8x8x128xf32, #tpu.memory_space<vmem>>, vector<8x8x128xf32>
    tpu.vector_store %arg17[%c0_147, %c0_148, %c0_149], %107 {strides = array<i32>} : memref<8x8x128xf32, #tpu.memory_space<vmem>>, vector<8x8x128xf32>,
    %c0_150 = arith.constant 0 : index
    %c0_151 = arith.constant 0 : index
    %c0_152 = arith.constant 0 : index
    %109 = tpu.strided_load %arg17[%c0_150, %c0_151, %c0_152] {strides = array<i32: 2, 1, 1>} : memref<8x8x128xf32, #tpu.memory_space<vmem>>, vector<4x8x128xf32>
    %c1_153 = arith.constant 1 : index
    %c0_154 = arith.constant 0 : index
    %c0_155 = arith.constant 0 : index
    %110 = tpu.strided_load %arg17[%c1_153, %c0_154, %c0_155] {strides = array<i32: 2, 1, 1>} : memref<8x8x128xf32, #tpu.memory_space<vmem>>, vector<4x8x128xf32>
    %111 = arith.maximumf %109, %110 : vector<4x8x128xf32>
    %112 = vector.shape_cast %111 : vector<4x8x128xf32> to vector<32x128xf32>
    %c0_156 = arith.constant 0 : index
    %c0_157 = arith.constant 0 : index
    %113 = vector.load %arg18[%c0_156, %c0_157] : memref<32x128xf32, #tpu.memory_space<vmem>>, vector<32x128xf32>
    tpu.vector_store %arg18[%c0_156, %c0_157], %112 {strides = array<i32>} : memref<32x128xf32, #tpu.memory_space<vmem>>, vector<32x128xf32>,
    %c0_158 = arith.constant 0 : index
    %c0_159 = arith.constant 0 : index
    %114 = tpu.strided_load %arg18[%c0_158, %c0_159] {strides = array<i32: 2, 1>} : memref<32x128xf32, #tpu.memory_space<vmem>>, vector<16x128xf32>
    %c1_160 = arith.constant 1 : index
    %c0_161 = arith.constant 0 : index
    %115 = tpu.strided_load %arg18[%c1_160, %c0_161] {strides = array<i32: 2, 1>} : memref<32x128xf32, #tpu.memory_space<vmem>>, vector<16x128xf32>
    %116 = arith.maximumf %114, %115 : vector<16x128xf32>
    %117 = tpu.transpose %116, [1, 0] : vector<16x128xf32> -> vector<128x16xf32>
    %c0_162 = arith.constant 0 : index
    %c0_163 = arith.constant 0 : index
    %c0_164 = arith.constant 0 : index
    %118 = vector.load %arg8[%c0_162, %c0_163, %c0_164] : memref<1x128x16xf32, #tpu.memory_space<vmem>>, vector<1x128x16xf32>
    %119 = vector.shape_cast %118 : vector<1x128x16xf32> to vector<128x16xf32>
    %120 = vector.shape_cast %117 : vector<128x16xf32> to vector<1x128x16xf32>
    tpu.vector_store %arg8[%c0_162, %c0_163, %c0_164], %120 {strides = array<i32>} : memref<1x128x16xf32, #tpu.memory_space<vmem>>, vector<1x128x16xf32>,
    return
  }
  func.func @transform_0(%arg0: i32) -> (i32, i32, i32) {
    %c0_i32 = arith.constant 0 : i32
    %c0_i32_0 = arith.constant 0 : i32
    %c0_i32_1 = arith.constant 0 : i32
    return %arg0, %c0_i32, %c0_i32_0 : i32, i32, i32
  }
  func.func @transform_1(%arg0: i32) -> (i32, i32) {
    %c0_i32 = arith.constant 0 : i32
    %c0_i32_0 = arith.constant 0 : i32
    %c0_i32_1 = arith.constant 0 : i32
    return %c0_i32, %c0_i32_0 : i32, i32
  }
  func.func @transform_2(%arg0: i32) -> (i32, i32) {
    %c0_i32 = arith.constant 0 : i32
    %c0_i32_0 = arith.constant 0 : i32
    %c0_i32_1 = arith.constant 0 : i32
    return %c0_i32, %c0_i32_0 : i32, i32
  }
  func.func @transform_3(%arg0: i32) -> (i32, i32) {
    %c0_i32 = arith.constant 0 : i32
    %c0_i32_0 = arith.constant 0 : i32
    %c0_i32_1 = arith.constant 0 : i32
    return %c0_i32, %c0_i32_0 : i32, i32
  }
  func.func @transform_4(%arg0: i32) -> (i32, i32) {
    %c0_i32 = arith.constant 0 : i32
    %c0_i32_0 = arith.constant 0 : i32
    %c0_i32_1 = arith.constant 0 : i32
    return %c0_i32, %c0_i32_0 : i32, i32
  }
  func.func @transform_5(%arg0: i32) -> (i32, i32) {
    %c0_i32 = arith.constant 0 : i32
    %c0_i32_0 = arith.constant 0 : i32
    %c0_i32_1 = arith.constant 0 : i32
    return %c0_i32, %c0_i32_0 : i32, i32
  }
  func.func @transform_6(%arg0: i32) -> (i32, i32) {
    %c0_i32 = arith.constant 0 : i32
    %c0_i32_0 = arith.constant 0 : i32
    %c0_i32_1 = arith.constant 0 : i32
    return %c0_i32, %c0_i32_0 : i32, i32
  }
  func.func @transform_7(%arg0: i32) -> (i32, i32, i32) {
    %c0_i32 = arith.constant 0 : i32
    %c0_i32_0 = arith.constant 0 : i32
    %c0_i32_1 = arith.constant 0 : i32
    return %arg0, %c0_i32, %c0_i32_0 : i32, i32, i32
  }
}

</mosaic_0001>

<bundles_post_ra>
// kernel: feature_extractor_forward.1
= control target key start
LH: loop header
LB: loop body
LE: loop exit
PB: predicated region body
PF: predicated region fallthrough
CT: control target
= control target key end

     0   :  { %s5291_s24 = smov 0   ;;  %s7877_s0 = inlined_call_operand.vmem [shape: f32[2,1024,27], index: 0, kind: input, shape index: {}]   ;;  %s7878_s1 = inlined_call_operand.vmem [shape: f32[27,32], index: 1, kind: input, shape index: {}]   ;;  %s7879_s2 = inlined_call_operand.vmem [shape: f32[1,32], index: 2, kind: input, shape index: {}]   ;;  %s7880_s3 = inlined_call_operand.vmem [shape: f32[1152,64], index: 3, kind: input, shape index: {}]   ;;  %s7881_s4 = inlined_call_operand.vmem [shape: f32[1,64], index: 4, kind: input, shape index: {}]   ;;  %s7882_s5 = inlined_call_operand.vmem [shape: f32[1152,128], index: 5, kind: input, shape index: {}]   ;;  %s7883_s6 = inlined_call_operand.vmem [shape: f32[1,128], index: 6, kind: input, shape index: {}]   ;;  %s7884_s7 = inlined_call_operand.vmem [shape: f32[2,128,16], index: 7, kind: output, shape index: {}]  }
   0x1 LB: > { %s5073_s25 = sadd.s32 4294967295, %s5248_s24   ;;  %p5077_p0 = scmp.ge.s32.totalorder %s5248_s24, 1  ;;  %s5248_s24 = sphi %s5291_s24, %s17_s24  }
   0x2   : > { %p237_p1 = scmp.lt.s32.totalorder %s5248_s24, 3 }
   0x4   : > { %p238_p2 = pnand %p5077_p0, %p237_p1 }
   0x6   : > { %241 = sbr.rel (%p238_p2) target bundleno = 2340 (0x924), region = 48 }
   0xb   : > { %v410_v0 = vld [vmem:[%s7878_s1 + $0x18] sm:$0x7]  ;;  %vm800_vm0 = vcmask 1042432   ;;  %v409_v1 = vld [vmem:[%s7878_s1 + $0x10] sm:$0xff]  ;;  %p269_p3 = scmp.lt.s32.totalorder %s5073_s25, 1  ;;  %v408_v2 = vld [vmem:[%s7878_s1 + $0x8] sm:$0xff] }
   0xc   : > { %5082 = vmatpush.msk.msra.mxu0 %vm800_vm0, %v410_v0  ;;  %5215 = vmatpush.msk.msra.mxu1 %vm800_vm0, %v410_v0  ;;  %v407_v3 = vld [vmem:[%s7878_s1] sm:$0xff]  ;;  %vm415_vm1 = vcmask 220160   ;;  %v2845_v21 = vld [vmem:[%s7880_s3 + $0x78] sm:$0xff]  ;;  %v2844_v23 = vld [vmem:[%s7880_s3 + $0x70] sm:$0xff]  ;;  %vm1333_vm2 = vcmask 261120   ;;  %vm4027_vm3 = vcmask 523264  }
   0xd   : > { %s8166_s25 = smov (!%p269_p3, %s5073_s25), 1  ;;  %v2861_v22 = vld [vmem:[%s7880_s3 + $0xf8] sm:$0xff]  ;;  %v2860_v24 = vld [vmem:[%s7880_s3 + $0xf0] sm:$0xff]  ;;  %v5368_v25 = vld [vmem:[%s7879_s2] ss:$0 sm:$0xff]  ;;  %vm5001_vm4 = vcmask 130048  }
   0xe   : > { %817 = vmatpush.msra.mxu0 %v409_v1  ;;  %5216 = vmatpush.msra.mxu1 %v409_v1  ;;  %s5213_s11 = sshll.u32 %s8166_s25, 10  ;;  %v2843_v26 = vld [vmem:[%s7880_s3 + $0x68] sm:$0xff]  ;;  %v2842_v28 = vld [vmem:[%s7880_s3 + $0x60] sm:$0xff]  ;;  %v2841_v34 = vld [vmem:[%s7880_s3 + $0x58] sm:$0xff]  ;;  %s5214_s22 = sshll.u32 %s8166_s25, 7 }
   0xf   : > { %s5317_s14 = scalar_lea.vmem %s7877_s0, %s5213_s11  ;;  %3091 = vmatpush.msra.mxu2 %v2861_v22  ;;  %v2859_v27 = vld [vmem:[%s7880_s3 + $0xe8] sm:$0xff]  ;;  %v2858_v29 = vld [vmem:[%s7880_s3 + $0xe0] sm:$0xff]  ;;  %v2857_v35 = vld [vmem:[%s7880_s3 + $0xd8] sm:$0xff]  ;;  %s7840_s27 = scalar_lea.vmem %s7884_s7, %s5214_s22 }
  0x10   : > { %818 = vmatpush.msra.mxu0 %v408_v2  ;;  %5217 = vmatpush.msra.mxu1 %v408_v2  ;;  %v279_v4 = vld [vmem:[%s5317_s14] sm:$0xff]  ;;  %v280_v5 = vld [vmem:[%s5317_s14 + $0x8] sm:$0xff]  ;;  %v281_v6 = vld [vmem:[%s5317_s14 + $0x10] sm:$0xff] }
  0x11   : > { %v282_v7 = vld [vmem:[%s5317_s14 + $0x18] sm:$0xff]  ;;  %v283_v8 = vld [vmem:[%s5317_s14 + $0x20] sm:$0xff]  ;;  %v284_v9 = vld [vmem:[%s5317_s14 + $0x28] sm:$0xff]  ;;  %3092 = vmatpush.msra.mxu2 %v2860_v24 }
  0x12   : > { %819 = vmatpush.msra.mxu0 %v407_v3  ;;  %5218 = vmatpush.msra.mxu1 %v407_v3  ;;  %v285_v10 = vld [vmem:[%s5317_s14 + $0x30] sm:$0xff]  ;;  %v286_v11 = vld [vmem:[%s5317_s14 + $0x38] sm:$0xff]  ;;  %v287_v12 = vld [vmem:[%s5317_s14 + $0x40] sm:$0xff]  ;;  %v5250_v3 = vmov 0.0  }
  0x13   : > { %5083 = vmatmul.msk.f32.vlgmr.msra.gmra.mxu0 %vm415_vm1, %v279_v4  ;;  %v288_v13 = vld [vmem:[%s5317_s14 + $0x48] sm:$0xff]  ;;  %v289_v14 = vld [vmem:[%s5317_s14 + $0x50] sm:$0xff]  ;;  %v290_v15 = vld [vmem:[%s5317_s14 + $0x58] sm:$0xff]  ;;  %3093 = vmatpush.msra.mxu2 %v2859_v27  ;;  %1878 = vst [vmem:[#allocation4] sm:$0xff] %v5250_v3 }
  0x14   : > { %v291_v16 = vld [vmem:[%s5317_s14 + $0x60] sm:$0xff]  ;;  %v292_v17 = vld [vmem:[%s5317_s14 + $0x68] sm:$0xff]  ;;  %v293_v18 = vld [vmem:[%s5317_s14 + $0x70] sm:$0xff]  ;;  %2978 = vmatpush.msrb.mxu1 %v2845_v21  ;;  %1879 = vst [vmem:[#allocation4 + $0x8] sm:$0xff] %v5250_v3 }
  0x15   : > { %v294_v19 = vld [vmem:[%s5317_s14 + $0x78] sm:$0xff]  ;;  %v403_v20 = vld [vmem:[%s5317_s14 + $0x3e0] sm:$0xff]  ;;  %3094 = vmatpush.msra.mxu2 %v2858_v29  ;;  %v404_v32 = vld [vmem:[%s5317_s14 + $0x3e8] sm:$0xff]  ;;  %1880 = vst [vmem:[#allocation4 + $0x10] sm:$0x3] %v5250_v3 }
  0x16   : > { %5207 = vmatmul.msk.f32.vlgmr.msra.gmra.mxu1 %vm415_vm1, %v403_v20  ;;  %v295_v31 = vld [vmem:[%s5317_s14 + $0x80] sm:$0xff]  ;;  %v2840_v37 = vld [vmem:[%s7880_s3 + $0x50] sm:$0xff]  ;;  %v2839_v39 = vld [vmem:[%s7880_s3 + $0x48] sm:$0xff]  ;;  %1881 = vst [vmem:[#allocation4 + $0x18] sm:$0xff] %v5250_v3 }
  0x17   : > { %2979 = vmatpush.msrb.mxu1 %v2844_v23  ;;  %3095 = vmatpush.msra.mxu2 %v2857_v35  ;;  %v2856_v38 = vld [vmem:[%s7880_s3 + $0xd0] sm:$0xff]  ;;  %v2855_v40 = vld [vmem:[%s7880_s3 + $0xc8] sm:$0xff]  ;;  %v2838_v41 = vld [vmem:[%s7880_s3 + $0x40] sm:$0xff]  ;;  %1882 = vst [vmem:[#allocation4 + $0x20] sm:$0xff] %v5250_v3 }
  0x18   : > { %v2854_v42 = vld [vmem:[%s7880_s3 + $0xc0] sm:$0xff]  ;;  %v296_v44 = vld [vmem:[%s5317_s14 + $0x88] sm:$0xff]  ;;  %v405_v45 = vld [vmem:[%s5317_s14 + $0x3f0] sm:$0xff]  ;;  %1883 = vst [vmem:[#allocation4 + $0x28] sm:$0x3] %v5250_v3 }
  0x19   : > { %2980 = vmatpush.msrb.mxu1 %v2843_v26  ;;  %3096 = vmatpush.msra.mxu2 %v2856_v38  ;;  %v2837_v47 = vld [vmem:[%s7880_s3 + $0x38] sm:$0xff]  ;;  %v2836_v51 = vld [vmem:[%s7880_s3 + $0x30] sm:$0xff]  ;;  %v2835_v54 = vld [vmem:[%s7880_s3 + $0x28] sm:$0xff]  ;;  %1884 = vst [vmem:[#allocation4 + $0x30] sm:$0xff] %v5250_v3 }
  0x1a   : > { %v2853_v48 = vld [vmem:[%s7880_s3 + $0xb8] sm:$0xff]  ;;  %v2852_v52 = vld [vmem:[%s7880_s3 + $0xb0] sm:$0xff]  ;;  %v2851_v55 = vld [vmem:[%s7880_s3 + $0xa8] sm:$0xff]  ;;  %1885 = vst [vmem:[#allocation4 + $0x38] sm:$0xff] %v5250_v3 }
  0x1b   : > { %5084 = vmatmul.msk.f32.gmra.mxu0 %vm415_vm1, %v280_v5  ;;  %2981 = vmatpush.msrb.mxu1 %v2842_v28  ;;  %v2877_v49 = vld [vmem:[%s7880_s3 + $0x178] sm:$0xff]  ;;  %v2876_v53 = vld [vmem:[%s7880_s3 + $0x170] sm:$0xff]  ;;  %v2875_v56 = vld [vmem:[%s7880_s3 + $0x168] sm:$0xff]  ;;  %1886 = vst [vmem:[#allocation4 + $0x40] sm:$0x3] %v5250_v3 }
  0x1c   : > { %3097 = vmatpush.msra.mxu2 %v2855_v40  ;;  %3204 = vmatpush.msra.mxu3 %v2877_v49  ;;  %v2834_v57 = vld [vmem:[%s7880_s3 + $0x20] sm:$0xff]  ;;  %v297_v61 = vld [vmem:[%s5317_s14 + $0x90] sm:$0xff]  ;;  %v406_v62 = vld [vmem:[%s5317_s14 + $0x3f8] sm:$0xff]  ;;  %1887 = vst [vmem:[#allocation4 + $0x48] sm:$0xff] %v5250_v3 }
  0x1d   : > { %2982 = vmatpush.msrb.mxu1 %v2841_v34  ;;  %v2850_v58 = vld [vmem:[%s7880_s3 + $0xa0] sm:$0xff]  ;;  %v2833_v0 = vld [vmem:[%s7880_s3 + $0x18] sm:$0xff]  ;;  %v2832_v5 = vld [vmem:[%s7880_s3 + $0x10] sm:$0xff]  ;;  %1888 = vst [vmem:[#allocation4 + $0x50] sm:$0xff] %v5250_v3 }
  0x1e   : > { %5208 = vmatmul.msk.f32.gmra.mxu1 %vm415_vm1, %v404_v32  ;;  %3098 = vmatpush.msra.mxu2 %v2854_v42  ;;  %v2874_v59 = vld [vmem:[%s7880_s3 + $0x160] sm:$0xff]  ;;  %v2849_v1 = vld [vmem:[%s7880_s3 + $0x98] sm:$0xff]  ;;  %v2868_v20 = vld [vmem:[%s7880_s3 + $0x130] sm:$0xff]  ;;  %1889 = vst [vmem:[#allocation4 + $0x58] sm:$0x3] %v5250_v3 }
  0x1f   : > { %2983 = vmatpush.msrb.mxu1 %v2840_v37  ;;  %3205 = vmatpush.msra.mxu3 %v2876_v53  ;;  %v2873_v2 = vld [vmem:[%s7880_s3 + $0x158] sm:$0xff]  ;;  %v2867_v21 = vld [vmem:[%s7880_s3 + $0x128] sm:$0xff]  ;;  %1890 = vst [vmem:[#allocation4 + $0x60] sm:$0xff] %v5250_v3  ;;  %v299_v23 = vld [vmem:[%s5317_s14 + $0xa0] sm:$0xff] }
  0x20   : > { %3099 = vmatpush.msra.mxu2 %v2853_v48  ;;  %1891 = vst [vmem:[#allocation4 + $0x68] sm:$0xff] %v5250_v3  ;;  %v300_v28 = vld [vmem:[%s5317_s14 + $0xa8] sm:$0xff]  ;;  %v301_v35 = vld [vmem:[%s5317_s14 + $0xb0] sm:$0xff]  ;;  %v302_v42 = vld [vmem:[%s5317_s14 + $0xb8] sm:$0xff] }
  0x21   : > { %2984 = vmatpush.msrb.mxu1 %v2839_v39  ;;  %3206 = vmatpush.msra.mxu3 %v2875_v56  ;;  %1892 = vst [vmem:[#allocation4 + $0x70] sm:$0x3] %v5250_v3  ;;  %v2866_v48 = vld [vmem:[%s7880_s3 + $0x120] sm:$0xff]  ;;  %v2864_v53 = vld [vmem:[%s7880_s3 + $0x110] sm:$0xff] }
  0x22   : > { %3100 = vmatpush.msra.mxu2 %v2852_v52  ;;  %1893 = vst [vmem:[#allocation4 + $0x78] sm:$0xff] %v5250_v3  ;;  %v303_v52 = vld [vmem:[%s5317_s14 + $0xc0] sm:$0xff] }
  0x23   : > { %5085 = vmatmul.msk.f32.gmra.mxu0 %vm415_vm1, %v281_v6  ;;  %2985 = vmatpush.msrb.mxu1 %v2838_v41  ;;  %v2848_v6 = vld [vmem:[%s7880_s3 + $0x90] sm:$0xff]  ;;  %1894 = vst [vmem:[#allocation4 + $0x80] sm:$0xff] %v5250_v3 }
  0x24   : > { %3101 = vmatpush.msra.mxu2 %v2851_v55  ;;  %3207 = vmatpush.msra.mxu3 %v2874_v59  ;;  %1895 = vst [vmem:[#allocation4 + $0x88] sm:$0x3] %v5250_v3 }
  0x25   : > { %2986 = vmatpush.msrb.mxu1 %v2837_v47  ;;  %1896 = vst [vmem:[#allocation4 + $0x90] sm:$0xff] %v5250_v3 }
  0x26   : > { %5209 = vmatmul.msk.f32.gmra.mxu1 %vm415_vm1, %v405_v45  ;;  %3102 = vmatpush.msra.mxu2 %v2850_v58  ;;  %1897 = vst [vmem:[#allocation4 + $0x98] sm:$0xff] %v5250_v3  ;;  %v2862_v58 = vld [vmem:[%s7880_s3 + $0x100] sm:$0xff] }
  0x27   : > { %2987 = vmatpush.msrb.mxu1 %v2836_v51  ;;  %3208 = vmatpush.msra.mxu3 %v2873_v2  ;;  %1898 = vst [vmem:[#allocation4 + $0xa0] sm:$0x3] %v5250_v3  ;;  %v2865_v51 = vld [vmem:[%s7880_s3 + $0x118] sm:$0xff] }
  0x28   : > { %3103 = vmatpush.msra.mxu2 %v2849_v1  ;;  %1899 = vst [vmem:[#allocation4 + $0xa8] sm:$0xff] %v5250_v3 }
  0x29   : > { %2988 = vmatpush.msrb.mxu1 %v2835_v54  ;;  %1900 = vst [vmem:[#allocation4 + $0xb0] sm:$0xff] %v5250_v3 }
  0x2a   : > { %3104 = vmatpush.msra.mxu2 %v2848_v6  ;;  %1901 = vst [vmem:[#allocation4 + $0xb8] sm:$0x3] %v5250_v3 }
  0x2b   : > { %5086 = vmatmul.msk.f32.gmra.mxu0 %vm415_vm1, %v282_v7  ;;  %2989 = vmatpush.msrb.mxu1 %v2834_v57  ;;  %v2872_v7 = vld [vmem:[%s7880_s3 + $0x150] sm:$0xff]  ;;  %1902 = vst [vmem:[#allocation4 + $0xc0] sm:$0xff] %v5250_v3  ;;  %v2863_v57 = vld [vmem:[%s7880_s3 + $0x108] sm:$0xff] }
  0x2c   : > { %3209 = vmatpush.msra.mxu3 %v2872_v7  ;;  %1903 = vst [vmem:[#allocation4 + $0xc8] sm:$0xff] %v5250_v3 }
  0x2d   : > { %2990 = vmatpush.msrb.mxu1 %v2833_v0  ;;  %1904 = vst [vmem:[#allocation4 + $0xd0] sm:$0x3] %v5250_v3  ;;  %v305_v0 = vld [vmem:[%s5317_s14 + $0xd0] sm:$0xff] }
  0x2e   : > { %5210 = vmatmul.msk.f32.gmra.mxu1 %vm415_vm1, %v406_v62  ;;  %1905 = vst [vmem:[#allocation4 + $0xd8] sm:$0xff] %v5250_v3 }
  0x2f   : > { %2991 = vmatpush.msrb.mxu1 %v2832_v5  ;;  %1906 = vst [vmem:[#allocation4 + $0xe0] sm:$0xff] %v5250_v3 }
  0x30   : > { %1907 = vst [vmem:[#allocation4 + $0xe8] sm:$0x3] %v5250_v3 }
  0x31   : > { %1908 = vst [vmem:[#allocation4 + $0xf0] sm:$0xff] %v5250_v3 }
  0x32   : > { %1909 = vst [vmem:[#allocation4 + $0xf8] sm:$0xff] %v5250_v3 }
  0x33   : > { %5087 = vmatmul.msk.f32.gmra.mxu0 %vm415_vm1, %v283_v8  ;;  %v2831_v8 = vld [vmem:[%s7880_s3 + $0x8] sm:$0xff]  ;;  %1910 = vst [vmem:[#allocation4 + $0x100] sm:$0x3] %v5250_v3 }
  0x34   : > { %2992 = vmatpush.msrb.mxu1 %v2831_v8  ;;  %1911 = vst [vmem:[#allocation4 + $0x108] sm:$0xff] %v5250_v3 }
  0x35   : > { %1912 = vst [vmem:[#allocation4 + $0x110] sm:$0xff] %v5250_v3 }
  0x36   : > { %1913 = vst [vmem:[#allocation4 + $0x118] sm:$0x3] %v5250_v3 }
  0x37   : > { %1914 = vst [vmem:[#allocation4 + $0x120] sm:$0xff] %v5250_v3 }
  0x38   : > { %1915 = vst [vmem:[#allocation4 + $0x128] sm:$0xff] %v5250_v3 }
  0x39   : > { %1916 = vst [vmem:[#allocation4 + $0x130] sm:$0x3] %v5250_v3 }
  0x3a   : > { %1917 = vst [vmem:[#allocation4 + $0x138] sm:$0xff] %v5250_v3 }
  0x3b   : > { %5088 = vmatmul.msk.f32.gmra.mxu0 %vm415_vm1, %v284_v9  ;;  %v2847_v9 = vld [vmem:[%s7880_s3 + $0x88] sm:$0xff]  ;;  %1918 = vst [vmem:[#allocation4 + $0x140] sm:$0xff] %v5250_v3 }
  0x3c   : > { %3105 = vmatpush.msra.mxu2 %v2847_v9  ;;  %1919 = vst [vmem:[#allocation4 + $0x148] sm:$0x3] %v5250_v3 }
  0x3d   : > { %1920 = vst [vmem:[#allocation4 + $0x150] sm:$0xff] %v5250_v3 }
  0x3e   : > { %1921 = vst [vmem:[#allocation4 + $0x158] sm:$0xff] %v5250_v3 }
  0x3f   : > { %1922 = vst [vmem:[#allocation4 + $0x160] sm:$0x3] %v5250_v3 }
  0x40   : > { %1923 = vst [vmem:[#allocation4 + $0x168] sm:$0xff] %v5250_v3 }
  0x41   : > { %1924 = vst [vmem:[#allocation4 + $0x170] sm:$0xff] %v5250_v3 }
  0x42   : > { %1925 = vst [vmem:[#allocation4 + $0x178] sm:$0x3] %v5250_v3 }
  0x43   : > { %5089 = vmatmul.msk.f32.gmra.mxu0 %vm415_vm1, %v285_v10  ;;  %v2871_v10 = vld [vmem:[%s7880_s3 + $0x148] sm:$0xff]  ;;  %1926 = vst [vmem:[#allocation4 + $0x180] sm:$0xff] %v5250_v3 }
  0x44   : > { %3210 = vmatpush.msra.mxu3 %v2871_v10  ;;  %1927 = vst [vmem:[#allocation4 + $0x188] sm:$0xff] %v5250_v3 }
  0x45   : > { %1928 = vst [vmem:[#allocation4 + $0x190] sm:$0x3] %v5250_v3 }
  0x46   : > { %1929 = vst [vmem:[#allocation4 + $0x198] sm:$0xff] %v5250_v3 }
  0x47   : > { %1930 = vst [vmem:[#allocation4 + $0x1a0] sm:$0xff] %v5250_v3 }
  0x48   : > { %1931 = vst [vmem:[#allocation4 + $0x1a8] sm:$0x3] %v5250_v3 }
  0x49   : > { %4164 = vst [vmem:[#allocation8] sm:$0xff] %v5250_v3 }
  0x4a   : > { %4165 = vst [vmem:[#allocation8 + $0x8] sm:$0x3] %v5250_v3 }
  0x4b   : > { %5090 = vmatmul.msk.f32.gmra.mxu0 %vm415_vm1, %v286_v11  ;;  %v2830_v11 = vld [vmem:[%s7880_s3] sm:$0xff]  ;;  %4166 = vst [vmem:[#allocation8 + $0x10] sm:$0xff] %v5250_v3 }
  0x4c   : > { %2993 = vmatpush.msrb.mxu1 %v2830_v11  ;;  %4167 = vst [vmem:[#allocation8 + $0x18] sm:$0x3] %v5250_v3 }
  0x4d   : > { %2994 = vmatmul.f32.vlgmr.msrb.gmra.mxu1 %v5250_v3  ;;  %4168 = vst [vmem:[#allocation8 + $0x20] sm:$0xff] %v5250_v3 }
  0x4e   : > { %4169 = vst [vmem:[#allocation8 + $0x28] sm:$0x3] %v5250_v3 }
  0x4f   : > { %4170 = vst [vmem:[#allocation8 + $0x30] sm:$0xff] %v5250_v3 }
  0x50   : > { %4171 = vst [vmem:[#allocation8 + $0x38] sm:$0x3] %v5250_v3 }
  0x51   : > { %4172 = vst [vmem:[#allocation8 + $0x40] sm:$0xff] %v5250_v3 }
  0x52   : > { %4173 = vst [vmem:[#allocation8 + $0x48] sm:$0x3] %v5250_v3 }
  0x53   : > { %5091 = vmatmul.msk.f32.gmra.mxu0 %vm415_vm1, %v287_v12  ;;  %v2846_v12 = vld [vmem:[%s7880_s3 + $0x80] sm:$0xff]  ;;  %4174 = vst [vmem:[#allocation8 + $0x50] sm:$0xff] %v5250_v3 }
  0x54   : > { %3106 = vmatpush.msra.mxu2 %v2846_v12  ;;  %4175 = vst [vmem:[#allocation8 + $0x58] sm:$0x3] %v5250_v3 }
  0x55   : > { %2997 = vmatmul.f32.gmra.mxu1 %v5250_v3  ;;  %4176 = vst [vmem:[#allocation8 + $0x60] sm:$0xff] %v5250_v3 }
  0x56   : > { %4177 = vst [vmem:[#allocation8 + $0x68] sm:$0x3] %v5250_v3 }
  0x57   : > { %4178 = vst [vmem:[#allocation8 + $0x70] sm:$0xff] %v5250_v3 }
  0x58   : > { %4179 = vst [vmem:[#allocation8 + $0x78] sm:$0x3] %v5250_v3 }
  0x59   : > { %4180 = vst [vmem:[#allocation8 + $0x80] sm:$0xff] %v5250_v3 }
  0x5a   : > { %4181 = vst [vmem:[#allocation8 + $0x88] sm:$0x3] %v5250_v3 }
  0x5b   : > { %5092 = vmatmul.msk.f32.gmra.mxu0 %vm415_vm1, %v288_v13  ;;  %v2870_v13 = vld [vmem:[%s7880_s3 + $0x140] sm:$0xff]  ;;  %4182 = vst [vmem:[#allocation8 + $0x90] sm:$0xff] %v5250_v3 }
  0x5c   : > { %3211 = vmatpush.msra.mxu3 %v2870_v13  ;;  %4183 = vst [vmem:[#allocation8 + $0x98] sm:$0x3] %v5250_v3 }
  0x63   : > { %5093 = vmatmul.msk.f32.gmra.mxu0 %vm415_vm1, %v289_v14 }
  0x6b   : > { %5094 = vmatmul.msk.f32.gmra.mxu0 %vm415_vm1, %v290_v15  ;;  %v298_v15 = vld [vmem:[%s5317_s14 + $0x98] sm:$0xff] }
  0x73   : > { %5095 = vmatmul.msk.f32.gmra.mxu0 %vm415_vm1, %v291_v16 }
  0x7b   : > { %5096 = vmatmul.msk.f32.gmra.mxu0 %vm415_vm1, %v292_v17  ;;  %v2029_v17 = vld [vmem:[#allocation4 + $0x1] sm:$0xff] }
  0x7c   : > { %3107 = vmatmul.f32.vlgmr.msra.gmra.mxu2 %v2029_v17 }
  0x83   : > { %5097 = vmatmul.msk.f32.gmra.mxu0 %vm415_vm1, %v293_v18  ;;  %v2869_v18 = vld [vmem:[%s7880_s3 + $0x138] sm:$0xff] }
  0x84   : > { %3212 = vmatpush.msra.mxu3 %v2869_v18 }
  0x86   : > { %3213 = vmatpush.msra.mxu3 %v2868_v20 }
  0x88   : > { %3214 = vmatpush.msra.mxu3 %v2867_v21 }
  0x8a   : > { %3215 = vmatpush.msra.mxu3 %v2866_v48  ;;  %v310_v48 = vld [vmem:[%s5317_s14 + $0xf8] sm:$0xff] }
  0x8b   : > { %5098 = vmatmul.msk.f32.gmra.mxu0 %vm415_vm1, %v294_v19 }
  0x8c   : > { %3216 = vmatpush.msra.mxu3 %v2865_v51 }
  0x8e   : > { %3217 = vmatpush.msra.mxu3 %v2864_v53 }
  0x90   : > { %v821_v30 = vpop.f32.mrf.mxu0  ;;  %3218 = vmatpush.msra.mxu3 %v2863_v57 }
  0x91   : > { %v822_v33 = vadd.f32 %v5368_v25, %v821_v30 }
  0x92   : > { %3219 = vmatpush.msra.mxu3 %v2862_v58 }
  0x93   : > { %v1205_v36 = vmax.f32 %v822_v33, 0.0  ;;  %5099 = vmatmul.msk.f32.gmra.mxu0 %vm415_vm1, %v295_v31 }
  0x95   : > { %1334 = vst.msk [vmem:[#allocation2] sm:$0xff] %vm1333_vm2, %v1205_v36 }
  0x98   : > { %v824_v43 = vpop.f32.mrf.mxu0 }
  0x99   : > { %v825_v46 = vadd.f32 %v5368_v25, %v824_v43 }
  0x9b   : > { %v1206_v50 = vmax.f32 %v825_v46, 0.0  ;;  %5100 = vmatmul.msk.f32.gmra.mxu0 %vm415_vm1, %v296_v44 }
  0x9c   : > { %v1462_v31 = vld [vmem:[#allocation2] sm:$0xff] }
  0x9d   : > { %1335 = vst.msk [vmem:[#allocation2 + $0x8] sm:$0xff] %vm1333_vm2, %v1206_v50  ;;  %v2030_v50 = vld [vmem:[#allocation4 + $0x9] sm:$0xff] }
  0x9e   : > { %3110 = vmatmul.f32.gmra.mxu2 %v2030_v50 }
  0xa0   : > { %v827_v60 = vpop.f32.mrf.mxu0 }
  0xa1   : > { %v828_v63 = vadd.f32 %v5368_v25, %v827_v60  ;;  %v2093_v60 = vld [vmem:[#allocation4 + $0x2] sm:$0xff] }
  0xa2   : > { %3220 = vmatmul.f32.vlgmr.msra.gmra.mxu3 %v2093_v60 }
  0xa3   : > { %v1207_v4 = vmax.f32 %v828_v63, 0.0  ;;  %5101 = vmatmul.msk.f32.gmra.mxu0 %vm415_vm1, %v297_v61  ;;  %v304_v61 = vld [vmem:[%s5317_s14 + $0xc8] sm:$0xff] }
  0xa4   : > { %v1463_v38 = vld [vmem:[#allocation2 + $0x8] sm:$0xff] }
  0xa5   : > { %1336 = vst.msk [vmem:[#allocation2 + $0x10] sm:$0xff] %vm1333_vm2, %v1207_v4  ;;  %v2094_v63 = vld [vmem:[#allocation4 + $0xa] sm:$0xff]  ;;  %v306_v4 = vld [vmem:[%s5317_s14 + $0xd8] sm:$0xff] }
  0xa8   : > { %v830_v14 = vpop.f32.mrf.mxu0 }
  0xa9   : > { %v831_v16 = vadd.f32 %v5368_v25, %v830_v14 }
  0xaa   : > { %3223 = vmatmul.f32.gmra.mxu3 %v2094_v63 }
  0xab   : > { %v1208_v19 = vmax.f32 %v831_v16, 0.0  ;;  %5102 = vmatmul.msk.f32.gmra.mxu0 %vm415_vm1, %v298_v15 }
  0xac   : > { %v1464_v45 = vld [vmem:[#allocation2 + $0x10] sm:$0xff] }
  0xad   : > { %1337 = vst.msk [vmem:[#allocation2 + $0x18] sm:$0xff] %vm1333_vm2, %v1208_v19  ;;  %v307_v19 = vld [vmem:[%s5317_s14 + $0xe0] sm:$0xff] }
  0xb0   : > { %v833_v22 = vpop.f32.mrf.mxu0 }
  0xb1   : > { %v834_v24 = vadd.f32 %v5368_v25, %v833_v22 }
  0xb3   : > { %v1209_v26 = vmax.f32 %v834_v24, 0.0  ;;  %5103 = vmatmul.msk.f32.gmra.mxu0 %vm415_vm1, %v299_v23  ;;  %v308_v24 = vld [vmem:[%s5317_s14 + $0xe8] sm:$0xff] }
  0xb4   : > { %v1465_v54 = vld [vmem:[#allocation2 + $0x18] sm:$0xff] }
  0xb5   : > { %1338 = vst.msk [vmem:[#allocation2 + $0x20] sm:$0xff] %vm1333_vm2, %v1209_v26 }
  0xb8   : > { %v836_v27 = vpop.f32.mrf.mxu0 }
  0xb9   : > { %v837_v29 = vadd.f32 %v5368_v25, %v836_v27 }
  0xbb   : > { %v1210_v30 = vmax.f32 %v837_v29, 0.0  ;;  %5104 = vmatmul.msk.f32.gmra.mxu0 %vm415_vm1, %v300_v28 }
  0xbc   : > { %v1527_v32 = vld [vmem:[#allocation2 + $0x20] sm:$0xff] }
  0xbd   : > { %v1591_v33 = vmax.f32 %v1462_v31, %v1527_v32  ;;  %1339 = vst.msk [vmem:[#allocation2 + $0x28] sm:$0xff] %vm1333_vm2, %v1210_v30 }
  0xbf   : > { %1655 = vst.msk [vmem:[#allocation3] sm:$0xff] %vm1333_vm2, %v1591_v33 }
  0xc0   : > { %v839_v34 = vpop.f32.mrf.mxu0 }
  0xc1   : > { %v840_v36 = vadd.f32 %v5368_v25, %v839_v34 }
  0xc3   : > { %v1211_v37 = vmax.f32 %v840_v36, 0.0  ;;  %5105 = vmatmul.msk.f32.gmra.mxu0 %vm415_vm1, %v301_v35 }
  0xc4   : > { %v1528_v39 = vld [vmem:[#allocation2 + $0x28] sm:$0xff] }
  0xc5   : > { %v1592_v40 = vmax.f32 %v1463_v38, %v1528_v39  ;;  %1340 = vst.msk [vmem:[#allocation2 + $0x30] sm:$0xff] %vm1333_vm2, %v1211_v37 }
  0xc7   : > { %1656 = vst.msk [vmem:[#allocation3 + $0x8] sm:$0xff] %vm1333_vm2, %v1592_v40  ;;  %v309_v40 = vld [vmem:[%s5317_s14 + $0xf0] sm:$0xff] }
  0xc8   : > { %v842_v41 = vpop.f32.mrf.mxu0 }
  0xc9   : > { %v843_v43 = vadd.f32 %v5368_v25, %v842_v41 }
  0xcb   : > { %v1212_v44 = vmax.f32 %v843_v43, 0.0  ;;  %5106 = vmatmul.msk.f32.gmra.mxu0 %vm415_vm1, %v302_v42 }
  0xcc   : > { %v1529_v46 = vld [vmem:[#allocation2 + $0x30] sm:$0xff] }
  0xcd   : > { %v1593_v47 = vmax.f32 %v1464_v45, %v1529_v46  ;;  %1341 = vst.msk [vmem:[#allocation2 + $0x38] sm:$0xff] %vm1333_vm2, %v1212_v44  ;;  %v1193_v45 = vpop.f32.mrf.mxu1 }
  0xce   : > { %v1719_v6 = vld [vmem:[#allocation3] ss:$2 sm:$0xff]  ;;  %v1783_v7 = vld [vmem:[#allocation3 + $0x1] ss:$2 sm:$0xff] }
  0xcf   : > { %1657 = vst.msk [vmem:[#allocation3 + $0x10] sm:$0xff] %vm1333_vm2, %v1593_v47  ;;  %v1846_v13 = vmax.f32 %v1719_v6, %v1783_v7  ;;  %v312_v7 = vld [vmem:[%s5317_s14 + $0x108] sm:$0xff] }
  0xd0   : > { %v845_v49 = vpop.f32.mrf.mxu0 }
  0xd1   : > { %v846_v2 = vadd.f32 %v5368_v25, %v845_v49  ;;  %1933 = vst.msk [vmem:[#allocation4 + $0x19] sm:$0xff] %vm1333_vm2, %v1846_v13  ;;  %v1194_v49 = vadd.f32 %v5368_v25, %v1193_v45 }
  0xd3   : > { %5107 = vmatmul.msk.f32.gmra.mxu0 %vm415_vm1, %v303_v52  ;;  %v1213_v10 = vmax.f32 %v846_v2, 0.0 }
  0xd4   : > { %v1530_v55 = vld [vmem:[#allocation2 + $0x38] sm:$0xff] }
  0xd5   : > { %v1594_v56 = vmax.f32 %v1465_v54, %v1530_v55  ;;  %1342 = vst.msk [vmem:[#allocation2 + $0x40] sm:$0xff] %vm1333_vm2, %v1213_v10  ;;  %v1329_v54 = vmax.f32 %v1194_v49, 0.0  ;;  %v1196_v60 = vpop.f32.mrf.mxu1 }
  0xd6   : > { %v1197_v63 = vadd.f32 %v5368_v25, %v1196_v60 }
  0xd7   : > { %1658 = vst.msk [vmem:[#allocation3 + $0x18] sm:$0xff] %vm1333_vm2, %v1594_v56 }
  0xd8   : > { %v848_v59 = vpop.f32.mrf.mxu0  ;;  %v1967_v26 = vld [vmem:[#allocation4 + $0x18] sm:$0xff]  ;;  %1458 = vst.msk [vmem:[#allocation2 + $0x3e0] sm:$0xff] %vm1333_vm2, %v1329_v54 }
  0xd9   : > { %v849_v5 = vadd.f32 %v5368_v25, %v848_v59  ;;  %v2031_v27 = vld [vmem:[#allocation4 + $0x19] sm:$0xff]  ;;  %3000 = vmatmul.f32.gmra.mxu1 %v1967_v26 }
  0xda   : > { %3113 = vmatmul.f32.gmra.mxu2 %v2031_v27  ;;  %v314_v27 = vld [vmem:[%s5317_s14 + $0x118] sm:$0xff] }
  0xdb   : > { %5108 = vmatmul.msk.f32.gmra.mxu0 %vm415_vm1, %v304_v61  ;;  %v1214_v12 = vmax.f32 %v849_v5, 0.0 }
  0xdc   : > { %v1466_v31 = vld [vmem:[#allocation2 + $0x40] sm:$0xff] }
  0xdd   : > { %1343 = vst.msk [vmem:[#allocation2 + $0x48] sm:$0xff] %vm1333_vm2, %v1214_v12 }
  0xde   : > { %v1721_v14 = vld [vmem:[#allocation3 + $0x10] ss:$2 sm:$0xff]  ;;  %v1785_v15 = vld [vmem:[#allocation3 + $0x11] ss:$2 sm:$0xff] }
  0xdf   : > { %v1847_v20 = vmax.f32 %v1721_v14, %v1785_v15 }
  0xe0   : > { %v851_v62 = vpop.f32.mrf.mxu0 }
  0xe1   : > { %v852_v8 = vadd.f32 %v5368_v25, %v851_v62  ;;  %1934 = vst.msk [vmem:[#allocation4 + $0x21] sm:$0xff] %vm1333_vm2, %v1847_v20  ;;  %v311_v62 = vld [vmem:[%s5317_s14 + $0x100] sm:$0xff] }
  0xe3   : > { %5109 = vmatmul.msk.f32.gmra.mxu0 %vm415_vm1, %v305_v0  ;;  %v1215_v17 = vmax.f32 %v852_v8, 0.0  ;;  %v1330_v0 = vmax.f32 %v1197_v63, 0.0 }
  0xe4   : > { %v1467_v33 = vld [vmem:[#allocation2 + $0x48] sm:$0xff] }
  0xe5   : > { %1344 = vst.msk [vmem:[#allocation2 + $0x50] sm:$0xff] %vm1333_vm2, %v1215_v17  ;;  %v313_v17 = vld [vmem:[%s5317_s14 + $0x110] sm:$0xff] }
  0xe6   : > { %1459 = vst.msk [vmem:[#allocation2 + $0x3e8] sm:$0xff] %vm1333_vm2, %v1330_v0 }
  0xe8   : > { %v854_v1 = vpop.f32.mrf.mxu0  ;;  %v2095_v29 = vld [vmem:[#allocation4 + $0x1a] sm:$0xff]  ;;  %v2096_v42 = vld [vmem:[#allocation4 + $0x22] sm:$0xff] }
  0xe9   : > { %v855_v11 = vadd.f32 %v5368_v25, %v854_v1  ;;  %3226 = vmatmul.f32.gmra.mxu3 %v2095_v29  ;;  %v1968_v36 = vld [vmem:[#allocation4 + $0x20] sm:$0xff] }
  0xea   : > { %v2032_v37 = vld [vmem:[#allocation4 + $0x21] sm:$0xff]  ;;  %3003 = vmatmul.f32.gmra.mxu1 %v1968_v36 }
  0xeb   : > { %5110 = vmatmul.msk.f32.gmra.mxu0 %vm415_vm1, %v306_v4  ;;  %v1216_v18 = vmax.f32 %v855_v11, 0.0  ;;  %3116 = vmatmul.f32.gmra.mxu2 %v2032_v37  ;;  %v1199_v11 = vpop.f32.mrf.mxu1 }
  0xec   : > { %v1468_v46 = vld [vmem:[#allocation2 + $0x50] sm:$0xff]  ;;  %v1200_v13 = vadd.f32 %v5368_v25, %v1199_v11 }
  0xed   : > { %1345 = vst.msk [vmem:[#allocation2 + $0x58] sm:$0xff] %vm1333_vm2, %v1216_v18 }
  0xee   : > { %v1331_v15 = vmax.f32 %v1200_v13, 0.0 }
  0xf0   : > { %v857_v9 = vpop.f32.mrf.mxu0  ;;  %1460 = vst.msk [vmem:[#allocation2 + $0x3f0] sm:$0xff] %vm1333_vm2, %v1331_v15  ;;  %v322_v15 = vld [vmem:[%s5317_s14 + $0x158] sm:$0xff] }
  0xf1   : > { %v858_v16 = vadd.f32 %v5368_v25, %v857_v9  ;;  %3229 = vmatmul.f32.gmra.mxu3 %v2096_v42 }
  0xf3   : > { %v1217_v21 = vmax.f32 %v858_v16, 0.0  ;;  %5111 = vmatmul.msk.f32.gmra.mxu0 %vm415_vm1, %v307_v19  ;;  %v1202_v18 = vpop.f32.mrf.mxu1 }
  0xf4   : > { %v1469_v58 = vld [vmem:[#allocation2 + $0x58] sm:$0xff] }
  0xf5   : > { %1346 = vst.msk [vmem:[#allocation2 + $0x60] sm:$0xff] %vm1333_vm2, %v1217_v21 }
  0xf8   : > { %v860_v22 = vpop.f32.mrf.mxu0 }
  0xf9   : > { %v861_v3 = vadd.f32 %v5368_v25, %v860_v22 }
  0xfb   : > { %v1218_v23 = vmax.f32 %v861_v3, 0.0  ;;  %5112 = vmatmul.msk.f32.gmra.mxu0 %vm415_vm1, %v308_v24  ;;  %v1203_v3 = vadd.f32 %v5368_v25, %v1202_v18 }
  0xfc   : > { %v1531_v32 = vld [vmem:[#allocation2 + $0x60] sm:$0xff] }
  0xfd   : > { %1347 = vst.msk [vmem:[#allocation2 + $0x68] sm:$0xff] %vm1333_vm2, %v1218_v23  ;;  %v1595_v34 = vmax.f32 %v1466_v31, %v1531_v32  ;;  %v1332_v24 = vmax.f32 %v1203_v3, 0.0  ;;  %v315_v32 = vld [vmem:[%s5317_s14 + $0x120] sm:$0xff] }
  0xfe   : > { %v323_v3 = vld [vmem:[%s5317_s14 + $0x160] sm:$0xff] }
  0xff   : > { %1659 = vst.msk [vmem:[#allocation3 + $0x20] sm:$0xff] %vm1333_vm2, %v1595_v34 }
 0x100   : > { %v863_v28 = vpop.f32.mrf.mxu0  ;;  %1461 = vst.msk [vmem:[#allocation2 + $0x3f8] sm:$0xff] %vm1333_vm2, %v1332_v24 }
 0x101   : > { %v864_v30 = vadd.f32 %v5368_v25, %v863_v28 }
 0x103   : > { %v1219_v35 = vmax.f32 %v864_v30, 0.0  ;;  %5113 = vmatmul.msk.f32.gmra.mxu0 %vm415_vm1, %v309_v40 }
 0x104   : > { %v1532_v38 = vld [vmem:[#allocation2 + $0x68] sm:$0xff] }
 0x105   : > { %v1596_v39 = vmax.f32 %v1467_v33, %v1532_v38  ;;  %1348 = vst.msk [vmem:[#allocation2 + $0x70] sm:$0xff] %vm1333_vm2, %v1219_v35 }
 0x107   : > { %1660 = vst.msk [vmem:[#allocation3 + $0x28] sm:$0xff] %vm1333_vm2, %v1596_v39  ;;  %v316_v39 = vld [vmem:[%s5317_s14 + $0x128] sm:$0xff] }
 0x108   : > { %v866_v41 = vpop.f32.mrf.mxu0 }
 0x109   : > { %v867_v43 = vadd.f32 %v5368_v25, %v866_v41 }
 0x10b   : > { %v1220_v44 = vmax.f32 %v867_v43, 0.0  ;;  %5114 = vmatmul.msk.f32.gmra.mxu0 %vm415_vm1, %v310_v48 }
 0x10c   : > { %v1533_v47 = vld [vmem:[#allocation2 + $0x70] sm:$0xff] }
 0x10d   : > { %1349 = vst.msk [vmem:[#allocation2 + $0x78] sm:$0xff] %vm1333_vm2, %v1220_v44  ;;  %v1597_v50 = vmax.f32 %v1468_v46, %v1533_v47  ;;  %v317_v46 = vld [vmem:[%s5317_s14 + $0x130] sm:$0xff] }
 0x10e   : > { %v1723_v51 = vld [vmem:[#allocation3 + $0x20] ss:$2 sm:$0xff]  ;;  %v1787_v52 = vld [vmem:[#allocation3 + $0x21] ss:$2 sm:$0xff] }
 0x10f   : > { %v1848_v53 = vmax.f32 %v1723_v51, %v1787_v52  ;;  %1661 = vst.msk [vmem:[#allocation3 + $0x30] sm:$0xff] %vm1333_vm2, %v1597_v50 }
 0x110   : > { %v869_v55 = vpop.f32.mrf.mxu0 }
 0x111   : > { %v870_v56 = vadd.f32 %v5368_v25, %v869_v55  ;;  %1935 = vst.msk [vmem:[#allocation4 + $0x31] sm:$0xff] %vm1333_vm2, %v1848_v53  ;;  %v318_v53 = vld [vmem:[%s5317_s14 + $0x138] sm:$0xff] }
 0x113   : > { %v1221_v57 = vmax.f32 %v870_v56, 0.0  ;;  %5115 = vmatmul.msk.f32.gmra.mxu0 %vm415_vm1, %v311_v62  ;;  %v319_v62 = vld [vmem:[%s5317_s14 + $0x140] sm:$0xff] }
 0x114   : > { %v1534_v59 = vld [vmem:[#allocation2 + $0x78] sm:$0xff] }
 0x115   : > { %v1598_v61 = vmax.f32 %v1469_v58, %v1534_v59  ;;  %1350 = vst.msk [vmem:[#allocation2 + $0x80] sm:$0xff] %vm1333_vm2, %v1221_v57 }
 0x117   : > { %1662 = vst.msk [vmem:[#allocation3 + $0x38] sm:$0xff] %vm1333_vm2, %v1598_v61 }
 0x118   : > { %v872_v1 = vpop.f32.mrf.mxu0  ;;  %v1969_v2 = vld [vmem:[#allocation4 + $0x30] sm:$0xff] }
 0x119   : > { %v2033_v4 = vld [vmem:[#allocation4 + $0x31] sm:$0xff]  ;;  %v873_v5 = vadd.f32 %v5368_v25, %v872_v1  ;;  %3006 = vmatmul.f32.gmra.mxu1 %v1969_v2  ;;  %v320_v2 = vld [vmem:[%s5317_s14 + $0x148] sm:$0xff] }
 0x11a   : > { %3119 = vmatmul.f32.gmra.mxu2 %v2033_v4 }
 0x11b   : > { %v1222_v6 = vmax.f32 %v873_v5, 0.0  ;;  %5116 = vmatmul.msk.f32.gmra.mxu0 %vm415_vm1, %v312_v7 }
 0x11c   : > { %v1470_v36 = vld [vmem:[#allocation2 + $0x80] sm:$0xff] }
 0x11d   : > { %1351 = vst.msk [vmem:[#allocation2 + $0x88] sm:$0xff] %vm1333_vm2, %v1222_v6 }
 0x11e   : > { %v1725_v8 = vld [vmem:[#allocation3 + $0x30] ss:$2 sm:$0xff]  ;;  %v1789_v9 = vld [vmem:[#allocation3 + $0x31] ss:$2 sm:$0xff] }
 0x11f   : > { %v1849_v10 = vmax.f32 %v1725_v8, %v1789_v9 }
 0x120   : > { %v875_v12 = vpop.f32.mrf.mxu0 }
 0x121   : > { %v876_v14 = vadd.f32 %v5368_v25, %v875_v12  ;;  %1936 = vst.msk [vmem:[#allocation4 + $0x39] sm:$0xff] %vm1333_vm2, %v1849_v10  ;;  %v321_v12 = vld [vmem:[%s5317_s14 + $0x150] sm:$0xff] }
 0x123   : > { %v1223_v16 = vmax.f32 %v876_v14, 0.0  ;;  %5117 = vmatmul.msk.f32.gmra.mxu0 %vm415_vm1, %v313_v17 }
 0x124   : > { %v1471_v43 = vld [vmem:[#allocation2 + $0x88] sm:$0xff] }
 0x125   : > { %1352 = vst.msk [vmem:[#allocation2 + $0x90] sm:$0xff] %vm1333_vm2, %v1223_v16 }
 0x128   : > { %v878_v19 = vpop.f32.mrf.mxu0  ;;  %v1970_v20 = vld [vmem:[#allocation4 + $0x38] sm:$0xff] }
 0x129   : > { %v2034_v21 = vld [vmem:[#allocation4 + $0x39] sm:$0xff]  ;;  %v879_v23 = vadd.f32 %v5368_v25, %v878_v19  ;;  %3009 = vmatmul.f32.gmra.mxu1 %v1970_v20 }
 0x12a   : > { %v2097_v22 = vld [vmem:[#allocation4 + $0x32] sm:$0xff]  ;;  %3122 = vmatmul.f32.gmra.mxu2 %v2034_v21  ;;  %v2098_v30 = vld [vmem:[#allocation4 + $0x3a] sm:$0xff] }
 0x12b   : > { %3232 = vmatmul.f32.gmra.mxu3 %v2097_v22  ;;  %v1224_v26 = vmax.f32 %v879_v23, 0.0  ;;  %5118 = vmatmul.msk.f32.gmra.mxu0 %vm415_vm1, %v314_v27 }
 0x12c   : > { %v1472_v50 = vld [vmem:[#allocation2 + $0x90] sm:$0xff] }
 0x12d   : > { %1353 = vst.msk [vmem:[#allocation2 + $0x98] sm:$0xff] %vm1333_vm2, %v1224_v26 }
 0x130   : > { %v881_v28 = vpop.f32.mrf.mxu0 }
 0x131   : > { %v882_v29 = vadd.f32 %v5368_v25, %v881_v28  ;;  %v324_v28 = vld [vmem:[%s5317_s14 + $0x168] sm:$0xff] }
 0x133   : > { %3235 = vmatmul.f32.gmra.mxu3 %v2098_v30  ;;  %v1225_v31 = vmax.f32 %v882_v29, 0.0  ;;  %5119 = vmatmul.msk.f32.gmra.mxu0 %vm415_vm1, %v315_v32 }
 0x134   : > { %v1473_v56 = vld [vmem:[#allocation2 + $0x98] sm:$0xff] }
 0x135   : > { %1354 = vst.msk [vmem:[#allocation2 + $0xa0] sm:$0xff] %vm1333_vm2, %v1225_v31 }
 0x138   : > { %v884_v33 = vpop.f32.mrf.mxu0 }
 0x139   : > { %v885_v34 = vadd.f32 %v5368_v25, %v884_v33 }
 0x13b   : > { %v1226_v35 = vmax.f32 %v885_v34, 0.0  ;;  %5120 = vmatmul.msk.f32.gmra.mxu0 %vm415_vm1, %v316_v39 }
 0x13c   : > { %v1535_v37 = vld [vmem:[#allocation2 + $0xa0] sm:$0xff] }
 0x13d   : > { %v1599_v38 = vmax.f32 %v1470_v36, %v1535_v37  ;;  %1355 = vst.msk [vmem:[#allocation2 + $0xa8] sm:$0xff] %vm1333_vm2, %v1226_v35  ;;  %v325_v35 = vld [vmem:[%s5317_s14 + $0x170] sm:$0xff] }
 0x13f   : > { %1663 = vst.msk [vmem:[#allocation3 + $0x40] sm:$0xff] %vm1333_vm2, %v1599_v38 }
 0x140   : > { %v887_v40 = vpop.f32.mrf.mxu0 }
 0x141   : > { %v888_v41 = vadd.f32 %v5368_v25, %v887_v40 }
 0x143   : > { %v1227_v42 = vmax.f32 %v888_v41, 0.0  ;;  %5121 = vmatmul.msk.f32.gmra.mxu0 %vm415_vm1, %v317_v46 }
 0x144   : > { %v1536_v44 = vld [vmem:[#allocation2 + $0xa8] sm:$0xff] }
 0x145   : > { %v1600_v45 = vmax.f32 %v1471_v43, %v1536_v44  ;;  %1356 = vst.msk [vmem:[#allocation2 + $0xb0] sm:$0xff] %vm1333_vm2, %v1227_v42  ;;  %v326_v42 = vld [vmem:[%s5317_s14 + $0x178] sm:$0xff] }
 0x147   : > { %1664 = vst.msk [vmem:[#allocation3 + $0x48] sm:$0xff] %vm1333_vm2, %v1600_v45 }
 0x148   : > { %v890_v47 = vpop.f32.mrf.mxu0 }
 0x149   : > { %v891_v48 = vadd.f32 %v5368_v25, %v890_v47 }
 0x14b   : > { %v1228_v49 = vmax.f32 %v891_v48, 0.0  ;;  %5122 = vmatmul.msk.f32.gmra.mxu0 %vm415_vm1, %v318_v53 }
 0x14c   : > { %v1537_v51 = vld [vmem:[#allocation2 + $0xb0] sm:$0xff] }
 0x14d   : > { %v1601_v52 = vmax.f32 %v1472_v50, %v1537_v51  ;;  %1357 = vst.msk [vmem:[#allocation2 + $0xb8] sm:$0xff] %vm1333_vm2, %v1228_v49  ;;  %v5744_v51 = vld [vmem:[%s7879_s2] ss:$0 sm:$0xff] }
 0x14e   : > { %v1727_v59 = vld [vmem:[#allocation3 + $0x40] ss:$2 sm:$0xff]  ;;  %v1791_v60 = vld [vmem:[#allocation3 + $0x41] ss:$2 sm:$0xff] }
 0x14f   : > { %1665 = vst.msk [vmem:[#allocation3 + $0x50] sm:$0xff] %vm1333_vm2, %v1601_v52  ;;  %v1850_v63 = vmax.f32 %v1727_v59, %v1791_v60  ;;  %v327_v52 = vld [vmem:[%s5317_s14 + $0x180] sm:$0xff] }
 0x150   : > { %v893_v54 = vpop.f32.mrf.mxu0 }
 0x151   : > { %v894_v55 = vadd.f32 %v5368_v25, %v893_v54  ;;  %1937 = vst.msk [vmem:[#allocation4 + $0x49] sm:$0xff] %vm1333_vm2, %v1850_v63 }
 0x153   : > { %v1229_v57 = vmax.f32 %v894_v55, 0.0  ;;  %5123 = vmatmul.msk.f32.gmra.mxu0 %vm415_vm1, %v319_v62 }
 0x154   : > { %v1538_v58 = vld [vmem:[#allocation2 + $0xb8] sm:$0xff] }
 0x155   : > { %v1602_v61 = vmax.f32 %v1473_v56, %v1538_v58  ;;  %1358 = vst.msk [vmem:[#allocation2 + $0xc0] sm:$0xff] %vm1333_vm2, %v1229_v57 }
 0x157   : > { %1666 = vst.msk [vmem:[#allocation3 + $0x58] sm:$0xff] %vm1333_vm2, %v1602_v61  ;;  %v328_v61 = vld [vmem:[%s5317_s14 + $0x188] sm:$0xff] }
 0x158   : > { %v896_v0 = vpop.f32.mrf.mxu0  ;;  %v1971_v4 = vld [vmem:[#allocation4 + $0x48] sm:$0xff] }
 0x159   : > { %v897_v1 = vadd.f32 %v5368_v25, %v896_v0  ;;  %v2035_v5 = vld [vmem:[#allocation4 + $0x49] sm:$0xff]  ;;  %3012 = vmatmul.f32.gmra.mxu1 %v1971_v4 }
 0x15a   : > { %3125 = vmatmul.f32.gmra.mxu2 %v2035_v5  ;;  %v329_v5 = vld [vmem:[%s5317_s14 + $0x190] sm:$0xff] }
 0x15b   : > { %v1230_v6 = vmax.f32 %v897_v1, 0.0  ;;  %5124 = vmatmul.msk.f32.gmra.mxu0 %vm415_vm1, %v320_v2 }
 0x15c   : > { %v1474_v30 = vld [vmem:[#allocation2 + $0xc0] sm:$0xff] }
 0x15d   : > { %1359 = vst.msk [vmem:[#allocation2 + $0xc8] sm:$0xff] %vm1333_vm2, %v1230_v6 }
 0x15e   : > { %v1729_v7 = vld [vmem:[#allocation3 + $0x50] ss:$2 sm:$0xff]  ;;  %v1793_v8 = vld [vmem:[#allocation3 + $0x51] ss:$2 sm:$0xff] }
 0x15f   : > { %v1851_v10 = vmax.f32 %v1729_v7, %v1793_v8 }
 0x160   : > { %v899_v9 = vpop.f32.mrf.mxu0 }
 0x161   : > { %v900_v11 = vadd.f32 %v5368_v25, %v899_v9  ;;  %1938 = vst.msk [vmem:[#allocation4 + $0x51] sm:$0xff] %vm1333_vm2, %v1851_v10 }
 0x163   : > { %v1231_v13 = vmax.f32 %v900_v11, 0.0  ;;  %5125 = vmatmul.msk.f32.gmra.mxu0 %vm415_vm1, %v321_v12  ;;  %v330_v12 = vld [vmem:[%s5317_s14 + $0x198] sm:$0xff] }
 0x164   : > { %v1475_v37 = vld [vmem:[#allocation2 + $0xc8] sm:$0xff] }
 0x165   : > { %1360 = vst.msk [vmem:[#allocation2 + $0xd0] sm:$0xff] %vm1333_vm2, %v1231_v13 }
 0x168   : > { %v902_v14 = vpop.f32.mrf.mxu0  ;;  %v1972_v17 = vld [vmem:[#allocation4 + $0x50] sm:$0xff] }
 0x169   : > { %v903_v16 = vadd.f32 %v5368_v25, %v902_v14  ;;  %v2036_v18 = vld [vmem:[#allocation4 + $0x51] sm:$0xff]  ;;  %3015 = vmatmul.f32.gmra.mxu1 %v1972_v17  ;;  %v331_v17 = vld [vmem:[%s5317_s14 + $0x1a0] sm:$0xff] }
 0x16a   : > { %v2099_v19 = vld [vmem:[#allocation4 + $0x4a] sm:$0xff]  ;;  %3128 = vmatmul.f32.gmra.mxu2 %v2036_v18  ;;  %v2100_v23 = vld [vmem:[#allocation4 + $0x52] sm:$0xff] }
 0x16b   : > { %v1232_v20 = vmax.f32 %v903_v16, 0.0  ;;  %3238 = vmatmul.f32.gmra.mxu3 %v2099_v19  ;;  %5126 = vmatmul.msk.f32.gmra.mxu0 %vm415_vm1, %v322_v15 }
 0x16c   : > { %v1476_v44 = vld [vmem:[#allocation2 + $0xd0] sm:$0xff] }
 0x16d   : > { %1361 = vst.msk [vmem:[#allocation2 + $0xd8] sm:$0xff] %vm1333_vm2, %v1232_v20 }
 0x170   : > { %v905_v21 = vpop.f32.mrf.mxu0 }
 0x171   : > { %v906_v22 = vadd.f32 %v5368_v25, %v905_v21  ;;  %v332_v21 = vld [vmem:[%s5317_s14 + $0x1a8] sm:$0xff] }
 0x173   : > { %v1233_v24 = vmax.f32 %v906_v22, 0.0  ;;  %3241 = vmatmul.f32.gmra.mxu3 %v2100_v23  ;;  %5127 = vmatmul.msk.f32.gmra.mxu0 %vm415_vm1, %v323_v3 }
 0x174   : > { %v1477_v54 = vld [vmem:[#allocation2 + $0xd8] sm:$0xff] }
 0x175   : > { %1362 = vst.msk [vmem:[#allocation2 + $0xe0] sm:$0xff] %vm1333_vm2, %v1233_v24 }
 0x178   : > { %v908_v26 = vpop.f32.mrf.mxu0 }
 0x179   : > { %v909_v27 = vadd.f32 %v5368_v25, %v908_v26 }
 0x17b   : > { %v1234_v29 = vmax.f32 %v909_v27, 0.0  ;;  %5128 = vmatmul.msk.f32.gmra.mxu0 %vm415_vm1, %v324_v28  ;;  %v333_v28 = vld [vmem:[%s5317_s14 + $0x1b0] sm:$0xff] }
 0x17c   : > { %v1539_v31 = vld [vmem:[#allocation2 + $0xe0] sm:$0xff] }
 0x17d   : > { %v1603_v32 = vmax.f32 %v1474_v30, %v1539_v31  ;;  %1363 = vst.msk [vmem:[#allocation2 + $0xe8] sm:$0xff] %vm1333_vm2, %v1234_v29 }
 0x17f   : > { %1667 = vst.msk [vmem:[#allocation3 + $0x60] sm:$0xff] %vm1333_vm2, %v1603_v32 }
 0x180   : > { %v911_v33 = vpop.f32.mrf.mxu0 }
 0x181   : > { %v912_v34 = vadd.f32 %v5368_v25, %v911_v33 }
 0x183   : > { %v1235_v36 = vmax.f32 %v912_v34, 0.0  ;;  %5129 = vmatmul.msk.f32.gmra.mxu0 %vm415_vm1, %v325_v35  ;;  %v334_v35 = vld [vmem:[%s5317_s14 + $0x1b8] sm:$0xff] }
 0x184   : > { %v1540_v38 = vld [vmem:[#allocation2 + $0xe8] sm:$0xff] }
 0x185   : > { %v1604_v39 = vmax.f32 %v1475_v37, %v1540_v38  ;;  %1364 = vst.msk [vmem:[#allocation2 + $0xf0] sm:$0xff] %vm1333_vm2, %v1235_v36 }
 0x187   : > { %1668 = vst.msk [vmem:[#allocation3 + $0x68] sm:$0xff] %vm1333_vm2, %v1604_v39 }
 0x188   : > { %v914_v40 = vpop.f32.mrf.mxu0 }
 0x189   : > { %v915_v41 = vadd.f32 %v5368_v25, %v914_v40 }
 0x18b   : > { %v1236_v43 = vmax.f32 %v915_v41, 0.0  ;;  %5130 = vmatmul.msk.f32.gmra.mxu0 %vm415_vm1, %v326_v42 }
 0x18c   : > { %v1541_v45 = vld [vmem:[#allocation2 + $0xf0] sm:$0xff] }
 0x18d   : > { %v1605_v46 = vmax.f32 %v1476_v44, %v1541_v45  ;;  %1365 = vst.msk [vmem:[#allocation2 + $0xf8] sm:$0xff] %vm1333_vm2, %v1236_v43  ;;  %v335_v45 = vld [vmem:[%s5317_s14 + $0x1c0] sm:$0xff] }
 0x18e   : > { %v1731_v47 = vld [vmem:[#allocation3 + $0x60] ss:$2 sm:$0xff]  ;;  %v1795_v48 = vld [vmem:[#allocation3 + $0x61] ss:$2 sm:$0xff] }
 0x18f   : > { %1669 = vst.msk [vmem:[#allocation3 + $0x70] sm:$0xff] %vm1333_vm2, %v1605_v46  ;;  %v1852_v49 = vmax.f32 %v1731_v47, %v1795_v48 }
 0x190   : > { %v917_v50 = vpop.f32.mrf.mxu0 }
 0x191   : > { %v918_v25 = vadd.f32 %v5744_v51, %v917_v50  ;;  %1939 = vst.msk [vmem:[#allocation4 + $0x61] sm:$0xff] %vm1333_vm2, %v1852_v49 }
 0x193   : > { %v1237_v53 = vmax.f32 %v918_v25, 0.0  ;;  %5131 = vmatmul.msk.f32.gmra.mxu0 %vm415_vm1, %v327_v52 }
 0x194   : > { %v1542_v55 = vld [vmem:[#allocation2 + $0xf8] sm:$0xff] }
 0x195   : > { %v1606_v56 = vmax.f32 %v1477_v54, %v1542_v55  ;;  %1366 = vst.msk [vmem:[#allocation2 + $0x100] sm:$0xff] %vm1333_vm2, %v1237_v53  ;;  %v336_v53 = vld [vmem:[%s5317_s14 + $0x1c8] sm:$0xff] }
 0x197   : > { %1670 = vst.msk [vmem:[#allocation3 + $0x78] sm:$0xff] %vm1333_vm2, %v1606_v56 }
 0x198   : > { %v920_v57 = vpop.f32.mrf.mxu0  ;;  %v1973_v58 = vld [vmem:[#allocation4 + $0x60] sm:$0xff] }
 0x199   : > { %v2037_v59 = vld [vmem:[#allocation4 + $0x61] sm:$0xff]  ;;  %v921_v60 = vadd.f32 %v5744_v51, %v920_v57  ;;  %3018 = vmatmul.f32.gmra.mxu1 %v1973_v58 }
 0x19a   : > { %3131 = vmatmul.f32.gmra.mxu2 %v2037_v59 }
 0x19b   : > { %v1238_v62 = vmax.f32 %v921_v60, 0.0  ;;  %5132 = vmatmul.msk.f32.gmra.mxu0 %vm415_vm1, %v328_v61  ;;  %v337_v60 = vld [vmem:[%s5317_s14 + $0x1d0] sm:$0xff] }
 0x19c   : > { %v1478_v3 = vld [vmem:[#allocation2 + $0x100] sm:$0xff] }
 0x19d   : > { %1367 = vst.msk [vmem:[#allocation2 + $0x108] sm:$0xff] %vm1333_vm2, %v1238_v62 }
 0x19e   : > { %v1733_v63 = vld [vmem:[#allocation3 + $0x70] ss:$2 sm:$0xff]  ;;  %v1797_v0 = vld [vmem:[#allocation3 + $0x71] ss:$2 sm:$0xff] }
 0x19f   : > { %v1853_v1 = vmax.f32 %v1733_v63, %v1797_v0 }
 0x1a0   : > { %v923_v2 = vpop.f32.mrf.mxu0 }
 0x1a1   : > { %v924_v4 = vadd.f32 %v5744_v51, %v923_v2  ;;  %1940 = vst.msk [vmem:[#allocation4 + $0x69] sm:$0xff] %vm1333_vm2, %v1853_v1 }
 0x1a3   : > { %v1239_v6 = vmax.f32 %v924_v4, 0.0  ;;  %5133 = vmatmul.msk.f32.gmra.mxu0 %vm415_vm1, %v329_v5  ;;  %v338_v4 = vld [vmem:[%s5317_s14 + $0x1d8] sm:$0xff] }
 0x1a4   : > { %v1479_v30 = vld [vmem:[#allocation2 + $0x108] sm:$0xff] }
 0x1a5   : > { %1368 = vst.msk [vmem:[#allocation2 + $0x110] sm:$0xff] %vm1333_vm2, %v1239_v6 }
 0x1a8   : > { %v926_v7 = vpop.f32.mrf.mxu0  ;;  %v1974_v8 = vld [vmem:[#allocation4 + $0x68] sm:$0xff] }
 0x1a9   : > { %v2038_v9 = vld [vmem:[#allocation4 + $0x69] sm:$0xff]  ;;  %v927_v11 = vadd.f32 %v5744_v51, %v926_v7  ;;  %3021 = vmatmul.f32.gmra.mxu1 %v1974_v8 }
 0x1aa   : > { %v2101_v10 = vld [vmem:[#allocation4 + $0x62] sm:$0xff]  ;;  %3134 = vmatmul.f32.gmra.mxu2 %v2038_v9  ;;  %v2102_v16 = vld [vmem:[#allocation4 + $0x6a] sm:$0xff] }
 0x1ab   : > { %3244 = vmatmul.f32.gmra.mxu3 %v2101_v10  ;;  %v1240_v13 = vmax.f32 %v927_v11, 0.0  ;;  %5134 = vmatmul.msk.f32.gmra.mxu0 %vm415_vm1, %v330_v12  ;;  %v339_v9 = vld [vmem:[%s5317_s14 + $0x1e0] sm:$0xff] }
 0x1ac   : > { %v1480_v37 = vld [vmem:[#allocation2 + $0x110] sm:$0xff] }
 0x1ad   : > { %1369 = vst.msk [vmem:[#allocation2 + $0x118] sm:$0xff] %vm1333_vm2, %v1240_v13  ;;  %v340_v13 = vld [vmem:[%s5317_s14 + $0x1e8] sm:$0xff] }
 0x1b0   : > { %v929_v14 = vpop.f32.mrf.mxu0 }
 0x1b1   : > { %v930_v15 = vadd.f32 %v5744_v51, %v929_v14 }
 0x1b3   : > { %3247 = vmatmul.f32.gmra.mxu3 %v2102_v16  ;;  %v1241_v18 = vmax.f32 %v930_v15, 0.0  ;;  %5135 = vmatmul.msk.f32.gmra.mxu0 %vm415_vm1, %v331_v17 }
 0x1b4   : > { %v1481_v47 = vld [vmem:[#allocation2 + $0x118] sm:$0xff] }
 0x1b5   : > { %1370 = vst.msk [vmem:[#allocation2 + $0x120] sm:$0xff] %vm1333_vm2, %v1241_v18 }
 0x1b8   : > { %v932_v19 = vpop.f32.mrf.mxu0 }
 0x1b9   : > { %v933_v20 = vadd.f32 %v5744_v51, %v932_v19 }
 0x1bb   : > { %v1242_v22 = vmax.f32 %v933_v20, 0.0  ;;  %5136 = vmatmul.msk.f32.gmra.mxu0 %vm415_vm1, %v332_v21  ;;  %v341_v20 = vld [vmem:[%s5317_s14 + $0x1f0] sm:$0xff] }
 0x1bc   : > { %v1543_v23 = vld [vmem:[#allocation2 + $0x120] sm:$0xff] }
 0x1bd   : > { %v1607_v24 = vmax.f32 %v1478_v3, %v1543_v23  ;;  %1371 = vst.msk [vmem:[#allocation2 + $0x128] sm:$0xff] %vm1333_vm2, %v1242_v22 }
 0x1bf   : > { %1671 = vst.msk [vmem:[#allocation3 + $0x80] sm:$0xff] %vm1333_vm2, %v1607_v24 }
 0x1c0   : > { %v935_v26 = vpop.f32.mrf.mxu0 }
 0x1c1   : > { %v936_v27 = vadd.f32 %v5744_v51, %v935_v26 }
 0x1c3   : > { %v1243_v29 = vmax.f32 %v936_v27, 0.0  ;;  %5137 = vmatmul.msk.f32.gmra.mxu0 %vm415_vm1, %v333_v28  ;;  %v342_v27 = vld [vmem:[%s5317_s14 + $0x1f8] sm:$0xff] }
 0x1c4   : > { %v1544_v31 = vld [vmem:[#allocation2 + $0x128] sm:$0xff] }
 0x1c5   : > { %v1608_v32 = vmax.f32 %v1479_v30, %v1544_v31  ;;  %1372 = vst.msk [vmem:[#allocation2 + $0x130] sm:$0xff] %vm1333_vm2, %v1243_v29 }
 0x1c7   : > { %1672 = vst.msk [vmem:[#allocation3 + $0x88] sm:$0xff] %vm1333_vm2, %v1608_v32 }
 0x1c8   : > { %v938_v33 = vpop.f32.mrf.mxu0 }
 0x1c9   : > { %v939_v34 = vadd.f32 %v5744_v51, %v938_v33 }
 0x1cb   : > { %v1244_v36 = vmax.f32 %v939_v34, 0.0  ;;  %5138 = vmatmul.msk.f32.gmra.mxu0 %vm415_vm1, %v334_v35 }
 0x1cc   : > { %v1545_v38 = vld [vmem:[#allocation2 + $0x130] sm:$0xff] }
 0x1cd   : > { %v1609_v39 = vmax.f32 %v1480_v37, %v1545_v38  ;;  %1373 = vst.msk [vmem:[#allocation2 + $0x138] sm:$0xff] %vm1333_vm2, %v1244_v36  ;;  %v343_v37 = vld [vmem:[%s5317_s14 + $0x200] sm:$0xff] }
 0x1ce   : > { %v1735_v40 = vld [vmem:[#allocation3 + $0x80] ss:$2 sm:$0xff]  ;;  %v1799_v41 = vld [vmem:[#allocation3 + $0x81] ss:$2 sm:$0xff] }
 0x1cf   : > { %1673 = vst.msk [vmem:[#allocation3 + $0x90] sm:$0xff] %vm1333_vm2, %v1609_v39  ;;  %v1854_v42 = vmax.f32 %v1735_v40, %v1799_v41 }
 0x1d0   : > { %v941_v43 = vpop.f32.mrf.mxu0 }
 0x1d1   : > { %v942_v44 = vadd.f32 %v5744_v51, %v941_v43  ;;  %1941 = vst.msk [vmem:[#allocation4 + $0x79] sm:$0xff] %vm1333_vm2, %v1854_v42 }
 0x1d3   : > { %v1245_v46 = vmax.f32 %v942_v44, 0.0  ;;  %5139 = vmatmul.msk.f32.gmra.mxu0 %vm415_vm1, %v335_v45 }
 0x1d4   : > { %v1546_v48 = vld [vmem:[#allocation2 + $0x138] sm:$0xff] }
 0x1d5   : > { %v1610_v49 = vmax.f32 %v1481_v47, %v1546_v48  ;;  %1374 = vst.msk [vmem:[#allocation2 + $0x140] sm:$0xff] %vm1333_vm2, %v1245_v46  ;;  %v344_v46 = vld [vmem:[%s5317_s14 + $0x208] sm:$0xff] }
 0x1d7   : > { %1674 = vst.msk [vmem:[#allocation3 + $0x98] sm:$0xff] %vm1333_vm2, %v1610_v49 }
 0x1d8   : > { %v1975_v50 = vld [vmem:[#allocation4 + $0x78] sm:$0xff]  ;;  %v944_v52 = vpop.f32.mrf.mxu0 }
 0x1d9   : > { %v2039_v25 = vld [vmem:[#allocation4 + $0x79] sm:$0xff]  ;;  %3024 = vmatmul.f32.gmra.mxu1 %v1975_v50  ;;  %v945_v54 = vadd.f32 %v5744_v51, %v944_v52 }
 0x1da   : > { %3137 = vmatmul.f32.gmra.mxu2 %v2039_v25 }
 0x1db   : > { %v1246_v55 = vmax.f32 %v945_v54, 0.0  ;;  %5140 = vmatmul.msk.f32.gmra.mxu0 %vm415_vm1, %v336_v53  ;;  %v345_v53 = vld [vmem:[%s5317_s14 + $0x210] sm:$0xff] }
 0x1dc   : > { %v1482_v16 = vld [vmem:[#allocation2 + $0x140] sm:$0xff] }
 0x1dd   : > { %1375 = vst.msk [vmem:[#allocation2 + $0x148] sm:$0xff] %vm1333_vm2, %v1246_v55 }
 0x1de   : > { %v1737_v56 = vld [vmem:[#allocation3 + $0x90] ss:$2 sm:$0xff]  ;;  %v1801_v57 = vld [vmem:[#allocation3 + $0x91] ss:$2 sm:$0xff] }
 0x1df   : > { %v1855_v58 = vmax.f32 %v1737_v56, %v1801_v57  ;;  %v346_v56 = vld [vmem:[%s5317_s14 + $0x218] sm:$0xff] }
 0x1e0   : > { %v947_v59 = vpop.f32.mrf.mxu0 }
 0x1e1   : > { %1942 = vst.msk [vmem:[#allocation4 + $0x81] sm:$0xff] %vm1333_vm2, %v1855_v58  ;;  %v948_v61 = vadd.f32 %v5744_v51, %v947_v59 }
 0x1e3   : > { %v1247_v62 = vmax.f32 %v948_v61, 0.0  ;;  %5141 = vmatmul.msk.f32.gmra.mxu0 %vm415_vm1, %v337_v60 }
 0x1e4   : > { %v1483_v3 = vld [vmem:[#allocation2 + $0x148] sm:$0xff] }
 0x1e5   : > { %1376 = vst.msk [vmem:[#allocation2 + $0x150] sm:$0xff] %vm1333_vm2, %v1247_v62 }
 0x1e8   : > { %v1976_v63 = vld [vmem:[#allocation4 + $0x80] sm:$0xff]  ;;  %v950_v2 = vpop.f32.mrf.mxu0 }
 0x1e9   : > { %v2040_v0 = vld [vmem:[#allocation4 + $0x81] sm:$0xff]  ;;  %3027 = vmatmul.f32.gmra.mxu1 %v1976_v63  ;;  %v951_v5 = vadd.f32 %v5744_v51, %v950_v2 }
 0x1ea   : > { %v2103_v1 = vld [vmem:[#allocation4 + $0x7a] sm:$0xff]  ;;  %3140 = vmatmul.f32.gmra.mxu2 %v2040_v0  ;;  %v2104_v8 = vld [vmem:[#allocation4 + $0x82] sm:$0xff] }
 0x1eb   : > { %3250 = vmatmul.f32.gmra.mxu3 %v2103_v1  ;;  %v1248_v6 = vmax.f32 %v951_v5, 0.0  ;;  %5142 = vmatmul.msk.f32.gmra.mxu0 %vm415_vm1, %v338_v4  ;;  %v347_v0 = vld [vmem:[%s5317_s14 + $0x220] sm:$0xff] }
 0x1ec   : > { %v1484_v30 = vld [vmem:[#allocation2 + $0x150] sm:$0xff] }
 0x1ed   : > { %1377 = vst.msk [vmem:[#allocation2 + $0x158] sm:$0xff] %vm1333_vm2, %v1248_v6  ;;  %v348_v6 = vld [vmem:[%s5317_s14 + $0x228] sm:$0xff] }
 0x1f0   : > { %v953_v7 = vpop.f32.mrf.mxu0 }
 0x1f1   : > { %v954_v10 = vadd.f32 %v5744_v51, %v953_v7 }
 0x1f3   : > { %3253 = vmatmul.f32.gmra.mxu3 %v2104_v8  ;;  %v1249_v11 = vmax.f32 %v954_v10, 0.0  ;;  %5143 = vmatmul.msk.f32.gmra.mxu0 %vm415_vm1, %v339_v9 }
 0x1f4   : > { %v1485_v40 = vld [vmem:[#allocation2 + $0x158] sm:$0xff] }
 0x1f5   : > { %1378 = vst.msk [vmem:[#allocation2 + $0x160] sm:$0xff] %vm1333_vm2, %v1249_v11 }
 0x1f8   : > { %v956_v12 = vpop.f32.mrf.mxu0 }
 0x1f9   : > { %v957_v14 = vadd.f32 %v5744_v51, %v956_v12 }
 0x1fb   : > { %v1250_v15 = vmax.f32 %v957_v14, 0.0  ;;  %5144 = vmatmul.msk.f32.gmra.mxu0 %vm415_vm1, %v340_v13  ;;  %v349_v13 = vld [vmem:[%s5317_s14 + $0x230] sm:$0xff] }
 0x1fc   : > { %v1547_v17 = vld [vmem:[#allocation2 + $0x160] sm:$0xff] }
 0x1fd   : > { %v1611_v18 = vmax.f32 %v1482_v16, %v1547_v17  ;;  %1379 = vst.msk [vmem:[#allocation2 + $0x168] sm:$0xff] %vm1333_vm2, %v1250_v15 }
 0x1ff   : > { %1675 = vst.msk [vmem:[#allocation3 + $0xa0] sm:$0xff] %vm1333_vm2, %v1611_v18 }
 0x200   : > { %v959_v19 = vpop.f32.mrf.mxu0 }
 0x201   : > { %v960_v21 = vadd.f32 %v5744_v51, %v959_v19 }
 0x203   : > { %v1251_v22 = vmax.f32 %v960_v21, 0.0  ;;  %5145 = vmatmul.msk.f32.gmra.mxu0 %vm415_vm1, %v341_v20  ;;  %v350_v20 = vld [vmem:[%s5317_s14 + $0x238] sm:$0xff] }
 0x204   : > { %v1548_v23 = vld [vmem:[#allocation2 + $0x168] sm:$0xff] }
 0x205   : > { %v1612_v24 = vmax.f32 %v1483_v3, %v1548_v23  ;;  %1380 = vst.msk [vmem:[#allocation2 + $0x170] sm:$0xff] %vm1333_vm2, %v1251_v22 }
 0x207   : > { %1676 = vst.msk [vmem:[#allocation3 + $0xa8] sm:$0xff] %vm1333_vm2, %v1612_v24 }
 0x208   : > { %v962_v26 = vpop.f32.mrf.mxu0 }
 0x209   : > { %v963_v28 = vadd.f32 %v5744_v51, %v962_v26 }
 0x20b   : > { %v1252_v29 = vmax.f32 %v963_v28, 0.0  ;;  %5146 = vmatmul.msk.f32.gmra.mxu0 %vm415_vm1, %v342_v27 }
 0x20c   : > { %v1549_v31 = vld [vmem:[#allocation2 + $0x170] sm:$0xff] }
 0x20d   : > { %v1613_v32 = vmax.f32 %v1484_v30, %v1549_v31  ;;  %1381 = vst.msk [vmem:[#allocation2 + $0x178] sm:$0xff] %vm1333_vm2, %v1252_v29  ;;  %v351_v30 = vld [vmem:[%s5317_s14 + $0x240] sm:$0xff] }
 0x20e   : > { %v1739_v33 = vld [vmem:[#allocation3 + $0xa0] ss:$2 sm:$0xff]  ;;  %v1803_v34 = vld [vmem:[#allocation3 + $0xa1] ss:$2 sm:$0xff] }
 0x20f   : > { %1677 = vst.msk [vmem:[#allocation3 + $0xb0] sm:$0xff] %vm1333_vm2, %v1613_v32  ;;  %v1856_v35 = vmax.f32 %v1739_v33, %v1803_v34 }
 0x210   : > { %v965_v36 = vpop.f32.mrf.mxu0 }
 0x211   : > { %v966_v38 = vadd.f32 %v5744_v51, %v965_v36  ;;  %1943 = vst.msk [vmem:[#allocation4 + $0x91] sm:$0xff] %vm1333_vm2, %v1856_v35 }
 0x213   : > { %v1253_v39 = vmax.f32 %v966_v38, 0.0  ;;  %5147 = vmatmul.msk.f32.gmra.mxu0 %vm415_vm1, %v343_v37 }
 0x214   : > { %v1550_v41 = vld [vmem:[#allocation2 + $0x178] sm:$0xff] }
 0x215   : > { %v1614_v42 = vmax.f32 %v1485_v40, %v1550_v41  ;;  %1382 = vst.msk [vmem:[#allocation2 + $0x180] sm:$0xff] %vm1333_vm2, %v1253_v39  ;;  %v352_v39 = vld [vmem:[%s5317_s14 + $0x248] sm:$0xff] }
 0x217   : > { %1678 = vst.msk [vmem:[#allocation3 + $0xb8] sm:$0xff] %vm1333_vm2, %v1614_v42 }
 0x218   : > { %v968_v43 = vpop.f32.mrf.mxu0  ;;  %v1977_v44 = vld [vmem:[#allocation4 + $0x90] sm:$0xff] }
 0x219   : > { %v2041_v45 = vld [vmem:[#allocation4 + $0x91] sm:$0xff]  ;;  %v969_v47 = vadd.f32 %v5744_v51, %v968_v43  ;;  %3030 = vmatmul.f32.gmra.mxu1 %v1977_v44 }
 0x21a   : > { %3143 = vmatmul.f32.gmra.mxu2 %v2041_v45 }
 0x21b   : > { %v1254_v48 = vmax.f32 %v969_v47, 0.0  ;;  %5148 = vmatmul.msk.f32.gmra.mxu0 %vm415_vm1, %v344_v46  ;;  %v353_v46 = vld [vmem:[%s5317_s14 + $0x250] sm:$0xff] }
 0x21c   : > { %v1486_v9 = vld [vmem:[#allocation2 + $0x180] sm:$0xff] }
 0x21d   : > { %1383 = vst.msk [vmem:[#allocation2 + $0x188] sm:$0xff] %vm1333_vm2, %v1254_v48 }
 0x21e   : > { %v1741_v49 = vld [vmem:[#allocation3 + $0xb0] ss:$2 sm:$0xff]  ;;  %v1805_v50 = vld [vmem:[#allocation3 + $0xb1] ss:$2 sm:$0xff] }
 0x21f   : > { %v1857_v25 = vmax.f32 %v1741_v49, %v1805_v50  ;;  %v354_v49 = vld [vmem:[%s5317_s14 + $0x258] sm:$0xff] }
 0x220   : > { %v971_v52 = vpop.f32.mrf.mxu0 }
 0x221   : > { %v972_v54 = vadd.f32 %v5744_v51, %v971_v52  ;;  %1944 = vst.msk [vmem:[#allocation4 + $0x99] sm:$0xff] %vm1333_vm2, %v1857_v25 }
 0x223   : > { %v1255_v55 = vmax.f32 %v972_v54, 0.0  ;;  %5149 = vmatmul.msk.f32.gmra.mxu0 %vm415_vm1, %v345_v53 }
 0x224   : > { %v1487_v16 = vld [vmem:[#allocation2 + $0x188] sm:$0xff] }
 0x225   : > { %1384 = vst.msk [vmem:[#allocation2 + $0x190] sm:$0xff] %vm1333_vm2, %v1255_v55 }
 0x228   : > { %v974_v57 = vpop.f32.mrf.mxu0  ;;  %v1978_v58 = vld [vmem:[#allocation4 + $0x98] sm:$0xff] }
 0x229   : > { %v2042_v59 = vld [vmem:[#allocation4 + $0x99] sm:$0xff]  ;;  %v975_v61 = vadd.f32 %v5744_v51, %v974_v57  ;;  %3033 = vmatmul.f32.gmra.mxu1 %v1978_v58 }
 0x22a   : > { %v2105_v60 = vld [vmem:[#allocation4 + $0x92] sm:$0xff]  ;;  %3146 = vmatmul.f32.gmra.mxu2 %v2042_v59  ;;  %v2106_v2 = vld [vmem:[#allocation4 + $0x9a] sm:$0xff] }
 0x22b   : > { %3256 = vmatmul.f32.gmra.mxu3 %v2105_v60  ;;  %v1256_v62 = vmax.f32 %v975_v61, 0.0  ;;  %5150 = vmatmul.msk.f32.gmra.mxu0 %vm415_vm1, %v346_v56  ;;  %v355_v57 = vld [vmem:[%s5317_s14 + $0x260] sm:$0xff] }
 0x22c   : > { %v1488_v3 = vld [vmem:[#allocation2 + $0x190] sm:$0xff] }
 0x22d   : > { %1385 = vst.msk [vmem:[#allocation2 + $0x198] sm:$0xff] %vm1333_vm2, %v1256_v62  ;;  %v356_v62 = vld [vmem:[%s5317_s14 + $0x268] sm:$0xff] }
 0x230   : > { %v977_v63 = vpop.f32.mrf.mxu0 }
 0x231   : > { %v978_v1 = vadd.f32 %v5744_v51, %v977_v63 }
 0x233   : > { %3259 = vmatmul.f32.gmra.mxu3 %v2106_v2  ;;  %v1257_v4 = vmax.f32 %v978_v1, 0.0  ;;  %5151 = vmatmul.msk.f32.gmra.mxu0 %vm415_vm1, %v347_v0 }
 0x234   : > { %v1489_v33 = vld [vmem:[#allocation2 + $0x198] sm:$0xff] }
 0x235   : > { %1386 = vst.msk [vmem:[#allocation2 + $0x1a0] sm:$0xff] %vm1333_vm2, %v1257_v4 }
 0x238   : > { %v980_v5 = vpop.f32.mrf.mxu0 }
 0x239   : > { %v981_v7 = vadd.f32 %v5744_v51, %v980_v5 }
 0x23b   : > { %v1258_v8 = vmax.f32 %v981_v7, 0.0  ;;  %5152 = vmatmul.msk.f32.gmra.mxu0 %vm415_vm1, %v348_v6  ;;  %v357_v6 = vld [vmem:[%s5317_s14 + $0x270] sm:$0xff] }
 0x23c   : > { %v1551_v10 = vld [vmem:[#allocation2 + $0x1a0] sm:$0xff] }
 0x23d   : > { %v1615_v11 = vmax.f32 %v1486_v9, %v1551_v10  ;;  %1387 = vst.msk [vmem:[#allocation2 + $0x1a8] sm:$0xff] %vm1333_vm2, %v1258_v8 }
 0x23f   : > { %1679 = vst.msk [vmem:[#allocation3 + $0xc0] sm:$0xff] %vm1333_vm2, %v1615_v11 }
 0x240   : > { %v983_v12 = vpop.f32.mrf.mxu0 }
 0x241   : > { %v984_v14 = vadd.f32 %v5744_v51, %v983_v12 }
 0x243   : > { %v1259_v15 = vmax.f32 %v984_v14, 0.0  ;;  %5153 = vmatmul.msk.f32.gmra.mxu0 %vm415_vm1, %v349_v13  ;;  %v358_v13 = vld [vmem:[%s5317_s14 + $0x278] sm:$0xff] }
 0x244   : > { %v1552_v17 = vld [vmem:[#allocation2 + $0x1a8] sm:$0xff] }
 0x245   : > { %v1616_v18 = vmax.f32 %v1487_v16, %v1552_v17  ;;  %1388 = vst.msk [vmem:[#allocation2 + $0x1b0] sm:$0xff] %vm1333_vm2, %v1259_v15 }
 0x247   : > { %1680 = vst.msk [vmem:[#allocation3 + $0xc8] sm:$0xff] %vm1333_vm2, %v1616_v18 }
 0x248   : > { %v986_v19 = vpop.f32.mrf.mxu0 }
 0x249   : > { %v987_v21 = vadd.f32 %v5744_v51, %v986_v19 }
 0x24b   : > { %v1260_v22 = vmax.f32 %v987_v21, 0.0  ;;  %5154 = vmatmul.msk.f32.gmra.mxu0 %vm415_vm1, %v350_v20 }
 0x24c   : > { %v1553_v23 = vld [vmem:[#allocation2 + $0x1b0] sm:$0xff] }
 0x24d   : > { %v1617_v24 = vmax.f32 %v1488_v3, %v1553_v23  ;;  %1389 = vst.msk [vmem:[#allocation2 + $0x1b8] sm:$0xff] %vm1333_vm2, %v1260_v22  ;;  %v359_v3 = vld [vmem:[%s5317_s14 + $0x280] sm:$0xff] }
 0x24e   : > { %v1743_v26 = vld [vmem:[#allocation3 + $0xc0] ss:$2 sm:$0xff]  ;;  %v1807_v27 = vld [vmem:[#allocation3 + $0xc1] ss:$2 sm:$0xff] }
 0x24f   : > { %1681 = vst.msk [vmem:[#allocation3 + $0xd0] sm:$0xff] %vm1333_vm2, %v1617_v24  ;;  %v1858_v28 = vmax.f32 %v1743_v26, %v1807_v27 }
 0x250   : > { %v989_v29 = vpop.f32.mrf.mxu0 }
 0x251   : > { %v990_v31 = vadd.f32 %v5744_v51, %v989_v29  ;;  %1945 = vst.msk [vmem:[#allocation4 + $0xa9] sm:$0xff] %vm1333_vm2, %v1858_v28 }
 0x253   : > { %v1261_v32 = vmax.f32 %v990_v31, 0.0  ;;  %5155 = vmatmul.msk.f32.gmra.mxu0 %vm415_vm1, %v351_v30 }
 0x254   : > { %v1554_v34 = vld [vmem:[#allocation2 + $0x1b8] sm:$0xff] }
 0x255   : > { %v1618_v35 = vmax.f32 %v1489_v33, %v1554_v34  ;;  %1390 = vst.msk [vmem:[#allocation2 + $0x1c0] sm:$0xff] %vm1333_vm2, %v1261_v32  ;;  %v360_v32 = vld [vmem:[%s5317_s14 + $0x288] sm:$0xff] }
 0x257   : > { %1682 = vst.msk [vmem:[#allocation3 + $0xd8] sm:$0xff] %vm1333_vm2, %v1618_v35 }
 0x258   : > { %v992_v36 = vpop.f32.mrf.mxu0  ;;  %v1979_v37 = vld [vmem:[#allocation4 + $0xa8] sm:$0xff] }
 0x259   : > { %v2043_v38 = vld [vmem:[#allocation4 + $0xa9] sm:$0xff]  ;;  %v993_v40 = vadd.f32 %v5744_v51, %v992_v36  ;;  %3036 = vmatmul.f32.gmra.mxu1 %v1979_v37 }
 0x25a   : > { %3149 = vmatmul.f32.gmra.mxu2 %v2043_v38 }
 0x25b   : > { %v1262_v41 = vmax.f32 %v993_v40, 0.0  ;;  %5156 = vmatmul.msk.f32.gmra.mxu0 %vm415_vm1, %v352_v39  ;;  %v361_v39 = vld [vmem:[%s5317_s14 + $0x290] sm:$0xff] }
 0x25c   : > { %v1490_v1 = vld [vmem:[#allocation2 + $0x1c0] sm:$0xff] }
 0x25d   : > { %1391 = vst.msk [vmem:[#allocation2 + $0x1c8] sm:$0xff] %vm1333_vm2, %v1262_v41 }
 0x25e   : > { %v1745_v42 = vld [vmem:[#allocation3 + $0xd0] ss:$2 sm:$0xff]  ;;  %v1809_v43 = vld [vmem:[#allocation3 + $0xd1] ss:$2 sm:$0xff] }
 0x25f   : > { %v1859_v44 = vmax.f32 %v1745_v42, %v1809_v43  ;;  %v362_v42 = vld [vmem:[%s5317_s14 + $0x298] sm:$0xff] }
 0x260   : > { %v995_v45 = vpop.f32.mrf.mxu0 }
 0x261   : > { %v996_v47 = vadd.f32 %v5744_v51, %v995_v45  ;;  %1946 = vst.msk [vmem:[#allocation4 + $0xb1] sm:$0xff] %vm1333_vm2, %v1859_v44 }
 0x263   : > { %v1263_v48 = vmax.f32 %v996_v47, 0.0  ;;  %5157 = vmatmul.msk.f32.gmra.mxu0 %vm415_vm1, %v353_v46 }
 0x264   : > { %v1491_v9 = vld [vmem:[#allocation2 + $0x1c8] sm:$0xff] }
 0x265   : > { %1392 = vst.msk [vmem:[#allocation2 + $0x1d0] sm:$0xff] %vm1333_vm2, %v1263_v48 }
 0x268   : > { %v998_v50 = vpop.f32.mrf.mxu0  ;;  %v1980_v25 = vld [vmem:[#allocation4 + $0xb0] sm:$0xff] }
 0x269   : > { %v2044_v52 = vld [vmem:[#allocation4 + $0xb1] sm:$0xff]  ;;  %v999_v54 = vadd.f32 %v5744_v51, %v998_v50  ;;  %3039 = vmatmul.f32.gmra.mxu1 %v1980_v25  ;;  %v363_v50 = vld [vmem:[%s5317_s14 + $0x2a0] sm:$0xff] }
 0x26a   : > { %v2107_v53 = vld [vmem:[#allocation4 + $0xaa] sm:$0xff]  ;;  %3152 = vmatmul.f32.gmra.mxu2 %v2044_v52  ;;  %v2108_v59 = vld [vmem:[#allocation4 + $0xb2] sm:$0xff] }
 0x26b   : > { %3262 = vmatmul.f32.gmra.mxu3 %v2107_v53  ;;  %v1264_v55 = vmax.f32 %v999_v54, 0.0  ;;  %5158 = vmatmul.msk.f32.gmra.mxu0 %vm415_vm1, %v354_v49 }
 0x26c   : > { %v1492_v16 = vld [vmem:[#allocation2 + $0x1d0] sm:$0xff] }
 0x26d   : > { %1393 = vst.msk [vmem:[#allocation2 + $0x1d8] sm:$0xff] %vm1333_vm2, %v1264_v55  ;;  %v364_v55 = vld [vmem:[%s5317_s14 + $0x2a8] sm:$0xff] }
 0x270   : > { %v1001_v56 = vpop.f32.mrf.mxu0 }
 0x271   : > { %v1002_v58 = vadd.f32 %v5744_v51, %v1001_v56 }
 0x273   : > { %3265 = vmatmul.f32.gmra.mxu3 %v2108_v59  ;;  %v1265_v60 = vmax.f32 %v1002_v58, 0.0  ;;  %5159 = vmatmul.msk.f32.gmra.mxu0 %vm415_vm1, %v355_v57 }
 0x274   : > { %v1493_v26 = vld [vmem:[#allocation2 + $0x1d8] sm:$0xff] }
 0x275   : > { %1394 = vst.msk [vmem:[#allocation2 + $0x1e0] sm:$0xff] %vm1333_vm2, %v1265_v60 }
 0x278   : > { %v1004_v61 = vpop.f32.mrf.mxu0 }
 0x279   : > { %v1005_v63 = vadd.f32 %v5744_v51, %v1004_v61 }
 0x27b   : > { %v1266_v0 = vmax.f32 %v1005_v63, 0.0  ;;  %5160 = vmatmul.msk.f32.gmra.mxu0 %vm415_vm1, %v356_v62  ;;  %v365_v62 = vld [vmem:[%s5317_s14 + $0x2b0] sm:$0xff] }
 0x27c   : > { %v1555_v2 = vld [vmem:[#allocation2 + $0x1e0] sm:$0xff] }
 0x27d   : > { %v1619_v4 = vmax.f32 %v1490_v1, %v1555_v2  ;;  %1395 = vst.msk [vmem:[#allocation2 + $0x1e8] sm:$0xff] %vm1333_vm2, %v1266_v0 }
 0x27f   : > { %1683 = vst.msk [vmem:[#allocation3 + $0xe0] sm:$0xff] %vm1333_vm2, %v1619_v4 }
 0x280   : > { %v1007_v5 = vpop.f32.mrf.mxu0 }
 0x281   : > { %v1008_v7 = vadd.f32 %v5744_v51, %v1007_v5 }
 0x283   : > { %v1267_v8 = vmax.f32 %v1008_v7, 0.0  ;;  %5161 = vmatmul.msk.f32.gmra.mxu0 %vm415_vm1, %v357_v6  ;;  %v366_v6 = vld [vmem:[%s5317_s14 + $0x2b8] sm:$0xff] }
 0x284   : > { %v1556_v10 = vld [vmem:[#allocation2 + $0x1e8] sm:$0xff] }
 0x285   : > { %v1620_v11 = vmax.f32 %v1491_v9, %v1556_v10  ;;  %1396 = vst.msk [vmem:[#allocation2 + $0x1f0] sm:$0xff] %vm1333_vm2, %v1267_v8 }
 0x287   : > { %1684 = vst.msk [vmem:[#allocation3 + $0xe8] sm:$0xff] %vm1333_vm2, %v1620_v11 }
 0x288   : > { %v1010_v12 = vpop.f32.mrf.mxu0 }
 0x289   : > { %v1011_v14 = vadd.f32 %v5744_v51, %v1010_v12 }
 0x28b   : > { %v1268_v15 = vmax.f32 %v1011_v14, 0.0  ;;  %5162 = vmatmul.msk.f32.gmra.mxu0 %vm415_vm1, %v358_v13 }
 0x28c   : > { %v1557_v17 = vld [vmem:[#allocation2 + $0x1f0] sm:$0xff] }
 0x28d   : > { %v1621_v18 = vmax.f32 %v1492_v16, %v1557_v17  ;;  %1397 = vst.msk [vmem:[#allocation2 + $0x1f8] sm:$0xff] %vm1333_vm2, %v1268_v15  ;;  %v367_v16 = vld [vmem:[%s5317_s14 + $0x2c0] sm:$0xff] }
 0x28e   : > { %v1747_v19 = vld [vmem:[#allocation3 + $0xe0] ss:$2 sm:$0xff]  ;;  %v1811_v20 = vld [vmem:[#allocation3 + $0xe1] ss:$2 sm:$0xff] }
 0x28f   : > { %1685 = vst.msk [vmem:[#allocation3 + $0xf0] sm:$0xff] %vm1333_vm2, %v1621_v18  ;;  %v1860_v21 = vmax.f32 %v1747_v19, %v1811_v20 }
 0x290   : > { %v1013_v22 = vpop.f32.mrf.mxu0 }
 0x291   : > { %v1014_v23 = vadd.f32 %v5744_v51, %v1013_v22  ;;  %1947 = vst.msk [vmem:[#allocation4 + $0xc1] sm:$0xff] %vm1333_vm2, %v1860_v21 }
 0x293   : > { %v1269_v24 = vmax.f32 %v1014_v23, 0.0  ;;  %5163 = vmatmul.msk.f32.gmra.mxu0 %vm415_vm1, %v359_v3 }
 0x294   : > { %v1558_v27 = vld [vmem:[#allocation2 + $0x1f8] sm:$0xff] }
 0x295   : > { %v1622_v28 = vmax.f32 %v1493_v26, %v1558_v27  ;;  %1398 = vst.msk [vmem:[#allocation2 + $0x200] sm:$0xff] %vm1333_vm2, %v1269_v24  ;;  %v368_v24 = vld [vmem:[%s5317_s14 + $0x2c8] sm:$0xff] }
 0x297   : > { %1686 = vst.msk [vmem:[#allocation3 + $0xf8] sm:$0xff] %vm1333_vm2, %v1622_v28 }
 0x298   : > { %v1016_v29 = vpop.f32.mrf.mxu0  ;;  %v1981_v30 = vld [vmem:[#allocation4 + $0xc0] sm:$0xff] }
 0x299   : > { %v2045_v31 = vld [vmem:[#allocation4 + $0xc1] sm:$0xff]  ;;  %v1017_v33 = vadd.f32 %v5744_v51, %v1016_v29  ;;  %3042 = vmatmul.f32.gmra.mxu1 %v1981_v30 }
 0x29a   : > { %3155 = vmatmul.f32.gmra.mxu2 %v2045_v31 }
 0x29b   : > { %v1270_v34 = vmax.f32 %v1017_v33, 0.0  ;;  %5164 = vmatmul.msk.f32.gmra.mxu0 %vm415_vm1, %v360_v32  ;;  %v369_v32 = vld [vmem:[%s5317_s14 + $0x2d0] sm:$0xff] }
 0x29c   : > { %v1494_v58 = vld [vmem:[#allocation2 + $0x200] sm:$0xff] }
 0x29d   : > { %1399 = vst.msk [vmem:[#allocation2 + $0x208] sm:$0xff] %vm1333_vm2, %v1270_v34 }
 0x29e   : > { %v1749_v35 = vld [vmem:[#allocation3 + $0xf0] ss:$2 sm:$0xff]  ;;  %v1813_v36 = vld [vmem:[#allocation3 + $0xf1] ss:$2 sm:$0xff] }
 0x29f   : > { %v1861_v37 = vmax.f32 %v1749_v35, %v1813_v36  ;;  %v370_v35 = vld [vmem:[%s5317_s14 + $0x2d8] sm:$0xff] }
 0x2a0   : > { %v1019_v38 = vpop.f32.mrf.mxu0 }
 0x2a1   : > { %v1020_v40 = vadd.f32 %v5744_v51, %v1019_v38  ;;  %1948 = vst.msk [vmem:[#allocation4 + $0xc9] sm:$0xff] %vm1333_vm2, %v1861_v37 }
 0x2a3   : > { %v1271_v41 = vmax.f32 %v1020_v40, 0.0  ;;  %5165 = vmatmul.msk.f32.gmra.mxu0 %vm415_vm1, %v361_v39 }
 0x2a4   : > { %v1495_v1 = vld [vmem:[#allocation2 + $0x208] sm:$0xff] }
 0x2a5   : > { %1400 = vst.msk [vmem:[#allocation2 + $0x210] sm:$0xff] %vm1333_vm2, %v1271_v41 }
 0x2a8   : > { %v1022_v43 = vpop.f32.mrf.mxu0  ;;  %v1982_v44 = vld [vmem:[#allocation4 + $0xc8] sm:$0xff] }
 0x2a9   : > { %v2046_v45 = vld [vmem:[#allocation4 + $0xc9] sm:$0xff]  ;;  %v1023_v47 = vadd.f32 %v5744_v51, %v1022_v43  ;;  %3045 = vmatmul.f32.gmra.mxu1 %v1982_v44  ;;  %v371_v43 = vld [vmem:[%s5317_s14 + $0x2e0] sm:$0xff] }
 0x2aa   : > { %v2109_v46 = vld [vmem:[#allocation4 + $0xc2] sm:$0xff]  ;;  %3158 = vmatmul.f32.gmra.mxu2 %v2046_v45  ;;  %v2110_v52 = vld [vmem:[#allocation4 + $0xca] sm:$0xff] }
 0x2ab   : > { %3268 = vmatmul.f32.gmra.mxu3 %v2109_v46  ;;  %v1272_v48 = vmax.f32 %v1023_v47, 0.0  ;;  %5166 = vmatmul.msk.f32.gmra.mxu0 %vm415_vm1, %v362_v42 }
 0x2ac   : > { %v1496_v9 = vld [vmem:[#allocation2 + $0x210] sm:$0xff] }
 0x2ad   : > { %1401 = vst.msk [vmem:[#allocation2 + $0x218] sm:$0xff] %vm1333_vm2, %v1272_v48  ;;  %v372_v48 = vld [vmem:[%s5317_s14 + $0x2e8] sm:$0xff] }
 0x2b0   : > { %v1025_v49 = vpop.f32.mrf.mxu0 }
 0x2b1   : > { %v1026_v25 = vadd.f32 %v5744_v51, %v1025_v49 }
 0x2b3   : > { %3271 = vmatmul.f32.gmra.mxu3 %v2110_v52  ;;  %v1273_v53 = vmax.f32 %v1026_v25, 0.0  ;;  %5167 = vmatmul.msk.f32.gmra.mxu0 %vm415_vm1, %v363_v50 }
 0x2b4   : > { %v1497_v19 = vld [vmem:[#allocation2 + $0x218] sm:$0xff] }
 0x2b5   : > { %1402 = vst.msk [vmem:[#allocation2 + $0x220] sm:$0xff] %vm1333_vm2, %v1273_v53 }
 0x2b8   : > { %v1028_v54 = vpop.f32.mrf.mxu0 }
 0x2b9   : > { %v1029_v56 = vadd.f32 %v5744_v51, %v1028_v54 }
 0x2bb   : > { %v1274_v57 = vmax.f32 %v1029_v56, 0.0  ;;  %5168 = vmatmul.msk.f32.gmra.mxu0 %vm415_vm1, %v364_v55  ;;  %v373_v55 = vld [vmem:[%s5317_s14 + $0x2f0] sm:$0xff] }
 0x2bc   : > { %v1559_v59 = vld [vmem:[#allocation2 + $0x220] sm:$0xff] }
 0x2bd   : > { %v1623_v60 = vmax.f32 %v1494_v58, %v1559_v59  ;;  %1403 = vst.msk [vmem:[#allocation2 + $0x228] sm:$0xff] %vm1333_vm2, %v1274_v57 }
 0x2bf   : > { %1687 = vst.msk [vmem:[#allocation3 + $0x100] sm:$0xff] %vm1333_vm2, %v1623_v60 }
 0x2c0   : > { %v1031_v61 = vpop.f32.mrf.mxu0 }
 0x2c1   : > { %v1032_v63 = vadd.f32 %v5744_v51, %v1031_v61 }
 0x2c3   : > { %v1275_v0 = vmax.f32 %v1032_v63, 0.0  ;;  %5169 = vmatmul.msk.f32.gmra.mxu0 %vm415_vm1, %v365_v62  ;;  %v374_v62 = vld [vmem:[%s5317_s14 + $0x2f8] sm:$0xff] }
 0x2c4   : > { %v1560_v2 = vld [vmem:[#allocation2 + $0x228] sm:$0xff] }
 0x2c5   : > { %v1624_v4 = vmax.f32 %v1495_v1, %v1560_v2  ;;  %1404 = vst.msk [vmem:[#allocation2 + $0x230] sm:$0xff] %vm1333_vm2, %v1275_v0 }
 0x2c7   : > { %1688 = vst.msk [vmem:[#allocation3 + $0x108] sm:$0xff] %vm1333_vm2, %v1624_v4 }
 0x2c8   : > { %v1034_v5 = vpop.f32.mrf.mxu0 }
 0x2c9   : > { %v1035_v7 = vadd.f32 %v5744_v51, %v1034_v5 }
 0x2cb   : > { %v1276_v8 = vmax.f32 %v1035_v7, 0.0  ;;  %5170 = vmatmul.msk.f32.gmra.mxu0 %vm415_vm1, %v366_v6 }
 0x2cc   : > { %v1561_v10 = vld [vmem:[#allocation2 + $0x230] sm:$0xff] }
 0x2cd   : > { %v1625_v11 = vmax.f32 %v1496_v9, %v1561_v10  ;;  %1405 = vst.msk [vmem:[#allocation2 + $0x238] sm:$0xff] %vm1333_vm2, %v1276_v8  ;;  %v375_v9 = vld [vmem:[%s5317_s14 + $0x300] sm:$0xff] }
 0x2ce   : > { %v1751_v12 = vld [vmem:[#allocation3 + $0x100] ss:$2 sm:$0xff]  ;;  %v1815_v13 = vld [vmem:[#allocation3 + $0x101] ss:$2 sm:$0xff] }
 0x2cf   : > { %1689 = vst.msk [vmem:[#allocation3 + $0x110] sm:$0xff] %vm1333_vm2, %v1625_v11  ;;  %v1862_v14 = vmax.f32 %v1751_v12, %v1815_v13 }
 0x2d0   : > { %v1037_v15 = vpop.f32.mrf.mxu0 }
 0x2d1   : > { %v1038_v17 = vadd.f32 %v5744_v51, %v1037_v15  ;;  %1949 = vst.msk [vmem:[#allocation4 + $0xd9] sm:$0xff] %vm1333_vm2, %v1862_v14 }
 0x2d3   : > { %v1277_v18 = vmax.f32 %v1038_v17, 0.0  ;;  %5171 = vmatmul.msk.f32.gmra.mxu0 %vm415_vm1, %v367_v16 }
 0x2d4   : > { %v1562_v20 = vld [vmem:[#allocation2 + $0x238] sm:$0xff] }
 0x2d5   : > { %v1626_v21 = vmax.f32 %v1497_v19, %v1562_v20  ;;  %1406 = vst.msk [vmem:[#allocation2 + $0x240] sm:$0xff] %vm1333_vm2, %v1277_v18  ;;  %v376_v18 = vld [vmem:[%s5317_s14 + $0x308] sm:$0xff] }
 0x2d7   : > { %1690 = vst.msk [vmem:[#allocation3 + $0x118] sm:$0xff] %vm1333_vm2, %v1626_v21 }
 0x2d8   : > { %v1040_v22 = vpop.f32.mrf.mxu0  ;;  %v1983_v3 = vld [vmem:[#allocation4 + $0xd8] sm:$0xff] }
 0x2d9   : > { %v2047_v23 = vld [vmem:[#allocation4 + $0xd9] sm:$0xff]  ;;  %v1041_v26 = vadd.f32 %v5744_v51, %v1040_v22  ;;  %3048 = vmatmul.f32.gmra.mxu1 %v1983_v3 }
 0x2da   : > { %3161 = vmatmul.f32.gmra.mxu2 %v2047_v23 }
 0x2db   : > { %v1278_v27 = vmax.f32 %v1041_v26, 0.0  ;;  %5172 = vmatmul.msk.f32.gmra.mxu0 %vm415_vm1, %v368_v24  ;;  %v377_v24 = vld [vmem:[%s5317_s14 + $0x310] sm:$0xff] }
 0x2dc   : > { %v1498_v25 = vld [vmem:[#allocation2 + $0x240] sm:$0xff] }
 0x2dd   : > { %1407 = vst.msk [vmem:[#allocation2 + $0x248] sm:$0xff] %vm1333_vm2, %v1278_v27 }
 0x2de   : > { %v1753_v28 = vld [vmem:[#allocation3 + $0x110] ss:$2 sm:$0xff]  ;;  %v1817_v29 = vld [vmem:[#allocation3 + $0x111] ss:$2 sm:$0xff] }
 0x2df   : > { %v1863_v30 = vmax.f32 %v1753_v28, %v1817_v29  ;;  %v378_v28 = vld [vmem:[%s5317_s14 + $0x318] sm:$0xff] }
 0x2e0   : > { %v1043_v31 = vpop.f32.mrf.mxu0 }
 0x2e1   : > { %v1044_v33 = vadd.f32 %v5744_v51, %v1043_v31  ;;  %1950 = vst.msk [vmem:[#allocation4 + $0xe1] sm:$0xff] %vm1333_vm2, %v1863_v30 }
 0x2e3   : > { %v1279_v34 = vmax.f32 %v1044_v33, 0.0  ;;  %5173 = vmatmul.msk.f32.gmra.mxu0 %vm415_vm1, %v369_v32 }
 0x2e4   : > { %v1499_v58 = vld [vmem:[#allocation2 + $0x248] sm:$0xff] }
 0x2e5   : > { %1408 = vst.msk [vmem:[#allocation2 + $0x250] sm:$0xff] %vm1333_vm2, %v1279_v34 }
 0x2e8   : > { %v1046_v36 = vpop.f32.mrf.mxu0  ;;  %v1984_v37 = vld [vmem:[#allocation4 + $0xe0] sm:$0xff] }
 0x2e9   : > { %v2048_v38 = vld [vmem:[#allocation4 + $0xe1] sm:$0xff]  ;;  %v1047_v40 = vadd.f32 %v5744_v51, %v1046_v36  ;;  %3051 = vmatmul.f32.gmra.mxu1 %v1984_v37 }
 0x2ea   : > { %v2111_v39 = vld [vmem:[#allocation4 + $0xda] sm:$0xff]  ;;  %3164 = vmatmul.f32.gmra.mxu2 %v2048_v38  ;;  %v2112_v45 = vld [vmem:[#allocation4 + $0xe2] sm:$0xff] }
 0x2eb   : > { %3274 = vmatmul.f32.gmra.mxu3 %v2111_v39  ;;  %v1280_v41 = vmax.f32 %v1047_v40, 0.0  ;;  %5174 = vmatmul.msk.f32.gmra.mxu0 %vm415_vm1, %v370_v35  ;;  %v379_v36 = vld [vmem:[%s5317_s14 + $0x320] sm:$0xff] }
 0x2ec   : > { %v1500_v1 = vld [vmem:[#allocation2 + $0x250] sm:$0xff] }
 0x2ed   : > { %1409 = vst.msk [vmem:[#allocation2 + $0x258] sm:$0xff] %vm1333_vm2, %v1280_v41  ;;  %v380_v41 = vld [vmem:[%s5317_s14 + $0x328] sm:$0xff] }
 0x2f0   : > { %v1049_v42 = vpop.f32.mrf.mxu0 }
 0x2f1   : > { %v1050_v44 = vadd.f32 %v5744_v51, %v1049_v42 }
 0x2f3   : > { %3277 = vmatmul.f32.gmra.mxu3 %v2112_v45  ;;  %v1281_v46 = vmax.f32 %v1050_v44, 0.0  ;;  %5175 = vmatmul.msk.f32.gmra.mxu0 %vm415_vm1, %v371_v43 }
 0x2f4   : > { %v1501_v12 = vld [vmem:[#allocation2 + $0x258] sm:$0xff] }
 0x2f5   : > { %1410 = vst.msk [vmem:[#allocation2 + $0x260] sm:$0xff] %vm1333_vm2, %v1281_v46 }
 0x2f8   : > { %v1052_v47 = vpop.f32.mrf.mxu0 }
 0x2f9   : > { %v1053_v49 = vadd.f32 %v5744_v51, %v1052_v47 }
 0x2fb   : > { %v1282_v50 = vmax.f32 %v1053_v49, 0.0  ;;  %5176 = vmatmul.msk.f32.gmra.mxu0 %vm415_vm1, %v372_v48  ;;  %v381_v48 = vld [vmem:[%s5317_s14 + $0x330] sm:$0xff] }
 0x2fc   : > { %v1563_v52 = vld [vmem:[#allocation2 + $0x260] sm:$0xff] }
 0x2fd   : > { %v1627_v53 = vmax.f32 %v1498_v25, %v1563_v52  ;;  %1411 = vst.msk [vmem:[#allocation2 + $0x268] sm:$0xff] %vm1333_vm2, %v1282_v50 }
 0x2ff   : > { %1691 = vst.msk [vmem:[#allocation3 + $0x120] sm:$0xff] %vm1333_vm2, %v1627_v53 }
 0x300   : > { %v1055_v54 = vpop.f32.mrf.mxu0 }
 0x301   : > { %v1056_v56 = vadd.f32 %v5744_v51, %v1055_v54 }
 0x303   : > { %v1283_v57 = vmax.f32 %v1056_v56, 0.0  ;;  %5177 = vmatmul.msk.f32.gmra.mxu0 %vm415_vm1, %v373_v55  ;;  %v382_v55 = vld [vmem:[%s5317_s14 + $0x338] sm:$0xff] }
 0x304   : > { %v1564_v59 = vld [vmem:[#allocation2 + $0x268] sm:$0xff] }
 0x305   : > { %v1628_v60 = vmax.f32 %v1499_v58, %v1564_v59  ;;  %1412 = vst.msk [vmem:[#allocation2 + $0x270] sm:$0xff] %vm1333_vm2, %v1283_v57 }
 0x307   : > { %1692 = vst.msk [vmem:[#allocation3 + $0x128] sm:$0xff] %vm1333_vm2, %v1628_v60 }
 0x308   : > { %v1058_v61 = vpop.f32.mrf.mxu0 }
 0x309   : > { %v1059_v63 = vadd.f32 %v5744_v51, %v1058_v61 }
 0x30b   : > { %v1284_v0 = vmax.f32 %v1059_v63, 0.0  ;;  %5178 = vmatmul.msk.f32.gmra.mxu0 %vm415_vm1, %v374_v62 }
 0x30c   : > { %v1565_v2 = vld [vmem:[#allocation2 + $0x270] sm:$0xff] }
 0x30d   : > { %v1629_v4 = vmax.f32 %v1500_v1, %v1565_v2  ;;  %1413 = vst.msk [vmem:[#allocation2 + $0x278] sm:$0xff] %vm1333_vm2, %v1284_v0  ;;  %v383_v1 = vld [vmem:[%s5317_s14 + $0x340] sm:$0xff] }
 0x30e   : > { %v1755_v5 = vld [vmem:[#allocation3 + $0x120] ss:$2 sm:$0xff]  ;;  %v1819_v6 = vld [vmem:[#allocation3 + $0x121] ss:$2 sm:$0xff] }
 0x30f   : > { %1693 = vst.msk [vmem:[#allocation3 + $0x130] sm:$0xff] %vm1333_vm2, %v1629_v4  ;;  %v1864_v7 = vmax.f32 %v1755_v5, %v1819_v6 }
 0x310   : > { %v1061_v8 = vpop.f32.mrf.mxu0 }
 0x311   : > { %v1062_v10 = vadd.f32 %v5744_v51, %v1061_v8  ;;  %1951 = vst.msk [vmem:[#allocation4 + $0xf1] sm:$0xff] %vm1333_vm2, %v1864_v7  ;;  %v5984_v51 = vld [vmem:[%s7879_s2] ss:$0 sm:$0xff] }
 0x313   : > { %v1285_v11 = vmax.f32 %v1062_v10, 0.0  ;;  %5179 = vmatmul.msk.f32.gmra.mxu0 %vm415_vm1, %v375_v9 }
 0x314   : > { %v1566_v13 = vld [vmem:[#allocation2 + $0x278] sm:$0xff] }
 0x315   : > { %v1630_v14 = vmax.f32 %v1501_v12, %v1566_v13  ;;  %1414 = vst.msk [vmem:[#allocation2 + $0x280] sm:$0xff] %vm1333_vm2, %v1285_v11  ;;  %v384_v11 = vld [vmem:[%s5317_s14 + $0x348] sm:$0xff] }
 0x317   : > { %1694 = vst.msk [vmem:[#allocation3 + $0x138] sm:$0xff] %vm1333_vm2, %v1630_v14 }
 0x318   : > { %v1064_v15 = vpop.f32.mrf.mxu0  ;;  %v1985_v16 = vld [vmem:[#allocation4 + $0xf0] sm:$0xff] }
 0x319   : > { %v2049_v17 = vld [vmem:[#allocation4 + $0xf1] sm:$0xff]  ;;  %v1065_v19 = vadd.f32 %v5984_v51, %v1064_v15  ;;  %3054 = vmatmul.f32.gmra.mxu1 %v1985_v16 }
 0x31a   : > { %3167 = vmatmul.f32.gmra.mxu2 %v2049_v17  ;;  %v2909_v17 = vld [vmem:[%s7880_s3 + $0x278] sm:$0xff] }
 0x31b   : > { %v1286_v20 = vmax.f32 %v1065_v19, 0.0  ;;  %5180 = vmatmul.msk.f32.gmra.mxu0 %vm415_vm1, %v376_v18  ;;  %v385_v19 = vld [vmem:[%s5317_s14 + $0x350] sm:$0xff]  ;;  %3430 = vmatpush.msrb.mxu2 %v2909_v17  ;;  %v6098_v17 = vpop.f32.mrf.mxu1 }
 0x31c   : > { %v1502_v44 = vld [vmem:[#allocation2 + $0x280] sm:$0xff] }
 0x31d   : > { %1415 = vst.msk [vmem:[#allocation2 + $0x288] sm:$0xff] %vm1333_vm2, %v1286_v20 }
 0x31e   : > { %v1757_v21 = vld [vmem:[#allocation3 + $0x130] ss:$2 sm:$0xff]  ;;  %v1821_v22 = vld [vmem:[#allocation3 + $0x131] ss:$2 sm:$0xff] }
 0x31f   : > { %v1865_v3 = vmax.f32 %v1757_v21, %v1821_v22  ;;  %v386_v22 = vld [vmem:[%s5317_s14 + $0x358] sm:$0xff] }
 0x320   : > { %v1067_v23 = vpop.f32.mrf.mxu0 }
 0x321   : > { %v1068_v26 = vadd.f32 %v5984_v51, %v1067_v23  ;;  %1952 = vst.msk [vmem:[#allocation4 + $0xf9] sm:$0xff] %vm1333_vm2, %v1865_v3  ;;  %v2925_v3 = vld [vmem:[%s7880_s3 + $0x2f8] sm:$0xff] }
 0x322   : > { %v2893_v23 = vld [vmem:[%s7880_s3 + $0x1f8] sm:$0xff]  ;;  %3543 = vmatpush.msrb.mxu3 %v2925_v3 }
 0x323   : > { %v1287_v27 = vmax.f32 %v1068_v26, 0.0  ;;  %5181 = vmatmul.msk.f32.gmra.mxu0 %vm415_vm1, %v377_v24  ;;  %3317 = vmatpush.msra.mxu1 %v2893_v23  ;;  %v2905_v23 = vld [vmem:[%s7880_s3 + $0x258] sm:$0xff] }
 0x324   : > { %v1503_v25 = vld [vmem:[#allocation2 + $0x288] sm:$0xff] }
 0x325   : > { %1416 = vst.msk [vmem:[#allocation2 + $0x290] sm:$0xff] %vm1333_vm2, %v1287_v27 }
 0x328   : > { %v1070_v29 = vpop.f32.mrf.mxu0  ;;  %v1986_v30 = vld [vmem:[#allocation4 + $0xf8] sm:$0xff] }
 0x329   : > { %v2050_v31 = vld [vmem:[#allocation4 + $0xf9] sm:$0xff]  ;;  %v1071_v33 = vadd.f32 %v5984_v51, %v1070_v29  ;;  %3057 = vmatmul.f32.gmra.mxu1 %v1986_v30 }
 0x32a   : > { %v2113_v32 = vld [vmem:[#allocation4 + $0xf2] sm:$0xff]  ;;  %3170 = vmatmul.f32.gmra.mxu2 %v2050_v31  ;;  %v2114_v38 = vld [vmem:[#allocation4 + $0xfa] sm:$0xff] }
 0x32b   : > { %3280 = vmatmul.f32.gmra.mxu3 %v2113_v32  ;;  %v1288_v34 = vmax.f32 %v1071_v33, 0.0  ;;  %5182 = vmatmul.msk.f32.gmra.mxu0 %vm415_vm1, %v378_v28  ;;  %v2908_v31 = vld [vmem:[%s7880_s3 + $0x270] sm:$0xff]  ;;  %v387_v33 = vld [vmem:[%s5317_s14 + $0x360] sm:$0xff] }
 0x32c   : > { %v1504_v58 = vld [vmem:[#allocation2 + $0x290] sm:$0xff]  ;;  %3431 = vmatpush.msrb.mxu2 %v2908_v31  ;;  %v2889_v31 = vld [vmem:[%s7880_s3 + $0x1d8] sm:$0xff] }
 0x32d   : > { %1417 = vst.msk [vmem:[#allocation2 + $0x298] sm:$0xff] %vm1333_vm2, %v1288_v34 }
 0x330   : > { %v1073_v35 = vpop.f32.mrf.mxu0 }
 0x331   : > { %v1074_v37 = vadd.f32 %v5984_v51, %v1073_v35 }
 0x333   : > { %3283 = vmatmul.f32.gmra.mxu3 %v2114_v38  ;;  %v1289_v39 = vmax.f32 %v1074_v37, 0.0  ;;  %5183 = vmatmul.msk.f32.gmra.mxu0 %vm415_vm1, %v379_v36  ;;  %v2924_v37 = vld [vmem:[%s7880_s3 + $0x2f0] sm:$0xff] }
 0x334   : > { %v1505_v5 = vld [vmem:[#allocation2 + $0x298] sm:$0xff]  ;;  %v2892_v38 = vld [vmem:[%s7880_s3 + $0x1f0] sm:$0xff]  ;;  %3544 = vmatpush.msrb.mxu3 %v2924_v37  ;;  %v6122_v37 = vpop.f32.mrf.mxu1 }
 0x335   : > { %1418 = vst.msk [vmem:[#allocation2 + $0x2a0] sm:$0xff] %vm1333_vm2, %v1289_v39  ;;  %3318 = vmatpush.msra.mxu1 %v2892_v38 }
 0x338   : > { %v1076_v40 = vpop.f32.mrf.mxu0 }
 0x339   : > { %v1077_v42 = vadd.f32 %v5984_v51, %v1076_v40  ;;  %v388_v40 = vld [vmem:[%s5317_s14 + $0x368] sm:$0xff] }
 0x33b   : > { %v1290_v43 = vmax.f32 %v1077_v42, 0.0  ;;  %5184 = vmatmul.msk.f32.gmra.mxu0 %vm415_vm1, %v380_v41 }
 0x33c   : > { %v1567_v45 = vld [vmem:[#allocation2 + $0x2a0] sm:$0xff] }
 0x33d   : > { %v1631_v46 = vmax.f32 %v1502_v44, %v1567_v45  ;;  %1419 = vst.msk [vmem:[#allocation2 + $0x2a8] sm:$0xff] %vm1333_vm2, %v1290_v43  ;;  %v2907_v45 = vld [vmem:[%s7880_s3 + $0x268] sm:$0xff] }
 0x33e   : > { %3432 = vmatpush.msrb.mxu2 %v2907_v45 }
 0x33f   : > { %1695 = vst.msk [vmem:[#allocation3 + $0x140] sm:$0xff] %vm1333_vm2, %v1631_v46 }
 0x340   : > { %v1079_v47 = vpop.f32.mrf.mxu0 }
 0x341   : > { %v1080_v49 = vadd.f32 %v5984_v51, %v1079_v47 }
 0x343   : > { %v1291_v50 = vmax.f32 %v1080_v49, 0.0  ;;  %5185 = vmatmul.msk.f32.gmra.mxu0 %vm415_vm1, %v381_v48  ;;  %v389_v48 = vld [vmem:[%s5317_s14 + $0x370] sm:$0xff] }
 0x344   : > { %v1568_v52 = vld [vmem:[#allocation2 + $0x2a8] sm:$0xff] }
 0x345   : > { %v1632_v53 = vmax.f32 %v1503_v25, %v1568_v52  ;;  %1420 = vst.msk [vmem:[#allocation2 + $0x2b0] sm:$0xff] %vm1333_vm2, %v1291_v50 }
 0x347   : > { %1696 = vst.msk [vmem:[#allocation3 + $0x148] sm:$0xff] %vm1333_vm2, %v1632_v53  ;;  %v2923_v53 = vld [vmem:[%s7880_s3 + $0x2e8] sm:$0xff] }
 0x348   : > { %v1082_v54 = vpop.f32.mrf.mxu0  ;;  %3545 = vmatpush.msrb.mxu3 %v2923_v53 }
 0x349   : > { %v1083_v56 = vadd.f32 %v5984_v51, %v1082_v54 }
 0x34b   : > { %v1292_v57 = vmax.f32 %v1083_v56, 0.0  ;;  %5186 = vmatmul.msk.f32.gmra.mxu0 %vm415_vm1, %v382_v55  ;;  %v2891_v55 = vld [vmem:[%s7880_s3 + $0x1e8] sm:$0xff] }
 0x34c   : > { %v1569_v59 = vld [vmem:[#allocation2 + $0x2b0] sm:$0xff]  ;;  %3319 = vmatpush.msra.mxu1 %v2891_v55 }
 0x34d   : > { %v1633_v60 = vmax.f32 %v1504_v58, %v1569_v59  ;;  %1421 = vst.msk [vmem:[#allocation2 + $0x2b8] sm:$0xff] %vm1333_vm2, %v1292_v57  ;;  %v390_v57 = vld [vmem:[%s5317_s14 + $0x378] sm:$0xff] }
 0x34e   : > { %v1759_v61 = vld [vmem:[#allocation3 + $0x140] ss:$2 sm:$0xff]  ;;  %v1823_v62 = vld [vmem:[#allocation3 + $0x141] ss:$2 sm:$0xff] }
 0x34f   : > { %1697 = vst.msk [vmem:[#allocation3 + $0x150] sm:$0xff] %vm1333_vm2, %v1633_v60  ;;  %v1866_v63 = vmax.f32 %v1759_v61, %v1823_v62  ;;  %v2906_v62 = vld [vmem:[%s7880_s3 + $0x260] sm:$0xff] }
 0x350   : > { %v1085_v0 = vpop.f32.mrf.mxu0  ;;  %3433 = vmatpush.msrb.mxu2 %v2906_v62 }
 0x351   : > { %v1086_v2 = vadd.f32 %v5984_v51, %v1085_v0  ;;  %1953 = vst.msk [vmem:[#allocation4 + $0x109] sm:$0xff] %vm1333_vm2, %v1866_v63 }
 0x352   : > { %3434 = vmatpush.msrb.mxu2 %v2905_v23 }
 0x353   : > { %v1293_v4 = vmax.f32 %v1086_v2, 0.0  ;;  %5187 = vmatmul.msk.f32.gmra.mxu0 %vm415_vm1, %v383_v1 }
 0x354   : > { %v1570_v6 = vld [vmem:[#allocation2 + $0x2b8] sm:$0xff] }
 0x355   : > { %v1634_v7 = vmax.f32 %v1505_v5, %v1570_v6  ;;  %1422 = vst.msk [vmem:[#allocation2 + $0x2c0] sm:$0xff] %vm1333_vm2, %v1293_v4  ;;  %v391_v5 = vld [vmem:[%s5317_s14 + $0x380] sm:$0xff] }
 0x357   : > { %1698 = vst.msk [vmem:[#allocation3 + $0x158] sm:$0xff] %vm1333_vm2, %v1634_v7 }
 0x358   : > { %v1088_v8 = vpop.f32.mrf.mxu0  ;;  %v1987_v9 = vld [vmem:[#allocation4 + $0x108] sm:$0xff] }
 0x359   : > { %v2051_v10 = vld [vmem:[#allocation4 + $0x109] sm:$0xff]  ;;  %v1089_v12 = vadd.f32 %v5984_v51, %v1088_v8  ;;  %3060 = vmatmul.f32.gmra.mxu1 %v1987_v9 }
 0x35a   : > { %3173 = vmatmul.f32.gmra.mxu2 %v2051_v10  ;;  %v2922_v10 = vld [vmem:[%s7880_s3 + $0x2e0] sm:$0xff] }
 0x35b   : > { %v1294_v13 = vmax.f32 %v1089_v12, 0.0  ;;  %5188 = vmatmul.msk.f32.gmra.mxu0 %vm415_vm1, %v384_v11  ;;  %3546 = vmatpush.msrb.mxu3 %v2922_v10  ;;  %v2890_v12 = vld [vmem:[%s7880_s3 + $0x1e0] sm:$0xff] }
 0x35c   : > { %v1506_v43 = vld [vmem:[#allocation2 + $0x2c0] sm:$0xff]  ;;  %3320 = vmatpush.msra.mxu1 %v2890_v12 }
 0x35d   : > { %1423 = vst.msk [vmem:[#allocation2 + $0x2c8] sm:$0xff] %vm1333_vm2, %v1294_v13  ;;  %v2902_v10 = vld [vmem:[%s7880_s3 + $0x240] sm:$0xff] }
 0x35e   : > { %v1761_v14 = vld [vmem:[#allocation3 + $0x150] ss:$2 sm:$0xff]  ;;  %v1825_v15 = vld [vmem:[#allocation3 + $0x151] ss:$2 sm:$0xff]  ;;  %3321 = vmatpush.msra.mxu1 %v2889_v31 }
 0x35f   : > { %v1867_v16 = vmax.f32 %v1761_v14, %v1825_v15 }
 0x360   : > { %v1091_v18 = vpop.f32.mrf.mxu0 }
 0x361   : > { %v1092_v20 = vadd.f32 %v5984_v51, %v1091_v18  ;;  %1954 = vst.msk [vmem:[#allocation4 + $0x111] sm:$0xff] %vm1333_vm2, %v1867_v16  ;;  %v392_v16 = vld [vmem:[%s5317_s14 + $0x388] sm:$0xff]  ;;  %v6100_v18 = vpop.f32.mrf.mxu2 }
 0x363   : > { %v1295_v21 = vmax.f32 %v1092_v20, 0.0  ;;  %5189 = vmatmul.msk.f32.gmra.mxu0 %vm415_vm1, %v385_v19 }
 0x364   : > { %v1507_v25 = vld [vmem:[#allocation2 + $0x2c8] sm:$0xff] }
 0x365   : > { %1424 = vst.msk [vmem:[#allocation2 + $0x2d0] sm:$0xff] %vm1333_vm2, %v1295_v21 }
 0x368   : > { %v1094_v24 = vpop.f32.mrf.mxu0  ;;  %v1988_v26 = vld [vmem:[#allocation4 + $0x110] sm:$0xff] }
 0x369   : > { %v2052_v27 = vld [vmem:[#allocation4 + $0x111] sm:$0xff]  ;;  %v1095_v29 = vadd.f32 %v5984_v51, %v1094_v24  ;;  %3063 = vmatmul.f32.gmra.mxu1 %v1988_v26  ;;  %v6124_v38 = vpop.f32.mrf.mxu2 }
 0x36a   : > { %v2115_v28 = vld [vmem:[#allocation4 + $0x10a] sm:$0xff]  ;;  %3176 = vmatmul.f32.gmra.mxu2 %v2052_v27  ;;  %v2116_v35 = vld [vmem:[#allocation4 + $0x112] sm:$0xff] }
 0x36b   : > { %3286 = vmatmul.f32.gmra.mxu3 %v2115_v28  ;;  %v1296_v30 = vmax.f32 %v1095_v29, 0.0  ;;  %5190 = vmatmul.msk.f32.gmra.mxu0 %vm415_vm1, %v386_v22  ;;  %v393_v26 = vld [vmem:[%s5317_s14 + $0x390] sm:$0xff]  ;;  %v394_v29 = vld [vmem:[%s5317_s14 + $0x398] sm:$0xff] }
 0x36c   : > { %v1508_v60 = vld [vmem:[#allocation2 + $0x2d0] sm:$0xff] }
 0x36d   : > { %1425 = vst.msk [vmem:[#allocation2 + $0x2d8] sm:$0xff] %vm1333_vm2, %v1296_v30  ;;  %v2921_v30 = vld [vmem:[%s7880_s3 + $0x2d8] sm:$0xff] }
 0x36e   : > { %3547 = vmatpush.msrb.mxu3 %v2921_v30  ;;  %v6184_v30 = vpop.f32.mrf.mxu1 }
 0x370   : > { %v1097_v32 = vpop.f32.mrf.mxu0 }
 0x371   : > { %v1098_v34 = vadd.f32 %v5984_v51, %v1097_v32  ;;  %v6120_v32 = vpop.f32.mrf.mxu3  ;;  %v6186_v31 = vpop.f32.mrf.mxu2 }
 0x373   : > { %3289 = vmatmul.f32.gmra.mxu3 %v2116_v35  ;;  %v1297_v36 = vmax.f32 %v1098_v34, 0.0  ;;  %5191 = vmatmul.msk.f32.gmra.mxu0 %vm415_vm1, %v387_v33 }
 0x374   : > { %v1509_v8 = vld [vmem:[#allocation2 + $0x2d8] sm:$0xff] }
 0x375   : > { %1426 = vst.msk [vmem:[#allocation2 + $0x2e0] sm:$0xff] %vm1333_vm2, %v1297_v36 }
 0x378   : > { %v1100_v39 = vpop.f32.mrf.mxu0 }
 0x379   : > { %v1101_v41 = vadd.f32 %v5984_v51, %v1100_v39 }
 0x37b   : > { %v1298_v42 = vmax.f32 %v1101_v41, 0.0  ;;  %5192 = vmatmul.msk.f32.gmra.mxu0 %vm415_vm1, %v388_v40  ;;  %v2904_v41 = vld [vmem:[%s7880_s3 + $0x250] sm:$0xff] }
 0x37c   : > { %v1571_v44 = vld [vmem:[#allocation2 + $0x2e0] sm:$0xff]  ;;  %3435 = vmatpush.msrb.mxu2 %v2904_v41 }
 0x37d   : > { %v1635_v46 = vmax.f32 %v1506_v43, %v1571_v44  ;;  %1427 = vst.msk [vmem:[#allocation2 + $0x2e8] sm:$0xff] %vm1333_vm2, %v1298_v42  ;;  %v395_v43 = vld [vmem:[%s5317_s14 + $0x3a0] sm:$0xff] }
 0x37f   : > { %1699 = vst.msk [vmem:[#allocation3 + $0x160] sm:$0xff] %vm1333_vm2, %v1635_v46  ;;  %v6134_v46 = vpop.f32.mrf.mxu3 }
 0x380   : > { %v1103_v47 = vpop.f32.mrf.mxu0 }
 0x381   : > { %v1104_v49 = vadd.f32 %v5984_v51, %v1103_v47 }
 0x383   : > { %v1299_v50 = vmax.f32 %v1104_v49, 0.0  ;;  %5193 = vmatmul.msk.f32.gmra.mxu0 %vm415_vm1, %v389_v48  ;;  %v2920_v48 = vld [vmem:[%s7880_s3 + $0x2d0] sm:$0xff] }
 0x384   : > { %v1572_v52 = vld [vmem:[#allocation2 + $0x2e8] sm:$0xff]  ;;  %v2888_v49 = vld [vmem:[%s7880_s3 + $0x1d0] sm:$0xff]  ;;  %3548 = vmatpush.msrb.mxu3 %v2920_v48  ;;  %v2885_v48 = vld [vmem:[%s7880_s3 + $0x1b8] sm:$0xff] }
 0x385   : > { %v1636_v54 = vmax.f32 %v1507_v25, %v1572_v52  ;;  %1428 = vst.msk [vmem:[#allocation2 + $0x2f0] sm:$0xff] %vm1333_vm2, %v1299_v50  ;;  %v396_v25 = vld [vmem:[%s5317_s14 + $0x3a8] sm:$0xff]  ;;  %3322 = vmatpush.msra.mxu1 %v2888_v49 }
 0x387   : > { %1700 = vst.msk [vmem:[#allocation3 + $0x168] sm:$0xff] %vm1333_vm2, %v1636_v54  ;;  %v6206_v49 = vpop.f32.mrf.mxu3 }
 0x388   : > { %v1106_v56 = vpop.f32.mrf.mxu0 }
 0x389   : > { %v1107_v58 = vadd.f32 %v5984_v51, %v1106_v56  ;;  %v2903_v56 = vld [vmem:[%s7880_s3 + $0x248] sm:$0xff] }
 0x38a   : > { %3436 = vmatpush.msrb.mxu2 %v2903_v56 }
 0x38b   : > { %v1300_v59 = vmax.f32 %v1107_v58, 0.0  ;;  %5194 = vmatmul.msk.f32.gmra.mxu0 %vm415_vm1, %v390_v57 }
 0x38c   : > { %v1573_v61 = vld [vmem:[#allocation2 + $0x2f0] sm:$0xff]  ;;  %3437 = vmatpush.msrb.mxu2 %v2902_v10 }
 0x38d   : > { %v1637_v63 = vmax.f32 %v1508_v60, %v1573_v61  ;;  %1429 = vst.msk [vmem:[#allocation2 + $0x2f8] sm:$0xff] %vm1333_vm2, %v1300_v59  ;;  %v397_v59 = vld [vmem:[%s5317_s14 + $0x3b0] sm:$0xff] }
 0x38e   : > { %v1763_v0 = vld [vmem:[#allocation3 + $0x160] ss:$2 sm:$0xff]  ;;  %v1827_v1 = vld [vmem:[#allocation3 + $0x161] ss:$2 sm:$0xff] }
 0x38f   : > { %1701 = vst.msk [vmem:[#allocation3 + $0x170] sm:$0xff] %vm1333_vm2, %v1637_v63  ;;  %v1868_v2 = vmax.f32 %v1763_v0, %v1827_v1  ;;  %v2919_v0 = vld [vmem:[%s7880_s3 + $0x2c8] sm:$0xff] }
 0x390   : > { %v1109_v4 = vpop.f32.mrf.mxu0  ;;  %3549 = vmatpush.msrb.mxu3 %v2919_v0  ;;  %v2916_v0 = vld [vmem:[%s7880_s3 + $0x2b0] sm:$0xff] }
 0x391   : > { %v1110_v6 = vadd.f32 %v5984_v51, %v1109_v4  ;;  %1955 = vst.msk [vmem:[#allocation4 + $0x121] sm:$0xff] %vm1333_vm2, %v1868_v2  ;;  %v2887_v2 = vld [vmem:[%s7880_s3 + $0x1c8] sm:$0xff] }
 0x392   : > { %3323 = vmatpush.msra.mxu1 %v2887_v2 }
 0x393   : > { %v1301_v7 = vmax.f32 %v1110_v6, 0.0  ;;  %5195 = vmatmul.msk.f32.gmra.mxu0 %vm415_vm1, %v391_v5  ;;  %v398_v5 = vld [vmem:[%s5317_s14 + $0x3b8] sm:$0xff] }
 0x394   : > { %v1574_v9 = vld [vmem:[#allocation2 + $0x2f8] sm:$0xff] }
 0x395   : > { %v1638_v11 = vmax.f32 %v1509_v8, %v1574_v9  ;;  %1430 = vst.msk [vmem:[#allocation2 + $0x300] sm:$0xff] %vm1333_vm2, %v1301_v7 }
 0x397   : > { %1702 = vst.msk [vmem:[#allocation3 + $0x178] sm:$0xff] %vm1333_vm2, %v1638_v11 }
 0x398   : > { %v1112_v13 = vpop.f32.mrf.mxu0  ;;  %v1989_v14 = vld [vmem:[#allocation4 + $0x120] sm:$0xff] }
 0x399   : > { %v2053_v15 = vld [vmem:[#allocation4 + $0x121] sm:$0xff]  ;;  %v1113_v19 = vadd.f32 %v5984_v51, %v1112_v13  ;;  %3066 = vmatmul.f32.gmra.mxu1 %v1989_v14 }
 0x39a   : > { %3179 = vmatmul.f32.gmra.mxu2 %v2053_v15 }
 0x39b   : > { %v1302_v20 = vmax.f32 %v1113_v19, 0.0  ;;  %5196 = vmatmul.msk.f32.gmra.mxu0 %vm415_vm1, %v392_v16  ;;  %v399_v16 = vld [vmem:[%s5317_s14 + $0x3c0] sm:$0xff] }
 0x39c   : > { %v1510_v54 = vld [vmem:[#allocation2 + $0x300] sm:$0xff] }
 0x39d   : > { %1431 = vst.msk [vmem:[#allocation2 + $0x308] sm:$0xff] %vm1333_vm2, %v1302_v20 }
 0x39e   : > { %v1765_v21 = vld [vmem:[#allocation3 + $0x170] ss:$2 sm:$0xff]  ;;  %v1829_v22 = vld [vmem:[#allocation3 + $0x171] ss:$2 sm:$0xff] }
 0x39f   : > { %v1869_v3 = vmax.f32 %v1765_v21, %v1829_v22 }
 0x3a0   : > { %v1115_v24 = vpop.f32.mrf.mxu0 }
 0x3a1   : > { %v1116_v27 = vadd.f32 %v5984_v51, %v1115_v24  ;;  %1956 = vst.msk [vmem:[#allocation4 + $0x129] sm:$0xff] %vm1333_vm2, %v1869_v3  ;;  %v2918_v3 = vld [vmem:[%s7880_s3 + $0x2c0] sm:$0xff] }
 0x3a2   : > { %3550 = vmatpush.msrb.mxu3 %v2918_v3  ;;  %v2886_v24 = vld [vmem:[%s7880_s3 + $0x1c0] sm:$0xff] }
 0x3a3   : > { %v1303_v28 = vmax.f32 %v1116_v27, 0.0  ;;  %5197 = vmatmul.msk.f32.gmra.mxu0 %vm415_vm1, %v393_v26  ;;  %3324 = vmatpush.msra.mxu1 %v2886_v24 }
 0x3a4   : > { %v1511_v62 = vld [vmem:[#allocation2 + $0x308] sm:$0xff] }
 0x3a5   : > { %1432 = vst.msk [vmem:[#allocation2 + $0x310] sm:$0xff] %vm1333_vm2, %v1303_v28  ;;  %3325 = vmatpush.msra.mxu1 %v2885_v48 }
 0x3a8   : > { %v1118_v33 = vpop.f32.mrf.mxu0  ;;  %v1990_v34 = vld [vmem:[#allocation4 + $0x128] sm:$0xff] }
 0x3a9   : > { %v2054_v35 = vld [vmem:[#allocation4 + $0x129] sm:$0xff]  ;;  %v1119_v39 = vadd.f32 %v5984_v51, %v1118_v33  ;;  %3069 = vmatmul.f32.gmra.mxu1 %v1990_v34 }
 0x3aa   : > { %v2117_v36 = vld [vmem:[#allocation4 + $0x122] sm:$0xff]  ;;  %3182 = vmatmul.f32.gmra.mxu2 %v2054_v35  ;;  %v2118_v45 = vld [vmem:[#allocation4 + $0x12a] sm:$0xff] }
 0x3ab   : > { %3292 = vmatmul.f32.gmra.mxu3 %v2117_v36  ;;  %v1304_v40 = vmax.f32 %v1119_v39, 0.0  ;;  %5198 = vmatmul.msk.f32.gmra.mxu0 %vm415_vm1, %v394_v29  ;;  %v400_v29 = vld [vmem:[%s5317_s14 + $0x3c8] sm:$0xff] }
 0x3ac   : > { %v1512_v8 = vld [vmem:[#allocation2 + $0x310] sm:$0xff] }
 0x3ad   : > { %1433 = vst.msk [vmem:[#allocation2 + $0x318] sm:$0xff] %vm1333_vm2, %v1304_v40  ;;  %v2901_v40 = vld [vmem:[%s7880_s3 + $0x238] sm:$0xff] }
 0x3ae   : > { %3438 = vmatpush.msrb.mxu2 %v2901_v40 }
 0x3b0   : > { %v1121_v42 = vpop.f32.mrf.mxu0 }
 0x3b1   : > { %v1122_v44 = vadd.f32 %v5984_v51, %v1121_v42  ;;  %v401_v42 = vld [vmem:[%s5317_s14 + $0x3d0] sm:$0xff] }
 0x3b3   : > { %3295 = vmatmul.f32.gmra.mxu3 %v2118_v45  ;;  %v1305_v47 = vmax.f32 %v1122_v44, 0.0  ;;  %5199 = vmatmul.msk.f32.gmra.mxu0 %vm415_vm1, %v395_v43  ;;  %v402_v45 = vld [vmem:[%s5317_s14 + $0x3d8] sm:$0xff] }
 0x3b4   : > { %v1513_v21 = vld [vmem:[#allocation2 + $0x318] sm:$0xff] }
 0x3b5   : > { %1434 = vst.msk [vmem:[#allocation2 + $0x320] sm:$0xff] %vm1333_vm2, %v1305_v47  ;;  %v2917_v47 = vld [vmem:[%s7880_s3 + $0x2b8] sm:$0xff] }
 0x3b6   : > { %3551 = vmatpush.msrb.mxu3 %v2917_v47 }
 0x3b8   : > { %v1124_v50 = vpop.f32.mrf.mxu0  ;;  %3552 = vmatpush.msrb.mxu3 %v2916_v0 }
 0x3b9   : > { %v1125_v52 = vadd.f32 %v5984_v51, %v1124_v50 }
 0x3bb   : > { %v1306_v53 = vmax.f32 %v1125_v52, 0.0  ;;  %5200 = vmatmul.msk.f32.gmra.mxu0 %vm415_vm1, %v396_v25 }
 0x3bc   : > { %v1575_v55 = vld [vmem:[#allocation2 + $0x320] sm:$0xff] }
 0x3bd   : > { %v1639_v57 = vmax.f32 %v1510_v54, %v1575_v55  ;;  %1435 = vst.msk [vmem:[#allocation2 + $0x328] sm:$0xff] %vm1333_vm2, %v1306_v53  ;;  %v6208_v54 = vpop.f32.mrf.mxu1  ;;  %v6210_v55 = vpop.f32.mrf.mxu2 }
 0x3bf   : > { %1703 = vst.msk [vmem:[#allocation3 + $0x180] sm:$0xff] %vm1333_vm2, %v1639_v57 }
 0x3c0   : > { %v1127_v58 = vpop.f32.mrf.mxu0 }
 0x3c1   : > { %v1128_v60 = vadd.f32 %v5984_v51, %v1127_v58  ;;  %v2900_v58 = vld [vmem:[%s7880_s3 + $0x230] sm:$0xff] }
 0x3c2   : > { %3439 = vmatpush.msrb.mxu2 %v2900_v58 }
 0x3c3   : > { %v1307_v61 = vmax.f32 %v1128_v60, 0.0  ;;  %5201 = vmatmul.msk.f32.gmra.mxu0 %vm415_vm1, %v397_v59 }
 0x3c4   : > { %v1576_v63 = vld [vmem:[#allocation2 + $0x328] sm:$0xff] }
 0x3c5   : > { %v1640_v1 = vmax.f32 %v1511_v62, %v1576_v63  ;;  %1436 = vst.msk [vmem:[#allocation2 + $0x330] sm:$0xff] %vm1333_vm2, %v1307_v61  ;;  %v6219_v62 = vpop.f32.mrf.mxu3 }
 0x3c7   : > { %1704 = vst.msk [vmem:[#allocation3 + $0x188] sm:$0xff] %vm1333_vm2, %v1640_v1  ;;  %v2884_v1 = vld [vmem:[%s7880_s3 + $0x1b0] sm:$0xff] }
 0x3c8   : > { %v1130_v4 = vpop.f32.mrf.mxu0  ;;  %3326 = vmatpush.msra.mxu1 %v2884_v1  ;;  %v2897_v1 = vld [vmem:[%s7880_s3 + $0x218] sm:$0xff] }
 0x3c9   : > { %v1131_v6 = vadd.f32 %v5984_v51, %v1130_v4 }
 0x3cb   : > { %v1308_v7 = vmax.f32 %v1131_v6, 0.0  ;;  %5202 = vmatmul.msk.f32.gmra.mxu0 %vm415_vm1, %v398_v5 }
 0x3cc   : > { %v1577_v9 = vld [vmem:[#allocation2 + $0x330] sm:$0xff] }
 0x3cd   : > { %v1641_v11 = vmax.f32 %v1512_v8, %v1577_v9  ;;  %1437 = vst.msk [vmem:[#allocation2 + $0x338] sm:$0xff] %vm1333_vm2, %v1308_v7  ;;  %v2899_v8 = vld [vmem:[%s7880_s3 + $0x228] sm:$0xff] }
 0x3ce   : > { %v1767_v12 = vld [vmem:[#allocation3 + $0x180] ss:$2 sm:$0xff]  ;;  %v1831_v13 = vld [vmem:[#allocation3 + $0x181] ss:$2 sm:$0xff]  ;;  %3440 = vmatpush.msrb.mxu2 %v2899_v8 }
 0x3cf   : > { %1705 = vst.msk [vmem:[#allocation3 + $0x190] sm:$0xff] %vm1333_vm2, %v1641_v11  ;;  %v1870_v14 = vmax.f32 %v1767_v12, %v1831_v13  ;;  %v6235_v12 = vpop.f32.mrf.mxu3 }
 0x3d0   : > { %v1133_v15 = vpop.f32.mrf.mxu0 }
 0x3d1   : > { %v1134_v19 = vadd.f32 %v5984_v51, %v1133_v15  ;;  %1957 = vst.msk [vmem:[#allocation4 + $0x139] sm:$0xff] %vm1333_vm2, %v1870_v14 }
 0x3d3   : > { %v1309_v20 = vmax.f32 %v1134_v19, 0.0  ;;  %5203 = vmatmul.msk.f32.gmra.mxu0 %vm415_vm1, %v399_v16  ;;  %v2915_v16 = vld [vmem:[%s7880_s3 + $0x2a8] sm:$0xff] }
 0x3d4   : > { %v1578_v22 = vld [vmem:[#allocation2 + $0x338] sm:$0xff]  ;;  %v2883_v19 = vld [vmem:[%s7880_s3 + $0x1a8] sm:$0xff]  ;;  %3553 = vmatpush.msrb.mxu3 %v2915_v16 }
 0x3d5   : > { %v1642_v23 = vmax.f32 %v1513_v21, %v1578_v22  ;;  %1438 = vst.msk [vmem:[#allocation2 + $0x340] sm:$0xff] %vm1333_vm2, %v1309_v20  ;;  %3327 = vmatpush.msra.mxu1 %v2883_v19 }
 0x3d7   : > { %1706 = vst.msk [vmem:[#allocation3 + $0x198] sm:$0xff] %vm1333_vm2, %v1642_v23 }
 0x3d8   : > { %v1136_v26 = vpop.f32.mrf.mxu0  ;;  %v1991_v27 = vld [vmem:[#allocation4 + $0x138] sm:$0xff] }
 0x3d9   : > { %v2055_v28 = vld [vmem:[#allocation4 + $0x139] sm:$0xff]  ;;  %v1137_v33 = vadd.f32 %v5984_v51, %v1136_v26  ;;  %3072 = vmatmul.f32.gmra.mxu1 %v1991_v27  ;;  %v6249_v27 = vpop.f32.mrf.mxu3 }
 0x3da   : > { %3185 = vmatmul.f32.gmra.mxu2 %v2055_v28  ;;  %v2898_v26 = vld [vmem:[%s7880_s3 + $0x220] sm:$0xff] }
 0x3db   : > { %v1310_v34 = vmax.f32 %v1137_v33, 0.0  ;;  %5204 = vmatmul.msk.f32.gmra.mxu0 %vm415_vm1, %v400_v29  ;;  %3441 = vmatpush.msrb.mxu2 %v2898_v26  ;;  %v6252_v29 = vpop.f32.mrf.mxu1 }
 0x3dc   : > { %v1514_v6 = vld [vmem:[#allocation2 + $0x340] sm:$0xff] }
 0x3dd   : > { %1439 = vst.msk [vmem:[#allocation2 + $0x348] sm:$0xff] %vm1333_vm2, %v1310_v34  ;;  %3442 = vmatpush.msrb.mxu2 %v2897_v1 }
 0x3de   : > { %v1769_v35 = vld [vmem:[#allocation3 + $0x190] ss:$2 sm:$0xff]  ;;  %v1833_v36 = vld [vmem:[#allocation3 + $0x191] ss:$2 sm:$0xff] }
 0x3df   : > { %v1871_v39 = vmax.f32 %v1769_v35, %v1833_v36 }
 0x3e0   : > { %v1139_v41 = vpop.f32.mrf.mxu0 }
 0x3e1   : > { %v1140_v43 = vadd.f32 %v5984_v51, %v1139_v41  ;;  %1958 = vst.msk [vmem:[#allocation4 + $0x141] sm:$0xff] %vm1333_vm2, %v1871_v39  ;;  %v6265_v47 = vpop.f32.mrf.mxu3 }
 0x3e3   : > { %v1311_v44 = vmax.f32 %v1140_v43, 0.0  ;;  %5205 = vmatmul.msk.f32.gmra.mxu0 %vm415_vm1, %v401_v42  ;;  %v6257_v42 = vpop.f32.mrf.mxu2 }
 0x3e4   : > { %v1515_v13 = vld [vmem:[#allocation2 + $0x348] sm:$0xff] }
 0x3e5   : > { %1440 = vst.msk [vmem:[#allocation2 + $0x350] sm:$0xff] %vm1333_vm2, %v1311_v44  ;;  %v2914_v44 = vld [vmem:[%s7880_s3 + $0x2a0] sm:$0xff] }
 0x3e6   : > { %3554 = vmatpush.msrb.mxu3 %v2914_v44 }
 0x3e8   : > { %v1142_v50 = vpop.f32.mrf.mxu0  ;;  %v1992_v25 = vld [vmem:[#allocation4 + $0x140] sm:$0xff] }
 0x3e9   : > { %v2056_v52 = vld [vmem:[#allocation4 + $0x141] sm:$0xff]  ;;  %v1143_v56 = vadd.f32 %v5984_v51, %v1142_v50  ;;  %3075 = vmatmul.f32.gmra.mxu1 %v1992_v25  ;;  %v6268_v50 = vpop.f32.mrf.mxu1 }
 0x3ea   : > { %v2119_v53 = vld [vmem:[#allocation4 + $0x13a] sm:$0xff]  ;;  %3188 = vmatmul.f32.gmra.mxu2 %v2056_v52  ;;  %v2120_v61 = vld [vmem:[#allocation4 + $0x142] sm:$0xff] }
 0x3eb   : > { %3298 = vmatmul.f32.gmra.mxu3 %v2119_v53  ;;  %v1312_v57 = vmax.f32 %v1143_v56, 0.0  ;;  %5206 = vmatmul.msk.f32.gmra.mxu0 %vm415_vm1, %v402_v45  ;;  %v2882_v45 = vld [vmem:[%s7880_s3 + $0x1a0] sm:$0xff]  ;;  %v6272_v58 = vpop.f32.mrf.mxu2 }
 0x3ec   : > { %v1516_v23 = vld [vmem:[#allocation2 + $0x350] sm:$0xff]  ;;  %3328 = vmatpush.msra.mxu1 %v2882_v45 }
 0x3ed   : > { %1441 = vst.msk [vmem:[#allocation2 + $0x358] sm:$0xff] %vm1333_vm2, %v1312_v57 }
 0x3f0   : > { %v1145_v59 = vpop.f32.mrf.mxu0 }
 0x3f1   : > { %v1146_v60 = vadd.f32 %v5984_v51, %v1145_v59  ;;  %v6275_v59 = vpop.f32.mrf.mxu1 }
 0x3f3   : > { %3301 = vmatmul.f32.gmra.mxu3 %v2120_v61  ;;  %v1313_v63 = vmax.f32 %v1146_v60, 0.0 }
 0x3f4   : > { %v1517_v40 = vld [vmem:[#allocation2 + $0x358] sm:$0xff] }
 0x3f5   : > { %1442 = vst.msk [vmem:[#allocation2 + $0x360] sm:$0xff] %vm1333_vm2, %v1313_v63  ;;  %v6277_v63 = vpop.f32.mrf.mxu3 }
 0x3f8   : > { %v1148_v2 = vpop.f32.mrf.mxu0 }
 0x3f9   : > { %v1149_v4 = vadd.f32 %v5984_v51, %v1148_v2 }
 0x3fb   : > { %v1314_v5 = vmax.f32 %v1149_v4, 0.0 }
 0x3fc   : > { %v1579_v7 = vld [vmem:[#allocation2 + $0x360] sm:$0xff] }
 0x3fd   : > { %v1643_v9 = vmax.f32 %v1514_v6, %v1579_v7  ;;  %1443 = vst.msk [vmem:[#allocation2 + $0x368] sm:$0xff] %vm1333_vm2, %v1314_v5  ;;  %v6284_v6 = vpop.f32.mrf.mxu2  ;;  %v6287_v7 = vpop.f32.mrf.mxu1 }
 0x3fe   : > { %v6289_v8 = vpop.f32.mrf.mxu3 }
 0x3ff   : > { %1707 = vst.msk [vmem:[#allocation3 + $0x1a0] sm:$0xff] %vm1333_vm2, %v1643_v9  ;;  %v2913_v9 = vld [vmem:[%s7880_s3 + $0x298] sm:$0xff] }
 0x400   : > { %v1151_v10 = vpop.f32.mrf.mxu0  ;;  %3555 = vmatpush.msrb.mxu3 %v2913_v9  ;;  %v2911_v9 = vld [vmem:[%s7880_s3 + $0x288] sm:$0xff] }
 0x401   : > { %v1152_v11 = vadd.f32 %v5984_v51, %v1151_v10  ;;  %v2881_v10 = vld [vmem:[%s7880_s3 + $0x198] sm:$0xff] }
 0x402   : > { %3329 = vmatpush.msra.mxu1 %v2881_v10  ;;  %v2879_v10 = vld [vmem:[%s7880_s3 + $0x188] sm:$0xff] }
 0x403   : > { %v1315_v14 = vmax.f32 %v1152_v11, 0.0 }
 0x404   : > { %v1580_v15 = vld [vmem:[#allocation2 + $0x368] sm:$0xff] }
 0x405   : > { %v1644_v20 = vmax.f32 %v1515_v13, %v1580_v15  ;;  %1444 = vst.msk [vmem:[#allocation2 + $0x370] sm:$0xff] %vm1333_vm2, %v1315_v14 }
 0x407   : > { %1708 = vst.msk [vmem:[#allocation3 + $0x1a8] sm:$0xff] %vm1333_vm2, %v1644_v20  ;;  %v6298_v20 = vpop.f32.mrf.mxu2 }
 0x408   : > { %v1154_v21 = vpop.f32.mrf.mxu0 }
 0x409   : > { %v1155_v22 = vadd.f32 %v5984_v51, %v1154_v21  ;;  %v6301_v21 = vpop.f32.mrf.mxu1 }
 0x40b   : > { %v1316_v3 = vmax.f32 %v1155_v22, 0.0  ;;  %v2896_v22 = vld [vmem:[%s7880_s3 + $0x210] sm:$0xff] }
 0x40c   : > { %v1581_v24 = vld [vmem:[#allocation2 + $0x370] sm:$0xff]  ;;  %3443 = vmatpush.msrb.mxu2 %v2896_v22 }
 0x40d   : > { %v1645_v28 = vmax.f32 %v1516_v23, %v1581_v24  ;;  %1445 = vst.msk [vmem:[#allocation2 + $0x378] sm:$0xff] %vm1333_vm2, %v1316_v3  ;;  %v6306_v23 = vpop.f32.mrf.mxu3 }
 0x40e   : > { %v1771_v33 = vld [vmem:[#allocation3 + $0x1a0] ss:$2 sm:$0xff]  ;;  %v1835_v34 = vld [vmem:[#allocation3 + $0x1a1] ss:$2 sm:$0xff] }
 0x40f   : > { %1709 = vst.msk [vmem:[#allocation3 + $0x1b0] sm:$0xff] %vm1333_vm2, %v1645_v28  ;;  %v1872_v35 = vmax.f32 %v1771_v33, %v1835_v34  ;;  %v6309_v33 = vpop.f32.mrf.mxu2 }
 0x410   : > { %v1157_v36 = vpop.f32.mrf.mxu0 }
 0x411   : > { %v1158_v39 = vadd.f32 %v5984_v51, %v1157_v36  ;;  %1959 = vst.msk [vmem:[#allocation4 + $0x151] sm:$0xff] %vm1333_vm2, %v1872_v35  ;;  %v6312_v34 = vpop.f32.mrf.mxu1  ;;  %v2912_v35 = vld [vmem:[%s7880_s3 + $0x290] sm:$0xff] }
 0x412   : > { %v2880_v36 = vld [vmem:[%s7880_s3 + $0x190] sm:$0xff]  ;;  %3556 = vmatpush.msrb.mxu3 %v2912_v35 }
 0x413   : > { %v1317_v41 = vmax.f32 %v1158_v39, 0.0  ;;  %3330 = vmatpush.msra.mxu1 %v2880_v36 }
 0x414   : > { %v1582_v43 = vld [vmem:[#allocation2 + $0x378] sm:$0xff]  ;;  %3557 = vmatpush.msrb.mxu3 %v2911_v9 }
 0x415   : > { %v1646_v48 = vmax.f32 %v1517_v40, %v1582_v43  ;;  %1446 = vst.msk [vmem:[#allocation2 + $0x380] sm:$0xff] %vm1333_vm2, %v1317_v41  ;;  %v6320_v40 = vpop.f32.mrf.mxu3  ;;  %3331 = vmatpush.msra.mxu1 %v2879_v10 }
 0x417   : > { %1710 = vst.msk [vmem:[#allocation3 + $0x1b8] sm:$0xff] %vm1333_vm2, %v1646_v48  ;;  %v6323_v44 = vpop.f32.mrf.mxu2 }
 0x418   : > { %v1160_v25 = vpop.f32.mrf.mxu0  ;;  %v1993_v52 = vld [vmem:[#allocation4 + $0x150] sm:$0xff] }
 0x419   : > { %v2057_v53 = vld [vmem:[#allocation4 + $0x151] sm:$0xff]  ;;  %v1161_v56 = vadd.f32 %v5984_v51, %v1160_v25  ;;  %3078 = vmatmul.f32.gmra.mxu1 %v1993_v52  ;;  %v6326_v52 = vpop.f32.mrf.mxu1 }
 0x41a   : > { %3191 = vmatmul.f32.gmra.mxu2 %v2057_v53  ;;  %v2895_v53 = vld [vmem:[%s7880_s3 + $0x208] sm:$0xff] }
 0x41b   : > { %v1318_v57 = vmax.f32 %v1161_v56, 0.0  ;;  %3444 = vmatpush.msrb.mxu2 %v2895_v53 }
 0x41c   : > { %v1518_v45 = vld [vmem:[#allocation2 + $0x380] sm:$0xff] }
 0x41d   : > { %1447 = vst.msk [vmem:[#allocation2 + $0x388] sm:$0xff] %vm1333_vm2, %v1318_v57 }
 0x41e   : > { %v1773_v60 = vld [vmem:[#allocation3 + $0x1b0] ss:$2 sm:$0xff]  ;;  %v1837_v61 = vld [vmem:[#allocation3 + $0x1b1] ss:$2 sm:$0xff] }
 0x41f   : > { %v1873_v0 = vmax.f32 %v1773_v60, %v1837_v61  ;;  %v6333_v60 = vpop.f32.mrf.mxu3 }
 0x420   : > { %v1163_v2 = vpop.f32.mrf.mxu0 }
 0x421   : > { %v1164_v4 = vadd.f32 %v5984_v51, %v1163_v2  ;;  %1960 = vst.msk [vmem:[#allocation4 + $0x159] sm:$0xff] %vm1333_vm2, %v1873_v0  ;;  %v6335_v0 = vpop.f32.mrf.mxu2 }
 0x423   : > { %v1319_v5 = vmax.f32 %v1164_v4, 0.0 }
 0x424   : > { %v1519_v1 = vld [vmem:[#allocation2 + $0x388] sm:$0xff] }
 0x425   : > { %1448 = vst.msk [vmem:[#allocation2 + $0x390] sm:$0xff] %vm1333_vm2, %v1319_v5  ;;  %v6338_v5 = vpop.f32.mrf.mxu1 }
 0x428   : > { %v1166_v11 = vpop.f32.mrf.mxu0  ;;  %v1994_v13 = vld [vmem:[#allocation4 + $0x158] sm:$0xff] }
 0x429   : > { %v2058_v14 = vld [vmem:[#allocation4 + $0x159] sm:$0xff]  ;;  %v1167_v16 = vadd.f32 %v5984_v51, %v1166_v11  ;;  %3081 = vmatmul.f32.gmra.mxu1 %v1994_v13 }
 0x42a   : > { %v2121_v15 = vld [vmem:[#allocation4 + $0x152] sm:$0xff]  ;;  %3194 = vmatmul.f32.gmra.mxu2 %v2058_v14  ;;  %v2122_v26 = vld [vmem:[#allocation4 + $0x15a] sm:$0xff]  ;;  %v6348_v14 = vpop.f32.mrf.mxu3 }
 0x42b   : > { %3304 = vmatmul.f32.gmra.mxu3 %v2121_v15  ;;  %v1320_v19 = vmax.f32 %v1167_v16, 0.0  ;;  %v6350_v16 = vpop.f32.mrf.mxu2 }
 0x42d   : > { %1449 = vst.msk [vmem:[#allocation2 + $0x398] sm:$0xff] %vm1333_vm2, %v1320_v19  ;;  %v1520_v19 = vld [vmem:[#allocation2 + $0x390] sm:$0xff] }
 0x430   : > { %v1169_v3 = vpop.f32.mrf.mxu0 }
 0x431   : > { %v1170_v24 = vadd.f32 %v5984_v51, %v1169_v3 }
 0x432   : > { %v6365_v53 = vpop.f32.mrf.mxu3 }
 0x433   : > { %3307 = vmatmul.f32.gmra.mxu3 %v2122_v26  ;;  %v1321_v28 = vmax.f32 %v1170_v24, 0.0  ;;  %v6353_v24 = vpop.f32.mrf.mxu1 }
 0x435   : > { %1450 = vst.msk [vmem:[#allocation2 + $0x3a0] sm:$0xff] %vm1333_vm2, %v1321_v28 }
 0x438   : > { %v1172_v39 = vpop.f32.mrf.mxu0 }
 0x439   : > { %v1173_v41 = vadd.f32 %v5984_v51, %v1172_v39  ;;  %v5233_v39 = vld [vmem:[%s7879_s2] ss:$0 sm:$0xff] }
 0x43b   : > { %v1322_v43 = vmax.f32 %v1173_v41, 0.0 }
 0x43c   : > { %v1583_v48 = vld [vmem:[#allocation2 + $0x3a0] sm:$0xff] }
 0x43d   : > { %v1647_v25 = vmax.f32 %v1518_v45, %v1583_v48  ;;  %1451 = vst.msk [vmem:[#allocation2 + $0x3a8] sm:$0xff] %vm1333_vm2, %v1322_v43  ;;  %v6363_v45 = vpop.f32.mrf.mxu2  ;;  %v1521_v48 = vld [vmem:[#allocation2 + $0x398] sm:$0xff] }
 0x43f   : > { %1711 = vst.msk [vmem:[#allocation3 + $0x1c0] sm:$0xff] %vm1333_vm2, %v1647_v25 }
 0x440   : > { %v1175_v56 = vpop.f32.mrf.mxu0 }
 0x441   : > { %v1176_v57 = vadd.f32 %v5984_v51, %v1175_v56 }
 0x443   : > { %v1323_v61 = vmax.f32 %v1176_v57, 0.0  ;;  %v6368_v57 = vpop.f32.mrf.mxu1 }
 0x444   : > { %v1584_v2 = vld [vmem:[#allocation2 + $0x3a8] sm:$0xff] }
 0x445   : > { %v1648_v4 = vmax.f32 %v1519_v1, %v1584_v2  ;;  %1452 = vst.msk [vmem:[#allocation2 + $0x3b0] sm:$0xff] %vm1333_vm2, %v1323_v61  ;;  %v2910_v61 = vld [vmem:[%s7880_s3 + $0x280] sm:$0xff]  ;;  %v2957_v2 = vld [vmem:[%s7880_s3 + $0x3f8] sm:$0xff] }
 0x446   : > { %v2878_v1 = vld [vmem:[%s7880_s3 + $0x180] sm:$0xff]  ;;  %3558 = vmatpush.msrb.mxu3 %v2910_v61 }
 0x447   : > { %1712 = vst.msk [vmem:[#allocation3 + $0x1c8] sm:$0xff] %vm1333_vm2, %v1648_v4  ;;  %3332 = vmatpush.msra.mxu1 %v2878_v1  ;;  %v1588_v1 = vld [vmem:[#allocation2 + $0x3e8] sm:$0xff] }
 0x448   : > { %v1178_v11 = vpop.f32.mrf.mxu0 }
 0x449   : > { %v1179_v13 = vadd.f32 %v5984_v51, %v1178_v11  ;;  %v2894_v51 = vld [vmem:[%s7880_s3 + $0x200] sm:$0xff] }
 0x44a   : > { %3445 = vmatpush.msrb.mxu2 %v2894_v51 }
 0x44b   : > { %v1324_v15 = vmax.f32 %v1179_v13, 0.0  ;;  %v2973_v13 = vld [vmem:[%s7880_s3 + $0x478] sm:$0xff]  ;;  %v6397_v51 = vpop.f32.mrf.mxu1 }
 0x44c   : > { %v1585_v22 = vld [vmem:[#allocation2 + $0x3b0] sm:$0xff]  ;;  %3769 = vmatpush.msra.mxu2 %v2957_v2  ;;  %3882 = vmatpush.msra.mxu3 %v2973_v13 }
 0x44d   : > { %v1649_v3 = vmax.f32 %v1520_v19, %v1585_v22  ;;  %1453 = vst.msk [vmem:[#allocation2 + $0x3b8] sm:$0xff] %vm1333_vm2, %v1324_v15  ;;  %v2941_v15 = vld [vmem:[%s7880_s3 + $0x378] sm:$0xff]  ;;  %v1587_v22 = vld [vmem:[#allocation2 + $0x3e0] sm:$0xff] }
 0x44e   : > { %v1775_v26 = vld [vmem:[#allocation3 + $0x1c0] ss:$2 sm:$0xff]  ;;  %v1839_v28 = vld [vmem:[#allocation3 + $0x1c1] ss:$2 sm:$0xff]  ;;  %3656 = vmatpush.msrb.mxu1 %v2941_v15 }
 0x44f   : > { %1713 = vst.msk [vmem:[#allocation3 + $0x1d0] sm:$0xff] %vm1333_vm2, %v1649_v3  ;;  %v1874_v35 = vmax.f32 %v1775_v26, %v1839_v28  ;;  %v6392_v3 = vpop.f32.mrf.mxu2  ;;  %v6394_v28 = vpop.f32.mrf.mxu3 }
 0x450   : > { %v1181_v36 = vpop.f32.mrf.mxu0  ;;  %7933 = vst [vmem:[#allocation12_spill] sm:$0xff] %v6394_v28 }
 0x451   : > { %v1182_v41 = vadd.f32 %v5233_v39, %v1181_v36  ;;  %1961 = vst.msk [vmem:[#allocation4 + $0x169] sm:$0xff] %vm1333_vm2, %v1874_v35 }
 0x453   : > { %v1325_v43 = vmax.f32 %v1182_v41, 0.0  ;;  %v6407_v13 = vpop.f32.mrf.mxu1 }
 0x454   : > { %v1586_v25 = vld [vmem:[#allocation2 + $0x3b8] sm:$0xff]  ;;  %7935 = vst [vmem:[#allocation14_spill] sm:$0xff] %v6407_v13 }
 0x455   : > { %v1650_v56 = vmax.f32 %v1521_v48, %v1586_v25  ;;  %1454 = vst.msk [vmem:[#allocation2 + $0x3c0] sm:$0xff] %vm1333_vm2, %v1325_v43  ;;  %v2221_v13 = vld [vmem:[#allocation4 + $0x19] sm:$0xff] }
 0x457   : > { %1714 = vst.msk [vmem:[#allocation3 + $0x1d8] sm:$0xff] %vm1333_vm2, %v1650_v56  ;;  %v2956_v56 = vld [vmem:[%s7880_s3 + $0x3f0] sm:$0xff]  ;;  %v6404_v2 = vpop.f32.mrf.mxu2  ;;  %v6409_v15 = vpop.f32.mrf.mxu3 }
 0x458   : > { %v1184_v4 = vpop.f32.mrf.mxu0  ;;  %v6380_v9 = vld [vmem:[#allocation4 + $0x168] sm:$0xff]  ;;  %3770 = vmatpush.msra.mxu2 %v2956_v56  ;;  %7934 = vst [vmem:[#allocation13_spill] sm:$0xff] %v6404_v2 }
 0x459   : > { %v6382_v10 = vld [vmem:[#allocation4 + $0x169] sm:$0xff]  ;;  %v1185_v11 = vadd.f32 %v5233_v39, %v1184_v4  ;;  %3084 = vmatmul.f32.gmra.mxu1 %v6380_v9  ;;  %7936 = vst [vmem:[#allocation15_spill] sm:$0xff] %v6409_v15  ;;  %v2157_v15 = vld [vmem:[#allocation4 + $0x18] sm:$0xff] }
 0x45a   : > { %3197 = vmatmul.f32.gmra.mxu2 %v6382_v10 }
 0x45b   : > { %v1326_v19 = vmax.f32 %v1185_v11, 0.0 }
 0x45c   : > { %v1522_v26 = vld [vmem:[#allocation2 + $0x3c0] sm:$0xff] }
 0x45d   : > { %v1651_v35 = vmax.f32 %v1522_v26, %v1587_v22  ;;  %1455 = vst.msk [vmem:[#allocation2 + $0x3c8] sm:$0xff] %vm1333_vm2, %v1326_v19 }
 0x45e   : > { %v1777_v36 = vld [vmem:[#allocation3 + $0x1d0] ss:$2 sm:$0xff]  ;;  %v1841_v41 = vld [vmem:[#allocation3 + $0x1d1] ss:$2 sm:$0xff] }
 0x45f   : > { %1715 = vst.msk [vmem:[#allocation3 + $0x1e0] sm:$0xff] %vm1333_vm2, %v1651_v35  ;;  %v1875_v43 = vmax.f32 %v1777_v36, %v1841_v41  ;;  %v2972_v41 = vld [vmem:[%s7880_s3 + $0x470] sm:$0xff]  ;;  %v6427_v56 = vpop.f32.mrf.mxu2 }
 0x460   : > { %v1187_v48 = vpop.f32.mrf.mxu0  ;;  %3883 = vmatpush.msra.mxu3 %v2972_v41  ;;  %7937 = vst [vmem:[#allocation16_spill] sm:$0xff] %v6427_v56 }
 0x461   : > { %v1188_v25 = vadd.f32 %v5233_v39, %v1187_v48  ;;  %1962 = vst.msk [vmem:[#allocation4 + $0x171] sm:$0xff] %vm1333_vm2, %v1875_v43  ;;  %v2940_v43 = vld [vmem:[%s7880_s3 + $0x370] sm:$0xff] }
 0x462   : > { %3657 = vmatpush.msrb.mxu1 %v2940_v43  ;;  %v1590_v43 = vld [vmem:[#allocation2 + $0x3f8] sm:$0xff] }
 0x463   : > { %v1327_v61 = vmax.f32 %v1188_v25, 0.0  ;;  %v1589_v25 = vld [vmem:[#allocation2 + $0x3f0] sm:$0xff] }
 0x464   : > { %v1523_v4 = vld [vmem:[#allocation2 + $0x3c8] sm:$0xff] }
 0x465   : > { %v1652_v11 = vmax.f32 %v1523_v4, %v1588_v1  ;;  %1456 = vst.msk [vmem:[#allocation2 + $0x3d0] sm:$0xff] %vm1333_vm2, %v1327_v61  ;;  %v6430_v1 = vpop.f32.mrf.mxu1  ;;  %v6432_v4 = vpop.f32.mrf.mxu3 }
 0x466   : > { %7938 = vst [vmem:[#allocation17_spill] sm:$0xff] %v6430_v1  ;;  %v6731_v1 = vld [vmem:[#allocation4 + $0xd9] sm:$0xff] }
 0x467   : > { %1716 = vst.msk [vmem:[#allocation3 + $0x1e8] sm:$0xff] %vm1333_vm2, %v1652_v11 }
 0x468   : > { %v1190_v19 = vpop.f32.mrf.mxu0  ;;  %v6412_v22 = vld [vmem:[#allocation4 + $0x170] sm:$0xff]  ;;  %7939 = vst [vmem:[#allocation18_spill] sm:$0xff] %v6432_v4 }
 0x469   : > { %v6414_v26 = vld [vmem:[#allocation4 + $0x171] sm:$0xff]  ;;  %v1191_v36 = vadd.f32 %v5233_v39, %v1190_v19  ;;  %3087 = vmatmul.f32.gmra.mxu1 %v6412_v22  ;;  %8025 = vst [vmem:[#allocation104_spill] sm:$0xff] %v6731_v1 }
 0x46a   : > { %v6416_v35 = vld [vmem:[#allocation4 + $0x16a] sm:$0xff]  ;;  %3200 = vmatmul.f32.gmra.mxu2 %v6414_v26  ;;  %v6435_v41 = vld [vmem:[#allocation4 + $0x172] sm:$0xff] }
 0x46b   : > { %3310 = vmatmul.f32.gmra.mxu3 %v6416_v35  ;;  %v1328_v48 = vmax.f32 %v1191_v36, 0.0 }
 0x46c   : > { %v1524_v39 = vld [vmem:[#allocation2 + $0x3d0] sm:$0xff] }
 0x46d   : > { %v1653_v61 = vmax.f32 %v1524_v39, %v1589_v25  ;;  %1457 = vst.msk [vmem:[#allocation2 + $0x3d8] sm:$0xff] %vm1333_vm2, %v1328_v48  ;;  %v6439_v48 = vpop.f32.mrf.mxu2  ;;  %v6441_v4 = vpop.f32.mrf.mxu1 }
 0x46e   : > { %v1779_v11 = vld [vmem:[#allocation3 + $0x1e0] ss:$2 sm:$0xff]  ;;  %v1843_v19 = vld [vmem:[#allocation3 + $0x1e1] ss:$2 sm:$0xff]  ;;  %7940 = vst [vmem:[#allocation19_spill] sm:$0xff] %v6439_v48 }
 0x46f   : > { %1717 = vst.msk [vmem:[#allocation3 + $0x1f0] sm:$0xff] %vm1333_vm2, %v1653_v61  ;;  %v1876_v36 = vmax.f32 %v1779_v11, %v1843_v19  ;;  %v2955_v61 = vld [vmem:[%s7880_s3 + $0x3e8] sm:$0xff]  ;;  %v2158_v11 = vld [vmem:[#allocation4 + $0x20] sm:$0xff] }
 0x470   : > { %7941 = vst [vmem:[#allocation20_spill] sm:$0xff] %v6441_v4  ;;  %3771 = vmatpush.msra.mxu2 %v2955_v61  ;;  %v2285_v19 = vld [vmem:[#allocation4 + $0x1a] sm:$0xff]  ;;  %v2286_v48 = vld [vmem:[#allocation4 + $0x22] sm:$0xff] }
 0x471   : > { %3333 = vmatmul.f32.vlgmr.msra.gmra.mxu1 %v2157_v15  ;;  %1963 = vst.msk [vmem:[#allocation4 + $0x181] sm:$0xff] %vm1333_vm2, %v1876_v36  ;;  %v2222_v15 = vld [vmem:[#allocation4 + $0x21] sm:$0xff] }
 0x472   : > { %3446 = vmatmul.f32.vlgmr.msrb.gmra.mxu2 %v2221_v13  ;;  %v6447_v13 = vpop.f32.mrf.mxu3  ;;  %v2971_v36 = vld [vmem:[%s7880_s3 + $0x468] sm:$0xff] }
 0x473   : > { %3313 = vmatmul.f32.gmra.mxu3 %v6435_v41  ;;  %7942 = vst [vmem:[#allocation21_spill] sm:$0xff] %v6447_v13 }
 0x474   : > { %v1525_v25 = vld [vmem:[#allocation2 + $0x3d8] sm:$0xff]  ;;  %3884 = vmatpush.msra.mxu3 %v2971_v36 }
 0x475   : > { %v1654_v39 = vmax.f32 %v1525_v25, %v1590_v43  ;;  %v2939_v43 = vld [vmem:[%s7880_s3 + $0x368] sm:$0xff]  ;;  %v6455_v25 = vpop.f32.mrf.mxu2 }
 0x476   : > { %3658 = vmatpush.msrb.mxu1 %v2939_v43  ;;  %7943 = vst [vmem:[#allocation22_spill] sm:$0xff] %v6455_v25  ;;  %v6475_v25 = vld [vmem:[#allocation4 + $0x38] sm:$0xff] }
 0x477   : > { %1718 = vst.msk [vmem:[#allocation3 + $0x1f8] sm:$0xff] %vm1333_vm2, %v1654_v39  ;;  %v6457_v39 = vpop.f32.mrf.mxu1 }
 0x478   : > { %7944 = vst [vmem:[#allocation23_spill] sm:$0xff] %v6457_v39  ;;  %v2954_v39 = vld [vmem:[%s7880_s3 + $0x3e0] sm:$0xff] }
 0x479   : > { %3336 = vmatmul.f32.gmra.mxu1 %v2158_v11  ;;  %v6459_v11 = vld [vmem:[#allocation4 + $0x30] sm:$0xff]  ;;  %7950 = vst [vmem:[#allocation29_spill] sm:$0xff] %v6475_v25  ;;  %3772 = vmatpush.msra.mxu2 %v2954_v39 }
 0x47a   : > { %3449 = vmatmul.f32.gmra.mxu2 %v2222_v15  ;;  %7945 = vst [vmem:[#allocation24_spill] sm:$0xff] %v6459_v11  ;;  %v6461_v15 = vld [vmem:[#allocation4 + $0x31] sm:$0xff]  ;;  %v6463_v4 = vpop.f32.mrf.mxu3 }
 0x47b   : > { %3559 = vmatmul.f32.vlgmr.msrb.gmra.mxu3 %v2285_v19  ;;  %7946 = vst [vmem:[#allocation25_spill] sm:$0xff] %v6461_v15 }
 0x47c   : > { %7947 = vst [vmem:[#allocation26_spill] sm:$0xff] %v6463_v4 }
 0x47d   : > { %v6468_v36 = vpop.f32.mrf.mxu2 }
 0x47e   : > { %v1781_v61 = vld [vmem:[#allocation3 + $0x1f0] ss:$2 sm:$0xff]  ;;  %v1845_v13 = vld [vmem:[#allocation3 + $0x1f1] ss:$2 sm:$0xff]  ;;  %7948 = vst [vmem:[#allocation27_spill] sm:$0xff] %v6468_v36  ;;  %v6496_v36 = vld [vmem:[#allocation4 + $0x48] sm:$0xff] }
 0x47f   : > { %v1877_v19 = vmax.f32 %v1781_v61, %v1845_v13  ;;  %v6470_v43 = vpop.f32.mrf.mxu1  ;;  %v6477_v13 = vld [vmem:[#allocation4 + $0x39] sm:$0xff]  ;;  %7956 = vst [vmem:[#allocation35_spill] sm:$0xff] %v6496_v36 }
 0x480   : > { %7949 = vst [vmem:[#allocation28_spill] sm:$0xff] %v6470_v43  ;;  %v2970_v61 = vld [vmem:[%s7880_s3 + $0x460] sm:$0xff] }
 0x481   : > { %3339 = vmatmul.f32.gmra.mxu1 %v6459_v11  ;;  %1964 = vst.msk [vmem:[#allocation4 + $0x189] sm:$0xff] %vm1333_vm2, %v1877_v19  ;;  %v2938_v19 = vld [vmem:[%s7880_s3 + $0x360] sm:$0xff]  ;;  %3885 = vmatpush.msra.mxu3 %v2970_v61 }
 0x482   : > { %3452 = vmatmul.f32.gmra.mxu2 %v6461_v15  ;;  %7951 = vst [vmem:[#allocation30_spill] sm:$0xff] %v6477_v13  ;;  %v6490_v43 = vpop.f32.mrf.mxu3  ;;  %3659 = vmatpush.msrb.mxu1 %v2938_v19 }
 0x483   : > { %3562 = vmatmul.f32.gmra.mxu3 %v2286_v48  ;;  %v6481_v48 = vld [vmem:[#allocation4 + $0x32] sm:$0xff]  ;;  %7953 = vst [vmem:[#allocation32_spill] sm:$0xff] %v6490_v43 }
 0x484   : > { %7952 = vst [vmem:[#allocation31_spill] sm:$0xff] %v6481_v48  ;;  %v6514_v43 = vld [vmem:[#allocation4 + $0x50] sm:$0xff] }
 0x485   : > { %v6492_v39 = vpop.f32.mrf.mxu2  ;;  %7962 = vst [vmem:[#allocation41_spill] sm:$0xff] %v6514_v43 }
 0x486   : > { %7954 = vst [vmem:[#allocation33_spill] sm:$0xff] %v6492_v39  ;;  %v6516_v39 = vld [vmem:[#allocation4 + $0x51] sm:$0xff] }
 0x487   : > { %v6494_v4 = vpop.f32.mrf.mxu1  ;;  %7963 = vst [vmem:[#allocation42_spill] sm:$0xff] %v6516_v39 }
 0x488   : > { %7955 = vst [vmem:[#allocation34_spill] sm:$0xff] %v6494_v4  ;;  %v2953_v4 = vld [vmem:[%s7880_s3 + $0x3d8] sm:$0xff] }
 0x489   : > { %3342 = vmatmul.f32.gmra.mxu1 %v6475_v25  ;;  %3773 = vmatpush.msra.mxu2 %v2953_v4  ;;  %v2937_v4 = vld [vmem:[%s7880_s3 + $0x358] sm:$0xff] }
 0x48a   : > { %3455 = vmatmul.f32.gmra.mxu2 %v6477_v13  ;;  %v6498_v13 = vld [vmem:[#allocation4 + $0x49] sm:$0xff]  ;;  %v6505_v25 = vpop.f32.mrf.mxu3  ;;  %3660 = vmatpush.msrb.mxu1 %v2937_v4 }
 0x48b   : > { %3565 = vmatmul.f32.gmra.mxu3 %v6481_v48  ;;  %7957 = vst [vmem:[#allocation36_spill] sm:$0xff] %v6498_v13  ;;  %v6502_v48 = vld [vmem:[#allocation4 + $0x3a] sm:$0xff] }
 0x48c   : > { %7958 = vst [vmem:[#allocation37_spill] sm:$0xff] %v6502_v48 }
 0x48d   : > { %7959 = vst [vmem:[#allocation38_spill] sm:$0xff] %v6505_v25  ;;  %v6507_v61 = vpop.f32.mrf.mxu2 }
 0x48e   : > { %7960 = vst [vmem:[#allocation39_spill] sm:$0xff] %v6507_v61 }
 0x48f   : > { %v6509_v19 = vpop.f32.mrf.mxu1 }
 0x490   : > { %7961 = vst [vmem:[#allocation40_spill] sm:$0xff] %v6509_v19  ;;  %v2969_v19 = vld [vmem:[%s7880_s3 + $0x458] sm:$0xff] }
 0x491   : > { %3345 = vmatmul.f32.gmra.mxu1 %v6496_v36  ;;  %3886 = vmatpush.msra.mxu3 %v2969_v19  ;;  %v2952_v19 = vld [vmem:[%s7880_s3 + $0x3d0] sm:$0xff]  ;;  %v6594_v36 = vld [vmem:[#allocation4 + $0x81] sm:$0xff] }
 0x492   : > { %3458 = vmatmul.f32.gmra.mxu2 %v6498_v13  ;;  %v6531_v61 = vpop.f32.mrf.mxu3  ;;  %v6537_v13 = vld [vmem:[#allocation4 + $0x61] sm:$0xff]  ;;  %7987 = vst [vmem:[#allocation66_spill] sm:$0xff] %v6594_v36 }
 0x493   : > { %3568 = vmatmul.f32.gmra.mxu3 %v6502_v48  ;;  %v6520_v48 = vld [vmem:[#allocation4 + $0x4a] sm:$0xff]  ;;  %7966 = vst [vmem:[#allocation45_spill] sm:$0xff] %v6531_v61  ;;  %3774 = vmatpush.msra.mxu2 %v2952_v19 }
 0x494   : > { %7964 = vst [vmem:[#allocation43_spill] sm:$0xff] %v6520_v48  ;;  %v2968_v19 = vld [vmem:[%s7880_s3 + $0x450] sm:$0xff] }
 0x495   : > { %v6529_v25 = vpop.f32.mrf.mxu2  ;;  %7969 = vst [vmem:[#allocation48_spill] sm:$0xff] %v6537_v13  ;;  %3887 = vmatpush.msra.mxu3 %v2968_v19 }
 0x496   : > { %7965 = vst [vmem:[#allocation44_spill] sm:$0xff] %v6529_v25  ;;  %v6553_v25 = vld [vmem:[#allocation4 + $0x68] sm:$0xff] }
 0x497   : > { %7974 = vst [vmem:[#allocation53_spill] sm:$0xff] %v6553_v25 }
 0x499   : > { %3348 = vmatmul.f32.gmra.mxu1 %v6514_v43  ;;  %v6533_v43 = vpop.f32.mrf.mxu1 }
 0x49a   : > { %3461 = vmatmul.f32.gmra.mxu2 %v6516_v39  ;;  %7967 = vst [vmem:[#allocation46_spill] sm:$0xff] %v6533_v43  ;;  %v6535_v39 = vld [vmem:[#allocation4 + $0x60] sm:$0xff]  ;;  %v6549_v43 = vpop.f32.mrf.mxu3 }
 0x49b   : > { %3571 = vmatmul.f32.gmra.mxu3 %v6520_v48  ;;  %7968 = vst [vmem:[#allocation47_spill] sm:$0xff] %v6535_v39  ;;  %v6541_v48 = vld [vmem:[#allocation4 + $0x52] sm:$0xff] }
 0x49c   : > { %7970 = vst [vmem:[#allocation49_spill] sm:$0xff] %v6541_v48 }
 0x49d   : > { %v6547_v4 = vpop.f32.mrf.mxu2  ;;  %7972 = vst [vmem:[#allocation51_spill] sm:$0xff] %v6549_v43 }
 0x49e   : > { %7971 = vst [vmem:[#allocation50_spill] sm:$0xff] %v6547_v4 }
 0x4a1   : > { %3351 = vmatmul.f32.gmra.mxu1 %v6535_v39  ;;  %v6551_v61 = vpop.f32.mrf.mxu1  ;;  %v6555_v39 = vld [vmem:[#allocation4 + $0x69] sm:$0xff] }
 0x4a2   : > { %3464 = vmatmul.f32.gmra.mxu2 %v6537_v13  ;;  %7973 = vst [vmem:[#allocation52_spill] sm:$0xff] %v6551_v61  ;;  %v2936_v61 = vld [vmem:[%s7880_s3 + $0x350] sm:$0xff]  ;;  %v6576_v13 = vld [vmem:[#allocation4 + $0x79] sm:$0xff] }
 0x4a3   : > { %3574 = vmatmul.f32.gmra.mxu3 %v6541_v48  ;;  %7975 = vst [vmem:[#allocation54_spill] sm:$0xff] %v6555_v39  ;;  %v6559_v48 = vld [vmem:[#allocation4 + $0x62] sm:$0xff]  ;;  %3661 = vmatpush.msrb.mxu1 %v2936_v61 }
 0x4a4   : > { %7976 = vst [vmem:[#allocation55_spill] sm:$0xff] %v6559_v48 }
 0x4a5   : > { %v6568_v43 = vpop.f32.mrf.mxu2  ;;  %7981 = vst [vmem:[#allocation60_spill] sm:$0xff] %v6576_v13 }
 0x4a6   : > { %7977 = vst [vmem:[#allocation56_spill] sm:$0xff] %v6568_v43 }
 0x4a9   : > { %3354 = vmatmul.f32.gmra.mxu1 %v6553_v25  ;;  %v6570_v4 = vpop.f32.mrf.mxu1  ;;  %v6572_v25 = vpop.f32.mrf.mxu3 }
 0x4aa   : > { %3467 = vmatmul.f32.gmra.mxu2 %v6555_v39  ;;  %7978 = vst [vmem:[#allocation57_spill] sm:$0xff] %v6570_v4  ;;  %v6574_v39 = vld [vmem:[#allocation4 + $0x78] sm:$0xff]  ;;  %v2951_v4 = vld [vmem:[%s7880_s3 + $0x3c8] sm:$0xff] }
 0x4ab   : > { %3577 = vmatmul.f32.gmra.mxu3 %v6559_v48  ;;  %7979 = vst [vmem:[#allocation58_spill] sm:$0xff] %v6572_v25  ;;  %v6580_v48 = vld [vmem:[#allocation4 + $0x6a] sm:$0xff]  ;;  %v6592_v25 = vld [vmem:[#allocation4 + $0x80] sm:$0xff]  ;;  %3775 = vmatpush.msra.mxu2 %v2951_v4 }
 0x4ac   : > { %7980 = vst [vmem:[#allocation59_spill] sm:$0xff] %v6574_v39 }
 0x4ad   : > { %7982 = vst [vmem:[#allocation61_spill] sm:$0xff] %v6580_v48  ;;  %v6583_v19 = vpop.f32.mrf.mxu2 }
 0x4ae   : > { %7983 = vst [vmem:[#allocation62_spill] sm:$0xff] %v6583_v19 }
 0x4af   : > { %7986 = vst [vmem:[#allocation65_spill] sm:$0xff] %v6592_v25 }
 0x4b1   : > { %3357 = vmatmul.f32.gmra.mxu1 %v6574_v39  ;;  %v6585_v61 = vpop.f32.mrf.mxu1  ;;  %v6587_v43 = vpop.f32.mrf.mxu3  ;;  %v6631_v39 = vld [vmem:[#allocation4 + $0x99] sm:$0xff] }
 0x4b2   : > { %3470 = vmatmul.f32.gmra.mxu2 %v6576_v13  ;;  %7984 = vst [vmem:[#allocation63_spill] sm:$0xff] %v6585_v61  ;;  %v2967_v61 = vld [vmem:[%s7880_s3 + $0x448] sm:$0xff] }
 0x4b3   : > { %3580 = vmatmul.f32.gmra.mxu3 %v6580_v48  ;;  %7985 = vst [vmem:[#allocation64_spill] sm:$0xff] %v6587_v43  ;;  %v6598_v48 = vld [vmem:[#allocation4 + $0x7a] sm:$0xff]  ;;  %v2935_v43 = vld [vmem:[%s7880_s3 + $0x348] sm:$0xff] }
 0x4b4   : > { %7988 = vst [vmem:[#allocation67_spill] sm:$0xff] %v6598_v48  ;;  %3888 = vmatpush.msra.mxu3 %v2967_v61  ;;  %3662 = vmatpush.msrb.mxu1 %v2935_v43 }
 0x4b5   : > { %v6607_v19 = vpop.f32.mrf.mxu2  ;;  %7998 = vst [vmem:[#allocation77_spill] sm:$0xff] %v6631_v39 }
 0x4b6   : > { %7989 = vst [vmem:[#allocation68_spill] sm:$0xff] %v6607_v19  ;;  %v6629_v19 = vld [vmem:[#allocation4 + $0x98] sm:$0xff] }
 0x4b7   : > { %7997 = vst [vmem:[#allocation76_spill] sm:$0xff] %v6629_v19 }
 0x4b9   : > { %3360 = vmatmul.f32.gmra.mxu1 %v6592_v25  ;;  %v6609_v4 = vpop.f32.mrf.mxu1  ;;  %v6611_v25 = vld [vmem:[#allocation4 + $0x90] sm:$0xff]  ;;  %v6615_v13 = vpop.f32.mrf.mxu3 }
 0x4ba   : > { %3473 = vmatmul.f32.gmra.mxu2 %v6594_v36  ;;  %7990 = vst [vmem:[#allocation69_spill] sm:$0xff] %v6609_v4  ;;  %v6613_v36 = vld [vmem:[#allocation4 + $0x91] sm:$0xff]  ;;  %v2950_v4 = vld [vmem:[%s7880_s3 + $0x3c0] sm:$0xff] }
 0x4bb   : > { %3583 = vmatmul.f32.gmra.mxu3 %v6598_v48  ;;  %7991 = vst [vmem:[#allocation70_spill] sm:$0xff] %v6611_v25  ;;  %v6619_v48 = vld [vmem:[#allocation4 + $0x82] sm:$0xff]  ;;  %3776 = vmatpush.msra.mxu2 %v2950_v4 }
 0x4bc   : > { %7992 = vst [vmem:[#allocation71_spill] sm:$0xff] %v6613_v36 }
 0x4bd   : > { %7993 = vst [vmem:[#allocation72_spill] sm:$0xff] %v6615_v13  ;;  %v6622_v61 = vpop.f32.mrf.mxu2 }
 0x4be   : > { %7994 = vst [vmem:[#allocation73_spill] sm:$0xff] %v6619_v48 }
 0x4bf   : > { %7995 = vst [vmem:[#allocation74_spill] sm:$0xff] %v6622_v61  ;;  %v2934_v61 = vld [vmem:[%s7880_s3 + $0x340] sm:$0xff] }
 0x4c0   : > { %3663 = vmatpush.msrb.mxu1 %v2934_v61 }
 0x4c1   : > { %3363 = vmatmul.f32.gmra.mxu1 %v6611_v25  ;;  %v6624_v43 = vpop.f32.mrf.mxu1  ;;  %v6633_v13 = vpop.f32.mrf.mxu3  ;;  %v6670_v25 = vld [vmem:[#allocation4 + $0xb1] sm:$0xff] }
 0x4c2   : > { %3476 = vmatmul.f32.gmra.mxu2 %v6613_v36  ;;  %7996 = vst [vmem:[#allocation75_spill] sm:$0xff] %v6624_v43  ;;  %v2966_v43 = vld [vmem:[%s7880_s3 + $0x440] sm:$0xff] }
 0x4c3   : > { %3586 = vmatmul.f32.gmra.mxu3 %v6619_v48  ;;  %7999 = vst [vmem:[#allocation78_spill] sm:$0xff] %v6633_v13  ;;  %v6637_v48 = vld [vmem:[#allocation4 + $0x92] sm:$0xff] }
 0x4c4   : > { %8000 = vst [vmem:[#allocation79_spill] sm:$0xff] %v6637_v48  ;;  %3889 = vmatpush.msra.mxu3 %v2966_v43 }
 0x4c5   : > { %v6646_v4 = vpop.f32.mrf.mxu2  ;;  %8010 = vst [vmem:[#allocation89_spill] sm:$0xff] %v6670_v25 }
 0x4c6   : > { %8001 = vst [vmem:[#allocation80_spill] sm:$0xff] %v6646_v4  ;;  %v6668_v4 = vld [vmem:[#allocation4 + $0xb0] sm:$0xff] }
 0x4c7   : > { %8009 = vst [vmem:[#allocation88_spill] sm:$0xff] %v6668_v4 }
 0x4c9   : > { %3366 = vmatmul.f32.gmra.mxu1 %v6629_v19  ;;  %v6648_v13 = vpop.f32.mrf.mxu1  ;;  %v6650_v19 = vld [vmem:[#allocation4 + $0xa8] sm:$0xff]  ;;  %v6659_v36 = vpop.f32.mrf.mxu3 }
 0x4ca   : > { %3479 = vmatmul.f32.gmra.mxu2 %v6631_v39  ;;  %8002 = vst [vmem:[#allocation81_spill] sm:$0xff] %v6648_v13  ;;  %v6652_v39 = vld [vmem:[#allocation4 + $0xa9] sm:$0xff]  ;;  %v2949_v13 = vld [vmem:[%s7880_s3 + $0x3b8] sm:$0xff] }
 0x4cb   : > { %3589 = vmatmul.f32.gmra.mxu3 %v6637_v48  ;;  %8003 = vst [vmem:[#allocation82_spill] sm:$0xff] %v6650_v19  ;;  %v6656_v48 = vld [vmem:[#allocation4 + $0x9a] sm:$0xff]  ;;  %3777 = vmatpush.msra.mxu2 %v2949_v13 }
 0x4cc   : > { %8004 = vst [vmem:[#allocation83_spill] sm:$0xff] %v6652_v39 }
 0x4cd   : > { %8005 = vst [vmem:[#allocation84_spill] sm:$0xff] %v6656_v48  ;;  %v6661_v43 = vpop.f32.mrf.mxu2 }
 0x4ce   : > { %8006 = vst [vmem:[#allocation85_spill] sm:$0xff] %v6659_v36 }
 0x4cf   : > { %8007 = vst [vmem:[#allocation86_spill] sm:$0xff] %v6661_v43  ;;  %v2933_v43 = vld [vmem:[%s7880_s3 + $0x338] sm:$0xff] }
 0x4d0   : > { %3664 = vmatpush.msrb.mxu1 %v2933_v43 }
 0x4d1   : > { %3369 = vmatmul.f32.gmra.mxu1 %v6650_v19  ;;  %v6663_v61 = vpop.f32.mrf.mxu1  ;;  %v6683_v36 = vpop.f32.mrf.mxu3 }
 0x4d2   : > { %3482 = vmatmul.f32.gmra.mxu2 %v6652_v39  ;;  %8008 = vst [vmem:[#allocation87_spill] sm:$0xff] %v6663_v61  ;;  %v2965_v61 = vld [vmem:[%s7880_s3 + $0x438] sm:$0xff]  ;;  %v6691_v39 = vld [vmem:[#allocation4 + $0xc1] sm:$0xff] }
 0x4d3   : > { %3592 = vmatmul.f32.gmra.mxu3 %v6656_v48  ;;  %v6674_v48 = vld [vmem:[#allocation4 + $0xaa] sm:$0xff]  ;;  %8012 = vst [vmem:[#allocation91_spill] sm:$0xff] %v6683_v36 }
 0x4d4   : > { %8011 = vst [vmem:[#allocation90_spill] sm:$0xff] %v6674_v48  ;;  %3890 = vmatpush.msra.mxu3 %v2965_v61  ;;  %v6707_v36 = vld [vmem:[#allocation4 + $0xc9] sm:$0xff] }
 0x4d5   : > { %v6685_v13 = vpop.f32.mrf.mxu2  ;;  %8016 = vst [vmem:[#allocation95_spill] sm:$0xff] %v6691_v39 }
 0x4d6   : > { %8013 = vst [vmem:[#allocation92_spill] sm:$0xff] %v6685_v13  ;;  %v2948_v13 = vld [vmem:[%s7880_s3 + $0x3b0] sm:$0xff] }
 0x4d7   : > { %8021 = vst [vmem:[#allocation100_spill] sm:$0xff] %v6707_v36  ;;  %3778 = vmatpush.msra.mxu2 %v2948_v13 }
 0x4d9   : > { %3372 = vmatmul.f32.gmra.mxu1 %v6668_v4  ;;  %v6687_v4 = vpop.f32.mrf.mxu1  ;;  %v6700_v61 = vpop.f32.mrf.mxu3 }
 0x4da   : > { %3485 = vmatmul.f32.gmra.mxu2 %v6670_v25  ;;  %8014 = vst [vmem:[#allocation93_spill] sm:$0xff] %v6687_v4  ;;  %v6689_v25 = vld [vmem:[#allocation4 + $0xc0] sm:$0xff]  ;;  %v6705_v4 = vld [vmem:[#allocation4 + $0xc8] sm:$0xff] }
 0x4db   : > { %3595 = vmatmul.f32.gmra.mxu3 %v6674_v48  ;;  %8015 = vst [vmem:[#allocation94_spill] sm:$0xff] %v6689_v25  ;;  %v6695_v48 = vld [vmem:[#allocation4 + $0xb2] sm:$0xff] }
 0x4dc   : > { %8017 = vst [vmem:[#allocation96_spill] sm:$0xff] %v6695_v48 }
 0x4dd   : > { %v6698_v19 = vpop.f32.mrf.mxu2  ;;  %8019 = vst [vmem:[#allocation98_spill] sm:$0xff] %v6700_v61  ;;  %v2964_v61 = vld [vmem:[%s7880_s3 + $0x430] sm:$0xff] }
 0x4de   : > { %8018 = vst [vmem:[#allocation97_spill] sm:$0xff] %v6698_v19  ;;  %v2932_v19 = vld [vmem:[%s7880_s3 + $0x330] sm:$0xff]  ;;  %3891 = vmatpush.msra.mxu3 %v2964_v61 }
 0x4df   : > { %8020 = vst [vmem:[#allocation99_spill] sm:$0xff] %v6705_v4  ;;  %3665 = vmatpush.msrb.mxu1 %v2932_v19  ;;  %v6735_v19 = vld [vmem:[#allocation4 + $0xca] sm:$0xff] }
 0x4e0   : > { %8026 = vst [vmem:[#allocation105_spill] sm:$0xff] %v6735_v19 }
 0x4e1   : > { %3375 = vmatmul.f32.gmra.mxu1 %v6689_v25  ;;  %v6729_v25 = vld [vmem:[#allocation4 + $0xd8] sm:$0xff] }
 0x4e2   : > { %3488 = vmatmul.f32.gmra.mxu2 %v6691_v39  ;;  %v6711_v39 = vld [vmem:[#allocation4 + $0xc2] sm:$0xff]  ;;  %8024 = vst [vmem:[#allocation103_spill] sm:$0xff] %v6729_v25 }
 0x4e3   : > { %3598 = vmatmul.f32.gmra.mxu3 %v6695_v48  ;;  %8022 = vst [vmem:[#allocation101_spill] sm:$0xff] %v6711_v39 }
 0x4e6   : > { %v3088_v43 = vpop.f32.mrf.mxu1 }
 0x4e9   : > { %3378 = vmatmul.f32.gmra.mxu1 %v6705_v4 }
 0x4ea   : > { %3491 = vmatmul.f32.gmra.mxu2 %v6707_v36  ;;  %v6725_v36 = vld [vmem:[%s7881_s4] ss:$0 sm:$0xff] }
 0x4eb   : > { %3601 = vmatmul.f32.gmra.mxu3 %v6711_v39  ;;  %v2996_v39 = vadd.f32 %v6725_v36, %v6098_v17  ;;  %v3089_v61 = vadd.f32 %v6725_v36, %v3088_v43  ;;  %v6748_v43 = vld [vmem:[#allocation4 + $0xe0] sm:$0xff] }
 0x4ed   : > { %v3201_v48 = vpop.f32.mrf.mxu2 }
 0x4ee   : > { %v6720_v13 = vpop.f32.mrf.mxu3  ;;  %v3334_v4 = vpop.f32.mrf.mxu1  ;;  %v3202_v15 = vadd.f32 %v3201_v48, %v3089_v61  ;;  %v6767_v61 = vld [vmem:[#allocation4 + $0xf0] sm:$0xff] }
 0x4ef   : > { %8023 = vst [vmem:[#allocation102_spill] sm:$0xff] %v6720_v13  ;;  %v3109_v13 = vadd.f32 %v6100_v18, %v2996_v39  ;;  %v6754_v18 = vld [vmem:[#allocation4 + $0xda] sm:$0xff] }
 0x4f1   : > { %3381 = vmatmul.f32.gmra.mxu1 %v6729_v25  ;;  %v2947_v25 = vld [vmem:[%s7880_s3 + $0x3a8] sm:$0xff]  ;;  %v3222_v2 = vadd.f32 %v6120_v32, %v3109_v13 }
 0x4f2   : > { %3494 = vmatmul.f32.gmra.mxu2 %v6731_v1  ;;  %v2999_v1 = vadd.f32 %v6725_v36, %v6122_v37  ;;  %v2963_v37 = vld [vmem:[%s7880_s3 + $0x428] sm:$0xff] }
 0x4f3   : > { %3604 = vmatmul.f32.gmra.mxu3 %v6735_v19  ;;  %v6750_v19 = vld [vmem:[#allocation4 + $0xe1] sm:$0xff]  ;;  %3779 = vmatpush.msra.mxu2 %v2947_v25 }
 0x4f4   : > { %v2931_v32 = vld [vmem:[%s7880_s3 + $0x328] sm:$0xff]  ;;  %3892 = vmatpush.msra.mxu3 %v2963_v37  ;;  %v3112_v25 = vadd.f32 %v6124_v38, %v2999_v1  ;;  %v3002_v38 = vadd.f32 %v6725_v36, %v6184_v30  ;;  %v6791_v30 = vld [vmem:[#allocation4 + $0xf2] sm:$0xff] }
 0x4f5   : > { %v3447_v11 = vpop.f32.mrf.mxu2  ;;  %3666 = vmatpush.msrb.mxu1 %v2931_v32  ;;  %v6773_v37 = vld [vmem:[#allocation4 + $0xe2] sm:$0xff]  ;;  %8030 = vst [vmem:[#allocation109_spill] sm:$0xff] %v6791_v30 }
 0x4f6   : > { %v3314_v56 = vpop.f32.mrf.mxu3  ;;  %v3337_v28 = vpop.f32.mrf.mxu1 }
 0x4f7   : > { %v6740_v17 = vadd.f32 %v3314_v56, %v3202_v15  ;;  %v3335_v56 = vadd.f32 %v3334_v4, %v3222_v2  ;;  %v3225_v4 = vadd.f32 %v6134_v46, %v3112_v25  ;;  %v3115_v46 = vadd.f32 %v6186_v31, %v3002_v38 }
 0x4f9   : > { %8027 = vst [vmem:[#allocation106_spill] sm:$0xff] %v6740_v17  ;;  %3384 = vmatmul.f32.gmra.mxu1 %v6748_v43  ;;  %v3448_v15 = vadd.f32 %v3447_v11, %v3335_v56  ;;  %v6769_v17 = vld [vmem:[#allocation4 + $0xf1] sm:$0xff]  ;;  %v3338_v32 = vadd.f32 %v3337_v28, %v3225_v4  ;;  %v6787_v4 = vld [vmem:[#allocation4 + $0xf9] sm:$0xff] }
 0x4fa   : > { %3497 = vmatmul.f32.gmra.mxu2 %v6750_v19  ;;  %v6785_v28 = vld [vmem:[#allocation4 + $0xf8] sm:$0xff] }
 0x4fb   : > { %3607 = vmatmul.f32.gmra.mxu3 %v6754_v18 }
 0x4fd   : > { %v3450_v48 = vpop.f32.mrf.mxu2 }
 0x4fe   : > { %v3560_v39 = vpop.f32.mrf.mxu3  ;;  %v3340_v2 = vpop.f32.mrf.mxu1  ;;  %v3451_v1 = vadd.f32 %v3450_v48, %v3338_v32  ;;  %v2962_v48 = vld [vmem:[%s7880_s3 + $0x420] sm:$0xff]  ;;  %v3005_v32 = vadd.f32 %v6725_v36, %v6208_v54 }
 0x4ff   : > { %v6764_v13 = vadd.f32 %v3560_v39, %v3448_v15  ;;  %v2946_v39 = vld [vmem:[%s7880_s3 + $0x3a0] sm:$0xff]  ;;  %3893 = vmatpush.msra.mxu3 %v2962_v48 }
 0x500   : > { %3780 = vmatpush.msra.mxu2 %v2946_v39  ;;  %v6812_v48 = vld [vmem:[#allocation4 + $0xfa] sm:$0xff] }
 0x501   : > { %8028 = vst [vmem:[#allocation107_spill] sm:$0xff] %v6764_v13  ;;  %3387 = vmatmul.f32.gmra.mxu1 %v6767_v61  ;;  %v3228_v13 = vadd.f32 %v6206_v49, %v3115_v46  ;;  %v2930_v49 = vld [vmem:[%s7880_s3 + $0x320] sm:$0xff] }
 0x502   : > { %3500 = vmatmul.f32.gmra.mxu2 %v6769_v17  ;;  %3667 = vmatpush.msrb.mxu1 %v2930_v49 }
 0x503   : > { %3610 = vmatmul.f32.gmra.mxu3 %v6773_v37  ;;  %v3341_v31 = vadd.f32 %v3340_v2, %v3228_v13  ;;  %v3118_v13 = vadd.f32 %v6210_v55, %v3005_v32  ;;  %v3008_v55 = vadd.f32 %v6725_v36, %v6252_v29  ;;  %v6830_v29 = vld [vmem:[#allocation4 + $0x10a] sm:$0xff] }
 0x504   : > { %8032 = vst [vmem:[#allocation111_spill] sm:$0xff] %v6830_v29 }
 0x505   : > { %v3453_v11 = vpop.f32.mrf.mxu2  ;;  %v3231_v39 = vadd.f32 %v6219_v62, %v3118_v13  ;;  %v3121_v62 = vadd.f32 %v6257_v42, %v3008_v55 }
 0x506   : > { %v3563_v56 = vpop.f32.mrf.mxu3  ;;  %v3343_v15 = vpop.f32.mrf.mxu1  ;;  %v3454_v38 = vadd.f32 %v3453_v11, %v3341_v31 }
 0x507   : > { %v6779_v25 = vadd.f32 %v3563_v56, %v3451_v1  ;;  %v3344_v54 = vadd.f32 %v3343_v15, %v3231_v39  ;;  %v3234_v13 = vadd.f32 %v6235_v12, %v3121_v62  ;;  %v6824_v15 = vld [vmem:[#allocation4 + $0x110] sm:$0xff]  ;;  %v2929_v12 = vld [vmem:[%s7880_s3 + $0x318] sm:$0xff] }
 0x508   : > { %v6826_v39 = vld [vmem:[#allocation4 + $0x111] sm:$0xff]  ;;  %3668 = vmatpush.msrb.mxu1 %v2929_v12 }
 0x509   : > { %8029 = vst [vmem:[#allocation108_spill] sm:$0xff] %v6779_v25  ;;  %3390 = vmatmul.f32.gmra.mxu1 %v6785_v28  ;;  %v6806_v25 = vld [vmem:[#allocation4 + $0x108] sm:$0xff] }
 0x50a   : > { %3503 = vmatmul.f32.gmra.mxu2 %v6787_v4 }
 0x50b   : > { %3613 = vmatmul.f32.gmra.mxu3 %v6791_v30  ;;  %v6808_v30 = vld [vmem:[#allocation4 + $0x109] sm:$0xff] }
 0x50d   : > { %v3456_v1 = vpop.f32.mrf.mxu2 }
 0x50e   : > { %v3566_v56 = vpop.f32.mrf.mxu3  ;;  %v3346_v46 = vpop.f32.mrf.mxu1  ;;  %v3457_v11 = vadd.f32 %v3456_v1, %v3344_v54  ;;  %v2961_v1 = vld [vmem:[%s7880_s3 + $0x418] sm:$0xff]  ;;  %v3011_v54 = vadd.f32 %v6725_v36, %v6268_v50 }
 0x50f   : > { %v6803_v2 = vadd.f32 %v3566_v56, %v3454_v38  ;;  %v2945_v56 = vld [vmem:[%s7880_s3 + $0x398] sm:$0xff]  ;;  %v3347_v42 = vadd.f32 %v3346_v46, %v3234_v13  ;;  %3894 = vmatpush.msra.mxu3 %v2961_v1 }
 0x510   : > { %3781 = vmatpush.msra.mxu2 %v2945_v56  ;;  %v3124_v46 = vadd.f32 %v6272_v58, %v3011_v54  ;;  %v6851_v1 = vld [vmem:[#allocation4 + $0x112] sm:$0xff]  ;;  %v3014_v58 = vadd.f32 %v6725_v36, %v6275_v59  ;;  %v6869_v59 = vld [vmem:[#allocation4 + $0x122] sm:$0xff] }
 0x511   : > { %3393 = vmatmul.f32.gmra.mxu1 %v6806_v25  ;;  %8034 = vst [vmem:[#allocation113_spill] sm:$0xff] %v6869_v59 }
 0x512   : > { %3506 = vmatmul.f32.gmra.mxu2 %v6808_v30  ;;  %v3237_v13 = vadd.f32 %v6249_v27, %v3124_v46  ;;  %v3127_v27 = vadd.f32 %v6284_v6, %v3014_v58 }
 0x513   : > { %3616 = vmatmul.f32.gmra.mxu3 %v6812_v48 }
 0x514   : > { %v3240_v46 = vadd.f32 %v6265_v47, %v3127_v27  ;;  %v2928_v47 = vld [vmem:[%s7880_s3 + $0x310] sm:$0xff] }
 0x515   : > { %v3459_v31 = vpop.f32.mrf.mxu2  ;;  %3669 = vmatpush.msrb.mxu1 %v2928_v47 }
 0x516   : > { %v3569_v49 = vpop.f32.mrf.mxu3  ;;  %v3349_v38 = vpop.f32.mrf.mxu1  ;;  %v3460_v55 = vadd.f32 %v3459_v31, %v3347_v42 }
 0x517   : > { %v6818_v32 = vadd.f32 %v3569_v49, %v3457_v11  ;;  %v3350_v50 = vadd.f32 %v3349_v38, %v3237_v13  ;;  %v6863_v38 = vld [vmem:[#allocation4 + $0x128] sm:$0xff] }
 0x518   : > { %v6865_v13 = vld [vmem:[#allocation4 + $0x129] sm:$0xff] }
 0x519   : > { %8031 = vst [vmem:[#allocation110_spill] sm:$0xff] %v6818_v32  ;;  %3396 = vmatmul.f32.gmra.mxu1 %v6824_v15  ;;  %v6845_v32 = vld [vmem:[#allocation4 + $0x120] sm:$0xff] }
 0x51a   : > { %3509 = vmatmul.f32.gmra.mxu2 %v6826_v39 }
 0x51b   : > { %3619 = vmatmul.f32.gmra.mxu3 %v6830_v29  ;;  %v6847_v29 = vld [vmem:[#allocation4 + $0x121] sm:$0xff] }
 0x51d   : > { %v3462_v11 = vpop.f32.mrf.mxu2 }
 0x51e   : > { %v3572_v49 = vpop.f32.mrf.mxu3  ;;  %v3352_v56 = vpop.f32.mrf.mxu1  ;;  %v3463_v31 = vadd.f32 %v3462_v11, %v3350_v50  ;;  %v2960_v11 = vld [vmem:[%s7880_s3 + $0x410] sm:$0xff]  ;;  %v3017_v50 = vadd.f32 %v6725_v36, %v6287_v7 }
 0x51f   : > { %v6842_v62 = vadd.f32 %v3572_v49, %v3460_v55  ;;  %v2944_v49 = vld [vmem:[%s7880_s3 + $0x390] sm:$0xff]  ;;  %v3353_v6 = vadd.f32 %v3352_v56, %v3240_v46  ;;  %3895 = vmatpush.msra.mxu3 %v2960_v11 }
 0x520   : > { %3782 = vmatpush.msra.mxu2 %v2944_v49  ;;  %v3130_v56 = vadd.f32 %v6298_v20, %v3017_v50  ;;  %v6890_v11 = vld [vmem:[#allocation4 + $0x12a] sm:$0xff]  ;;  %v3020_v20 = vadd.f32 %v6725_v36, %v6301_v21  ;;  %v6908_v21 = vld [vmem:[#allocation4 + $0x13a] sm:$0xff] }
 0x521   : > { %3399 = vmatmul.f32.gmra.mxu1 %v6845_v32  ;;  %8037 = vst [vmem:[#allocation116_spill] sm:$0xff] %v6908_v21 }
 0x522   : > { %3512 = vmatmul.f32.gmra.mxu2 %v6847_v29  ;;  %v3243_v46 = vadd.f32 %v6277_v63, %v3130_v56  ;;  %v3133_v63 = vadd.f32 %v6309_v33, %v3020_v20 }
 0x523   : > { %3622 = vmatmul.f32.gmra.mxu3 %v6851_v1 }
 0x524   : > { %v3246_v56 = vadd.f32 %v6289_v8, %v3133_v63  ;;  %v2927_v8 = vld [vmem:[%s7880_s3 + $0x308] sm:$0xff] }
 0x525   : > { %v3465_v42 = vpop.f32.mrf.mxu2  ;;  %3670 = vmatpush.msrb.mxu1 %v2927_v8 }
 0x526   : > { %v3575_v12 = vpop.f32.mrf.mxu3  ;;  %v3355_v55 = vpop.f32.mrf.mxu1  ;;  %v3466_v58 = vadd.f32 %v3465_v42, %v3353_v6 }
 0x527   : > { %v6857_v54 = vadd.f32 %v3575_v12, %v3463_v31  ;;  %v3356_v7 = vadd.f32 %v3355_v55, %v3243_v46  ;;  %v6902_v55 = vld [vmem:[#allocation4 + $0x140] sm:$0xff] }
 0x528   : > { %v6904_v46 = vld [vmem:[#allocation4 + $0x141] sm:$0xff] }
 0x529   : > { %8033 = vst [vmem:[#allocation112_spill] sm:$0xff] %v6857_v54  ;;  %3402 = vmatmul.f32.gmra.mxu1 %v6863_v38  ;;  %v6884_v54 = vld [vmem:[#allocation4 + $0x138] sm:$0xff] }
 0x52a   : > { %3515 = vmatmul.f32.gmra.mxu2 %v6865_v13 }
 0x52b   : > { %3625 = vmatmul.f32.gmra.mxu3 %v6869_v59  ;;  %v6886_v59 = vld [vmem:[#allocation4 + $0x139] sm:$0xff] }
 0x52d   : > { %v3468_v31 = vpop.f32.mrf.mxu2 }
 0x52e   : > { %v3578_v12 = vpop.f32.mrf.mxu3  ;;  %v3358_v49 = vpop.f32.mrf.mxu1  ;;  %v3469_v42 = vadd.f32 %v3468_v31, %v3356_v7  ;;  %v2959_v31 = vld [vmem:[%s7880_s3 + $0x408] sm:$0xff]  ;;  %v3023_v7 = vadd.f32 %v6725_v36, %v6312_v34  ;;  %v3026_v34 = vadd.f32 %v6725_v36, %v6326_v52 }
 0x52f   : > { %v6881_v27 = vadd.f32 %v3578_v12, %v3466_v58  ;;  %v2943_v12 = vld [vmem:[%s7880_s3 + $0x388] sm:$0xff]  ;;  %v3359_v33 = vadd.f32 %v3358_v49, %v3246_v56  ;;  %3896 = vmatpush.msra.mxu3 %v2959_v31 }
 0x530   : > { %3783 = vmatpush.msra.mxu2 %v2943_v12  ;;  %v3136_v49 = vadd.f32 %v6323_v44, %v3023_v7  ;;  %v3139_v8 = vadd.f32 %v6335_v0, %v3026_v34  ;;  %v2958_v0 = vld [vmem:[%s7880_s3 + $0x400] sm:$0xff] }
 0x531   : > { %8035 = vst [vmem:[#allocation114_spill] sm:$0xff] %v6881_v27  ;;  %3405 = vmatmul.f32.gmra.mxu1 %v6884_v54  ;;  %v6923_v27 = vld [vmem:[#allocation4 + $0x142] sm:$0xff]  ;;  %3897 = vmatpush.msra.mxu3 %v2958_v0 }
 0x532   : > { %3518 = vmatmul.f32.gmra.mxu2 %v6886_v59  ;;  %v3249_v56 = vadd.f32 %v6306_v23, %v3136_v49 }
 0x533   : > { %3628 = vmatmul.f32.gmra.mxu3 %v6890_v11 }
 0x535   : > { %v3471_v6 = vpop.f32.mrf.mxu2 }
 0x536   : > { %v3581_v47 = vpop.f32.mrf.mxu3  ;;  %v3361_v58 = vpop.f32.mrf.mxu1  ;;  %v3472_v20 = vadd.f32 %v3471_v6, %v3359_v33 }
 0x537   : > { %v6896_v50 = vadd.f32 %v3581_v47, %v3469_v42  ;;  %v3362_v31 = vadd.f32 %v3361_v58, %v3249_v56  ;;  %v5236_v58 = vld [vmem:[#allocation4 + $0x158] sm:$0xff] }
 0x539   : > { %8036 = vst [vmem:[#allocation115_spill] sm:$0xff] %v6896_v50  ;;  %3408 = vmatmul.f32.gmra.mxu1 %v6902_v55  ;;  %v5234_v50 = vld [vmem:[#allocation4 + $0x150] sm:$0xff] }
 0x53a   : > { %3521 = vmatmul.f32.gmra.mxu2 %v6904_v46 }
 0x53b   : > { %3631 = vmatmul.f32.gmra.mxu3 %v6908_v21  ;;  %v5235_v21 = vld [vmem:[#allocation4 + $0x151] sm:$0xff] }
 0x53d   : > { %v3474_v42 = vpop.f32.mrf.mxu2 }
 0x53e   : > { %v3584_v47 = vpop.f32.mrf.mxu3  ;;  %v3364_v12 = vpop.f32.mrf.mxu1  ;;  %v3475_v6 = vadd.f32 %v3474_v42, %v3362_v31  ;;  %v5238_v42 = vld [vmem:[#allocation4 + $0x152] sm:$0xff] }
 0x53f   : > { %v6920_v63 = vadd.f32 %v3584_v47, %v3472_v20  ;;  %v5237_v20 = vld [vmem:[#allocation4 + $0x159] sm:$0xff] }
 0x540   : > { %v2926_v47 = vld [vmem:[%s7880_s3 + $0x300] sm:$0xff] }
 0x541   : > { %3411 = vmatmul.f32.gmra.mxu1 %v5234_v50  ;;  %v2942_v50 = vld [vmem:[%s7880_s3 + $0x380] sm:$0xff] }
 0x542   : > { %3524 = vmatmul.f32.gmra.mxu2 %v5235_v21  ;;  %v3252_v21 = vadd.f32 %v6320_v40, %v3139_v8  ;;  %3671 = vmatpush.msrb.mxu1 %v2926_v47  ;;  %v3029_v40 = vadd.f32 %v6725_v36, %v6338_v5  ;;  %v3032_v5 = vadd.f32 %v6725_v36, %v6353_v24 }
 0x543   : > { %3634 = vmatmul.f32.gmra.mxu3 %v6923_v27  ;;  %3784 = vmatpush.msra.mxu2 %v2942_v50  ;;  %v5239_v50 = vld [vmem:[#allocation4 + $0x15a] sm:$0xff]  ;;  %v3035_v24 = vadd.f32 %v6725_v36, %v6368_v57  ;;  %v3038_v57 = vadd.f32 %v6725_v36, %v6397_v51 }
 0x544   : > { %v3365_v52 = vadd.f32 %v3364_v12, %v3252_v21  ;;  %v3142_v12 = vadd.f32 %v6350_v16, %v3029_v40  ;;  %v3145_v16 = vadd.f32 %v6363_v45, %v3032_v5  ;;  %v6964_v40 = vld [vmem:[#allocation4 + $0x180] sm:$0xff] }
 0x545   : > { %v3477_v33 = vpop.f32.mrf.mxu2  ;;  %v3148_v45 = vadd.f32 %v6392_v3, %v3035_v24  ;;  %v8040_v5 = vld [vmem:[#allocation14_spill] sm:$0xff] }
 0x546   : > { %v3587_v44 = vpop.f32.mrf.mxu3  ;;  %v3367_v23 = vpop.f32.mrf.mxu1  ;;  %v3478_v49 = vadd.f32 %v3477_v33, %v3365_v52 }
 0x547   : > { %v6929_v7 = vadd.f32 %v3587_v44, %v3475_v6  ;;  %v3255_v44 = vadd.f32 %v6333_v60, %v3142_v12  ;;  %v3258_v60 = vadd.f32 %v6348_v14, %v3145_v16  ;;  %v3261_v14 = vadd.f32 %v6365_v53, %v3148_v45  ;;  %v8043_v45 = vld [vmem:[#allocation24_spill] sm:$0xff] }
 0x549   : > { %3414 = vmatmul.f32.gmra.mxu1 %v5236_v58  ;;  %v3368_v8 = vadd.f32 %v3367_v23, %v3255_v44 }
 0x54a   : > { %3527 = vmatmul.f32.gmra.mxu2 %v5237_v20 }
 0x54b   : > { %3637 = vmatmul.f32.gmra.mxu3 %v5238_v42 }
 0x54d   : > { %v3480_v56 = vpop.f32.mrf.mxu2 }
 0x54e   : > { %v3590_v31 = vpop.f32.mrf.mxu3  ;;  %v3370_v6 = vpop.f32.mrf.mxu1  ;;  %v3481_v33 = vadd.f32 %v3480_v56, %v3368_v8  ;;  %v8038_v56 = vld [vmem:[#allocation13_spill] sm:$0xff]  ;;  %v6977_v8 = vld [vmem:[#allocation4 + $0x188] sm:$0xff] }
 0x54f   : > { %v6944_v34 = vadd.f32 %v3590_v31, %v3478_v49  ;;  %v3151_v31 = vadd.f32 %v8038_v56, %v3038_v57  ;;  %v8046_v56 = vld [vmem:[#allocation19_spill] sm:$0xff] }
 0x551   : > { %3417 = vmatmul.f32.gmra.mxu1 %v6380_v9  ;;  %v3371_v9 = vadd.f32 %v3370_v6, %v3258_v60  ;;  %v8039_v6 = vld [vmem:[#allocation12_spill] sm:$0xff] }
 0x552   : > { %3530 = vmatmul.f32.gmra.mxu2 %v6382_v10  ;;  %v3264_v44 = vadd.f32 %v8039_v6, %v3151_v31 }
 0x553   : > { %3640 = vmatmul.f32.gmra.mxu3 %v5239_v50  ;;  %v6979_v50 = vld [vmem:[#allocation4 + $0x189] sm:$0xff] }
 0x555   : > { %v3483_v21 = vpop.f32.mrf.mxu2 }
 0x556   : > { %v3593_v58 = vpop.f32.mrf.mxu3  ;;  %v3373_v52 = vpop.f32.mrf.mxu1  ;;  %v3484_v10 = vadd.f32 %v3483_v21, %v3371_v9 }
 0x557   : > { %v6952_v20 = vadd.f32 %v3593_v58, %v3481_v33  ;;  %v3041_v33 = vadd.f32 %v6725_v36, %v8040_v5 }
 0x559   : > { %3420 = vmatmul.f32.gmra.mxu1 %v6412_v22  ;;  %v6966_v22 = vld [vmem:[#allocation4 + $0x181] sm:$0xff] }
 0x55a   : > { %3533 = vmatmul.f32.gmra.mxu2 %v6414_v26  ;;  %v3374_v26 = vadd.f32 %v3373_v52, %v3261_v14  ;;  %v8041_v52 = vld [vmem:[#allocation16_spill] sm:$0xff] }
 0x55b   : > { %3643 = vmatmul.f32.gmra.mxu3 %v6416_v35  ;;  %v3154_v60 = vadd.f32 %v8041_v52, %v3041_v33  ;;  %v8048_v33 = vld [vmem:[#allocation29_spill] sm:$0xff]  ;;  %v8051_v52 = vld [vmem:[#allocation20_spill] sm:$0xff] }
 0x55d   : > { %v3486_v23 = vpop.f32.mrf.mxu2 }
 0x55e   : > { %v3596_v42 = vpop.f32.mrf.mxu3  ;;  %v3376_v47 = vpop.f32.mrf.mxu1  ;;  %v3487_v3 = vadd.f32 %v3486_v23, %v3374_v26  ;;  %v8045_v26 = vld [vmem:[#allocation17_spill] sm:$0xff] }
 0x55f   : > { %v6961_v0 = vadd.f32 %v3596_v42, %v3484_v10  ;;  %v3377_v51 = vadd.f32 %v3376_v47, %v3264_v44  ;;  %v8042_v10 = vld [vmem:[#allocation15_spill] sm:$0xff]  ;;  %v8044_v47 = vld [vmem:[#allocation25_spill] sm:$0xff]  ;;  %v3044_v57 = vadd.f32 %v6725_v36, %v8045_v26 }
 0x560   : > { %v3267_v23 = vadd.f32 %v8042_v10, %v3154_v60  ;;  %v6992_v42 = vld [vmem:[#allocation4 + $0x18a] sm:$0xff]  ;;  %v3047_v60 = vadd.f32 %v6725_v36, %v8051_v52 }
 0x561   : > { %3423 = vmatmul.f32.gmra.mxu1 %v6964_v40  ;;  %v3157_v31 = vadd.f32 %v8046_v56, %v3044_v57  ;;  %v8053_v57 = vld [vmem:[#allocation21_spill] sm:$0xff]  ;;  %v8055_v56 = vld [vmem:[#allocation36_spill] sm:$0xff] }
 0x562   : > { %3536 = vmatmul.f32.gmra.mxu2 %v6966_v22 }
 0x563   : > { %3646 = vmatmul.f32.gmra.mxu3 %v6435_v41  ;;  %v6983_v41 = vld [vmem:[#allocation4 + $0x182] sm:$0xff] }
 0x565   : > { %v3489_v35 = vpop.f32.mrf.mxu2 }
 0x566   : > { %v3599_v49 = vpop.f32.mrf.mxu3  ;;  %v3379_v12 = vpop.f32.mrf.mxu1  ;;  %v3490_v21 = vadd.f32 %v3489_v35, %v3377_v51  ;;  %v8047_v51 = vld [vmem:[#allocation18_spill] sm:$0xff] }
 0x567   : > { %v6974_v53 = vadd.f32 %v3599_v49, %v3487_v3  ;;  %v3380_v14 = vadd.f32 %v3379_v12, %v3267_v23  ;;  %v3270_v5 = vadd.f32 %v8047_v51, %v3157_v31  ;;  %v8056_v31 = vld [vmem:[#allocation37_spill] sm:$0xff]  ;;  %v8057_v51 = vld [vmem:[#allocation23_spill] sm:$0xff] }
 0x569   : > { %3426 = vmatmul.f32.gmra.mxu1 %v6977_v8 }
 0x56a   : > { %3539 = vmatmul.f32.gmra.mxu2 %v6979_v50 }
 0x56b   : > { %3649 = vmatmul.f32.gmra.mxu3 %v6983_v41 }
 0x56d   : > { %v3492_v58 = vpop.f32.mrf.mxu2 }
 0x56e   : > { %v3602_v16 = vpop.f32.mrf.mxu3  ;;  %v3382_v24 = vpop.f32.mrf.mxu1  ;;  %v3493_v3 = vadd.f32 %v3492_v58, %v3380_v14 }
 0x56f   : > { %v6989_v9 = vadd.f32 %v3602_v16, %v3490_v21  ;;  %v8049_v21 = vld [vmem:[#allocation30_spill] sm:$0xff]  ;;  %v3383_v12 = vadd.f32 %v3382_v24, %v3270_v5  ;;  %v8050_v16 = vld [vmem:[#allocation31_spill] sm:$0xff]  ;;  %v3050_v5 = vadd.f32 %v6725_v36, %v8057_v51 }
 0x571   : > { %3672 = vmatmul.f32.vlgmr.msrb.gmra.mxu1 %v8043_v45  ;;  %v8052_v45 = vld [vmem:[#allocation22_spill] sm:$0xff] }
 0x572   : > { %3785 = vmatmul.f32.vlgmr.msra.gmra.mxu2 %v8044_v47  ;;  %v3160_v47 = vadd.f32 %v8052_v45, %v3047_v60  ;;  %v8061_v45 = vld [vmem:[#allocation41_spill] sm:$0xff] }
 0x573   : > { %3652 = vmatmul.f32.gmra.mxu3 %v6992_v42 }
 0x575   : > { %v3495_v35 = vpop.f32.mrf.mxu2 }
 0x576   : > { %v3605_v49 = vpop.f32.mrf.mxu3  ;;  %v3385_v44 = vpop.f32.mrf.mxu1  ;;  %v3496_v58 = vadd.f32 %v3495_v35, %v3383_v12  ;;  %v8058_v12 = vld [vmem:[#allocation27_spill] sm:$0xff] }
 0x577   : > { %v7000_v6 = vadd.f32 %v3605_v49, %v3493_v3  ;;  %v3273_v3 = vadd.f32 %v8053_v57, %v3160_v47  ;;  %v8054_v49 = vld [vmem:[#allocation35_spill] sm:$0xff]  ;;  %v8062_v47 = vld [vmem:[#allocation42_spill] sm:$0xff] }
 0x578   : > { %v8063_v57 = vld [vmem:[#allocation43_spill] sm:$0xff] }
 0x579   : > { %3675 = vmatmul.f32.gmra.mxu1 %v8048_v33  ;;  %v3386_v24 = vadd.f32 %v3385_v44, %v3273_v3  ;;  %v8064_v3 = vld [vmem:[#allocation28_spill] sm:$0xff] }
 0x57a   : > { %3788 = vmatmul.f32.gmra.mxu2 %v8049_v21 }
 0x57b   : > { %3898 = vmatmul.f32.vlgmr.msra.gmra.mxu3 %v8050_v16  ;;  %v3163_v16 = vadd.f32 %v8058_v12, %v3050_v5 }
 0x57d   : > { %v3498_v10 = vpop.f32.mrf.mxu2 }
 0x57e   : > { %v3608_v23 = vpop.f32.mrf.mxu3  ;;  %v3388_v26 = vpop.f32.mrf.mxu1  ;;  %v3499_v35 = vadd.f32 %v3498_v10, %v3386_v24 }
 0x57f   : > { %v7009_v14 = vadd.f32 %v3608_v23, %v3496_v58  ;;  %v8060_v58 = vld [vmem:[#allocation26_spill] sm:$0xff] }
 0x580   : > { %v3276_v23 = vadd.f32 %v8060_v58, %v3163_v16  ;;  %v8068_v16 = vld [vmem:[#allocation47_spill] sm:$0xff]  ;;  %v8069_v58 = vld [vmem:[#allocation48_spill] sm:$0xff] }
 0x581   : > { %3678 = vmatmul.f32.gmra.mxu1 %v8054_v49  ;;  %v3053_v49 = vadd.f32 %v6725_v36, %v8064_v3  ;;  %v8072_v3 = vld [vmem:[#allocation39_spill] sm:$0xff] }
 0x582   : > { %3791 = vmatmul.f32.gmra.mxu2 %v8055_v56  ;;  %v3389_v44 = vadd.f32 %v3388_v26, %v3276_v23  ;;  %v8070_v23 = vld [vmem:[#allocation49_spill] sm:$0xff] }
 0x583   : > { %3901 = vmatmul.f32.gmra.mxu3 %v8056_v31  ;;  %v8065_v31 = vld [vmem:[#allocation33_spill] sm:$0xff] }
 0x584   : > { %v3166_v51 = vadd.f32 %v8065_v31, %v3053_v49  ;;  %v8074_v31 = vld [vmem:[#allocation38_spill] sm:$0xff] }
 0x585   : > { %v3501_v33 = vpop.f32.mrf.mxu2 }
 0x586   : > { %v3611_v21 = vpop.f32.mrf.mxu3  ;;  %v3391_v60 = vpop.f32.mrf.mxu1  ;;  %v3502_v10 = vadd.f32 %v3501_v33, %v3389_v44 }
 0x587   : > { %v7018_v52 = vadd.f32 %v3611_v21, %v3499_v35  ;;  %v8067_v21 = vld [vmem:[#allocation32_spill] sm:$0xff] }
 0x588   : > { %v3279_v12 = vadd.f32 %v8067_v21, %v3166_v51  ;;  %v8075_v21 = vld [vmem:[#allocation53_spill] sm:$0xff] }
 0x589   : > { %8059 = vst [vmem:[#allocation13_spill] sm:$0xff] %v7018_v52  ;;  %3681 = vmatmul.f32.gmra.mxu1 %v8061_v45  ;;  %v8071_v45 = vld [vmem:[#allocation34_spill] sm:$0xff] }
 0x58a   : > { %3794 = vmatmul.f32.gmra.mxu2 %v8062_v47  ;;  %v3392_v26 = vadd.f32 %v3391_v60, %v3279_v12  ;;  %v3056_v47 = vadd.f32 %v6725_v36, %v8071_v45  ;;  %v8077_v12 = vld [vmem:[#allocation55_spill] sm:$0xff] }
 0x58b   : > { %3904 = vmatmul.f32.gmra.mxu3 %v8063_v57 }
 0x58c   : > { %v3169_v49 = vadd.f32 %v8072_v3, %v3056_v47  ;;  %v4441_v3 = vld [vmem:[%s7882_s5 + $0xf8] sm:$0xff] }
 0x58d   : > { %v3504_v56 = vpop.f32.mrf.mxu2  ;;  %4599 = vmatpush.msrb.mxu2 %v4441_v3 }
 0x58e   : > { %v3614_v24 = vpop.f32.mrf.mxu3  ;;  %v3394_v35 = vpop.f32.mrf.mxu1  ;;  %v3505_v33 = vadd.f32 %v3504_v56, %v3392_v26  ;;  %v3282_v51 = vadd.f32 %v8074_v31, %v3169_v49  ;;  %v8081_v49 = vld [vmem:[#allocation45_spill] sm:$0xff] }
 0x58f   : > { %v7027_v5 = vadd.f32 %v3614_v24, %v3502_v10 }
 0x590   : > { %v3395_v60 = vadd.f32 %v3394_v35, %v3282_v51  ;;  %v4457_v35 = vld [vmem:[%s7882_s5 + $0x178] sm:$0xff]  ;;  %v8083_v51 = vld [vmem:[#allocation60_spill] sm:$0xff] }
 0x591   : > { %8066 = vst [vmem:[#allocation12_spill] sm:$0xff] %v7027_v5  ;;  %3684 = vmatmul.f32.gmra.mxu1 %v8068_v16  ;;  %v8076_v16 = vld [vmem:[#allocation54_spill] sm:$0xff]  ;;  %v8079_v5 = vld [vmem:[#allocation44_spill] sm:$0xff]  ;;  %4640 = vmatpush.msrb.mxu3 %v4457_v35 }
 0x592   : > { %3797 = vmatmul.f32.gmra.mxu2 %v8069_v58  ;;  %v8078_v58 = vld [vmem:[#allocation40_spill] sm:$0xff] }
 0x593   : > { %3907 = vmatmul.f32.gmra.mxu3 %v8070_v23  ;;  %v3059_v23 = vadd.f32 %v6725_v36, %v8078_v58 }
 0x595   : > { %v3507_v44 = vpop.f32.mrf.mxu2  ;;  %v3172_v47 = vadd.f32 %v8079_v5, %v3059_v23 }
 0x596   : > { %v3617_v57 = vpop.f32.mrf.mxu3  ;;  %v3397_v24 = vpop.f32.mrf.mxu1  ;;  %v3508_v56 = vadd.f32 %v3507_v44, %v3395_v60  ;;  %v8082_v44 = vld [vmem:[#allocation59_spill] sm:$0xff]  ;;  %v8085_v60 = vld [vmem:[#allocation46_spill] sm:$0xff] }
 0x597   : > { %v7036_v10 = vadd.f32 %v3617_v57, %v3505_v33  ;;  %v3285_v31 = vadd.f32 %v8081_v49, %v3172_v47  ;;  %v8088_v49 = vld [vmem:[#allocation51_spill] sm:$0xff] }
 0x599   : > { %8073 = vst [vmem:[#allocation14_spill] sm:$0xff] %v7036_v10  ;;  %3687 = vmatmul.f32.gmra.mxu1 %v8075_v21  ;;  %v3398_v5 = vadd.f32 %v3397_v24, %v3285_v31  ;;  %v8084_v21 = vld [vmem:[#allocation61_spill] sm:$0xff]  ;;  %v8093_v10 = vld [vmem:[#allocation56_spill] sm:$0xff] }
 0x59a   : > { %3800 = vmatmul.f32.gmra.mxu2 %v8076_v16  ;;  %v4425_v16 = vld [vmem:[%s7882_s5 + $0x78] sm:$0xff] }
 0x59b   : > { %3910 = vmatmul.f32.gmra.mxu3 %v8077_v12  ;;  %4558 = vmatpush.msra.mxu1 %v4425_v16  ;;  %v3062_v12 = vadd.f32 %v6725_v36, %v8085_v60  ;;  %v8089_v31 = vld [vmem:[#allocation65_spill] sm:$0xff]  ;;  %v8092_v16 = vld [vmem:[#allocation52_spill] sm:$0xff] }
 0x59c   : > { %v3065_v60 = vadd.f32 %v6725_v36, %v8092_v16 }
 0x59d   : > { %v3510_v26 = vpop.f32.mrf.mxu2 }
 0x59e   : > { %v3620_v45 = vpop.f32.mrf.mxu3  ;;  %v3400_v57 = vpop.f32.mrf.mxu1  ;;  %v3511_v58 = vadd.f32 %v3510_v26, %v3398_v5 }
 0x59f   : > { %v7045_v33 = vadd.f32 %v3620_v45, %v3508_v56  ;;  %v8086_v45 = vld [vmem:[#allocation50_spill] sm:$0xff] }
 0x5a0   : > { %v3175_v47 = vadd.f32 %v8086_v45, %v3062_v12  ;;  %v3178_v12 = vadd.f32 %v8093_v10, %v3065_v60  ;;  %v4440_v45 = vld [vmem:[%s7882_s5 + $0xf0] sm:$0xff] }
 0x5a1   : > { %8080 = vst [vmem:[#allocation16_spill] sm:$0xff] %v7045_v33  ;;  %3690 = vmatmul.f32.gmra.mxu1 %v8082_v44  ;;  %v8090_v44 = vld [vmem:[#allocation66_spill] sm:$0xff]  ;;  %4600 = vmatpush.msrb.mxu2 %v4440_v45 }
 0x5a2   : > { %3803 = vmatmul.f32.gmra.mxu2 %v8083_v51  ;;  %v3288_v24 = vadd.f32 %v8088_v49, %v3175_v47  ;;  %v8095_v47 = vld [vmem:[#allocation58_spill] sm:$0xff] }
 0x5a3   : > { %3913 = vmatmul.f32.gmra.mxu3 %v8084_v21  ;;  %v8091_v21 = vld [vmem:[#allocation67_spill] sm:$0xff]  ;;  %v3291_v49 = vadd.f32 %v8095_v47, %v3178_v12  ;;  %v8102_v47 = vld [vmem:[#allocation64_spill] sm:$0xff] }
 0x5a4   : > { %v3401_v51 = vadd.f32 %v3400_v57, %v3288_v24  ;;  %v4456_v57 = vld [vmem:[%s7882_s5 + $0x170] sm:$0xff]  ;;  %v8097_v24 = vld [vmem:[#allocation71_spill] sm:$0xff] }
 0x5a5   : > { %v3513_v23 = vpop.f32.mrf.mxu2  ;;  %4641 = vmatpush.msrb.mxu3 %v4456_v57 }
 0x5a6   : > { %v3623_v56 = vpop.f32.mrf.mxu3  ;;  %v3403_v35 = vpop.f32.mrf.mxu1  ;;  %v3514_v26 = vadd.f32 %v3513_v23, %v3401_v51  ;;  %v8096_v23 = vld [vmem:[#allocation70_spill] sm:$0xff] }
 0x5a7   : > { %v7063_v3 = vadd.f32 %v3623_v56, %v3511_v58  ;;  %v3404_v10 = vadd.f32 %v3403_v35, %v3291_v49  ;;  %v8103_v49 = vld [vmem:[#allocation76_spill] sm:$0xff] }
 0x5a9   : > { %8087 = vst [vmem:[#allocation15_spill] sm:$0xff] %v7063_v3  ;;  %3693 = vmatmul.f32.gmra.mxu1 %v8089_v31  ;;  %v4424_v31 = vld [vmem:[%s7882_s5 + $0x70] sm:$0xff] }
 0x5aa   : > { %3806 = vmatmul.f32.gmra.mxu2 %v8090_v44  ;;  %4559 = vmatpush.msra.mxu1 %v4424_v31  ;;  %v8099_v44 = vld [vmem:[#allocation57_spill] sm:$0xff]  ;;  %v8106_v31 = vld [vmem:[#allocation63_spill] sm:$0xff]  ;;  %v8107_v3 = vld [vmem:[#allocation68_spill] sm:$0xff] }
 0x5ab   : > { %3916 = vmatmul.f32.gmra.mxu3 %v8091_v21  ;;  %v3068_v51 = vadd.f32 %v6725_v36, %v8099_v44  ;;  %v3071_v44 = vadd.f32 %v6725_v36, %v8106_v31 }
 0x5ad   : > { %v3516_v5 = vpop.f32.mrf.mxu2 }
 0x5ae   : > { %v3626_v33 = vpop.f32.mrf.mxu3  ;;  %v3406_v56 = vpop.f32.mrf.mxu1  ;;  %v3517_v21 = vadd.f32 %v3516_v5, %v3404_v10 }
 0x5af   : > { %v7072_v58 = vadd.f32 %v3626_v33, %v3514_v26  ;;  %v8098_v33 = vld [vmem:[#allocation73_spill] sm:$0xff]  ;;  %v8100_v26 = vld [vmem:[#allocation62_spill] sm:$0xff] }
 0x5b0   : > { %v3181_v12 = vadd.f32 %v8100_v26, %v3068_v51  ;;  %v3184_v51 = vadd.f32 %v8107_v3, %v3071_v44  ;;  %v4439_v26 = vld [vmem:[%s7882_s5 + $0xe8] sm:$0xff] }
 0x5b1   : > { %8094 = vst [vmem:[#allocation24_spill] sm:$0xff] %v7072_v58  ;;  %3696 = vmatmul.f32.gmra.mxu1 %v8096_v23  ;;  %v8104_v23 = vld [vmem:[#allocation77_spill] sm:$0xff]  ;;  %4601 = vmatpush.msrb.mxu2 %v4439_v26 }
 0x5b2   : > { %3809 = vmatmul.f32.gmra.mxu2 %v8097_v24  ;;  %v3294_v35 = vadd.f32 %v8102_v47, %v3181_v12  ;;  %v8109_v12 = vld [vmem:[#allocation72_spill] sm:$0xff] }
 0x5b3   : > { %3919 = vmatmul.f32.gmra.mxu3 %v8098_v33  ;;  %v8105_v33 = vld [vmem:[#allocation79_spill] sm:$0xff]  ;;  %v3297_v47 = vadd.f32 %v8109_v12, %v3184_v51  ;;  %v8116_v12 = vld [vmem:[#allocation78_spill] sm:$0xff] }
 0x5b4   : > { %v3407_v24 = vadd.f32 %v3406_v56, %v3294_v35  ;;  %v4455_v56 = vld [vmem:[%s7882_s5 + $0x168] sm:$0xff] }
 0x5b5   : > { %v3519_v16 = vpop.f32.mrf.mxu2  ;;  %4642 = vmatpush.msrb.mxu3 %v4455_v56  ;;  %v8111_v35 = vld [vmem:[#allocation83_spill] sm:$0xff] }
 0x5b6   : > { %v3629_v60 = vpop.f32.mrf.mxu3  ;;  %v3409_v57 = vpop.f32.mrf.mxu1  ;;  %v3520_v5 = vadd.f32 %v3519_v16, %v3407_v24  ;;  %v8110_v16 = vld [vmem:[#allocation82_spill] sm:$0xff] }
 0x5b7   : > { %v7090_v45 = vadd.f32 %v3629_v60, %v3517_v21  ;;  %v3410_v3 = vadd.f32 %v3409_v57, %v3297_v47  ;;  %v8117_v47 = vld [vmem:[#allocation88_spill] sm:$0xff] }
 0x5b9   : > { %8101 = vst [vmem:[#allocation25_spill] sm:$0xff] %v7090_v45  ;;  %3699 = vmatmul.f32.gmra.mxu1 %v8103_v49  ;;  %v4423_v49 = vld [vmem:[%s7882_s5 + $0x68] sm:$0xff]  ;;  %v8121_v45 = vld [vmem:[#allocation80_spill] sm:$0xff] }
 0x5ba   : > { %3812 = vmatmul.f32.gmra.mxu2 %v8104_v23  ;;  %4560 = vmatpush.msra.mxu1 %v4423_v49  ;;  %v8113_v23 = vld [vmem:[#allocation69_spill] sm:$0xff]  ;;  %v8120_v49 = vld [vmem:[#allocation75_spill] sm:$0xff] }
 0x5bb   : > { %3922 = vmatmul.f32.gmra.mxu3 %v8105_v33  ;;  %v3074_v24 = vadd.f32 %v6725_v36, %v8113_v23  ;;  %v3077_v23 = vadd.f32 %v6725_v36, %v8120_v49 }
 0x5bd   : > { %v3522_v10 = vpop.f32.mrf.mxu2 }
 0x5be   : > { %v3632_v58 = vpop.f32.mrf.mxu3  ;;  %v3412_v60 = vpop.f32.mrf.mxu1  ;;  %v3523_v33 = vadd.f32 %v3522_v10, %v3410_v3 }
 0x5bf   : > { %v7099_v21 = vadd.f32 %v3632_v58, %v3520_v5  ;;  %v8112_v58 = vld [vmem:[#allocation84_spill] sm:$0xff]  ;;  %v8114_v5 = vld [vmem:[#allocation74_spill] sm:$0xff] }
 0x5c0   : > { %v3187_v51 = vadd.f32 %v8114_v5, %v3074_v24  ;;  %v3190_v24 = vadd.f32 %v8121_v45, %v3077_v23  ;;  %v4438_v5 = vld [vmem:[%s7882_s5 + $0xe0] sm:$0xff] }
 0x5c1   : > { %8108 = vst [vmem:[#allocation17_spill] sm:$0xff] %v7099_v21  ;;  %3702 = vmatmul.f32.gmra.mxu1 %v8110_v16  ;;  %v8118_v16 = vld [vmem:[#allocation89_spill] sm:$0xff]  ;;  %4602 = vmatpush.msrb.mxu2 %v4438_v5 }
 0x5c2   : > { %3815 = vmatmul.f32.gmra.mxu2 %v8111_v35  ;;  %v3300_v57 = vadd.f32 %v8116_v12, %v3187_v51  ;;  %v8123_v51 = vld [vmem:[#allocation85_spill] sm:$0xff] }
 0x5c3   : > { %3925 = vmatmul.f32.gmra.mxu3 %v8112_v58  ;;  %v8119_v58 = vld [vmem:[#allocation90_spill] sm:$0xff]  ;;  %v3303_v12 = vadd.f32 %v8123_v51, %v3190_v24  ;;  %v8130_v51 = vld [vmem:[#allocation91_spill] sm:$0xff] }
 0x5c4   : > { %v3413_v35 = vadd.f32 %v3412_v60, %v3300_v57  ;;  %v4454_v60 = vld [vmem:[%s7882_s5 + $0x160] sm:$0xff]  ;;  %v8125_v57 = vld [vmem:[#allocation95_spill] sm:$0xff] }
 0x5c5   : > { %v3525_v31 = vpop.f32.mrf.mxu2  ;;  %4643 = vmatpush.msrb.mxu3 %v4454_v60 }
 0x5c6   : > { %v3635_v44 = vpop.f32.mrf.mxu3  ;;  %v3415_v56 = vpop.f32.mrf.mxu1  ;;  %v3526_v10 = vadd.f32 %v3525_v31, %v3413_v35  ;;  %v8124_v31 = vld [vmem:[#allocation94_spill] sm:$0xff] }
 0x5c7   : > { %v7117_v26 = vadd.f32 %v3635_v44, %v3523_v33  ;;  %v3416_v45 = vadd.f32 %v3415_v56, %v3303_v12  ;;  %v8131_v12 = vld [vmem:[#allocation99_spill] sm:$0xff] }
 0x5c9   : > { %8115 = vst [vmem:[#allocation19_spill] sm:$0xff] %v7117_v26  ;;  %3705 = vmatmul.f32.gmra.mxu1 %v8117_v47  ;;  %v4422_v47 = vld [vmem:[%s7882_s5 + $0x60] sm:$0xff]  ;;  %v8140_v26 = vld [vmem:[#allocation103_spill] sm:$0xff] }
 0x5ca   : > { %3818 = vmatmul.f32.gmra.mxu2 %v8118_v16  ;;  %4561 = vmatpush.msra.mxu1 %v4422_v47  ;;  %v8127_v16 = vld [vmem:[#allocation81_spill] sm:$0xff]  ;;  %v8134_v47 = vld [vmem:[#allocation87_spill] sm:$0xff] }
 0x5cb   : > { %3928 = vmatmul.f32.gmra.mxu3 %v8119_v58  ;;  %v3080_v35 = vadd.f32 %v6725_v36, %v8127_v16  ;;  %v3083_v16 = vadd.f32 %v6725_v36, %v8134_v47  ;;  %v8141_v47 = vld [vmem:[#allocation104_spill] sm:$0xff] }
 0x5cd   : > { %v3528_v3 = vpop.f32.mrf.mxu2 }
 0x5ce   : > { %v3638_v21 = vpop.f32.mrf.mxu3  ;;  %v3418_v44 = vpop.f32.mrf.mxu1  ;;  %v3529_v58 = vadd.f32 %v3528_v3, %v3416_v45 }
 0x5cf   : > { %v7126_v33 = vadd.f32 %v3638_v21, %v3526_v10  ;;  %v8126_v21 = vld [vmem:[#allocation96_spill] sm:$0xff]  ;;  %v8128_v10 = vld [vmem:[#allocation86_spill] sm:$0xff] }
 0x5d0   : > { %v3193_v24 = vadd.f32 %v8128_v10, %v3080_v35 }
 0x5d1   : > { %8122 = vst [vmem:[#allocation18_spill] sm:$0xff] %v7126_v33  ;;  %3708 = vmatmul.f32.gmra.mxu1 %v8124_v31  ;;  %v8132_v31 = vld [vmem:[#allocation100_spill] sm:$0xff]  ;;  %v8135_v33 = vld [vmem:[#allocation93_spill] sm:$0xff] }
 0x5d2   : > { %3821 = vmatmul.f32.gmra.mxu2 %v8125_v57  ;;  %v3306_v56 = vadd.f32 %v8130_v51, %v3193_v24  ;;  %v3086_v35 = vadd.f32 %v6725_v36, %v8135_v33  ;;  %v8137_v51 = vld [vmem:[#allocation97_spill] sm:$0xff] }
 0x5d3   : > { %3931 = vmatmul.f32.gmra.mxu3 %v8126_v21  ;;  %v8133_v21 = vld [vmem:[#allocation101_spill] sm:$0xff] }
 0x5d4   : > { %v3419_v57 = vadd.f32 %v3418_v44, %v3306_v56  ;;  %v8139_v56 = vld [vmem:[#allocation102_spill] sm:$0xff] }
 0x5d5   : > { %v3531_v49 = vpop.f32.mrf.mxu2 }
 0x5d6   : > { %v3641_v23 = vpop.f32.mrf.mxu3  ;;  %v3421_v60 = vpop.f32.mrf.mxu1  ;;  %v3532_v3 = vadd.f32 %v3531_v49, %v3419_v57  ;;  %v8142_v57 = vld [vmem:[#allocation105_spill] sm:$0xff] }
 0x5d7   : > { %v7144_v5 = vadd.f32 %v3641_v23, %v3529_v58  ;;  %v8136_v23 = vld [vmem:[#allocation92_spill] sm:$0xff] }
 0x5d8   : > { %v3196_v10 = vadd.f32 %v8136_v23, %v3083_v16 }
 0x5d9   : > { %8129 = vst [vmem:[#allocation29_spill] sm:$0xff] %v7144_v5  ;;  %3711 = vmatmul.f32.gmra.mxu1 %v8131_v12  ;;  %v3199_v12 = vadd.f32 %v8137_v51, %v3086_v35 }
 0x5da   : > { %3824 = vmatmul.f32.gmra.mxu2 %v8132_v31  ;;  %v8138_v31 = vld [vmem:[#allocation98_spill] sm:$0xff] }
 0x5db   : > { %3934 = vmatmul.f32.gmra.mxu3 %v8133_v21  ;;  %v3309_v44 = vadd.f32 %v8138_v31, %v3196_v10  ;;  %v3312_v21 = vadd.f32 %v8139_v56, %v3199_v12  ;;  %v8144_v56 = vld [vmem:[#allocation107_spill] sm:$0xff] }
 0x5dd   : > { %v3534_v45 = vpop.f32.mrf.mxu2  ;;  %v3422_v49 = vadd.f32 %v3421_v60, %v3309_v44  ;;  %v4453_v60 = vld [vmem:[%s7882_s5 + $0x158] sm:$0xff] }
 0x5de   : > { %v3644_v58 = vpop.f32.mrf.mxu3  ;;  %v3424_v24 = vpop.f32.mrf.mxu1  ;;  %4644 = vmatpush.msrb.mxu3 %v4453_v60 }
 0x5df   : > { %v7155_v5 = vadd.f32 %v3644_v58, %v3532_v3  ;;  %v3425_v36 = vadd.f32 %v3424_v24, %v3312_v21  ;;  %v3535_v33 = vadd.f32 %v3534_v45, %v3422_v49  ;;  %v8143_v45 = vld [vmem:[#allocation106_spill] sm:$0xff] }
 0x5e1   : > { %3714 = vmatmul.f32.gmra.mxu1 %v8140_v26  ;;  %v4437_v26 = vld [vmem:[%s7882_s5 + $0xd8] sm:$0xff] }
 0x5e2   : > { %3827 = vmatmul.f32.gmra.mxu2 %v8141_v47  ;;  %v8145_v47 = vld [vmem:[#allocation109_spill] sm:$0xff] }
 0x5e3   : > { %3937 = vmatmul.f32.gmra.mxu3 %v8142_v57  ;;  %4603 = vmatpush.msrb.mxu2 %v4437_v26 }
 0x5e5   : > { %v3537_v52 = vpop.f32.mrf.mxu2 }
 0x5e6   : > { %v3538_v16 = vadd.f32 %v3537_v52, %v3425_v36  ;;  %v3647_v3 = vpop.f32.mrf.mxu3  ;;  %v3427_v23 = vpop.f32.mrf.mxu1  ;;  %v4421_v52 = vld [vmem:[%s7882_s5 + $0x58] sm:$0xff] }
 0x5e7   : > { %v7163_v58 = vadd.f32 %v3647_v3, %v3535_v33  ;;  %v3428_v35 = vadd.f32 %v3427_v23, %v8143_v45  ;;  %4562 = vmatpush.msra.mxu1 %v4421_v52 }
 0x5e9   : > { %3717 = vmatmul.f32.gmra.mxu1 %v6748_v43 }
 0x5ea   : > { %3830 = vmatmul.f32.gmra.mxu2 %v6750_v19 }
 0x5eb   : > { %3940 = vmatmul.f32.gmra.mxu3 %v6754_v18 }
 0x5ed   : > { %v3540_v19 = vpop.f32.mrf.mxu2 }
 0x5ee   : > { %v3541_v43 = vadd.f32 %v3540_v19, %v3428_v35  ;;  %v3650_v10 = vpop.f32.mrf.mxu3  ;;  %v3673_v51 = vpop.f32.mrf.mxu1  ;;  %v8147_v19 = vld [vmem:[#allocation111_spill] sm:$0xff] }
 0x5ef   : > { %v7178_v24 = vadd.f32 %v3650_v10, %v3538_v16  ;;  %v3674_v21 = vadd.f32 %v3673_v51, %v8144_v56  ;;  %v8146_v16 = vld [vmem:[#allocation108_spill] sm:$0xff] }
 0x5f1   : > { %3720 = vmatmul.f32.gmra.mxu1 %v6767_v61  ;;  %v4452_v61 = vld [vmem:[%s7882_s5 + $0x150] sm:$0xff] }
 0x5f2   : > { %3833 = vmatmul.f32.gmra.mxu2 %v6769_v17  ;;  %v4436_v17 = vld [vmem:[%s7882_s5 + $0xd0] sm:$0xff]  ;;  %4645 = vmatpush.msrb.mxu3 %v4452_v61 }
 0x5f3   : > { %3943 = vmatmul.f32.gmra.mxu3 %v6773_v37  ;;  %v4420_v37 = vld [vmem:[%s7882_s5 + $0x50] sm:$0xff]  ;;  %4604 = vmatpush.msrb.mxu2 %v4436_v17 }
 0x5f4   : > { %4563 = vmatpush.msra.mxu1 %v4420_v37 }
 0x5f5   : > { %v3786_v12 = vpop.f32.mrf.mxu2 }
 0x5f6   : > { %v3653_v31 = vpop.f32.mrf.mxu3  ;;  %v3676_v44 = vpop.f32.mrf.mxu1  ;;  %v3787_v49 = vadd.f32 %v3786_v12, %v3674_v21 }
 0x5f7   : > { %v7183_v18 = vadd.f32 %v3653_v31, %v3541_v43  ;;  %v3677_v3 = vadd.f32 %v3676_v44, %v8146_v16 }
 0x5f9   : > { %3723 = vmatmul.f32.gmra.mxu1 %v6785_v28 }
 0x5fa   : > { %3836 = vmatmul.f32.gmra.mxu2 %v6787_v4 }
 0x5fb   : > { %3946 = vmatmul.f32.gmra.mxu3 %v8145_v47 }
 0x5fd   : > { %v3789_v57 = vpop.f32.mrf.mxu2 }
 0x5fe   : > { %v3899_v28 = vpop.f32.mrf.mxu3  ;;  %v3679_v36 = vpop.f32.mrf.mxu1  ;;  %v3790_v23 = vadd.f32 %v3789_v57, %v3677_v3 }
 0x5ff   : > { %v3900_v4 = vadd.f32 %v3899_v28, %v3787_v49  ;;  %v8149_v28 = vld [vmem:[#allocation113_spill] sm:$0xff] }
 0x601   : > { %v3995_v33 = vmax.f32 %v3900_v4, 0.0  ;;  %3726 = vmatmul.f32.gmra.mxu1 %v6806_v25  ;;  %v4435_v25 = vld [vmem:[%s7882_s5 + $0xc8] sm:$0xff] }
 0x602   : > { %3839 = vmatmul.f32.gmra.mxu2 %v6808_v30  ;;  %v4451_v30 = vld [vmem:[%s7882_s5 + $0x148] sm:$0xff] }
 0x603   : > { %4028 = vst.msk [vmem:[#allocation6] sm:$0xff] %vm4027_vm3, %v3995_v33  ;;  %3949 = vmatmul.f32.gmra.mxu3 %v6812_v48  ;;  %v3680_v48 = vadd.f32 %v3679_v36, %v6803_v2  ;;  %4605 = vmatpush.msrb.mxu2 %v4435_v25  ;;  %v8148_v2 = vld [vmem:[#allocation110_spill] sm:$0xff] }
 0x604   : > { %4646 = vmatpush.msrb.mxu3 %v4451_v30  ;;  %v4434_v36 = vld [vmem:[%s7882_s5 + $0xc0] sm:$0xff] }
 0x605   : > { %v3792_v26 = vpop.f32.mrf.mxu2  ;;  %4606 = vmatpush.msrb.mxu2 %v4434_v36  ;;  %v2439_v36 = vld [vmem:[#allocation4 + $0x159] sm:$0xff] }
 0x606   : > { %v3902_v60 = vpop.f32.mrf.mxu3  ;;  %v3682_v45 = vpop.f32.mrf.mxu1 }
 0x607   : > { %v3903_v52 = vadd.f32 %v3902_v60, %v3790_v23  ;;  %v3683_v44 = vadd.f32 %v3682_v45, %v8148_v2 }
 0x609   : > { %v3996_v35 = vmax.f32 %v3903_v52, 0.0  ;;  %3729 = vmatmul.f32.gmra.mxu1 %v6824_v15  ;;  %v4419_v15 = vld [vmem:[%s7882_s5 + $0x48] sm:$0xff]  ;;  %v8150_v52 = vld [vmem:[#allocation112_spill] sm:$0xff] }
 0x60a   : > { %3842 = vmatmul.f32.gmra.mxu2 %v6826_v39  ;;  %4564 = vmatpush.msra.mxu1 %v4419_v15  ;;  %v3793_v39 = vadd.f32 %v3792_v26, %v3680_v48  ;;  %v4060_v61 = vld [vmem:[#allocation6] sm:$0xff] }
 0x60b   : > { %4029 = vst.msk [vmem:[#allocation6 + $0x8] sm:$0xff] %vm4027_vm3, %v3996_v35  ;;  %3952 = vmatmul.f32.gmra.mxu3 %v8147_v19 }
 0x60d   : > { %v3795_v43 = vpop.f32.mrf.mxu2 }
 0x60e   : > { %v3905_v10 = vpop.f32.mrf.mxu3  ;;  %v3685_v12 = vpop.f32.mrf.mxu1  ;;  %v3796_v56 = vadd.f32 %v3795_v43, %v3683_v44  ;;  %v8152_v43 = vld [vmem:[#allocation116_spill] sm:$0xff] }
 0x60f   : > { %v3906_v51 = vadd.f32 %v3905_v10, %v3793_v39 }
 0x611   : > { %v3997_v31 = vmax.f32 %v3906_v51, 0.0  ;;  %3732 = vmatmul.f32.gmra.mxu1 %v6845_v32 }
 0x612   : > { %3845 = vmatmul.f32.gmra.mxu2 %v6847_v29  ;;  %v3686_v29 = vadd.f32 %v3685_v12, %v6842_v62  ;;  %v4418_v62 = vld [vmem:[%s7882_s5 + $0x40] sm:$0xff]  ;;  %v4061_v23 = vld [vmem:[#allocation6 + $0x8] sm:$0xff] }
 0x613   : > { %4030 = vst.msk [vmem:[#allocation6 + $0x10] sm:$0xff] %vm4027_vm3, %v3997_v31  ;;  %3955 = vmatmul.f32.gmra.mxu3 %v6851_v1  ;;  %4565 = vmatpush.msra.mxu1 %v4418_v62 }
 0x615   : > { %v3798_v21 = vpop.f32.mrf.mxu2 }
 0x616   : > { %v3908_v47 = vpop.f32.mrf.mxu3  ;;  %v3688_v57 = vpop.f32.mrf.mxu1  ;;  %v3799_v1 = vadd.f32 %v3798_v21, %v3686_v29 }
 0x617   : > { %v3909_v49 = vadd.f32 %v3908_v47, %v3796_v56  ;;  %v3689_v45 = vadd.f32 %v3688_v57, %v8150_v52  ;;  %v2374_v47 = vld [vmem:[#allocation4 + $0x150] sm:$0xff]  ;;  %v8153_v57 = vld [vmem:[#allocation115_spill] sm:$0xff] }
 0x619   : > { %v3998_v17 = vmax.f32 %v3909_v49, 0.0  ;;  %3735 = vmatmul.f32.gmra.mxu1 %v6863_v38  ;;  %v4450_v38 = vld [vmem:[%s7882_s5 + $0x140] sm:$0xff]  ;;  %v2438_v49 = vld [vmem:[#allocation4 + $0x151] sm:$0xff] }
 0x61a   : > { %v4077_v37 = vld [vmem:[#allocation6 + $0x10] sm:$0xff]  ;;  %3848 = vmatmul.f32.gmra.mxu2 %v6865_v13  ;;  %4647 = vmatpush.msrb.mxu3 %v4450_v38 }
 0x61b   : > { %v4093_v32 = vmax.f32 %v4060_v61, %v4077_v37  ;;  %4031 = vst.msk [vmem:[#allocation6 + $0x18] sm:$0xff] %vm4027_vm3, %v3998_v17  ;;  %3958 = vmatmul.f32.gmra.mxu3 %v8149_v28 }
 0x61d   : > { %4109 = vst.msk [vmem:[#allocation7] sm:$0xff] %vm4027_vm3, %v4093_v32  ;;  %v3801_v4 = vpop.f32.mrf.mxu2 }
 0x61e   : > { %v3911_v13 = vpop.f32.mrf.mxu3  ;;  %v3691_v16 = vpop.f32.mrf.mxu1  ;;  %v3802_v35 = vadd.f32 %v3801_v4, %v3689_v45  ;;  %v2375_v4 = vld [vmem:[#allocation4 + $0x158] sm:$0xff] }
 0x61f   : > { %v3912_v33 = vadd.f32 %v3911_v13, %v3799_v1  ;;  %v2502_v13 = vld [vmem:[#allocation4 + $0x152] sm:$0xff] }
 0x621   : > { %v3999_v3 = vmax.f32 %v3912_v33, 0.0  ;;  %3738 = vmatmul.f32.gmra.mxu1 %v6884_v54  ;;  %v4433_v54 = vld [vmem:[%s7882_s5 + $0xb8] sm:$0xff] }
 0x622   : > { %v4078_v26 = vld [vmem:[#allocation6 + $0x18] sm:$0xff]  ;;  %3851 = vmatmul.f32.gmra.mxu2 %v6886_v59  ;;  %v4449_v59 = vld [vmem:[%s7882_s5 + $0x138] sm:$0xff] }
 0x623   : > { %v4094_v60 = vmax.f32 %v4061_v23, %v4078_v26  ;;  %4032 = vst.msk [vmem:[#allocation6 + $0x20] sm:$0xff] %vm4027_vm3, %v3999_v3  ;;  %3961 = vmatmul.f32.gmra.mxu3 %v6890_v11  ;;  %v8151_v11 = vld [vmem:[#allocation114_spill] sm:$0xff]  ;;  %4607 = vmatpush.msrb.mxu2 %v4433_v54  ;;  %v4432_v23 = vld [vmem:[%s7882_s5 + $0xb0] sm:$0xff] }
 0x624   : > { %v3692_v39 = vadd.f32 %v3691_v16, %v8151_v11  ;;  %4648 = vmatpush.msrb.mxu3 %v4449_v59  ;;  %v4448_v26 = vld [vmem:[%s7882_s5 + $0x130] sm:$0xff] }
 0x625   : > { %4110 = vst.msk [vmem:[#allocation7 + $0x8] sm:$0xff] %vm4027_vm3, %v4094_v60  ;;  %v3804_v25 = vpop.f32.mrf.mxu2  ;;  %v4416_v60 = vld [vmem:[%s7882_s5 + $0x30] sm:$0xff]  ;;  %4608 = vmatpush.msrb.mxu2 %v4432_v23 }
 0x626   : > { %v3914_v30 = vpop.f32.mrf.mxu3  ;;  %v3694_v19 = vpop.f32.mrf.mxu1  ;;  %v3805_v51 = vadd.f32 %v3804_v25, %v3692_v39  ;;  %4649 = vmatpush.msrb.mxu3 %v4448_v26  ;;  %v2376_v25 = vld [vmem:[#allocation4 + $0x168] sm:$0xff] }
 0x627   : > { %v3915_v48 = vadd.f32 %v3914_v30, %v3802_v35  ;;  %v3695_v17 = vadd.f32 %v3694_v19, %v8153_v57  ;;  %v2440_v30 = vld [vmem:[#allocation4 + $0x169] sm:$0xff] }
 0x629   : > { %v4000_v15 = vmax.f32 %v3915_v48, 0.0  ;;  %3741 = vmatmul.f32.gmra.mxu1 %v6902_v55  ;;  %v4417_v55 = vld [vmem:[%s7882_s5 + $0x38] sm:$0xff] }
 0x62a   : > { %3854 = vmatmul.f32.gmra.mxu2 %v6904_v46  ;;  %4566 = vmatpush.msra.mxu1 %v4417_v55  ;;  %v4062_v38 = vld [vmem:[#allocation6 + $0x20] sm:$0xff] }
 0x62b   : > { %4033 = vst.msk [vmem:[#allocation6 + $0x28] sm:$0xff] %vm4027_vm3, %v4000_v15  ;;  %3964 = vmatmul.f32.gmra.mxu3 %v8152_v43  ;;  %v2503_v15 = vld [vmem:[#allocation4 + $0x15a] sm:$0xff] }
 0x62c   : > { %v4125_v46 = vld [vmem:[#allocation7] ss:$2 sm:$0xff]  ;;  %v4141_v10 = vld [vmem:[#allocation7 + $0x1] ss:$2 sm:$0xff]  ;;  %4567 = vmatpush.msra.mxu1 %v4416_v60 }
 0x62d   : > { %v3807_v12 = vpop.f32.mrf.mxu2  ;;  %v4156_v31 = vmax.f32 %v4125_v46, %v4141_v10 }
 0x62e   : > { %v3917_v2 = vpop.f32.mrf.mxu3  ;;  %v3697_v56 = vpop.f32.mrf.mxu1  ;;  %v3808_v61 = vadd.f32 %v3807_v12, %v3695_v17  ;;  %v2441_v12 = vld [vmem:[#allocation4 + $0x171] sm:$0xff] }
 0x62f   : > { %v3918_v44 = vadd.f32 %v3917_v2, %v3805_v51  ;;  %4185 = vst.msk [vmem:[#allocation8 + $0x11] sm:$0xff] %vm4027_vm3, %v4156_v31  ;;  %v3698_v16 = vadd.f32 %v3697_v56, %v6920_v63  ;;  %v2377_v51 = vld [vmem:[#allocation4 + $0x170] sm:$0xff]  ;;  %v4447_v2 = vld [vmem:[%s7882_s5 + $0x128] sm:$0xff] }
 0x630   : > { %v2504_v31 = vld [vmem:[#allocation4 + $0x16a] sm:$0xff]  ;;  %4650 = vmatpush.msrb.mxu3 %v4447_v2 }
 0x631   : > { %v4001_v21 = vmax.f32 %v3918_v44, 0.0  ;;  %3744 = vmatmul.f32.gmra.mxu1 %v2374_v47  ;;  %v4415_v56 = vld [vmem:[%s7882_s5 + $0x28] sm:$0xff] }
 0x632   : > { %3857 = vmatmul.f32.gmra.mxu2 %v2438_v49  ;;  %v4063_v48 = vld [vmem:[#allocation6 + $0x28] sm:$0xff]  ;;  %4568 = vmatpush.msra.mxu1 %v4415_v56 }
 0x633   : > { %4034 = vst.msk [vmem:[#allocation6 + $0x30] sm:$0xff] %vm4027_vm3, %v4001_v21  ;;  %3967 = vmatmul.f32.gmra.mxu3 %v6923_v27 }
 0x635   : > { %v3810_v37 = vpop.f32.mrf.mxu2 }
 0x636   : > { %v3920_v32 = vpop.f32.mrf.mxu3  ;;  %v3700_v28 = vpop.f32.mrf.mxu1  ;;  %v3811_v27 = vadd.f32 %v3810_v37, %v3698_v16 }
 0x637   : > { %v3921_v29 = vadd.f32 %v3920_v32, %v3808_v61  ;;  %v3701_v59 = vadd.f32 %v3700_v28, %v6929_v7  ;;  %v4431_v7 = vld [vmem:[%s7882_s5 + $0xa8] sm:$0xff]  ;;  %v4414_v28 = vld [vmem:[%s7882_s5 + $0x20] sm:$0xff] }
 0x638   : > { %4609 = vmatpush.msrb.mxu2 %v4431_v7  ;;  %4569 = vmatpush.msra.mxu1 %v4414_v28  ;;  %v2445_v7 = vld [vmem:[#allocation4 + $0x1a1] sm:$0xff] }
 0x639   : > { %v4002_v1 = vmax.f32 %v3921_v29, 0.0  ;;  %3747 = vmatmul.f32.gmra.mxu1 %v2375_v4  ;;  %v2505_v29 = vld [vmem:[#allocation4 + $0x172] sm:$0xff] }
 0x63a   : > { %v4079_v62 = vld [vmem:[#allocation6 + $0x30] sm:$0xff]  ;;  %3860 = vmatmul.f32.gmra.mxu2 %v2439_v36 }
 0x63b   : > { %v4095_v33 = vmax.f32 %v4062_v38, %v4079_v62  ;;  %4035 = vst.msk [vmem:[#allocation6 + $0x38] sm:$0xff] %vm4027_vm3, %v4002_v1  ;;  %3970 = vmatmul.f32.gmra.mxu3 %v2502_v13  ;;  %v4430_v1 = vld [vmem:[%s7882_s5 + $0xa0] sm:$0xff] }
 0x63c   : > { %4610 = vmatpush.msrb.mxu2 %v4430_v1 }
 0x63d   : > { %4111 = vst.msk [vmem:[#allocation7 + $0x10] sm:$0xff] %vm4027_vm3, %v4095_v33  ;;  %v3813_v3 = vpop.f32.mrf.mxu2 }
 0x63e   : > { %v3923_v63 = vpop.f32.mrf.mxu3  ;;  %v3703_v45 = vpop.f32.mrf.mxu1  ;;  %v3814_v11 = vadd.f32 %v3813_v3, %v3701_v59 }
 0x63f   : > { %v3924_v52 = vadd.f32 %v3923_v63, %v3811_v27  ;;  %v3704_v44 = vadd.f32 %v3703_v45, %v6944_v34  ;;  %v4412_v63 = vld [vmem:[%s7882_s5 + $0x10] sm:$0xff] }
 0x641   : > { %v4003_v35 = vmax.f32 %v3924_v52, 0.0  ;;  %3750 = vmatmul.f32.gmra.mxu1 %v2376_v25  ;;  %v4446_v52 = vld [vmem:[%s7882_s5 + $0x120] sm:$0xff] }
 0x642   : > { %v4080_v19 = vld [vmem:[#allocation6 + $0x38] sm:$0xff]  ;;  %3863 = vmatmul.f32.gmra.mxu2 %v2440_v30  ;;  %v2444_v25 = vld [vmem:[#allocation4 + $0x199] sm:$0xff]  ;;  %4651 = vmatpush.msrb.mxu3 %v4446_v52 }
 0x643   : > { %v4096_v54 = vmax.f32 %v4063_v48, %v4080_v19  ;;  %4036 = vst.msk [vmem:[#allocation6 + $0x40] sm:$0xff] %vm4027_vm3, %v4003_v35  ;;  %3973 = vmatmul.f32.gmra.mxu3 %v2503_v15  ;;  %v4410_v30 = vld [vmem:[%s7882_s5] sm:$0xff]  ;;  %v4445_v48 = vld [vmem:[%s7882_s5 + $0x118] sm:$0xff] }
 0x644   : > { %v4426_v15 = vld [vmem:[%s7882_s5 + $0x80] sm:$0xff]  ;;  %4652 = vmatpush.msrb.mxu3 %v4445_v48 }
 0x645   : > { %4112 = vst.msk [vmem:[#allocation7 + $0x18] sm:$0xff] %vm4027_vm3, %v4096_v54  ;;  %v3816_v39 = vpop.f32.mrf.mxu2 }
 0x646   : > { %v3926_v43 = vpop.f32.mrf.mxu3  ;;  %v3706_v46 = vpop.f32.mrf.mxu1  ;;  %v3817_v49 = vadd.f32 %v3816_v39, %v3704_v44  ;;  %v4442_v44 = vld [vmem:[%s7882_s5 + $0x100] sm:$0xff] }
 0x647   : > { %v3927_v55 = vadd.f32 %v3926_v43, %v3814_v11  ;;  %v3707_v4 = vadd.f32 %v3706_v46, %v6952_v20  ;;  %v5240_v11 = vld [vmem:[#allocation4] sm:$0xff] }
 0x649   : > { %v4004_v10 = vmax.f32 %v3927_v55, 0.0  ;;  %3753 = vmatmul.f32.gmra.mxu1 %v2377_v51  ;;  %v4443_v51 = vld [vmem:[%s7882_s5 + $0x108] sm:$0xff] }
 0x64a   : > { %3866 = vmatmul.f32.gmra.mxu2 %v2441_v12  ;;  %v4064_v16 = vld [vmem:[#allocation6 + $0x40] sm:$0xff] }
 0x64b   : > { %4037 = vst.msk [vmem:[#allocation6 + $0x48] sm:$0xff] %vm4027_vm3, %v4004_v10  ;;  %3976 = vmatmul.f32.gmra.mxu3 %v2504_v31  ;;  %v4444_v10 = vld [vmem:[%s7882_s5 + $0x110] sm:$0xff] }
 0x64c   : > { %v4127_v21 = vld [vmem:[#allocation7 + $0x10] ss:$2 sm:$0xff]  ;;  %v4143_v47 = vld [vmem:[#allocation7 + $0x11] ss:$2 sm:$0xff]  ;;  %4653 = vmatpush.msrb.mxu3 %v4444_v10 }
 0x64d   : > { %v3819_v57 = vpop.f32.mrf.mxu2  ;;  %v4157_v17 = vmax.f32 %v4127_v21, %v4143_v47 }
 0x64e   : > { %v3929_v61 = vpop.f32.mrf.mxu3  ;;  %v3709_v32 = vpop.f32.mrf.mxu1  ;;  %v3820_v36 = vadd.f32 %v3819_v57, %v3707_v4  ;;  %4654 = vmatpush.msrb.mxu3 %v4443_v51 }
 0x64f   : > { %v3930_v37 = vadd.f32 %v3929_v61, %v3817_v49  ;;  %4186 = vst.msk [vmem:[#allocation8 + $0x21] sm:$0xff] %vm4027_vm3, %v4157_v17  ;;  %v3710_v23 = vadd.f32 %v3709_v32, %v6961_v0  ;;  %v4411_v0 = vld [vmem:[%s7882_s5 + $0x8] sm:$0xff] }
 0x650   : > { %4655 = vmatpush.msrb.mxu3 %v4442_v44 }
 0x651   : > { %v4005_v34 = vmax.f32 %v3930_v37, 0.0  ;;  %3756 = vmatmul.f32.gmra.mxu1 %v6964_v40  ;;  %v4413_v40 = vld [vmem:[%s7882_s5 + $0x18] sm:$0xff] }
 0x652   : > { %3869 = vmatmul.f32.gmra.mxu2 %v6966_v22  ;;  %v4429_v22 = vld [vmem:[%s7882_s5 + $0x98] sm:$0xff]  ;;  %4570 = vmatpush.msra.mxu1 %v4413_v40 }
 0x653   : > { %4038 = vst.msk [vmem:[#allocation6 + $0x50] sm:$0xff] %vm4027_vm3, %v4005_v34  ;;  %3979 = vmatmul.f32.gmra.mxu3 %v2505_v29  ;;  %4611 = vmatpush.msrb.mxu2 %v4429_v22  ;;  %v4065_v54 = vld [vmem:[#allocation6 + $0x48] sm:$0xff]  ;;  %v2509_v29 = vld [vmem:[#allocation4 + $0x1a2] sm:$0xff] }
 0x654   : > { %4571 = vmatpush.msra.mxu1 %v4412_v63  ;;  %v4209_v34 = vld [vmem:[#allocation8 + $0x1] sm:$0xff] }
 0x655   : > { %v3822_v38 = vpop.f32.mrf.mxu2 }
 0x656   : > { %v3932_v62 = vpop.f32.mrf.mxu3  ;;  %v3712_v20 = vpop.f32.mrf.mxu1  ;;  %v3823_v26 = vadd.f32 %v3822_v38, %v3710_v23  ;;  %4572 = vmatpush.msra.mxu1 %v4411_v0  ;;  %v4225_v38 = vld [vmem:[#allocation8 + $0x2] sm:$0xff] }
 0x657   : > { %v3933_v13 = vadd.f32 %v3932_v62, %v3820_v36  ;;  %v3713_v43 = vadd.f32 %v3712_v20, %v6974_v53  ;;  %v7354_v20 = vld [vmem:[#allocation8 + $0x11] sm:$0xff]  ;;  %v7361_v0 = vld [vmem:[#allocation8 + $0x20] sm:$0xff] }
 0x658   : > { %4573 = vmatpush.msra.mxu1 %v4410_v30 }
 0x659   : > { %v4006_v33 = vmax.f32 %v3933_v13, 0.0  ;;  %3759 = vmatmul.f32.gmra.mxu1 %v6977_v8  ;;  %v4428_v8 = vld [vmem:[%s7882_s5 + $0x90] sm:$0xff]  ;;  %v7352_v13 = vld [vmem:[#allocation8 + $0x10] sm:$0xff] }
 0x65a   : > { %v4081_v27 = vld [vmem:[#allocation6 + $0x50] sm:$0xff]  ;;  %3872 = vmatmul.f32.gmra.mxu2 %v6979_v50 }
 0x65b   : > { %v4097_v3 = vmax.f32 %v4064_v16, %v4081_v27  ;;  %4039 = vst.msk [vmem:[#allocation6 + $0x58] sm:$0xff] %vm4027_vm3, %v4006_v33  ;;  %3982 = vmatmul.f32.gmra.mxu3 %v6983_v41  ;;  %4612 = vmatpush.msrb.mxu2 %v4428_v8  ;;  %v4427_v41 = vld [vmem:[%s7882_s5 + $0x88] sm:$0xff] }
 0x65d   : > { %4113 = vst.msk [vmem:[#allocation7 + $0x20] sm:$0xff] %vm4027_vm3, %v4097_v3  ;;  %v3825_v60 = vpop.f32.mrf.mxu2  ;;  %4613 = vmatpush.msrb.mxu2 %v4427_v41 }
 0x65e   : > { %v3935_v50 = vpop.f32.mrf.mxu3  ;;  %v3715_v35 = vpop.f32.mrf.mxu1  ;;  %v3826_v55 = vadd.f32 %v3825_v60, %v3713_v43  ;;  %v7379_v43 = vld [vmem:[#allocation8 + $0x22] sm:$0xff] }
 0x65f   : > { %v3936_v45 = vadd.f32 %v3935_v50, %v3823_v26  ;;  %4614 = vmatpush.msrb.mxu2 %v4426_v15  ;;  %v3716_v56 = vadd.f32 %v3715_v35, %v6989_v9  ;;  %v7363_v50 = vld [vmem:[#allocation8 + $0x21] sm:$0xff] }
 0x660   : > { %v8154_v35 = vld [vmem:[#allocation13_spill] sm:$0xff] }
 0x661   : > { %v4007_v19 = vmax.f32 %v3936_v45, 0.0  ;;  %3762 = vmatmul.f32.gmra.mxu1 %v5240_v11 }
 0x662   : > { %v4082_v59 = vld [vmem:[#allocation6 + $0x58] sm:$0xff]  ;;  %3875 = vmatmul.f32.gmra.mxu2 %v2444_v25 }
 0x663   : > { %v4098_v39 = vmax.f32 %v4065_v54, %v4082_v59  ;;  %4040 = vst.msk [vmem:[#allocation6 + $0x60] sm:$0xff] %vm4027_vm3, %v4007_v19  ;;  %3985 = vmatmul.f32.gmra.mxu3 %v6992_v42  ;;  %v2508_v42 = vld [vmem:[#allocation4 + $0x19a] sm:$0xff] }
 0x665   : > { %4114 = vst.msk [vmem:[#allocation7 + $0x28] sm:$0xff] %vm4027_vm3, %v4098_v39  ;;  %v3828_v46 = vpop.f32.mrf.mxu2 }
 0x666   : > { %v3938_v12 = vpop.f32.mrf.mxu3  ;;  %v3718_v31 = vpop.f32.mrf.mxu1  ;;  %v3829_v49 = vadd.f32 %v3828_v46, %v3716_v56 }
 0x667   : > { %v3939_v53 = vadd.f32 %v3938_v12, %v3826_v55  ;;  %v3719_v9 = vadd.f32 %v3718_v31, %v7000_v6  ;;  %v8155_v55 = vld [vmem:[#allocation12_spill] sm:$0xff] }
 0x669   : > { %v4008_v2 = vmax.f32 %v3939_v53, 0.0  ;;  %3765 = vmatmul.f32.gmra.mxu1 %v5240_v11 }
 0x66a   : > { %3878 = vmatmul.f32.gmra.mxu2 %v2445_v7  ;;  %v4066_v33 = vld [vmem:[#allocation6 + $0x60] sm:$0xff] }
 0x66b   : > { %4041 = vst.msk [vmem:[#allocation6 + $0x68] sm:$0xff] %vm4027_vm3, %v4008_v2  ;;  %3988 = vmatmul.f32.gmra.mxu3 %v2508_v42 }
 0x66c   : > { %v4129_v21 = vld [vmem:[#allocation7 + $0x20] ss:$2 sm:$0xff]  ;;  %v4145_v47 = vld [vmem:[#allocation7 + $0x21] ss:$2 sm:$0xff] }
 0x66d   : > { %v3831_v57 = vpop.f32.mrf.mxu2  ;;  %v4158_v17 = vmax.f32 %v4129_v21, %v4145_v47  ;;  %v8156_v21 = vld [vmem:[#allocation14_spill] sm:$0xff] }
 0x66e   : > { %v3941_v61 = vpop.f32.mrf.mxu3  ;;  %v3721_v32 = vpop.f32.mrf.mxu1  ;;  %v3832_v1 = vadd.f32 %v3831_v57, %v3719_v9 }
 0x66f   : > { %v3942_v37 = vadd.f32 %v3941_v61, %v3829_v49  ;;  %4187 = vst.msk [vmem:[#allocation8 + $0x31] sm:$0xff] %vm4027_vm3, %v4158_v17  ;;  %v3722_v27 = vadd.f32 %v3721_v32, %v7009_v14  ;;  %v7367_v14 = vld [vmem:[#allocation8 + $0x12] sm:$0xff] }
 0x671   : > { %v4009_v28 = vmax.f32 %v3942_v37, 0.0  ;;  %4574 = vmatmul.f32.vlgmr.msra.gmra.mxu1 %v5240_v11 }
 0x672   : > { %4615 = vmatmul.f32.vlgmr.msrb.gmra.mxu2 %v4209_v34  ;;  %v4067_v41 = vld [vmem:[#allocation6 + $0x68] sm:$0xff] }
 0x673   : > { %4042 = vst.msk [vmem:[#allocation6 + $0x70] sm:$0xff] %vm4027_vm3, %v4009_v28  ;;  %3991 = vmatmul.f32.gmra.mxu3 %v2509_v29 }
 0x675   : > { %v3834_v4 = vpop.f32.mrf.mxu2 }
 0x676   : > { %v3944_v40 = vpop.f32.mrf.mxu3  ;;  %v3724_v36 = vpop.f32.mrf.mxu1  ;;  %v3835_v3 = vadd.f32 %v3834_v4, %v3722_v27  ;;  %v7373_v11 = vld [vmem:[#allocation8 + $0x30] sm:$0xff] }
 0x677   : > { %v3945_v22 = vadd.f32 %v3944_v40, %v3832_v1  ;;  %v3725_v25 = vadd.f32 %v3724_v36, %v8154_v35  ;;  %v7375_v39 = vld [vmem:[#allocation8 + $0x31] sm:$0xff]  ;;  %v8157_v40 = vld [vmem:[#allocation16_spill] sm:$0xff] }
 0x678   : > { %v7385_v56 = vld [vmem:[#allocation8 + $0x32] sm:$0xff] }
 0x679   : > { %v4010_v62 = vmax.f32 %v3945_v22, 0.0  ;;  %4577 = vmatmul.f32.gmra.mxu1 %v7352_v13 }
 0x67a   : > { %v4083_v16 = vld [vmem:[#allocation6 + $0x70] sm:$0xff]  ;;  %4618 = vmatmul.f32.gmra.mxu2 %v7354_v20 }
 0x67b   : > { %v4099_v6 = vmax.f32 %v4066_v33, %v4083_v16  ;;  %4043 = vst.msk [vmem:[#allocation6 + $0x78] sm:$0xff] %vm4027_vm3, %v4010_v62  ;;  %4656 = vmatmul.f32.vlgmr.msrb.gmra.mxu3 %v4225_v38 }
 0x67d   : > { %4115 = vst.msk [vmem:[#allocation7 + $0x30] sm:$0xff] %vm4027_vm3, %v4099_v6  ;;  %v3837_v23 = vpop.f32.mrf.mxu2 }
 0x67e   : > { %v3947_v26 = vpop.f32.mrf.mxu3  ;;  %v3727_v63 = vpop.f32.mrf.mxu1  ;;  %v3838_v30 = vadd.f32 %v3837_v23, %v3725_v25  ;;  %v4489_v25 = vld [vmem:[%s7882_s5 + $0x278] sm:$0xff] }
 0x67f   : > { %v3948_v60 = vadd.f32 %v3947_v26, %v3835_v3  ;;  %v3728_v46 = vadd.f32 %v3727_v63, %v8155_v55  ;;  %v8158_v26 = vld [vmem:[#allocation15_spill] sm:$0xff]  ;;  %4722 = vmatpush.msra.mxu2 %v4489_v25 }
 0x681   : > { %v4011_v8 = vmax.f32 %v3948_v60, 0.0  ;;  %4580 = vmatmul.f32.gmra.mxu1 %v7361_v0 }
 0x682   : > { %v4084_v52 = vld [vmem:[#allocation6 + $0x78] sm:$0xff]  ;;  %4621 = vmatmul.f32.gmra.mxu2 %v7363_v50 }
 0x683   : > { %v4100_v45 = vmax.f32 %v4067_v41, %v4084_v52  ;;  %4044 = vst.msk [vmem:[#allocation6 + $0x80] sm:$0xff] %vm4027_vm3, %v4011_v8  ;;  %4659 = vmatmul.f32.gmra.mxu3 %v7367_v14 }
 0x685   : > { %4116 = vst.msk [vmem:[#allocation7 + $0x38] sm:$0xff] %vm4027_vm3, %v4100_v45  ;;  %v3840_v48 = vpop.f32.mrf.mxu2 }
 0x686   : > { %v3950_v19 = vpop.f32.mrf.mxu3  ;;  %v3730_v54 = vpop.f32.mrf.mxu1  ;;  %v3841_v12 = vadd.f32 %v3840_v48, %v3728_v46  ;;  %v8159_v48 = vld [vmem:[#allocation24_spill] sm:$0xff] }
 0x687   : > { %v3951_v15 = vadd.f32 %v3950_v19, %v3838_v30  ;;  %v3731_v47 = vadd.f32 %v3730_v54, %v8156_v21  ;;  %v4505_v30 = vld [vmem:[%s7882_s5 + $0x2f8] sm:$0xff]  ;;  %v4488_v54 = vld [vmem:[%s7882_s5 + $0x270] sm:$0xff] }
 0x688   : > { %4763 = vmatpush.msra.mxu3 %v4505_v30  ;;  %4723 = vmatpush.msra.mxu2 %v4488_v54  ;;  %v8160_v21 = vld [vmem:[#allocation25_spill] sm:$0xff]  ;;  %v8162_v54 = vld [vmem:[#allocation19_spill] sm:$0xff] }
 0x689   : > { %v4012_v59 = vmax.f32 %v3951_v15, 0.0  ;;  %4583 = vmatmul.f32.gmra.mxu1 %v7373_v11  ;;  %v4473_v15 = vld [vmem:[%s7882_s5 + $0x1f8] sm:$0xff] }
 0x68a   : > { %4624 = vmatmul.f32.gmra.mxu2 %v7375_v39  ;;  %v4068_v28 = vld [vmem:[#allocation6 + $0x80] sm:$0xff]  ;;  %4681 = vmatpush.msrb.mxu1 %v4473_v15 }
 0x68b   : > { %4045 = vst.msk [vmem:[#allocation6 + $0x88] sm:$0xff] %vm4027_vm3, %v4012_v59  ;;  %4662 = vmatmul.f32.gmra.mxu3 %v7379_v43  ;;  %v4504_v59 = vld [vmem:[%s7882_s5 + $0x2f0] sm:$0xff] }
 0x68c   : > { %v4131_v10 = vld [vmem:[#allocation7 + $0x30] ss:$2 sm:$0xff]  ;;  %v4147_v51 = vld [vmem:[#allocation7 + $0x31] ss:$2 sm:$0xff]  ;;  %4764 = vmatpush.msra.mxu3 %v4504_v59 }
 0x68d   : > { %v3843_v53 = vpop.f32.mrf.mxu2  ;;  %v4159_v31 = vmax.f32 %v4131_v10, %v4147_v51 }
 0x68e   : > { %v3953_v7 = vpop.f32.mrf.mxu3  ;;  %v3733_v2 = vpop.f32.mrf.mxu1  ;;  %v3844_v49 = vadd.f32 %v3843_v53, %v3731_v47 }
 0x68f   : > { %v3954_v42 = vadd.f32 %v3953_v7, %v3841_v12  ;;  %4188 = vst.msk [vmem:[#allocation8 + $0x41] sm:$0xff] %vm4027_vm3, %v4159_v31  ;;  %v3734_v22 = vadd.f32 %v3733_v2, %v8157_v40  ;;  %v4472_v2 = vld [vmem:[%s7882_s5 + $0x1f0] sm:$0xff] }
 0x690   : > { %4682 = vmatpush.msrb.mxu1 %v4472_v2 }
 0x691   : > { %v4013_v44 = vmax.f32 %v3954_v42, 0.0 }
 0x692   : > { %v4069_v27 = vld [vmem:[#allocation6 + $0x88] sm:$0xff] }
 0x693   : > { %4046 = vst.msk [vmem:[#allocation6 + $0x90] sm:$0xff] %vm4027_vm3, %v4013_v44  ;;  %4665 = vmatmul.f32.gmra.mxu3 %v7385_v56  ;;  %v4487_v44 = vld [vmem:[%s7882_s5 + $0x268] sm:$0xff] }
 0x694   : > { %4724 = vmatpush.msra.mxu2 %v4487_v44 }
 0x695   : > { %v3846_v57 = vpop.f32.mrf.mxu2 }
 0x696   : > { %v3956_v17 = vpop.f32.mrf.mxu3  ;;  %v7390_v61 = vld [vmem:[#allocation8 + $0x40] sm:$0xff]  ;;  %v3736_v34 = vpop.f32.mrf.mxu1  ;;  %v3847_v36 = vadd.f32 %v3846_v57, %v3734_v22  ;;  %v4471_v57 = vld [vmem:[%s7882_s5 + $0x1e8] sm:$0xff] }
 0x697   : > { %v7392_v37 = vld [vmem:[#allocation8 + $0x41] sm:$0xff]  ;;  %v3957_v32 = vadd.f32 %v3956_v17, %v3844_v49  ;;  %4586 = vmatmul.f32.gmra.mxu1 %v7390_v61  ;;  %v3737_v60 = vadd.f32 %v3736_v34, %v8158_v26  ;;  %v4503_v49 = vld [vmem:[%s7882_s5 + $0x2e8] sm:$0xff]  ;;  %v4486_v17 = vld [vmem:[%s7882_s5 + $0x260] sm:$0xff] }
 0x698   : > { %4627 = vmatmul.f32.gmra.mxu2 %v7392_v37  ;;  %v7396_v1 = vld [vmem:[#allocation8 + $0x42] sm:$0xff]  ;;  %4765 = vmatpush.msra.mxu3 %v4503_v49  ;;  %v4470_v26 = vld [vmem:[%s7882_s5 + $0x1e0] sm:$0xff] }
 0x699   : > { %v4014_v29 = vmax.f32 %v3957_v32, 0.0  ;;  %v4502_v32 = vld [vmem:[%s7882_s5 + $0x2e0] sm:$0xff]  ;;  %4683 = vmatpush.msrb.mxu1 %v4471_v57  ;;  %4725 = vmatpush.msra.mxu2 %v4486_v17  ;;  %v4481_v49 = vld [vmem:[%s7882_s5 + $0x238] sm:$0xff] }
 0x69a   : > { %v4085_v9 = vld [vmem:[#allocation6 + $0x90] sm:$0xff]  ;;  %4766 = vmatpush.msra.mxu3 %v4502_v32  ;;  %v4497_v32 = vld [vmem:[%s7882_s5 + $0x2b8] sm:$0xff] }
 0x69b   : > { %v4101_v4 = vmax.f32 %v4068_v28, %v4085_v9  ;;  %4047 = vst.msk [vmem:[#allocation6 + $0x98] sm:$0xff] %vm4027_vm3, %v4014_v29  ;;  %4668 = vmatmul.f32.gmra.mxu3 %v7396_v1  ;;  %4684 = vmatpush.msrb.mxu1 %v4470_v26  ;;  %v8163_v57 = vld [vmem:[#allocation18_spill] sm:$0xff]  ;;  %v4479_v26 = vld [vmem:[%s7882_s5 + $0x228] sm:$0xff] }
 0x69d   : > { %4117 = vst.msk [vmem:[#allocation7 + $0x40] sm:$0xff] %vm4027_vm3, %v4101_v4  ;;  %v3849_v38 = vpop.f32.mrf.mxu2 }
 0x69e   : > { %v3959_v62 = vpop.f32.mrf.mxu3  ;;  %v3739_v16 = vpop.f32.mrf.mxu1  ;;  %v3850_v63 = vadd.f32 %v3849_v38, %v3737_v60  ;;  %v4485_v60 = vld [vmem:[%s7882_s5 + $0x258] sm:$0xff] }
 0x69f   : > { %v3960_v33 = vadd.f32 %v3959_v62, %v3847_v36  ;;  %v3740_v19 = vadd.f32 %v3739_v16, %v8159_v48  ;;  %4726 = vmatpush.msra.mxu2 %v4485_v60  ;;  %v8164_v60 = vld [vmem:[#allocation29_spill] sm:$0xff] }
 0x6a1   : > { %v4015_v6 = vmax.f32 %v3960_v33, 0.0 }
 0x6a2   : > { %v4086_v3 = vld [vmem:[#allocation6 + $0x98] sm:$0xff] }
 0x6a3   : > { %v4102_v23 = vmax.f32 %v4069_v27, %v4086_v3  ;;  %4048 = vst.msk [vmem:[#allocation6 + $0xa0] sm:$0xff] %vm4027_vm3, %v4015_v6  ;;  %v8161_v6 = vld [vmem:[#allocation17_spill] sm:$0xff] }
 0x6a5   : > { %4118 = vst.msk [vmem:[#allocation7 + $0x48] sm:$0xff] %vm4027_vm3, %v4102_v23  ;;  %v3852_v8 = vpop.f32.mrf.mxu2 }
 0x6a6   : > { %v3962_v41 = vpop.f32.mrf.mxu3  ;;  %v3742_v45 = vpop.f32.mrf.mxu1  ;;  %v3853_v10 = vadd.f32 %v3852_v8, %v3740_v19 }
 0x6a7   : > { %v3963_v52 = vadd.f32 %v3962_v41, %v3850_v63  ;;  %v3743_v47 = vadd.f32 %v3742_v45, %v8160_v21  ;;  %v4501_v63 = vld [vmem:[%s7882_s5 + $0x2d8] sm:$0xff]  ;;  %v4500_v45 = vld [vmem:[%s7882_s5 + $0x2d0] sm:$0xff] }
 0x6a8   : > { %v4469_v41 = vld [vmem:[%s7882_s5 + $0x1d8] sm:$0xff]  ;;  %4767 = vmatpush.msra.mxu3 %v4501_v63 }
 0x6a9   : > { %v4016_v35 = vmax.f32 %v3963_v52, 0.0  ;;  %v4484_v52 = vld [vmem:[%s7882_s5 + $0x250] sm:$0xff]  ;;  %4685 = vmatpush.msrb.mxu1 %v4469_v41  ;;  %v4463_v41 = vld [vmem:[%s7882_s5 + $0x1a8] sm:$0xff] }
 0x6aa   : > { %v4070_v62 = vld [vmem:[#allocation6 + $0xa0] sm:$0xff]  ;;  %4727 = vmatpush.msra.mxu2 %v4484_v52  ;;  %4768 = vmatpush.msra.mxu3 %v4500_v45  ;;  %v4478_v52 = vld [vmem:[%s7882_s5 + $0x220] sm:$0xff] }
 0x6ab   : > { %4049 = vst.msk [vmem:[#allocation6 + $0xa8] sm:$0xff] %vm4027_vm3, %v4016_v35  ;;  %v4494_v45 = vld [vmem:[%s7882_s5 + $0x2a0] sm:$0xff] }
 0x6ac   : > { %v4133_v55 = vld [vmem:[#allocation7 + $0x40] ss:$2 sm:$0xff]  ;;  %v4149_v46 = vld [vmem:[#allocation7 + $0x41] ss:$2 sm:$0xff] }
 0x6ad   : > { %v3855_v51 = vpop.f32.mrf.mxu2  ;;  %v4160_v12 = vmax.f32 %v4133_v55, %v4149_v46 }
 0x6ae   : > { %v3965_v53 = vpop.f32.mrf.mxu3  ;;  %v3745_v7 = vpop.f32.mrf.mxu1  ;;  %v3856_v34 = vadd.f32 %v3855_v51, %v3743_v47  ;;  %v4483_v51 = vld [vmem:[%s7882_s5 + $0x248] sm:$0xff]  ;;  %v4466_v47 = vld [vmem:[%s7882_s5 + $0x1c0] sm:$0xff] }
 0x6af   : > { %v3966_v31 = vadd.f32 %v3965_v53, %v3853_v10  ;;  %4189 = vst.msk [vmem:[#allocation8 + $0x51] sm:$0xff] %vm4027_vm3, %v4160_v12  ;;  %v3746_v27 = vadd.f32 %v3745_v7, %v8161_v6  ;;  %v4468_v10 = vld [vmem:[%s7882_s5 + $0x1d0] sm:$0xff]  ;;  %v4499_v12 = vld [vmem:[%s7882_s5 + $0x2c8] sm:$0xff]  ;;  %4728 = vmatpush.msra.mxu2 %v4483_v51  ;;  %v4482_v7 = vld [vmem:[%s7882_s5 + $0x240] sm:$0xff] }
 0x6b0   : > { %4686 = vmatpush.msrb.mxu1 %v4468_v10  ;;  %4769 = vmatpush.msra.mxu3 %v4499_v12 }
 0x6b1   : > { %v4017_v42 = vmax.f32 %v3966_v31, 0.0  ;;  %v4467_v31 = vld [vmem:[%s7882_s5 + $0x1c8] sm:$0xff]  ;;  %4729 = vmatpush.msra.mxu2 %v4482_v7  ;;  %v4462_v7 = vld [vmem:[%s7882_s5 + $0x1a0] sm:$0xff] }
 0x6b2   : > { %v4071_v48 = vld [vmem:[#allocation6 + $0xa8] sm:$0xff]  ;;  %4687 = vmatpush.msrb.mxu1 %v4467_v31 }
 0x6b3   : > { %4050 = vst.msk [vmem:[#allocation6 + $0xb0] sm:$0xff] %vm4027_vm3, %v4017_v42  ;;  %v4498_v42 = vld [vmem:[%s7882_s5 + $0x2c0] sm:$0xff]  ;;  %4730 = vmatpush.msra.mxu2 %v4481_v49 }
 0x6b4   : > { %4770 = vmatpush.msra.mxu3 %v4498_v42  ;;  %4688 = vmatpush.msrb.mxu1 %v4466_v47  ;;  %v4477_v42 = vld [vmem:[%s7882_s5 + $0x218] sm:$0xff] }
 0x6b5   : > { %v3858_v29 = vpop.f32.mrf.mxu2 }
 0x6b6   : > { %v3968_v28 = vpop.f32.mrf.mxu3  ;;  %v7443_v9 = vld [vmem:[#allocation8 + $0x50] sm:$0xff]  ;;  %v3748_v36 = vpop.f32.mrf.mxu1  ;;  %v3859_v3 = vadd.f32 %v3858_v29, %v3746_v27  ;;  %v4480_v29 = vld [vmem:[%s7882_s5 + $0x230] sm:$0xff]  ;;  %4771 = vmatpush.msra.mxu3 %v4497_v32 }
 0x6b7   : > { %v7445_v4 = vld [vmem:[#allocation8 + $0x51] sm:$0xff]  ;;  %v3969_v22 = vadd.f32 %v3968_v28, %v3856_v34  ;;  %4589 = vmatmul.f32.gmra.mxu1 %v7443_v9  ;;  %v3749_v59 = vadd.f32 %v3748_v36, %v8162_v54  ;;  %v4465_v34 = vld [vmem:[%s7882_s5 + $0x1b8] sm:$0xff]  ;;  %v4496_v36 = vld [vmem:[%s7882_s5 + $0x2b0] sm:$0xff]  ;;  %4731 = vmatpush.msra.mxu2 %v4480_v29 }
 0x6b8   : > { %v7447_v40 = vld [vmem:[#allocation8 + $0x52] sm:$0xff]  ;;  %4630 = vmatmul.f32.gmra.mxu2 %v7445_v4  ;;  %4689 = vmatpush.msrb.mxu1 %v4465_v34 }
 0x6b9   : > { %4671 = vmatmul.f32.gmra.mxu3 %v7447_v40  ;;  %v4018_v38 = vmax.f32 %v3969_v22, 0.0  ;;  %4732 = vmatpush.msra.mxu2 %v4479_v26  ;;  %v4458_v26 = vld [vmem:[%s7882_s5 + $0x180] sm:$0xff] }
 0x6ba   : > { %v4087_v33 = vld [vmem:[#allocation6 + $0xb0] sm:$0xff]  ;;  %4772 = vmatpush.msra.mxu3 %v4496_v36 }
 0x6bb   : > { %v4103_v16 = vmax.f32 %v4070_v62, %v4087_v33  ;;  %4051 = vst.msk [vmem:[#allocation6 + $0xb8] sm:$0xff] %vm4027_vm3, %v4018_v38  ;;  %4733 = vmatpush.msra.mxu2 %v4478_v52 }
 0x6bd   : > { %4119 = vst.msk [vmem:[#allocation7 + $0x50] sm:$0xff] %vm4027_vm3, %v4103_v16  ;;  %v3861_v23 = vpop.f32.mrf.mxu2  ;;  %4734 = vmatpush.msra.mxu2 %v4477_v42  ;;  %v7627_v42 = vld [vmem:[%s7883_s6] ss:$0 sm:$0xff] }
 0x6be   : > { %v3971_v8 = vpop.f32.mrf.mxu3  ;;  %v3751_v25 = vpop.f32.mrf.mxu1  ;;  %v3862_v55 = vadd.f32 %v3861_v23, %v3749_v59  ;;  %v4464_v23 = vld [vmem:[%s7882_s5 + $0x1b0] sm:$0xff] }
 0x6bf   : > { %v3972_v35 = vadd.f32 %v3971_v8, %v3859_v3  ;;  %v3752_v17 = vadd.f32 %v3751_v25, %v8163_v57  ;;  %4690 = vmatpush.msrb.mxu1 %v4464_v23  ;;  %v4495_v8 = vld [vmem:[%s7882_s5 + $0x2a8] sm:$0xff]  ;;  %v4492_v57 = vld [vmem:[%s7882_s5 + $0x290] sm:$0xff] }
 0x6c0   : > { %4773 = vmatpush.msra.mxu3 %v4495_v8  ;;  %v4521_v8 = vld [vmem:[%s7882_s5 + $0x378] sm:$0xff] }
 0x6c1   : > { %v4019_v30 = vmax.f32 %v3972_v35, 0.0  ;;  %4691 = vmatpush.msrb.mxu1 %v4463_v41  ;;  %v4536_v41 = vld [vmem:[%s7882_s5 + $0x3f0] sm:$0xff] }
 0x6c2   : > { %v4088_v19 = vld [vmem:[#allocation6 + $0xb8] sm:$0xff]  ;;  %4774 = vmatpush.msra.mxu3 %v4494_v45  ;;  %v4552_v45 = vld [vmem:[%s7882_s5 + $0x470] sm:$0xff] }
 0x6c3   : > { %v4104_v15 = vmax.f32 %v4071_v48, %v4088_v19  ;;  %4052 = vst.msk [vmem:[#allocation6 + $0xc0] sm:$0xff] %vm4027_vm3, %v4019_v30  ;;  %4692 = vmatpush.msrb.mxu1 %v4462_v7 }
 0x6c5   : > { %4120 = vst.msk [vmem:[#allocation7 + $0x58] sm:$0xff] %vm4027_vm3, %v4104_v15  ;;  %v3864_v46 = vpop.f32.mrf.mxu2 }
 0x6c6   : > { %v3974_v53 = vpop.f32.mrf.mxu3  ;;  %v3754_v44 = vpop.f32.mrf.mxu1  ;;  %v3865_v38 = vadd.f32 %v3864_v46, %v3752_v17 }
 0x6c7   : > { %v3975_v2 = vadd.f32 %v3974_v53, %v3862_v55  ;;  %v3755_v63 = vadd.f32 %v3754_v44, %v8164_v60  ;;  %v4461_v44 = vld [vmem:[%s7882_s5 + $0x198] sm:$0xff] }
 0x6c8   : > { %4693 = vmatpush.msrb.mxu1 %v4461_v44  ;;  %v4537_v60 = vld [vmem:[%s7882_s5 + $0x3f8] sm:$0xff] }
 0x6c9   : > { %v4020_v21 = vmax.f32 %v3975_v2, 0.0  ;;  %v4533_v44 = vld [vmem:[%s7882_s5 + $0x3d8] sm:$0xff] }
 0x6ca   : > { %v4072_v46 = vld [vmem:[#allocation6 + $0xc0] sm:$0xff] }
 0x6cb   : > { %4053 = vst.msk [vmem:[#allocation6 + $0xc8] sm:$0xff] %vm4027_vm3, %v4020_v21  ;;  %v4476_v21 = vld [vmem:[%s7882_s5 + $0x210] sm:$0xff] }
 0x6cc   : > { %v4135_v28 = vld [vmem:[#allocation7 + $0x50] ss:$2 sm:$0xff]  ;;  %v4151_v22 = vld [vmem:[#allocation7 + $0x51] ss:$2 sm:$0xff]  ;;  %4735 = vmatpush.msra.mxu2 %v4476_v21  ;;  %v4549_v21 = vld [vmem:[%s7882_s5 + $0x458] sm:$0xff] }
 0x6cd   : > { %v3867_v62 = vpop.f32.mrf.mxu2  ;;  %v4161_v33 = vmax.f32 %v4135_v28, %v4151_v22 }
 0x6ce   : > { %v3977_v16 = vpop.f32.mrf.mxu3  ;;  %v3757_v27 = vpop.f32.mrf.mxu1  ;;  %v3868_v35 = vadd.f32 %v3867_v62, %v3755_v63  ;;  %v4475_v62 = vld [vmem:[%s7882_s5 + $0x208] sm:$0xff]  ;;  %v4553_v63 = vld [vmem:[%s7882_s5 + $0x478] sm:$0xff] }
 0x6cf   : > { %v3978_v6 = vadd.f32 %v3977_v16, %v3865_v38  ;;  %4190 = vst.msk [vmem:[#allocation8 + $0x61] sm:$0xff] %vm4027_vm3, %v4161_v33  ;;  %v3758_v12 = vadd.f32 %v3757_v27, %v7155_v5  ;;  %v4493_v5 = vld [vmem:[%s7882_s5 + $0x298] sm:$0xff]  ;;  %v4460_v38 = vld [vmem:[%s7882_s5 + $0x190] sm:$0xff]  ;;  %v4491_v33 = vld [vmem:[%s7882_s5 + $0x288] sm:$0xff]  ;;  %4736 = vmatpush.msra.mxu2 %v4475_v62 }
 0x6d0   : > { %4775 = vmatpush.msra.mxu3 %v4493_v5  ;;  %4694 = vmatpush.msrb.mxu1 %v4460_v38  ;;  %v4490_v27 = vld [vmem:[%s7882_s5 + $0x280] sm:$0xff] }
 0x6d1   : > { %v4021_v3 = vmax.f32 %v3978_v6, 0.0  ;;  %v4474_v6 = vld [vmem:[%s7882_s5 + $0x200] sm:$0xff] }
 0x6d2   : > { %4776 = vmatpush.msra.mxu3 %v4492_v57  ;;  %v4073_v32 = vld [vmem:[#allocation6 + $0xc8] sm:$0xff]  ;;  %4737 = vmatpush.msra.mxu2 %v4474_v6  ;;  %v4518_v5 = vld [vmem:[%s7882_s5 + $0x360] sm:$0xff]  ;;  %v4532_v57 = vld [vmem:[%s7882_s5 + $0x3d0] sm:$0xff] }
 0x6d3   : > { %4054 = vst.msk [vmem:[#allocation6 + $0xd0] sm:$0xff] %vm4027_vm3, %v4021_v3  ;;  %v4531_v6 = vld [vmem:[%s7882_s5 + $0x3c8] sm:$0xff] }
 0x6d4   : > { %4777 = vmatpush.msra.mxu3 %v4491_v33  ;;  %4845 = vmatpush.msrb.mxu2 %v4537_v60 }
 0x6d5   : > { %v3870_v25 = vpop.f32.mrf.mxu2 }
 0x6d6   : > { %v3980_v30 = vpop.f32.mrf.mxu3  ;;  %v7535_v48 = vld [vmem:[#allocation8 + $0x60] sm:$0xff]  ;;  %v3760_v59 = vpop.f32.mrf.mxu1  ;;  %v3871_v53 = vadd.f32 %v3870_v25, %v3758_v12  ;;  %4778 = vmatpush.msra.mxu3 %v4490_v27  ;;  %v4535_v25 = vld [vmem:[%s7882_s5 + $0x3e8] sm:$0xff]  ;;  %4846 = vmatpush.msrb.mxu2 %v4536_v41  ;;  %v4546_v41 = vld [vmem:[%s7882_s5 + $0x440] sm:$0xff] }
 0x6d7   : > { %v7537_v19 = vld [vmem:[#allocation8 + $0x61] sm:$0xff]  ;;  %v3981_v54 = vadd.f32 %v3980_v30, %v3868_v35  ;;  %4592 = vmatmul.f32.gmra.mxu1 %v7535_v48  ;;  %v3761_v28 = vadd.f32 %v3760_v59, %v7163_v58  ;;  %v4459_v58 = vld [vmem:[%s7882_s5 + $0x188] sm:$0xff] }
 0x6d8   : > { %v7539_v15 = vld [vmem:[#allocation8 + $0x62] sm:$0xff]  ;;  %4633 = vmatmul.f32.gmra.mxu2 %v7537_v19  ;;  %4695 = vmatpush.msrb.mxu1 %v4459_v58  ;;  %v4519_v59 = vld [vmem:[%s7882_s5 + $0x368] sm:$0xff] }
 0x6d9   : > { %4674 = vmatmul.f32.gmra.mxu3 %v7539_v15  ;;  %v4022_v55 = vmax.f32 %v3981_v54, 0.0  ;;  %v4520_v35 = vld [vmem:[%s7882_s5 + $0x370] sm:$0xff]  ;;  %v4551_v54 = vld [vmem:[%s7882_s5 + $0x468] sm:$0xff]  ;;  %4847 = vmatpush.msrb.mxu2 %v4535_v25 }
 0x6da   : > { %v4089_v10 = vld [vmem:[#allocation6 + $0xd0] sm:$0xff]  ;;  %4696 = vmatpush.msrb.mxu1 %v4458_v26  ;;  %4886 = vmatpush.msrb.mxu3 %v4553_v63  ;;  %v4516_v58 = vld [vmem:[%s7882_s5 + $0x350] sm:$0xff]  ;;  %v4547_v27 = vld [vmem:[%s7882_s5 + $0x448] sm:$0xff] }
 0x6db   : > { %v4105_v51 = vmax.f32 %v4072_v46, %v4089_v10  ;;  %4055 = vst.msk [vmem:[#allocation6 + $0xd8] sm:$0xff] %vm4027_vm3, %v4022_v55  ;;  %v4534_v10 = vld [vmem:[%s7882_s5 + $0x3e0] sm:$0xff]  ;;  %v4515_v63 = vld [vmem:[%s7882_s5 + $0x348] sm:$0xff] }
 0x6dc   : > { %4804 = vmatpush.msra.mxu1 %v4521_v8  ;;  %4887 = vmatpush.msrb.mxu3 %v4552_v45  ;;  %v4530_v8 = vld [vmem:[%s7882_s5 + $0x3c0] sm:$0xff] }
 0x6dd   : > { %4121 = vst.msk [vmem:[#allocation7 + $0x60] sm:$0xff] %vm4027_vm3, %v4105_v51  ;;  %v3873_v31 = vpop.f32.mrf.mxu2  ;;  %4848 = vmatpush.msrb.mxu2 %v4534_v10 }
 0x6de   : > { %v3983_v2 = vpop.f32.mrf.mxu3  ;;  %v3763_v49 = vpop.f32.mrf.mxu1  ;;  %v3874_v22 = vadd.f32 %v3873_v31, %v3761_v28  ;;  %4805 = vmatpush.msra.mxu1 %v4520_v35  ;;  %4888 = vmatpush.msrb.mxu3 %v4551_v54  ;;  %v4548_v28 = vld [vmem:[%s7882_s5 + $0x450] sm:$0xff] }
 0x6df   : > { %v3984_v47 = vadd.f32 %v3983_v2, %v3871_v53  ;;  %v3764_v30 = vadd.f32 %v3763_v49, %v7178_v24  ;;  %v4550_v53 = vld [vmem:[%s7882_s5 + $0x460] sm:$0xff]  ;;  %4849 = vmatpush.msrb.mxu2 %v4533_v44  ;;  %v4517_v49 = vld [vmem:[%s7882_s5 + $0x358] sm:$0xff]  ;;  %v4527_v44 = vld [vmem:[%s7882_s5 + $0x3a8] sm:$0xff] }
 0x6e0   : > { %4806 = vmatpush.msra.mxu1 %v4519_v59  ;;  %4889 = vmatpush.msrb.mxu3 %v4550_v53  ;;  %v4514_v59 = vld [vmem:[%s7882_s5 + $0x340] sm:$0xff] }
 0x6e1   : > { %v4023_v17 = vmax.f32 %v3984_v47, 0.0  ;;  %4850 = vmatpush.msrb.mxu2 %v4532_v57  ;;  %v4526_v57 = vld [vmem:[%s7882_s5 + $0x3a0] sm:$0xff] }
 0x6e2   : > { %v4090_v34 = vld [vmem:[#allocation6 + $0xd8] sm:$0xff]  ;;  %4807 = vmatpush.msra.mxu1 %v4518_v5  ;;  %4890 = vmatpush.msrb.mxu3 %v4549_v21  ;;  %v4512_v5 = vld [vmem:[%s7882_s5 + $0x330] sm:$0xff] }
 0x6e3   : > { %v4106_v29 = vmax.f32 %v4073_v32, %v4090_v34  ;;  %4056 = vst.msk [vmem:[#allocation6 + $0xe0] sm:$0xff] %vm4027_vm3, %v4023_v17  ;;  %4851 = vmatpush.msrb.mxu2 %v4531_v6  ;;  %v4543_v21 = vld [vmem:[%s7882_s5 + $0x428] sm:$0xff]  ;;  %v4525_v6 = vld [vmem:[%s7882_s5 + $0x398] sm:$0xff] }
 0x6e4   : > { %4808 = vmatpush.msra.mxu1 %v4517_v49  ;;  %4891 = vmatpush.msrb.mxu3 %v4548_v28  ;;  %v4511_v49 = vld [vmem:[%s7882_s5 + $0x328] sm:$0xff] }
 0x6e5   : > { %4122 = vst.msk [vmem:[#allocation7 + $0x68] sm:$0xff] %vm4027_vm3, %v4106_v29  ;;  %v3876_v36 = vpop.f32.mrf.mxu2  ;;  %4852 = vmatpush.msrb.mxu2 %v4530_v8 }
 0x6e6   : > { %v3986_v16 = vpop.f32.mrf.mxu3  ;;  %v3766_v23 = vpop.f32.mrf.mxu1  ;;  %v3877_v24 = vadd.f32 %v3876_v36, %v3764_v30  ;;  %4809 = vmatpush.msra.mxu1 %v4516_v58  ;;  %4892 = vmatpush.msrb.mxu3 %v4547_v27  ;;  %v4510_v58 = vld [vmem:[%s7882_s5 + $0x320] sm:$0xff]  ;;  %v4541_v27 = vld [vmem:[%s7882_s5 + $0x418] sm:$0xff] }
 0x6e7   : > { %v3987_v3 = vadd.f32 %v3986_v16, %v3874_v22  ;;  %v3767_v32 = vadd.f32 %v3766_v23, %v7183_v18 }
 0x6e8   : > { %4810 = vmatpush.msra.mxu1 %v4515_v63  ;;  %4893 = vmatpush.msrb.mxu3 %v4546_v41  ;;  %v4508_v41 = vld [vmem:[%s7882_s5 + $0x310] sm:$0xff] }
 0x6e9   : > { %v4024_v52 = vmax.f32 %v3987_v3, 0.0 }
 0x6ea   : > { %v4074_v23 = vld [vmem:[#allocation6 + $0xe0] sm:$0xff]  ;;  %4811 = vmatpush.msra.mxu1 %v4514_v59  ;;  %v4507_v59 = vld [vmem:[%s7882_s5 + $0x308] sm:$0xff] }
 0x6eb   : > { %4057 = vst.msk [vmem:[#allocation6 + $0xe8] sm:$0xff] %vm4027_vm3, %v4024_v52 }
 0x6ec   : > { %v4137_v55 = vld [vmem:[#allocation7 + $0x60] ss:$2 sm:$0xff]  ;;  %v4153_v46 = vld [vmem:[#allocation7 + $0x61] ss:$2 sm:$0xff] }
 0x6ed   : > { %v3879_v51 = vpop.f32.mrf.mxu2  ;;  %v4162_v12 = vmax.f32 %v4137_v55, %v4153_v46  ;;  %v4529_v55 = vld [vmem:[%s7882_s5 + $0x3b8] sm:$0xff] }
 0x6ee   : > { %v3989_v31 = vpop.f32.mrf.mxu3  ;;  %v4575_v2 = vpop.f32.mrf.mxu1  ;;  %v3880_v34 = vadd.f32 %v3879_v51, %v3767_v32  ;;  %v4545_v46 = vld [vmem:[%s7882_s5 + $0x438] sm:$0xff]  ;;  %4853 = vmatpush.msrb.mxu2 %v4529_v55  ;;  %v4522_v55 = vld [vmem:[%s7882_s5 + $0x380] sm:$0xff] }
 0x6ef   : > { %v3990_v7 = vadd.f32 %v3989_v31, %v3877_v24  ;;  %4191 = vst.msk [vmem:[#allocation8 + $0x71] sm:$0xff] %vm4027_vm3, %v4162_v12  ;;  %v4576_v17 = vadd.f32 %v7627_v42, %v4575_v2  ;;  %4894 = vmatpush.msrb.mxu3 %v4545_v46 }
 0x6f1   : > { %v4025_v47 = vmax.f32 %v3990_v7, 0.0 }
 0x6f2   : > { %v4075_v10 = vld [vmem:[#allocation6 + $0xe8] sm:$0xff] }
 0x6f3   : > { %4058 = vst.msk [vmem:[#allocation6 + $0xf0] sm:$0xff] %vm4027_vm3, %v4025_v47 }
 0x6f5   : > { %v4616_v29 = vpop.f32.mrf.mxu2 }
 0x6f6   : > { %v3992_v22 = vpop.f32.mrf.mxu3  ;;  %v4617_v36 = vadd.f32 %v4616_v29, %v4576_v17  ;;  %v7651_v38 = vld [vmem:[#allocation8 + $0x70] sm:$0xff]  ;;  %v4578_v16 = vpop.f32.mrf.mxu1 }
 0x6f7   : > { %v7653_v62 = vld [vmem:[#allocation8 + $0x71] sm:$0xff]  ;;  %v3993_v18 = vadd.f32 %v3992_v22, %v3880_v34  ;;  %4595 = vmatmul.f32.gmra.mxu1 %v7651_v38  ;;  %v4579_v52 = vadd.f32 %v7627_v42, %v4578_v16 }
 0x6f8   : > { %v7655_v33 = vld [vmem:[#allocation8 + $0x72] sm:$0xff]  ;;  %4636 = vmatmul.f32.gmra.mxu2 %v7653_v62 }
 0x6f9   : > { %4677 = vmatmul.f32.gmra.mxu3 %v7655_v33  ;;  %v4026_v3 = vmax.f32 %v3993_v18, 0.0  ;;  %v4542_v17 = vld [vmem:[%s7882_s5 + $0x420] sm:$0xff] }
 0x6fa   : > { %v4091_v26 = vld [vmem:[#allocation6 + $0xf0] sm:$0xff] }
 0x6fb   : > { %v4107_v60 = vmax.f32 %v4074_v23, %v4091_v26  ;;  %4059 = vst.msk [vmem:[#allocation6 + $0xf8] sm:$0xff] %vm4027_vm3, %v4026_v3  ;;  %v4509_v3 = vld [vmem:[%s7882_s5 + $0x318] sm:$0xff]  ;;  %v4524_v23 = vld [vmem:[%s7882_s5 + $0x390] sm:$0xff] }
 0x6fc   : > { %v4540_v26 = vld [vmem:[%s7882_s5 + $0x410] sm:$0xff] }
 0x6fd   : > { %4123 = vst.msk [vmem:[#allocation7 + $0x70] sm:$0xff] %vm4027_vm3, %v4107_v60  ;;  %v4619_v45 = vpop.f32.mrf.mxu2 }
 0x6fe   : > { %v4620_v35 = vadd.f32 %v4619_v45, %v4579_v52  ;;  %v4657_v25 = vpop.f32.mrf.mxu3  ;;  %v4581_v54 = vpop.f32.mrf.mxu1  ;;  %v4523_v52 = vld [vmem:[%s7882_s5 + $0x388] sm:$0xff] }
 0x6ff   : > { %v7681_v30 = vadd.f32 %v4657_v25, %v4617_v36  ;;  %4697 = vmatmul.f32.vlgmr.msrb.gmra.mxu1 %v7352_v13  ;;  %v4513_v13 = vld [vmem:[%s7882_s5 + $0x338] sm:$0xff]  ;;  %v4582_v12 = vadd.f32 %v7627_v42, %v4581_v54  ;;  %v4539_v45 = vld [vmem:[%s7882_s5 + $0x408] sm:$0xff] }
 0x700   : > { %4738 = vmatmul.f32.vlgmr.msra.gmra.mxu2 %v7354_v20  ;;  %v4528_v20 = vld [vmem:[%s7882_s5 + $0x3b0] sm:$0xff]  ;;  %4812 = vmatpush.msra.mxu1 %v4513_v13  ;;  %v4538_v13 = vld [vmem:[%s7882_s5 + $0x400] sm:$0xff] }
 0x701   : > { %4779 = vmatmul.f32.vlgmr.msra.gmra.mxu3 %v7367_v14  ;;  %v4544_v14 = vld [vmem:[%s7882_s5 + $0x430] sm:$0xff]  ;;  %4854 = vmatpush.msrb.mxu2 %v4528_v20  ;;  %v4506_v20 = vld [vmem:[%s7882_s5 + $0x300] sm:$0xff] }
 0x702   : > { %v4092_v24 = vld [vmem:[#allocation6 + $0xf8] sm:$0xff]  ;;  %4895 = vmatpush.msrb.mxu3 %v4544_v14  ;;  %4813 = vmatpush.msra.mxu1 %v4512_v5 }
 0x703   : > { %v4108_v51 = vmax.f32 %v4075_v10, %v4092_v24  ;;  %4855 = vmatpush.msrb.mxu2 %v4527_v44 }
 0x704   : > { %4896 = vmatpush.msrb.mxu3 %v4543_v21  ;;  %4814 = vmatpush.msra.mxu1 %v4511_v49 }
 0x705   : > { %4124 = vst.msk [vmem:[#allocation7 + $0x78] sm:$0xff] %vm4027_vm3, %v4108_v51  ;;  %v4622_v53 = vpop.f32.mrf.mxu2  ;;  %4856 = vmatpush.msrb.mxu2 %v4526_v57 }
 0x706   : > { %v4623_v31 = vadd.f32 %v4622_v53, %v4582_v12  ;;  %v4660_v7 = vpop.f32.mrf.mxu3  ;;  %v4584_v47 = vpop.f32.mrf.mxu1  ;;  %4897 = vmatpush.msrb.mxu3 %v4542_v17  ;;  %4815 = vmatpush.msra.mxu1 %v4510_v58 }
 0x707   : > { %v7706_v2 = vadd.f32 %v4660_v7, %v4620_v35  ;;  %4700 = vmatmul.f32.gmra.mxu1 %v7361_v0  ;;  %v4585_v32 = vadd.f32 %v7627_v42, %v4584_v47  ;;  %4857 = vmatpush.msrb.mxu2 %v4525_v6 }
 0x708   : > { %4741 = vmatmul.f32.gmra.mxu2 %v7363_v50  ;;  %4898 = vmatpush.msrb.mxu3 %v4541_v27 }
 0x709   : > { %4782 = vmatmul.f32.gmra.mxu3 %v7379_v43  ;;  %4816 = vmatpush.msra.mxu1 %v4509_v3 }
 0x70a   : > { %4858 = vmatpush.msrb.mxu2 %v4524_v23  ;;  %4899 = vmatpush.msrb.mxu3 %v4540_v26 }
 0x70b   : > { %4817 = vmatpush.msra.mxu1 %v4508_v41 }
 0x70c   : > { %v4139_v34 = vld [vmem:[#allocation7 + $0x70] ss:$2 sm:$0xff]  ;;  %v4155_v29 = vld [vmem:[#allocation7 + $0x71] ss:$2 sm:$0xff]  ;;  %4859 = vmatpush.msrb.mxu2 %v4523_v52  ;;  %4900 = vmatpush.msrb.mxu3 %v4539_v45 }
 0x70d   : > { %v4625_v28 = vpop.f32.mrf.mxu2  ;;  %v4163_v22 = vmax.f32 %v4139_v34, %v4155_v29  ;;  %4818 = vmatpush.msra.mxu1 %v4507_v59 }
 0x70e   : > { %v4626_v36 = vadd.f32 %v4625_v28, %v4585_v32  ;;  %v4663_v18 = vpop.f32.mrf.mxu3  ;;  %4860 = vmatpush.msrb.mxu2 %v4522_v55  ;;  %4901 = vmatpush.msrb.mxu3 %v4538_v13 }
 0x70f   : > { %v7730_v16 = vadd.f32 %v4663_v18, %v4623_v31  ;;  %4703 = vmatmul.f32.gmra.mxu1 %v7373_v11  ;;  %4192 = vst.msk [vmem:[#allocation8 + $0x81] sm:$0xff] %vm4027_vm3, %v4163_v22 }
 0x710   : > { %4744 = vmatmul.f32.gmra.mxu2 %v7375_v39  ;;  %4819 = vmatpush.msra.mxu1 %v4506_v20 }
 0x711   : > { %4785 = vmatmul.f32.gmra.mxu3 %v7385_v56 }
 0x714   : > { %v4587_v60 = vpop.f32.mrf.mxu1 }
 0x715   : > { %v4588_v35 = vadd.f32 %v7627_v42, %v4587_v60 }
 0x716   : > { %v4666_v63 = vpop.f32.mrf.mxu3  ;;  %v4248_v24 = vld [vmem:[#allocation8 + $0x80] sm:$0xff] }
 0x717   : > { %v7754_v8 = vadd.f32 %v4666_v63, %v4626_v36  ;;  %4706 = vmatmul.f32.gmra.mxu1 %v7390_v61  ;;  %v4264_v51 = vld [vmem:[#allocation8 + $0x81] sm:$0xff] }
 0x718   : > { %4747 = vmatmul.f32.gmra.mxu2 %v7392_v37  ;;  %v4280_v12 = vld [vmem:[#allocation8 + $0x82] sm:$0xff] }
 0x719   : > { %4788 = vmatmul.f32.gmra.mxu3 %v7396_v1 }
 0x71b   : > { %v4628_v25 = vpop.f32.mrf.mxu2 }
 0x71c   : > { %v4629_v54 = vadd.f32 %v4628_v25, %v4588_v35 }
 0x71e   : > { %v4669_v46 = vpop.f32.mrf.mxu3 }
 0x71f   : > { %v7781_v14 = vadd.f32 %v4669_v46, %v4629_v54  ;;  %4709 = vmatmul.f32.gmra.mxu1 %v7443_v9 }
 0x720   : > { %4750 = vmatmul.f32.gmra.mxu2 %v7445_v4 }
 0x721   : > { %4791 = vmatmul.f32.gmra.mxu3 %v7447_v40 }
 0x727   : > { %4712 = vmatmul.f32.gmra.mxu1 %v7535_v48 }
 0x728   : > { %4753 = vmatmul.f32.gmra.mxu2 %v7537_v19 }
 0x729   : > { %4794 = vmatmul.f32.gmra.mxu3 %v7539_v15 }
 0x72f   : > { %4715 = vmatmul.f32.gmra.mxu1 %v7651_v38 }
 0x730   : > { %4756 = vmatmul.f32.gmra.mxu2 %v7653_v62 }
 0x731   : > { %4797 = vmatmul.f32.gmra.mxu3 %v7655_v33 }
 0x734   : > { %v4590_v10 = vpop.f32.mrf.mxu1 }
 0x735   : > { %v4591_v53 = vadd.f32 %v7627_v42, %v4590_v10 }
 0x737   : > { %4718 = vmatmul.f32.gmra.mxu1 %v4248_v24 }
 0x738   : > { %4759 = vmatmul.f32.gmra.mxu2 %v4264_v51 }
 0x739   : > { %4800 = vmatmul.f32.gmra.mxu3 %v4280_v12 }
 0x73b   : > { %v4631_v31 = vpop.f32.mrf.mxu2 }
 0x73c   : > { %v4632_v7 = vadd.f32 %v4631_v31, %v4591_v53  ;;  %v4672_v5 = vpop.f32.mrf.mxu3 }
 0x73e   : > { %v7793_v44 = vadd.f32 %v4672_v5, %v4632_v7 }
 0x73f   : > { %4820 = vmatmul.f32.vlgmr.msra.gmra.mxu1 %v7361_v0 }
 0x740   : > { %4861 = vmatmul.f32.vlgmr.msrb.gmra.mxu2 %v7363_v50 }
 0x741   : > { %4902 = vmatmul.f32.vlgmr.msrb.gmra.mxu3 %v7379_v43 }
 0x747   : > { %4823 = vmatmul.f32.gmra.mxu1 %v7373_v11 }
 0x748   : > { %4864 = vmatmul.f32.gmra.mxu2 %v7375_v39 }
 0x749   : > { %4905 = vmatmul.f32.gmra.mxu3 %v7385_v56 }
 0x74f   : > { %4826 = vmatmul.f32.gmra.mxu1 %v7390_v61  ;;  %v4313_v61 = vld [vmem:[#allocation8 + $0x91] sm:$0xff] }
 0x750   : > { %4867 = vmatmul.f32.gmra.mxu2 %v7392_v37  ;;  %v4329_v37 = vld [vmem:[#allocation8 + $0x92] sm:$0xff] }
 0x751   : > { %4908 = vmatmul.f32.gmra.mxu3 %v7396_v1  ;;  %v5241_v1 = vld [vmem:[#allocation4] sm:$0xff] }
 0x754   : > { %v4593_v21 = vpop.f32.mrf.mxu1 }
 0x755   : > { %v4594_v0 = vadd.f32 %v7627_v42, %v4593_v21 }
 0x757   : > { %4829 = vmatmul.f32.gmra.mxu1 %v7443_v9 }
 0x758   : > { %4870 = vmatmul.f32.gmra.mxu2 %v7445_v4 }
 0x759   : > { %4911 = vmatmul.f32.gmra.mxu3 %v7447_v40 }
 0x75b   : > { %v4634_v50 = vpop.f32.mrf.mxu2 }
 0x75c   : > { %v4635_v11 = vadd.f32 %v4634_v50, %v4594_v0  ;;  %v4675_v39 = vpop.f32.mrf.mxu3 }
 0x75e   : > { %v4676_v43 = vadd.f32 %v4675_v39, %v4635_v11 }
 0x75f   : > { %4832 = vmatmul.f32.gmra.mxu1 %v7535_v48 }
 0x760   : > { %4873 = vmatmul.f32.gmra.mxu2 %v7537_v19 }
 0x761   : > { %4914 = vmatmul.f32.gmra.mxu3 %v7539_v15 }
 0x767   : > { %4835 = vmatmul.f32.gmra.mxu1 %v7651_v38 }
 0x768   : > { %4876 = vmatmul.f32.gmra.mxu2 %v7653_v62 }
 0x769   : > { %4917 = vmatmul.f32.gmra.mxu3 %v7655_v33 }
 0x76f   : > { %4838 = vmatmul.f32.gmra.mxu1 %v4248_v24 }
 0x770   : > { %4879 = vmatmul.f32.gmra.mxu2 %v4264_v51 }
 0x771   : > { %4920 = vmatmul.f32.gmra.mxu3 %v4280_v12 }
 0x774   : > { %v4596_v56 = vpop.f32.mrf.mxu1 }
 0x775   : > { %v4597_v9 = vadd.f32 %v7627_v42, %v4596_v56 }
 0x777   : > { %4841 = vmatmul.f32.gmra.mxu1 %v5241_v1 }
 0x778   : > { %4882 = vmatmul.f32.gmra.mxu2 %v4313_v61 }
 0x779   : > { %4923 = vmatmul.f32.gmra.mxu3 %v4329_v37 }
 0x77b   : > { %v4637_v4 = vpop.f32.mrf.mxu2 }
 0x77c   : > { %v4638_v40 = vadd.f32 %v4637_v4, %v4597_v9  ;;  %v4678_v48 = vpop.f32.mrf.mxu3  ;;  %v4698_v19 = vpop.f32.mrf.mxu1 }
 0x77d   : > { %v4699_v38 = vadd.f32 %v4698_v19, %v7681_v30 }
 0x77e   : > { %v7815_v15 = vadd.f32 %v4678_v48, %v4638_v40 }
 0x783   : > { %v4739_v62 = vpop.f32.mrf.mxu2 }
 0x784   : > { %v4740_v33 = vadd.f32 %v4739_v62, %v4699_v38  ;;  %v4780_v47 = vpop.f32.mrf.mxu3  ;;  %v4701_v49 = vpop.f32.mrf.mxu1 }
 0x786   : > { %v4781_v57 = vadd.f32 %v4780_v47, %v4740_v33 }
 0x78b   : > { %v4742_v17 = vpop.f32.mrf.mxu2 }
 0x78c   : > { %v4783_v32 = vpop.f32.mrf.mxu3  ;;  %v4704_v34 = vpop.f32.mrf.mxu1 }
 0x78d   : > { %v4705_v29 = vadd.f32 %v4704_v34, %v7730_v16 }
 0x793   : > { %v4745_v28 = vpop.f32.mrf.mxu2 }
 0x794   : > { %v4746_v42 = vadd.f32 %v4745_v28, %v4705_v29  ;;  %v4786_v22 = vpop.f32.mrf.mxu3  ;;  %v4707_v36 = vpop.f32.mrf.mxu1 }
 0x795   : > { %v4708_v37 = vadd.f32 %v4707_v36, %v7754_v8 }
 0x796   : > { %v4787_v18 = vadd.f32 %v4786_v22, %v4746_v42 }
 0x79b   : > { %v4748_v58 = vpop.f32.mrf.mxu2 }
 0x79c   : > { %v4789_v6 = vpop.f32.mrf.mxu3  ;;  %v4710_v27 = vpop.f32.mrf.mxu1  ;;  %v4749_v9 = vadd.f32 %v4748_v58, %v4708_v37 }
 0x79d   : > { %v4711_v30 = vadd.f32 %v4710_v27, %v7781_v14  ;;  %v4702_v14 = vadd.f32 %v4701_v49, %v7706_v2 }
 0x79e   : > { %v4790_v19 = vadd.f32 %v4789_v6, %v4749_v9 }
 0x79f   : > { %v4743_v24 = vadd.f32 %v4742_v17, %v4702_v14 }
 0x7a1   : > { %v4784_v31 = vadd.f32 %v4783_v32, %v4743_v24 }
 0x7a3   : > { %v4751_v3 = vpop.f32.mrf.mxu2 }
 0x7a4   : > { %v4752_v23 = vadd.f32 %v4751_v3, %v4711_v30  ;;  %v4792_v26 = vpop.f32.mrf.mxu3  ;;  %v4713_v60 = vpop.f32.mrf.mxu1 }
 0x7a5   : > { %v4714_v8 = vadd.f32 %v4713_v60, %v7793_v44 }
 0x7a6   : > { %v4793_v63 = vadd.f32 %v4792_v26, %v4752_v23 }
 0x7ab   : > { %v4754_v41 = vpop.f32.mrf.mxu2 }
 0x7ac   : > { %v4795_v52 = vpop.f32.mrf.mxu3  ;;  %v4716_v45 = vpop.f32.mrf.mxu1  ;;  %v4755_v22 = vadd.f32 %v4754_v41, %v4714_v8 }
 0x7ad   : > { %v4717_v35 = vadd.f32 %v4716_v45, %v4676_v43 }
 0x7ae   : > { %v4796_v6 = vadd.f32 %v4795_v52, %v4755_v22 }
 0x7b3   : > { %v4757_v16 = vpop.f32.mrf.mxu2 }
 0x7b4   : > { %v4758_v25 = vadd.f32 %v4757_v16, %v4717_v35  ;;  %v4798_v54 = vpop.f32.mrf.mxu3  ;;  %v7820_v59 = vpop.f32.mrf.mxu1 }
 0x7b5   : > { %v4720_v41 = vadd.f32 %v7820_v59, %v7815_v15 }
 0x7b6   : > { %v7822_v55 = vadd.f32 %v4798_v54, %v4758_v25 }
 0x7bb   : > { %v7824_v46 = vpop.f32.mrf.mxu2 }
 0x7bc   : > { %v7826_v13 = vpop.f32.mrf.mxu3  ;;  %v4821_v20 = vpop.f32.mrf.mxu1  ;;  %v4761_v52 = vadd.f32 %v7824_v46, %v4720_v41 }
 0x7bd   : > { %v4822_v53 = vadd.f32 %v4821_v20, %v4781_v57 }
 0x7c3   : > { %v4862_v10 = vpop.f32.mrf.mxu2 }
 0x7c4   : > { %v4903_v51 = vpop.f32.mrf.mxu3  ;;  %v4824_v12 = vpop.f32.mrf.mxu1  ;;  %v4863_v7 = vadd.f32 %v4862_v10, %v4822_v53 }
 0x7c5   : > { %v4825_v5 = vadd.f32 %v4824_v12, %v4784_v31  ;;  %v4802_v12 = vadd.f32 %v7826_v13, %v4761_v52 }
 0x7c6   : > { %v4904_v0 = vadd.f32 %v4903_v51, %v4863_v7 }
 0x7c8   : > { %v4927_v56 = vmax.f32 %v4904_v0, 0.0 }
 0x7cb   : > { %v4865_v21 = vpop.f32.mrf.mxu2 }
 0x7cc   : > { %v4866_v50 = vadd.f32 %v4865_v21, %v4825_v5  ;;  %v4906_v11 = vpop.f32.mrf.mxu3  ;;  %v4827_v39 = vpop.f32.mrf.mxu1 }
 0x7cd   : > { %v4828_v48 = vadd.f32 %v4827_v39, %v4787_v18 }
 0x7ce   : > { %v4907_v43 = vadd.f32 %v4906_v11, %v4866_v50 }
 0x7d0   : > { %v4928_v61 = vmax.f32 %v4907_v43, 0.0 }
 0x7d2   : > { %v4952_v1 = vmax.f32 %v4927_v56, %v4928_v61 }
 0x7d3   : > { %v4868_v2 = vpop.f32.mrf.mxu2 }
 0x7d4   : > { %4956 = vst [vmem:[#allocation11] sm:$0xff] %v4952_v1  ;;  %v4909_v4 = vpop.f32.mrf.mxu3  ;;  %v4830_v40 = vpop.f32.mrf.mxu1  ;;  %v4869_v38 = vadd.f32 %v4868_v2, %v4828_v48 }
 0x7d5   : > { %v4831_v62 = vadd.f32 %v4830_v40, %v4790_v19 }
 0x7d6   : > { %v4910_v47 = vadd.f32 %v4909_v4, %v4869_v38 }
 0x7d8   : > { %v4929_v34 = vmax.f32 %v4910_v47, 0.0 }
 0x7db   : > { %v4871_v33 = vpop.f32.mrf.mxu2 }
 0x7dc   : > { %v4872_v49 = vadd.f32 %v4871_v33, %v4831_v62  ;;  %v4912_v57 = vpop.f32.mrf.mxu3  ;;  %v4833_v17 = vpop.f32.mrf.mxu1 }
 0x7dd   : > { %v4834_v18 = vadd.f32 %v4833_v17, %v4793_v63 }
 0x7de   : > { %v4913_v32 = vadd.f32 %v4912_v57, %v4872_v49 }
 0x7e0   : > { %v4930_v29 = vmax.f32 %v4913_v32, 0.0 }
 0x7e2   : > { %v4953_v28 = vmax.f32 %v4929_v34, %v4930_v29 }
 0x7e3   : > { %v4874_v42 = vpop.f32.mrf.mxu2 }
 0x7e4   : > { %4957 = vst [vmem:[#allocation11 + $0x8] sm:$0xff] %v4953_v28  ;;  %v4915_v36 = vpop.f32.mrf.mxu3  ;;  %v4836_v58 = vpop.f32.mrf.mxu1  ;;  %v4875_v27 = vadd.f32 %v4874_v42, %v4834_v18 }
 0x7e5   : > { %v4837_v30 = vadd.f32 %v4836_v58, %v4796_v6 }
 0x7e6   : > { %v4916_v45 = vadd.f32 %v4915_v36, %v4875_v27 }
 0x7e8   : > { %v4931_v44 = vmax.f32 %v4916_v45, 0.0 }
 0x7eb   : > { %v4877_v3 = vpop.f32.mrf.mxu2  ;;  %v4960_v23 = vld [vmem:[#allocation11] ss:$2 sm:$0xff]  ;;  %v4964_v26 = vld [vmem:[#allocation11 + $0x1] ss:$2 sm:$0xff] }
 0x7ec   : > { %v4878_v35 = vadd.f32 %v4877_v3, %v4837_v30  ;;  %v4918_v16 = vpop.f32.mrf.mxu3  ;;  %v4967_v25 = vmax.f32 %v4960_v23, %v4964_v26  ;;  %v4839_v54 = vpop.f32.mrf.mxu1 }
 0x7ed   : > { %v4840_v24 = vadd.f32 %v4839_v54, %v7822_v55 }
 0x7ee   : > { %v4919_v20 = vadd.f32 %v4918_v16, %v4878_v35  ;;  %4969 = vxpose.xlu0.b32.start [1/2] (short) %v4967_v25, 128 }
 0x7f0   : > { %v4932_v60 = vmax.f32 %v4919_v20, 0.0 }
 0x7f2   : > { %v4954_v14 = vmax.f32 %v4931_v44, %v4932_v60 }
 0x7f3   : > { %v4880_v63 = vpop.f32.mrf.mxu2 }
 0x7f4   : > { %4958 = vst [vmem:[#allocation11 + $0x10] sm:$0xff] %v4954_v14  ;;  %v4921_v10 = vpop.f32.mrf.mxu3  ;;  %v4842_v51 = vpop.f32.mrf.mxu1  ;;  %v4881_v53 = vadd.f32 %v4880_v63, %v4840_v24 }
 0x7f5   : > { %v4843_v31 = vadd.f32 %v4842_v51, %v4802_v12 }
 0x7f6   : > { %v4922_v5 = vadd.f32 %v4921_v10, %v4881_v53 }
 0x7f8   : > { %v4933_v15 = vmax.f32 %v4922_v5, 0.0 }
 0x7fb   : > { %v4883_v7 = vpop.f32.mrf.mxu2 }
 0x7fc   : > { %v4884_v21 = vadd.f32 %v4883_v7, %v4843_v31  ;;  %v4924_v0 = vpop.f32.mrf.mxu3 }
 0x7fe   : > { %v4925_v50 = vadd.f32 %v4924_v0, %v4884_v21 }
 0x800   : > { %v4934_v59 = vmax.f32 %v4925_v50, 0.0 }
 0x802   : > { %v4955_v11 = vmax.f32 %v4933_v15, %v4934_v59 }
 0x804   : > { %4959 = vst [vmem:[#allocation11 + $0x18] sm:$0xff] %v4955_v11 }
 0x80b   : > { %v4962_v46 = vld [vmem:[#allocation11 + $0x10] ss:$2 sm:$0xff]  ;;  %v4966_v39 = vld [vmem:[#allocation11 + $0x11] ss:$2 sm:$0xff] }
 0x80c   : > { %v4968_v43 = vmax.f32 %v4962_v46, %v4966_v39 }
 0x80e   : > { %4970 = vxpose.xlu0.b32.end [2/2] (short) %v4968_v43, 128 }
 0x8aa   : > { %v4985_v55 = vpop.trf.xlu0 }
 0x8ab   : > { %5002 = vst.msk [vmem:[%s7840_s27] sm:$0xff] %vm5001_vm4, %v4985_v55 }
 0x8b2   : > { %v4986_v13 = vpop.trf.xlu0 }
 0x8b3   : > { %5003 = vst.msk [vmem:[%s7840_s27 + $0x8] sm:$0xff] %vm5001_vm4, %v4986_v13 }
 0x8ba   : > { %v4987_v56 = vpop.trf.xlu0 }
 0x8bb   : > { %5004 = vst.msk [vmem:[%s7840_s27 + $0x10] sm:$0xff] %vm5001_vm4, %v4987_v56 }
 0x8c2   : > { %v4988_v61 = vpop.trf.xlu0 }
 0x8c3   : > { %5005 = vst.msk [vmem:[%s7840_s27 + $0x18] sm:$0xff] %vm5001_vm4, %v4988_v61 }
 0x8ca   : > { %v4989_v37 = vpop.trf.xlu0 }
 0x8cb   : > { %5006 = vst.msk [vmem:[%s7840_s27 + $0x20] sm:$0xff] %vm5001_vm4, %v4989_v37 }
 0x8d2   : > { %v4990_v1 = vpop.trf.xlu0 }
 0x8d3   : > { %5007 = vst.msk [vmem:[%s7840_s27 + $0x28] sm:$0xff] %vm5001_vm4, %v4990_v1 }
 0x8da   : > { %v4991_v2 = vpop.trf.xlu0 }
 0x8db   : > { %5008 = vst.msk [vmem:[%s7840_s27 + $0x30] sm:$0xff] %vm5001_vm4, %v4991_v2 }
 0x8e2   : > { %v4992_v9 = vpop.trf.xlu0 }
 0x8e3   : > { %5009 = vst.msk [vmem:[%s7840_s27 + $0x38] sm:$0xff] %vm5001_vm4, %v4992_v9 }
 0x8ea   : > { %v4993_v4 = vpop.trf.xlu0 }
 0x8eb   : > { %5010 = vst.msk [vmem:[%s7840_s27 + $0x40] sm:$0xff] %vm5001_vm4, %v4993_v4 }
 0x8f2   : > { %v4994_v40 = vpop.trf.xlu0 }
 0x8f3   : > { %5011 = vst.msk [vmem:[%s7840_s27 + $0x48] sm:$0xff] %vm5001_vm4, %v4994_v40 }
 0x8fa   : > { %v4995_v48 = vpop.trf.xlu0 }
 0x8fb   : > { %5012 = vst.msk [vmem:[%s7840_s27 + $0x50] sm:$0xff] %vm5001_vm4, %v4995_v48 }
 0x902   : > { %v4996_v19 = vpop.trf.xlu0 }
 0x903   : > { %5013 = vst.msk [vmem:[%s7840_s27 + $0x58] sm:$0xff] %vm5001_vm4, %v4996_v19 }
 0x90a   : > { %v4997_v38 = vpop.trf.xlu0 }
 0x90b   : > { %5014 = vst.msk [vmem:[%s7840_s27 + $0x60] sm:$0xff] %vm5001_vm4, %v4997_v38 }
 0x912   : > { %v4998_v62 = vpop.trf.xlu0 }
 0x913   : > { %5015 = vst.msk [vmem:[%s7840_s27 + $0x68] sm:$0xff] %vm5001_vm4, %v4998_v62 }
 0x91a   : > { %v4999_v33 = vpop.trf.xlu0 }
 0x91b   : > { %5016 = vst.msk [vmem:[%s7840_s27 + $0x70] sm:$0xff] %vm5001_vm4, %v4999_v33 }
 0x922   : > { %v5000_v47 = vpop.trf.xlu0 }
 0x923   : > { %5017 = vst.msk [vmem:[%s7840_s27 + $0x78] sm:$0xff] %vm5001_vm4, %v5000_v47 }
 0x924 PF: > { %s17_s24 = sadd.s32 1, %s5248_s24  }
 0x925   : > { %p14_p4 = scmp.ge.s32.totalorder %s17_s24, 4  }
 0x927   :  { %16 = sbr.rel (!%p14_p4) target bundleno = 1 (0x1), region = 166 }

</bundles_post_ra>
